<compile_context>
chip_gen: v6e
topology: v6e:2x2x1
jax: 0.10.0
libtpu: 0.0.40
codegen_flags: <defaults>
</compile_context>

<pallas_src>
import jax
import jax.numpy as jnp
from jax.experimental import pallas as pl
from jax.experimental.pallas import tpu as pltpu

_MEAN = (0.48235, 0.45882, 0.40784)
_INV_STD = 1.0 / 0.00392156862745098  # = 255.0
_CIN0 = 8  # input channels padded 3 -> 8 (zero channels / zero weights) for a sane MXU K


def _round_up(x, m):
    return (x + m - 1) // m * m


def _conv3x3_relu_bands(src_ref, w_ref, b_ref, lmask_ref, rmask_ref,
                        H, W, pad_off, band, store_fn):
    """3x3 conv (stride 1, zero pad 1) + bias + ReLU.

    src_ref holds the input activation flattened to (H*W, Cin) f32 at row offset
    `pad_off` inside a zero-filled buffer, so every tap (kh, kw) is the contiguous
    static slice starting at pad_off + kh*W + kw.  Left/right column masks zero the
    rows where a kw=+-1 tap would wrap into the neighbouring image row.
    Results are produced in `band`-row chunks and handed to store_fn(r0, res_f32).
    """
    HW = H * W
    cout = w_ref.shape[2]
    for r0 in range(0, HW, band):
        lm = lmask_ref[pl.ds(r0, band), :]   # (band, 1) f32, 1.0 iff column w > 0
        rm = rmask_ref[pl.ds(r0, band), :]   # (band, 1) f32, 1.0 iff column w < W-1
        acc = jnp.zeros((band, cout), jnp.float32)
        for kh in (-1, 0, 1):
            for kw in (-1, 0, 1):
                tap = (kh + 1) * 3 + (kw + 1)
                start = pad_off + r0 + kh * W + kw            # static slice start
                patch = src_ref[pl.ds(start, band), :]        # (band, Cin) f32
                if kw == -1:
                    patch = patch * lm
                elif kw == 1:
                    patch = patch * rm
                acc = acc + jnp.dot(patch.astype(jnp.bfloat16), w_ref[tap],
                                    preferred_element_type=jnp.float32)
        store_fn(r0, jnp.maximum(acc + b_ref[...], 0.0))


def _make_fused_kernel(H, W):
    HW = H * W
    Hh, Wh = H // 2, W // 2
    HW2 = Hh * Wh
    PAD1 = _round_up(W + 1, 8)      # halo rows before/after the 16x16 feature maps
    PAD2 = _round_up(Wh + 1, 8)     # halo rows before/after the 8x8 feature maps
    BAND1 = 128 if HW % 128 == 0 else HW
    BAND2 = 128 if HW2 % 128 == 0 else HW2

    def kernel(mean_ref, l1_ref, r1_ref, l2_ref, r2_ref, x_ref,
               w0_ref, b0_ref, w2_ref, b2_ref, w5_ref, b5_ref, w7_ref, b7_ref,
               o_ref, p0, p1, a2, p2, p3):
        # Halo'd buffers must read 0.0 in their pad rows (zero padding semantics).
        p0[...] = jnp.zeros_like(p0)
        p1[...] = jnp.zeros_like(p1)
        p2[...] = jnp.zeros_like(p2)
        p3[...] = jnp.zeros_like(p3)

        # Normalize fused into the input load: (x - mean) / std, straight into VMEM.
        p0[pl.ds(PAD1, HW), :] = (x_ref[0] - mean_ref[...]) * _INV_STD

        # conv0: 3(->8 padded) -> 64
        def store_p1(r0, res):
            p1[pl.ds(PAD1 + r0, res.shape[0]), :] = res
        _conv3x3_relu_bands(p0, w0_ref, b0_ref, l1_ref, r1_ref,
                            H, W, PAD1, BAND1, store_p1)

        # conv2: 64 -> 64
        def store_a2(r0, res):
            a2[pl.ds(r0, res.shape[0]), :] = res
        _conv3x3_relu_bands(p1, w2_ref, b2_ref, l1_ref, r1_ref,
                            H, W, PAD1, BAND1, store_a2)

        # MaxPool 2x2 stride 2, written directly into conv5's halo'd buffer.
        for i in range(Hh):
            e0 = a2[pl.ds((2 * i) * W, Wh, stride=2), :]          # (2i,   even cols)
            o0 = a2[pl.ds((2 * i) * W + 1, Wh, stride=2), :]      # (2i,   odd  cols)
            e1 = a2[pl.ds((2 * i + 1) * W, Wh, stride=2), :]      # (2i+1, even cols)
            o1 = a2[pl.ds((2 * i + 1) * W + 1, Wh, stride=2), :]  # (2i+1, odd  cols)
            p2[pl.ds(PAD2 + i * Wh, Wh), :] = jnp.maximum(jnp.maximum(e0, o0),
                                                          jnp.maximum(e1, o1))

        # conv5: 64 -> 128
        def store_p3(r0, res):
            p3[pl.ds(PAD2 + r0, res.shape[0]), :] = res
        _conv3x3_relu_bands(p2, w5_ref, b5_ref, l2_ref, r2_ref,
                            Hh, Wh, PAD2, BAND2, store_p3)

        # conv7: 128 -> 128, stored lane-dense (128 channels) straight to the output.
        def store_out(r0, res):
            o_ref[0, pl.ds(r0, res.shape[0]), :] = res.astype(o_ref.dtype)
        _conv3x3_relu_bands(p3, w7_ref, b7_ref, l2_ref, r2_ref,
                            Hh, Wh, PAD2, BAND2, store_out)

    scratch = [
        pltpu.VMEM((2 * PAD1 + HW, _CIN0), jnp.float32),   # p0: normalized input
        pltpu.VMEM((2 * PAD1 + HW, 64), jnp.float32),      # p1: conv0 output
        pltpu.VMEM((HW, 64), jnp.float32),                 # a2: conv2 output
        pltpu.VMEM((2 * PAD2 + HW2, 64), jnp.float32),     # p2: pooled
        pltpu.VMEM((2 * PAD2 + HW2, 128), jnp.float32),    # p3: conv5 output
    ]
    return kernel, scratch


def _column_masks(H, W):
    cols = jnp.arange(H * W, dtype=jnp.int32) % W
    left = (cols > 0).astype(jnp.float32).reshape(H * W, 1)
    right = (cols < W - 1).astype(jnp.float32).reshape(H * W, 1)
    return left, right


def vgg_features_pallas(x_nchw, params):
    n, c, h, w = x_nchw.shape
    assert c == 3 and h % 2 == 0 and w % 2 == 0
    hh, wh = h // 2, w // 2

    kernel, scratch = _make_fused_kernel(h, w)

    # NCHW -> flattened NHWC (tiny, one-time); pad 3 channels -> _CIN0 zero channels.
    x_flat = jnp.transpose(x_nchw, (0, 2, 3, 1)).astype(jnp.float32).reshape(n, h * w, 3)
    x_flat = jnp.pad(x_flat, ((0, 0), (0, 0), (0, _CIN0 - 3)))
    mean = jnp.concatenate([jnp.asarray(_MEAN, jnp.float32),
                            jnp.zeros((_CIN0 - 3,), jnp.float32)]).reshape(1, _CIN0)
    l1, r1 = _column_masks(h, w)
    l2, r2 = _column_masks(hh, wh)
    w0, b0 = params["conv0"]
    w2, b2 = params["conv2"]
    w5, b5 = params["conv5"]
    w7, b7 = params["conv7"]

    def whole(arr):
        nd = arr.ndim
        return pl.BlockSpec(arr.shape, lambda b, nd=nd: (0,) * nd)

    feats = pl.pallas_call(
        kernel,
        out_shape=jax.ShapeDtypeStruct((n, hh * wh, 128), jnp.float32),
        grid_spec=pltpu.PrefetchScalarGridSpec(
            num_scalar_prefetch=0,
            grid=(n,),
            in_specs=[
                whole(mean), whole(l1), whole(r1), whole(l2), whole(r2),
                pl.BlockSpec((1, h * w, _CIN0), lambda b: (b, 0, 0)),
                whole(w0), whole(b0), whole(w2), whole(b2),
                whole(w5), whole(b5), whole(w7), whole(b7),
            ],
            out_specs=pl.BlockSpec((1, hh * wh, 128), lambda b: (b, 0, 0)),
            scratch_shapes=scratch,
        ),
        compiler_params=pltpu.CompilerParams(dimension_semantics=("parallel",)),
    )(mean, l1, r1, l2, r2, x_flat, w0, b0, w2, b2, w5, b5, w7, b7)

    # (N, Hh*Wh, 128) -> NCHW (N, 128, Hh, Wh), like the PyTorch module.
    return jnp.transpose(feats.reshape(n, hh, wh, 128), (0, 3, 1, 2))


def make_conv_params(key, cin, cout, cin_pad=None):
    # TODO(synk): pretrained IMAGENET1K_V1 VGG16 weights cannot be loaded here (no
    # file/network access); deterministic synthetic weights keep identical shapes.
    kw_, kb_ = jax.random.split(key)
    w_oihw = jax.random.normal(kw_, (cout, cin, 3, 3), jnp.float32) / jnp.sqrt(cin * 9.0)
    b = 0.01 * jax.random.normal(kb_, (cout,), jnp.float32)
    w = jnp.transpose(w_oihw, (2, 3, 1, 0)).reshape(9, cin, cout)  # (tap, Cin, Cout)
    if cin_pad is not None and cin_pad > cin:
        w = jnp.pad(w, ((0, 0), (0, cin_pad - cin), (0, 0)))
    return w.astype(jnp.bfloat16), b.reshape(1, cout)


def init_params(key):
    k0, k2, k5, k7 = jax.random.split(key, 4)
    return {
        "conv0": make_conv_params(k0, 3, 64, cin_pad=_CIN0),
        "conv2": make_conv_params(k2, 64, 64),
        "conv5": make_conv_params(k5, 64, 128),
        "conv7": make_conv_params(k7, 128, 128),
    }


vgg_loss_forward = jax.jit(vgg_features_pallas)


if __name__ == "__main__":
    key = jax.random.PRNGKey(0)
    k_in, k_par = jax.random.split(key)
    # Small input consistent with the module: batch=2, RGB, 16x16 images in [0, 1].
    x = jax.random.uniform(k_in, (2, 3, 16, 16), dtype=jnp.float32)
    params = init_params(k_par)

    out = jax.block_until_ready(vgg_loss_forward(x, params))
    assert out.shape == (2, 128, 8, 8), out.shape
    assert bool(jnp.all(jnp.isfinite(out)))
    print("KERNEL_OK")
</pallas_src>

<mosaic_0001>
module attributes {stable_mosaic.version = 11 : i64} {
  func.func @kernel(%arg0: i32, %arg1: memref<1x8xf32, #tpu.memory_space<vmem>>, %arg2: memref<256x1xf32, #tpu.memory_space<vmem>>, %arg3: memref<256x1xf32, #tpu.memory_space<vmem>>, %arg4: memref<64x1xf32, #tpu.memory_space<vmem>>, %arg5: memref<64x1xf32, #tpu.memory_space<vmem>>, %arg6: memref<1x256x8xf32, #tpu.memory_space<vmem>>, %arg7: memref<9x8x64xbf16, #tpu.memory_space<vmem>>, %arg8: memref<1x64xf32, #tpu.memory_space<vmem>>, %arg9: memref<9x64x64xbf16, #tpu.memory_space<vmem>>, %arg10: memref<1x64xf32, #tpu.memory_space<vmem>>, %arg11: memref<9x64x128xbf16, #tpu.memory_space<vmem>>, %arg12: memref<1x128xf32, #tpu.memory_space<vmem>>, %arg13: memref<9x128x128xbf16, #tpu.memory_space<vmem>>, %arg14: memref<1x128xf32, #tpu.memory_space<vmem>>, %arg15: memref<1x64x128xf32, #tpu.memory_space<vmem>>, %arg16: memref<304x8xf32, #tpu.memory_space<vmem>>, %arg17: memref<304x64xf32, #tpu.memory_space<vmem>>, %arg18: memref<256x64xf32, #tpu.memory_space<vmem>>, %arg19: memref<96x64xf32, #tpu.memory_space<vmem>>, %arg20: memref<96x128xf32, #tpu.memory_space<vmem>>) attributes {dimension_semantics = [#tpu.dimension_semantics<parallel>], iteration_bounds = array<i64: 2>, scalar_prefetch = 0 : i64, scratch_operands = 5 : i64, tpu.core_type = #tpu.core_type<tc>, window_params = [{pipeline_mode = #tpu.pipeline_mode<synchronous>, transform_indices = @transform_0, window_bounds = array<i64: 1, 8>}, {pipeline_mode = #tpu.pipeline_mode<synchronous>, transform_indices = @transform_1, window_bounds = array<i64: 256, 1>}, {pipeline_mode = #tpu.pipeline_mode<synchronous>, transform_indices = @transform_2, window_bounds = array<i64: 256, 1>}, {pipeline_mode = #tpu.pipeline_mode<synchronous>, transform_indices = @transform_3, window_bounds = array<i64: 64, 1>}, {pipeline_mode = #tpu.pipeline_mode<synchronous>, transform_indices = @transform_4, window_bounds = array<i64: 64, 1>}, {transform_indices = @transform_5, window_bounds = array<i64: 1, 256, 8>}, {pipeline_mode = #tpu.pipeline_mode<synchronous>, transform_indices = @transform_6, window_bounds = array<i64: 9, 8, 64>}, {pipeline_mode = #tpu.pipeline_mode<synchronous>, transform_indices = @transform_7, window_bounds = array<i64: 1, 64>}, {pipeline_mode = #tpu.pipeline_mode<synchronous>, transform_indices = @transform_8, window_bounds = array<i64: 9, 64, 64>}, {pipeline_mode = #tpu.pipeline_mode<synchronous>, transform_indices = @transform_9, window_bounds = array<i64: 1, 64>}, {pipeline_mode = #tpu.pipeline_mode<synchronous>, transform_indices = @transform_10, window_bounds = array<i64: 9, 64, 128>}, {pipeline_mode = #tpu.pipeline_mode<synchronous>, transform_indices = @transform_11, window_bounds = array<i64: 1, 128>}, {pipeline_mode = #tpu.pipeline_mode<synchronous>, transform_indices = @transform_12, window_bounds = array<i64: 9, 128, 128>}, {pipeline_mode = #tpu.pipeline_mode<synchronous>, transform_indices = @transform_13, window_bounds = array<i64: 1, 128>}, {transform_indices = @transform_14, window_bounds = array<i64: 1, 64, 128>}]} {
    %cst = arith.constant 0.000000e+00 : f32
    %0 = vector.broadcast %cst : f32 to vector<304x8xf32>
    %c0 = arith.constant 0 : index
    %c0_0 = arith.constant 0 : index
    %1 = vector.load %arg16[%c0, %c0_0] : memref<304x8xf32, #tpu.memory_space<vmem>>, vector<304x8xf32>
    tpu.vector_store %arg16[%c0, %c0_0], %0 {strides = array<i32>} : memref<304x8xf32, #tpu.memory_space<vmem>>, vector<304x8xf32>,
    %cst_1 = arith.constant 0.000000e+00 : f32
    %2 = vector.broadcast %cst_1 : f32 to vector<304x64xf32>
    %c0_2 = arith.constant 0 : index
    %c0_3 = arith.constant 0 : index
    %3 = vector.load %arg17[%c0_2, %c0_3] : memref<304x64xf32, #tpu.memory_space<vmem>>, vector<304x64xf32>
    tpu.vector_store %arg17[%c0_2, %c0_3], %2 {strides = array<i32>} : memref<304x64xf32, #tpu.memory_space<vmem>>, vector<304x64xf32>,
    %cst_4 = arith.constant 0.000000e+00 : f32
    %4 = vector.broadcast %cst_4 : f32 to vector<96x64xf32>
    %c0_5 = arith.constant 0 : index
    %c0_6 = arith.constant 0 : index
    %5 = vector.load %arg19[%c0_5, %c0_6] : memref<96x64xf32, #tpu.memory_space<vmem>>, vector<96x64xf32>
    tpu.vector_store %arg19[%c0_5, %c0_6], %4 {strides = array<i32>} : memref<96x64xf32, #tpu.memory_space<vmem>>, vector<96x64xf32>,
    %cst_7 = arith.constant 0.000000e+00 : f32
    %6 = vector.broadcast %cst_7 : f32 to vector<96x128xf32>
    %c0_8 = arith.constant 0 : index
    %c0_9 = arith.constant 0 : index
    %7 = vector.load %arg20[%c0_8, %c0_9] : memref<96x128xf32, #tpu.memory_space<vmem>>, vector<96x128xf32>
    tpu.vector_store %arg20[%c0_8, %c0_9], %6 {strides = array<i32>} : memref<96x128xf32, #tpu.memory_space<vmem>>, vector<96x128xf32>,
    %c0_10 = arith.constant 0 : index
    %c0_11 = arith.constant 0 : index
    %c0_12 = arith.constant 0 : index
    %8 = vector.load %arg6[%c0_10, %c0_11, %c0_12] : memref<1x256x8xf32, #tpu.memory_space<vmem>>, vector<1x256x8xf32>
    %9 = vector.shape_cast %8 : vector<1x256x8xf32> to vector<256x8xf32>
    %c0_13 = arith.constant 0 : index
    %c0_14 = arith.constant 0 : index
    %10 = vector.load %arg1[%c0_13, %c0_14] : memref<1x8xf32, #tpu.memory_space<vmem>>, vector<1x8xf32>
    %11 = vector.broadcast %10 : vector<1x8xf32> to vector<256x8xf32>
    %12 = arith.subf %9, %11 : vector<256x8xf32>
    %cst_15 = arith.constant 2.550000e+02 : f32
    %13 = vector.broadcast %cst_15 : f32 to vector<256x8xf32>
    %14 = arith.mulf %12, %13 : vector<256x8xf32>
    %c24 = arith.constant 24 : index
    %c0_16 = arith.constant 0 : index
    %15 = vector.load %arg16[%c24, %c0_16] : memref<304x8xf32, #tpu.memory_space<vmem>>, vector<256x8xf32>
    tpu.vector_store %arg16[%c24, %c0_16], %14 {strides = array<i32>} : memref<304x8xf32, #tpu.memory_space<vmem>>, vector<256x8xf32>,
    %c0_17 = arith.constant 0 : index
    %c0_18 = arith.constant 0 : index
    %16 = vector.load %arg2[%c0_17, %c0_18] : memref<256x1xf32, #tpu.memory_space<vmem>>, vector<128x1xf32>
    %c0_19 = arith.constant 0 : index
    %c0_20 = arith.constant 0 : index
    %17 = vector.load %arg3[%c0_19, %c0_20] : memref<256x1xf32, #tpu.memory_space<vmem>>, vector<128x1xf32>
    %cst_21 = arith.constant 0.000000e+00 : f32
    %18 = vector.broadcast %cst_21 : f32 to vector<128x64xf32>
    %c7 = arith.constant 7 : index
    %c0_22 = arith.constant 0 : index
    %19 = vector.load %arg16[%c7, %c0_22] : memref<304x8xf32, #tpu.memory_space<vmem>>, vector<128x8xf32>
    %20 = vector.broadcast %16 : vector<128x1xf32> to vector<128x8xf32>
    %21 = arith.mulf %19, %20 : vector<128x8xf32>
    %22 = arith.truncf %21 : vector<128x8xf32> to vector<128x8xbf16>
    %c0_23 = arith.constant 0 : index
    %c0_24 = arith.constant 0 : index
    %c0_25 = arith.constant 0 : index
    %23 = vector.load %arg7[%c0_23, %c0_24, %c0_25] : memref<9x8x64xbf16, #tpu.memory_space<vmem>>, vector<1x8x64xbf16>
    %24 = vector.shape_cast %23 : vector<1x8x64xbf16> to vector<8x64xbf16>
    %cst_26 = arith.constant dense<0.000000e+00> : vector<128x64xf32>
    %25 = tpu.matmul %22, %24, %cst_26 {dimension_numbers = #tpu.dot_dimension_numbers<[1], [0], [0], [1], [0, 0, 1, 1], [], []>} : vector<128x8xbf16>, vector<8x64xbf16>, vector<128x64xf32> -> vector<128x64xf32>
    %26 = arith.addf %18, %25 : vector<128x64xf32>
    %c8 = arith.constant 8 : index
    %c0_27 = arith.constant 0 : index
    %27 = vector.load %arg16[%c8, %c0_27] : memref<304x8xf32, #tpu.memory_space<vmem>>, vector<128x8xf32>
    %28 = arith.truncf %27 : vector<128x8xf32> to vector<128x8xbf16>
    %c1 = arith.constant 1 : index
    %c0_28 = arith.constant 0 : index
    %c0_29 = arith.constant 0 : index
    %29 = vector.load %arg7[%c1, %c0_28, %c0_29] : memref<9x8x64xbf16, #tpu.memory_space<vmem>>, vector<1x8x64xbf16>
    %30 = vector.shape_cast %29 : vector<1x8x64xbf16> to vector<8x64xbf16>
    %cst_30 = arith.constant dense<0.000000e+00> : vector<128x64xf32>
    %31 = tpu.matmul %28, %30, %cst_30 {dimension_numbers = #tpu.dot_dimension_numbers<[1], [0], [0], [1], [0, 0, 1, 1], [], []>} : vector<128x8xbf16>, vector<8x64xbf16>, vector<128x64xf32> -> vector<128x64xf32>
    %32 = arith.addf %26, %31 : vector<128x64xf32>
    %c9 = arith.constant 9 : index
    %c0_31 = arith.constant 0 : index
    %33 = vector.load %arg16[%c9, %c0_31] : memref<304x8xf32, #tpu.memory_space<vmem>>, vector<128x8xf32>
    %34 = vector.broadcast %17 : vector<128x1xf32> to vector<128x8xf32>
    %35 = arith.mulf %33, %34 : vector<128x8xf32>
    %36 = arith.truncf %35 : vector<128x8xf32> to vector<128x8xbf16>
    %c2 = arith.constant 2 : index
    %c0_32 = arith.constant 0 : index
    %c0_33 = arith.constant 0 : index
    %37 = vector.load %arg7[%c2, %c0_32, %c0_33] : memref<9x8x64xbf16, #tpu.memory_space<vmem>>, vector<1x8x64xbf16>
    %38 = vector.shape_cast %37 : vector<1x8x64xbf16> to vector<8x64xbf16>
    %cst_34 = arith.constant dense<0.000000e+00> : vector<128x64xf32>
    %39 = tpu.matmul %36, %38, %cst_34 {dimension_numbers = #tpu.dot_dimension_numbers<[1], [0], [0], [1], [0, 0, 1, 1], [], []>} : vector<128x8xbf16>, vector<8x64xbf16>, vector<128x64xf32> -> vector<128x64xf32>
    %40 = arith.addf %32, %39 : vector<128x64xf32>
    %c23 = arith.constant 23 : index
    %c0_35 = arith.constant 0 : index
    %41 = vector.load %arg16[%c23, %c0_35] : memref<304x8xf32, #tpu.memory_space<vmem>>, vector<128x8xf32>
    %42 = vector.broadcast %16 : vector<128x1xf32> to vector<128x8xf32>
    %43 = arith.mulf %41, %42 : vector<128x8xf32>
    %44 = arith.truncf %43 : vector<128x8xf32> to vector<128x8xbf16>
    %c3 = arith.constant 3 : index
    %c0_36 = arith.constant 0 : index
    %c0_37 = arith.constant 0 : index
    %45 = vector.load %arg7[%c3, %c0_36, %c0_37] : memref<9x8x64xbf16, #tpu.memory_space<vmem>>, vector<1x8x64xbf16>
    %46 = vector.shape_cast %45 : vector<1x8x64xbf16> to vector<8x64xbf16>
    %cst_38 = arith.constant dense<0.000000e+00> : vector<128x64xf32>
    %47 = tpu.matmul %44, %46, %cst_38 {dimension_numbers = #tpu.dot_dimension_numbers<[1], [0], [0], [1], [0, 0, 1, 1], [], []>} : vector<128x8xbf16>, vector<8x64xbf16>, vector<128x64xf32> -> vector<128x64xf32>
    %48 = arith.addf %40, %47 : vector<128x64xf32>
    %c24_39 = arith.constant 24 : index
    %c0_40 = arith.constant 0 : index
    %49 = vector.load %arg16[%c24_39, %c0_40] : memref<304x8xf32, #tpu.memory_space<vmem>>, vector<128x8xf32>
    %50 = arith.truncf %49 : vector<128x8xf32> to vector<128x8xbf16>
    %c4 = arith.constant 4 : index
    %c0_41 = arith.constant 0 : index
    %c0_42 = arith.constant 0 : index
    %51 = vector.load %arg7[%c4, %c0_41, %c0_42] : memref<9x8x64xbf16, #tpu.memory_space<vmem>>, vector<1x8x64xbf16>
    %52 = vector.shape_cast %51 : vector<1x8x64xbf16> to vector<8x64xbf16>
    %cst_43 = arith.constant dense<0.000000e+00> : vector<128x64xf32>
    %53 = tpu.matmul %50, %52, %cst_43 {dimension_numbers = #tpu.dot_dimension_numbers<[1], [0], [0], [1], [0, 0, 1, 1], [], []>} : vector<128x8xbf16>, vector<8x64xbf16>, vector<128x64xf32> -> vector<128x64xf32>
    %54 = arith.addf %48, %53 : vector<128x64xf32>
    %c25 = arith.constant 25 : index
    %c0_44 = arith.constant 0 : index
    %55 = vector.load %arg16[%c25, %c0_44] : memref<304x8xf32, #tpu.memory_space<vmem>>, vector<128x8xf32>
    %56 = vector.broadcast %17 : vector<128x1xf32> to vector<128x8xf32>
    %57 = arith.mulf %55, %56 : vector<128x8xf32>
    %58 = arith.truncf %57 : vector<128x8xf32> to vector<128x8xbf16>
    %c5 = arith.constant 5 : index
    %c0_45 = arith.constant 0 : index
    %c0_46 = arith.constant 0 : index
    %59 = vector.load %arg7[%c5, %c0_45, %c0_46] : memref<9x8x64xbf16, #tpu.memory_space<vmem>>, vector<1x8x64xbf16>
    %60 = vector.shape_cast %59 : vector<1x8x64xbf16> to vector<8x64xbf16>
    %cst_47 = arith.constant dense<0.000000e+00> : vector<128x64xf32>
    %61 = tpu.matmul %58, %60, %cst_47 {dimension_numbers = #tpu.dot_dimension_numbers<[1], [0], [0], [1], [0, 0, 1, 1], [], []>} : vector<128x8xbf16>, vector<8x64xbf16>, vector<128x64xf32> -> vector<128x64xf32>
    %62 = arith.addf %54, %61 : vector<128x64xf32>
    %c39 = arith.constant 39 : index
    %c0_48 = arith.constant 0 : index
    %63 = vector.load %arg16[%c39, %c0_48] : memref<304x8xf32, #tpu.memory_space<vmem>>, vector<128x8xf32>
    %64 = vector.broadcast %16 : vector<128x1xf32> to vector<128x8xf32>
    %65 = arith.mulf %63, %64 : vector<128x8xf32>
    %66 = arith.truncf %65 : vector<128x8xf32> to vector<128x8xbf16>
    %c6 = arith.constant 6 : index
    %c0_49 = arith.constant 0 : index
    %c0_50 = arith.constant 0 : index
    %67 = vector.load %arg7[%c6, %c0_49, %c0_50] : memref<9x8x64xbf16, #tpu.memory_space<vmem>>, vector<1x8x64xbf16>
    %68 = vector.shape_cast %67 : vector<1x8x64xbf16> to vector<8x64xbf16>
    %cst_51 = arith.constant dense<0.000000e+00> : vector<128x64xf32>
    %69 = tpu.matmul %66, %68, %cst_51 {dimension_numbers = #tpu.dot_dimension_numbers<[1], [0], [0], [1], [0, 0, 1, 1], [], []>} : vector<128x8xbf16>, vector<8x64xbf16>, vector<128x64xf32> -> vector<128x64xf32>
    %70 = arith.addf %62, %69 : vector<128x64xf32>
    %c40 = arith.constant 40 : index
    %c0_52 = arith.constant 0 : index
    %71 = vector.load %arg16[%c40, %c0_52] : memref<304x8xf32, #tpu.memory_space<vmem>>, vector<128x8xf32>
    %72 = arith.truncf %71 : vector<128x8xf32> to vector<128x8xbf16>
    %c7_53 = arith.constant 7 : index
    %c0_54 = arith.constant 0 : index
    %c0_55 = arith.constant 0 : index
    %73 = vector.load %arg7[%c7_53, %c0_54, %c0_55] : memref<9x8x64xbf16, #tpu.memory_space<vmem>>, vector<1x8x64xbf16>
    %74 = vector.shape_cast %73 : vector<1x8x64xbf16> to vector<8x64xbf16>
    %cst_56 = arith.constant dense<0.000000e+00> : vector<128x64xf32>
    %75 = tpu.matmul %72, %74, %cst_56 {dimension_numbers = #tpu.dot_dimension_numbers<[1], [0], [0], [1], [0, 0, 1, 1], [], []>} : vector<128x8xbf16>, vector<8x64xbf16>, vector<128x64xf32> -> vector<128x64xf32>
    %76 = arith.addf %70, %75 : vector<128x64xf32>
    %c41 = arith.constant 41 : index
    %c0_57 = arith.constant 0 : index
    %77 = vector.load %arg16[%c41, %c0_57] : memref<304x8xf32, #tpu.memory_space<vmem>>, vector<128x8xf32>
    %78 = vector.broadcast %17 : vector<128x1xf32> to vector<128x8xf32>
    %79 = arith.mulf %77, %78 : vector<128x8xf32>
    %80 = arith.truncf %79 : vector<128x8xf32> to vector<128x8xbf16>
    %c8_58 = arith.constant 8 : index
    %c0_59 = arith.constant 0 : index
    %c0_60 = arith.constant 0 : index
    %81 = vector.load %arg7[%c8_58, %c0_59, %c0_60] : memref<9x8x64xbf16, #tpu.memory_space<vmem>>, vector<1x8x64xbf16>
    %82 = vector.shape_cast %81 : vector<1x8x64xbf16> to vector<8x64xbf16>
    %cst_61 = arith.constant dense<0.000000e+00> : vector<128x64xf32>
    %83 = tpu.matmul %80, %82, %cst_61 {dimension_numbers = #tpu.dot_dimension_numbers<[1], [0], [0], [1], [0, 0, 1, 1], [], []>} : vector<128x8xbf16>, vector<8x64xbf16>, vector<128x64xf32> -> vector<128x64xf32>
    %84 = arith.addf %76, %83 : vector<128x64xf32>
    %c0_62 = arith.constant 0 : index
    %c0_63 = arith.constant 0 : index
    %85 = vector.load %arg8[%c0_62, %c0_63] : memref<1x64xf32, #tpu.memory_space<vmem>>, vector<1x64xf32>
    %86 = vector.broadcast %85 : vector<1x64xf32> to vector<128x64xf32>
    %87 = arith.addf %84, %86 : vector<128x64xf32>
    %cst_64 = arith.constant 0.000000e+00 : f32
    %88 = vector.broadcast %cst_64 : f32 to vector<128x64xf32>
    %89 = arith.maximumf %87, %88 : vector<128x64xf32>
    %c24_65 = arith.constant 24 : index
    %c0_66 = arith.constant 0 : index
    %90 = vector.load %arg17[%c24_65, %c0_66] : memref<304x64xf32, #tpu.memory_space<vmem>>, vector<128x64xf32>
    tpu.vector_store %arg17[%c24_65, %c0_66], %89 {strides = array<i32>} : memref<304x64xf32, #tpu.memory_space<vmem>>, vector<128x64xf32>,
    %c128 = arith.constant 128 : index
    %c0_67 = arith.constant 0 : index
    %91 = vector.load %arg2[%c128, %c0_67] : memref<256x1xf32, #tpu.memory_space<vmem>>, vector<128x1xf32>
    %c128_68 = arith.constant 128 : index
    %c0_69 = arith.constant 0 : index
    %92 = vector.load %arg3[%c128_68, %c0_69] : memref<256x1xf32, #tpu.memory_space<vmem>>, vector<128x1xf32>
    %cst_70 = arith.constant 0.000000e+00 : f32
    %93 = vector.broadcast %cst_70 : f32 to vector<128x64xf32>
    %c135 = arith.constant 135 : index
    %c0_71 = arith.constant 0 : index
    %94 = vector.load %arg16[%c135, %c0_71] : memref<304x8xf32, #tpu.memory_space<vmem>>, vector<128x8xf32>
    %95 = vector.broadcast %91 : vector<128x1xf32> to vector<128x8xf32>
    %96 = arith.mulf %94, %95 : vector<128x8xf32>
    %97 = arith.truncf %96 : vector<128x8xf32> to vector<128x8xbf16>
    %c0_72 = arith.constant 0 : index
    %c0_73 = arith.constant 0 : index
    %c0_74 = arith.constant 0 : index
    %98 = vector.load %arg7[%c0_72, %c0_73, %c0_74] : memref<9x8x64xbf16, #tpu.memory_space<vmem>>, vector<1x8x64xbf16>
    %99 = vector.shape_cast %98 : vector<1x8x64xbf16> to vector<8x64xbf16>
    %cst_75 = arith.constant dense<0.000000e+00> : vector<128x64xf32>
    %100 = tpu.matmul %97, %99, %cst_75 {dimension_numbers = #tpu.dot_dimension_numbers<[1], [0], [0], [1], [0, 0, 1, 1], [], []>} : vector<128x8xbf16>, vector<8x64xbf16>, vector<128x64xf32> -> vector<128x64xf32>
    %101 = arith.addf %93, %100 : vector<128x64xf32>
    %c136 = arith.constant 136 : index
    %c0_76 = arith.constant 0 : index
    %102 = vector.load %arg16[%c136, %c0_76] : memref<304x8xf32, #tpu.memory_space<vmem>>, vector<128x8xf32>
    %103 = arith.truncf %102 : vector<128x8xf32> to vector<128x8xbf16>
    %c1_77 = arith.constant 1 : index
    %c0_78 = arith.constant 0 : index
    %c0_79 = arith.constant 0 : index
    %104 = vector.load %arg7[%c1_77, %c0_78, %c0_79] : memref<9x8x64xbf16, #tpu.memory_space<vmem>>, vector<1x8x64xbf16>
    %105 = vector.shape_cast %104 : vector<1x8x64xbf16> to vector<8x64xbf16>
    %cst_80 = arith.constant dense<0.000000e+00> : vector<128x64xf32>
    %106 = tpu.matmul %103, %105, %cst_80 {dimension_numbers = #tpu.dot_dimension_numbers<[1], [0], [0], [1], [0, 0, 1, 1], [], []>} : vector<128x8xbf16>, vector<8x64xbf16>, vector<128x64xf32> -> vector<128x64xf32>
    %107 = arith.addf %101, %106 : vector<128x64xf32>
    %c137 = arith.constant 137 : index
    %c0_81 = arith.constant 0 : index
    %108 = vector.load %arg16[%c137, %c0_81] : memref<304x8xf32, #tpu.memory_space<vmem>>, vector<128x8xf32>
    %109 = vector.broadcast %92 : vector<128x1xf32> to vector<128x8xf32>
    %110 = arith.mulf %108, %109 : vector<128x8xf32>
    %111 = arith.truncf %110 : vector<128x8xf32> to vector<128x8xbf16>
    %c2_82 = arith.constant 2 : index
    %c0_83 = arith.constant 0 : index
    %c0_84 = arith.constant 0 : index
    %112 = vector.load %arg7[%c2_82, %c0_83, %c0_84] : memref<9x8x64xbf16, #tpu.memory_space<vmem>>, vector<1x8x64xbf16>
    %113 = vector.shape_cast %112 : vector<1x8x64xbf16> to vector<8x64xbf16>
    %cst_85 = arith.constant dense<0.000000e+00> : vector<128x64xf32>
    %114 = tpu.matmul %111, %113, %cst_85 {dimension_numbers = #tpu.dot_dimension_numbers<[1], [0], [0], [1], [0, 0, 1, 1], [], []>} : vector<128x8xbf16>, vector<8x64xbf16>, vector<128x64xf32> -> vector<128x64xf32>
    %115 = arith.addf %107, %114 : vector<128x64xf32>
    %c151 = arith.constant 151 : index
    %c0_86 = arith.constant 0 : index
    %116 = vector.load %arg16[%c151, %c0_86] : memref<304x8xf32, #tpu.memory_space<vmem>>, vector<128x8xf32>
    %117 = vector.broadcast %91 : vector<128x1xf32> to vector<128x8xf32>
    %118 = arith.mulf %116, %117 : vector<128x8xf32>
    %119 = arith.truncf %118 : vector<128x8xf32> to vector<128x8xbf16>
    %c3_87 = arith.constant 3 : index
    %c0_88 = arith.constant 0 : index
    %c0_89 = arith.constant 0 : index
    %120 = vector.load %arg7[%c3_87, %c0_88, %c0_89] : memref<9x8x64xbf16, #tpu.memory_space<vmem>>, vector<1x8x64xbf16>
    %121 = vector.shape_cast %120 : vector<1x8x64xbf16> to vector<8x64xbf16>
    %cst_90 = arith.constant dense<0.000000e+00> : vector<128x64xf32>
    %122 = tpu.matmul %119, %121, %cst_90 {dimension_numbers = #tpu.dot_dimension_numbers<[1], [0], [0], [1], [0, 0, 1, 1], [], []>} : vector<128x8xbf16>, vector<8x64xbf16>, vector<128x64xf32> -> vector<128x64xf32>
    %123 = arith.addf %115, %122 : vector<128x64xf32>
    %c152 = arith.constant 152 : index
    %c0_91 = arith.constant 0 : index
    %124 = vector.load %arg16[%c152, %c0_91] : memref<304x8xf32, #tpu.memory_space<vmem>>, vector<128x8xf32>
    %125 = arith.truncf %124 : vector<128x8xf32> to vector<128x8xbf16>
    %c4_92 = arith.constant 4 : index
    %c0_93 = arith.constant 0 : index
    %c0_94 = arith.constant 0 : index
    %126 = vector.load %arg7[%c4_92, %c0_93, %c0_94] : memref<9x8x64xbf16, #tpu.memory_space<vmem>>, vector<1x8x64xbf16>
    %127 = vector.shape_cast %126 : vector<1x8x64xbf16> to vector<8x64xbf16>
    %cst_95 = arith.constant dense<0.000000e+00> : vector<128x64xf32>
    %128 = tpu.matmul %125, %127, %cst_95 {dimension_numbers = #tpu.dot_dimension_numbers<[1], [0], [0], [1], [0, 0, 1, 1], [], []>} : vector<128x8xbf16>, vector<8x64xbf16>, vector<128x64xf32> -> vector<128x64xf32>
    %129 = arith.addf %123, %128 : vector<128x64xf32>
    %c153 = arith.constant 153 : index
    %c0_96 = arith.constant 0 : index
    %130 = vector.load %arg16[%c153, %c0_96] : memref<304x8xf32, #tpu.memory_space<vmem>>, vector<128x8xf32>
    %131 = vector.broadcast %92 : vector<128x1xf32> to vector<128x8xf32>
    %132 = arith.mulf %130, %131 : vector<128x8xf32>
    %133 = arith.truncf %132 : vector<128x8xf32> to vector<128x8xbf16>
    %c5_97 = arith.constant 5 : index
    %c0_98 = arith.constant 0 : index
    %c0_99 = arith.constant 0 : index
    %134 = vector.load %arg7[%c5_97, %c0_98, %c0_99] : memref<9x8x64xbf16, #tpu.memory_space<vmem>>, vector<1x8x64xbf16>
    %135 = vector.shape_cast %134 : vector<1x8x64xbf16> to vector<8x64xbf16>
    %cst_100 = arith.constant dense<0.000000e+00> : vector<128x64xf32>
    %136 = tpu.matmul %133, %135, %cst_100 {dimension_numbers = #tpu.dot_dimension_numbers<[1], [0], [0], [1], [0, 0, 1, 1], [], []>} : vector<128x8xbf16>, vector<8x64xbf16>, vector<128x64xf32> -> vector<128x64xf32>
    %137 = arith.addf %129, %136 : vector<128x64xf32>
    %c167 = arith.constant 167 : index
    %c0_101 = arith.constant 0 : index
    %138 = vector.load %arg16[%c167, %c0_101] : memref<304x8xf32, #tpu.memory_space<vmem>>, vector<128x8xf32>
    %139 = vector.broadcast %91 : vector<128x1xf32> to vector<128x8xf32>
    %140 = arith.mulf %138, %139 : vector<128x8xf32>
    %141 = arith.truncf %140 : vector<128x8xf32> to vector<128x8xbf16>
    %c6_102 = arith.constant 6 : index
    %c0_103 = arith.constant 0 : index
    %c0_104 = arith.constant 0 : index
    %142 = vector.load %arg7[%c6_102, %c0_103, %c0_104] : memref<9x8x64xbf16, #tpu.memory_space<vmem>>, vector<1x8x64xbf16>
    %143 = vector.shape_cast %142 : vector<1x8x64xbf16> to vector<8x64xbf16>
    %cst_105 = arith.constant dense<0.000000e+00> : vector<128x64xf32>
    %144 = tpu.matmul %141, %143, %cst_105 {dimension_numbers = #tpu.dot_dimension_numbers<[1], [0], [0], [1], [0, 0, 1, 1], [], []>} : vector<128x8xbf16>, vector<8x64xbf16>, vector<128x64xf32> -> vector<128x64xf32>
    %145 = arith.addf %137, %144 : vector<128x64xf32>
    %c168 = arith.constant 168 : index
    %c0_106 = arith.constant 0 : index
    %146 = vector.load %arg16[%c168, %c0_106] : memref<304x8xf32, #tpu.memory_space<vmem>>, vector<128x8xf32>
    %147 = arith.truncf %146 : vector<128x8xf32> to vector<128x8xbf16>
    %c7_107 = arith.constant 7 : index
    %c0_108 = arith.constant 0 : index
    %c0_109 = arith.constant 0 : index
    %148 = vector.load %arg7[%c7_107, %c0_108, %c0_109] : memref<9x8x64xbf16, #tpu.memory_space<vmem>>, vector<1x8x64xbf16>
    %149 = vector.shape_cast %148 : vector<1x8x64xbf16> to vector<8x64xbf16>
    %cst_110 = arith.constant dense<0.000000e+00> : vector<128x64xf32>
    %150 = tpu.matmul %147, %149, %cst_110 {dimension_numbers = #tpu.dot_dimension_numbers<[1], [0], [0], [1], [0, 0, 1, 1], [], []>} : vector<128x8xbf16>, vector<8x64xbf16>, vector<128x64xf32> -> vector<128x64xf32>
    %151 = arith.addf %145, %150 : vector<128x64xf32>
    %c169 = arith.constant 169 : index
    %c0_111 = arith.constant 0 : index
    %152 = vector.load %arg16[%c169, %c0_111] : memref<304x8xf32, #tpu.memory_space<vmem>>, vector<128x8xf32>
    %153 = vector.broadcast %92 : vector<128x1xf32> to vector<128x8xf32>
    %154 = arith.mulf %152, %153 : vector<128x8xf32>
    %155 = arith.truncf %154 : vector<128x8xf32> to vector<128x8xbf16>
    %c8_112 = arith.constant 8 : index
    %c0_113 = arith.constant 0 : index
    %c0_114 = arith.constant 0 : index
    %156 = vector.load %arg7[%c8_112, %c0_113, %c0_114] : memref<9x8x64xbf16, #tpu.memory_space<vmem>>, vector<1x8x64xbf16>
    %157 = vector.shape_cast %156 : vector<1x8x64xbf16> to vector<8x64xbf16>
    %cst_115 = arith.constant dense<0.000000e+00> : vector<128x64xf32>
    %158 = tpu.matmul %155, %157, %cst_115 {dimension_numbers = #tpu.dot_dimension_numbers<[1], [0], [0], [1], [0, 0, 1, 1], [], []>} : vector<128x8xbf16>, vector<8x64xbf16>, vector<128x64xf32> -> vector<128x64xf32>
    %159 = arith.addf %151, %158 : vector<128x64xf32>
    %c0_116 = arith.constant 0 : index
    %c0_117 = arith.constant 0 : index
    %160 = vector.load %arg8[%c0_116, %c0_117] : memref<1x64xf32, #tpu.memory_space<vmem>>, vector<1x64xf32>
    %161 = vector.broadcast %160 : vector<1x64xf32> to vector<128x64xf32>
    %162 = arith.addf %159, %161 : vector<128x64xf32>
    %cst_118 = arith.constant 0.000000e+00 : f32
    %163 = vector.broadcast %cst_118 : f32 to vector<128x64xf32>
    %164 = arith.maximumf %162, %163 : vector<128x64xf32>
    %c152_119 = arith.constant 152 : index
    %c0_120 = arith.constant 0 : index
    %165 = vector.load %arg17[%c152_119, %c0_120] : memref<304x64xf32, #tpu.memory_space<vmem>>, vector<128x64xf32>
    tpu.vector_store %arg17[%c152_119, %c0_120], %164 {strides = array<i32>} : memref<304x64xf32, #tpu.memory_space<vmem>>, vector<128x64xf32>,
    %c0_121 = arith.constant 0 : index
    %c0_122 = arith.constant 0 : index
    %166 = vector.load %arg2[%c0_121, %c0_122] : memref<256x1xf32, #tpu.memory_space<vmem>>, vector<128x1xf32>
    %c0_123 = arith.constant 0 : index
    %c0_124 = arith.constant 0 : index
    %167 = vector.load %arg3[%c0_123, %c0_124] : memref<256x1xf32, #tpu.memory_space<vmem>>, vector<128x1xf32>
    %cst_125 = arith.constant 0.000000e+00 : f32
    %168 = vector.broadcast %cst_125 : f32 to vector<128x64xf32>
    %c7_126 = arith.constant 7 : index
    %c0_127 = arith.constant 0 : index
    %169 = vector.load %arg17[%c7_126, %c0_127] : memref<304x64xf32, #tpu.memory_space<vmem>>, vector<128x64xf32>
    %170 = vector.broadcast %166 : vector<128x1xf32> to vector<128x64xf32>
    %171 = arith.mulf %169, %170 : vector<128x64xf32>
    %172 = arith.truncf %171 : vector<128x64xf32> to vector<128x64xbf16>
    %c0_128 = arith.constant 0 : index
    %c0_129 = arith.constant 0 : index
    %c0_130 = arith.constant 0 : index
    %173 = vector.load %arg9[%c0_128, %c0_129, %c0_130] : memref<9x64x64xbf16, #tpu.memory_space<vmem>>, vector<1x64x64xbf16>
    %174 = vector.shape_cast %173 : vector<1x64x64xbf16> to vector<64x64xbf16>
    %cst_131 = arith.constant dense<0.000000e+00> : vector<128x64xf32>
    %175 = tpu.matmul %172, %174, %cst_131 {dimension_numbers = #tpu.dot_dimension_numbers<[1], [0], [0], [1], [0, 0, 1, 1], [], []>} : vector<128x64xbf16>, vector<64x64xbf16>, vector<128x64xf32> -> vector<128x64xf32>
    %176 = arith.addf %168, %175 : vector<128x64xf32>
    %c8_132 = arith.constant 8 : index
    %c0_133 = arith.constant 0 : index
    %177 = vector.load %arg17[%c8_132, %c0_133] : memref<304x64xf32, #tpu.memory_space<vmem>>, vector<128x64xf32>
    %178 = arith.truncf %177 : vector<128x64xf32> to vector<128x64xbf16>
    %c1_134 = arith.constant 1 : index
    %c0_135 = arith.constant 0 : index
    %c0_136 = arith.constant 0 : index
    %179 = vector.load %arg9[%c1_134, %c0_135, %c0_136] : memref<9x64x64xbf16, #tpu.memory_space<vmem>>, vector<1x64x64xbf16>
    %180 = vector.shape_cast %179 : vector<1x64x64xbf16> to vector<64x64xbf16>
    %cst_137 = arith.constant dense<0.000000e+00> : vector<128x64xf32>
    %181 = tpu.matmul %178, %180, %cst_137 {dimension_numbers = #tpu.dot_dimension_numbers<[1], [0], [0], [1], [0, 0, 1, 1], [], []>} : vector<128x64xbf16>, vector<64x64xbf16>, vector<128x64xf32> -> vector<128x64xf32>
    %182 = arith.addf %176, %181 : vector<128x64xf32>
    %c9_138 = arith.constant 9 : index
    %c0_139 = arith.constant 0 : index
    %183 = vector.load %arg17[%c9_138, %c0_139] : memref<304x64xf32, #tpu.memory_space<vmem>>, vector<128x64xf32>
    %184 = vector.broadcast %167 : vector<128x1xf32> to vector<128x64xf32>
    %185 = arith.mulf %183, %184 : vector<128x64xf32>
    %186 = arith.truncf %185 : vector<128x64xf32> to vector<128x64xbf16>
    %c2_140 = arith.constant 2 : index
    %c0_141 = arith.constant 0 : index
    %c0_142 = arith.constant 0 : index
    %187 = vector.load %arg9[%c2_140, %c0_141, %c0_142] : memref<9x64x64xbf16, #tpu.memory_space<vmem>>, vector<1x64x64xbf16>
    %188 = vector.shape_cast %187 : vector<1x64x64xbf16> to vector<64x64xbf16>
    %cst_143 = arith.constant dense<0.000000e+00> : vector<128x64xf32>
    %189 = tpu.matmul %186, %188, %cst_143 {dimension_numbers = #tpu.dot_dimension_numbers<[1], [0], [0], [1], [0, 0, 1, 1], [], []>} : vector<128x64xbf16>, vector<64x64xbf16>, vector<128x64xf32> -> vector<128x64xf32>
    %190 = arith.addf %182, %189 : vector<128x64xf32>
    %c23_144 = arith.constant 23 : index
    %c0_145 = arith.constant 0 : index
    %191 = vector.load %arg17[%c23_144, %c0_145] : memref<304x64xf32, #tpu.memory_space<vmem>>, vector<128x64xf32>
    %192 = vector.broadcast %166 : vector<128x1xf32> to vector<128x64xf32>
    %193 = arith.mulf %191, %192 : vector<128x64xf32>
    %194 = arith.truncf %193 : vector<128x64xf32> to vector<128x64xbf16>
    %c3_146 = arith.constant 3 : index
    %c0_147 = arith.constant 0 : index
    %c0_148 = arith.constant 0 : index
    %195 = vector.load %arg9[%c3_146, %c0_147, %c0_148] : memref<9x64x64xbf16, #tpu.memory_space<vmem>>, vector<1x64x64xbf16>
    %196 = vector.shape_cast %195 : vector<1x64x64xbf16> to vector<64x64xbf16>
    %cst_149 = arith.constant dense<0.000000e+00> : vector<128x64xf32>
    %197 = tpu.matmul %194, %196, %cst_149 {dimension_numbers = #tpu.dot_dimension_numbers<[1], [0], [0], [1], [0, 0, 1, 1], [], []>} : vector<128x64xbf16>, vector<64x64xbf16>, vector<128x64xf32> -> vector<128x64xf32>
    %198 = arith.addf %190, %197 : vector<128x64xf32>
    %c24_150 = arith.constant 24 : index
    %c0_151 = arith.constant 0 : index
    %199 = vector.load %arg17[%c24_150, %c0_151] : memref<304x64xf32, #tpu.memory_space<vmem>>, vector<128x64xf32>
    %200 = arith.truncf %199 : vector<128x64xf32> to vector<128x64xbf16>
    %c4_152 = arith.constant 4 : index
    %c0_153 = arith.constant 0 : index
    %c0_154 = arith.constant 0 : index
    %201 = vector.load %arg9[%c4_152, %c0_153, %c0_154] : memref<9x64x64xbf16, #tpu.memory_space<vmem>>, vector<1x64x64xbf16>
    %202 = vector.shape_cast %201 : vector<1x64x64xbf16> to vector<64x64xbf16>
    %cst_155 = arith.constant dense<0.000000e+00> : vector<128x64xf32>
    %203 = tpu.matmul %200, %202, %cst_155 {dimension_numbers = #tpu.dot_dimension_numbers<[1], [0], [0], [1], [0, 0, 1, 1], [], []>} : vector<128x64xbf16>, vector<64x64xbf16>, vector<128x64xf32> -> vector<128x64xf32>
    %204 = arith.addf %198, %203 : vector<128x64xf32>
    %c25_156 = arith.constant 25 : index
    %c0_157 = arith.constant 0 : index
    %205 = vector.load %arg17[%c25_156, %c0_157] : memref<304x64xf32, #tpu.memory_space<vmem>>, vector<128x64xf32>
    %206 = vector.broadcast %167 : vector<128x1xf32> to vector<128x64xf32>
    %207 = arith.mulf %205, %206 : vector<128x64xf32>
    %208 = arith.truncf %207 : vector<128x64xf32> to vector<128x64xbf16>
    %c5_158 = arith.constant 5 : index
    %c0_159 = arith.constant 0 : index
    %c0_160 = arith.constant 0 : index
    %209 = vector.load %arg9[%c5_158, %c0_159, %c0_160] : memref<9x64x64xbf16, #tpu.memory_space<vmem>>, vector<1x64x64xbf16>
    %210 = vector.shape_cast %209 : vector<1x64x64xbf16> to vector<64x64xbf16>
    %cst_161 = arith.constant dense<0.000000e+00> : vector<128x64xf32>
    %211 = tpu.matmul %208, %210, %cst_161 {dimension_numbers = #tpu.dot_dimension_numbers<[1], [0], [0], [1], [0, 0, 1, 1], [], []>} : vector<128x64xbf16>, vector<64x64xbf16>, vector<128x64xf32> -> vector<128x64xf32>
    %212 = arith.addf %204, %211 : vector<128x64xf32>
    %c39_162 = arith.constant 39 : index
    %c0_163 = arith.constant 0 : index
    %213 = vector.load %arg17[%c39_162, %c0_163] : memref<304x64xf32, #tpu.memory_space<vmem>>, vector<128x64xf32>
    %214 = vector.broadcast %166 : vector<128x1xf32> to vector<128x64xf32>
    %215 = arith.mulf %213, %214 : vector<128x64xf32>
    %216 = arith.truncf %215 : vector<128x64xf32> to vector<128x64xbf16>
    %c6_164 = arith.constant 6 : index
    %c0_165 = arith.constant 0 : index
    %c0_166 = arith.constant 0 : index
    %217 = vector.load %arg9[%c6_164, %c0_165, %c0_166] : memref<9x64x64xbf16, #tpu.memory_space<vmem>>, vector<1x64x64xbf16>
    %218 = vector.shape_cast %217 : vector<1x64x64xbf16> to vector<64x64xbf16>
    %cst_167 = arith.constant dense<0.000000e+00> : vector<128x64xf32>
    %219 = tpu.matmul %216, %218, %cst_167 {dimension_numbers = #tpu.dot_dimension_numbers<[1], [0], [0], [1], [0, 0, 1, 1], [], []>} : vector<128x64xbf16>, vector<64x64xbf16>, vector<128x64xf32> -> vector<128x64xf32>
    %220 = arith.addf %212, %219 : vector<128x64xf32>
    %c40_168 = arith.constant 40 : index
    %c0_169 = arith.constant 0 : index
    %221 = vector.load %arg17[%c40_168, %c0_169] : memref<304x64xf32, #tpu.memory_space<vmem>>, vector<128x64xf32>
    %222 = arith.truncf %221 : vector<128x64xf32> to vector<128x64xbf16>
    %c7_170 = arith.constant 7 : index
    %c0_171 = arith.constant 0 : index
    %c0_172 = arith.constant 0 : index
    %223 = vector.load %arg9[%c7_170, %c0_171, %c0_172] : memref<9x64x64xbf16, #tpu.memory_space<vmem>>, vector<1x64x64xbf16>
    %224 = vector.shape_cast %223 : vector<1x64x64xbf16> to vector<64x64xbf16>
    %cst_173 = arith.constant dense<0.000000e+00> : vector<128x64xf32>
    %225 = tpu.matmul %222, %224, %cst_173 {dimension_numbers = #tpu.dot_dimension_numbers<[1], [0], [0], [1], [0, 0, 1, 1], [], []>} : vector<128x64xbf16>, vector<64x64xbf16>, vector<128x64xf32> -> vector<128x64xf32>
    %226 = arith.addf %220, %225 : vector<128x64xf32>
    %c41_174 = arith.constant 41 : index
    %c0_175 = arith.constant 0 : index
    %227 = vector.load %arg17[%c41_174, %c0_175] : memref<304x64xf32, #tpu.memory_space<vmem>>, vector<128x64xf32>
    %228 = vector.broadcast %167 : vector<128x1xf32> to vector<128x64xf32>
    %229 = arith.mulf %227, %228 : vector<128x64xf32>
    %230 = arith.truncf %229 : vector<128x64xf32> to vector<128x64xbf16>
    %c8_176 = arith.constant 8 : index
    %c0_177 = arith.constant 0 : index
    %c0_178 = arith.constant 0 : index
    %231 = vector.load %arg9[%c8_176, %c0_177, %c0_178] : memref<9x64x64xbf16, #tpu.memory_space<vmem>>, vector<1x64x64xbf16>
    %232 = vector.shape_cast %231 : vector<1x64x64xbf16> to vector<64x64xbf16>
    %cst_179 = arith.constant dense<0.000000e+00> : vector<128x64xf32>
    %233 = tpu.matmul %230, %232, %cst_179 {dimension_numbers = #tpu.dot_dimension_numbers<[1], [0], [0], [1], [0, 0, 1, 1], [], []>} : vector<128x64xbf16>, vector<64x64xbf16>, vector<128x64xf32> -> vector<128x64xf32>
    %234 = arith.addf %226, %233 : vector<128x64xf32>
    %c0_180 = arith.constant 0 : index
    %c0_181 = arith.constant 0 : index
    %235 = vector.load %arg10[%c0_180, %c0_181] : memref<1x64xf32, #tpu.memory_space<vmem>>, vector<1x64xf32>
    %236 = vector.broadcast %235 : vector<1x64xf32> to vector<128x64xf32>
    %237 = arith.addf %234, %236 : vector<128x64xf32>
    %cst_182 = arith.constant 0.000000e+00 : f32
    %238 = vector.broadcast %cst_182 : f32 to vector<128x64xf32>
    %239 = arith.maximumf %237, %238 : vector<128x64xf32>
    %c0_183 = arith.constant 0 : index
    %c0_184 = arith.constant 0 : index
    %240 = vector.load %arg18[%c0_183, %c0_184] : memref<256x64xf32, #tpu.memory_space<vmem>>, vector<128x64xf32>
    tpu.vector_store %arg18[%c0_183, %c0_184], %239 {strides = array<i32>} : memref<256x64xf32, #tpu.memory_space<vmem>>, vector<128x64xf32>,
    %c128_185 = arith.constant 128 : index
    %c0_186 = arith.constant 0 : index
    %241 = vector.load %arg2[%c128_185, %c0_186] : memref<256x1xf32, #tpu.memory_space<vmem>>, vector<128x1xf32>
    %c128_187 = arith.constant 128 : index
    %c0_188 = arith.constant 0 : index
    %242 = vector.load %arg3[%c128_187, %c0_188] : memref<256x1xf32, #tpu.memory_space<vmem>>, vector<128x1xf32>
    %cst_189 = arith.constant 0.000000e+00 : f32
    %243 = vector.broadcast %cst_189 : f32 to vector<128x64xf32>
    %c135_190 = arith.constant 135 : index
    %c0_191 = arith.constant 0 : index
    %244 = vector.load %arg17[%c135_190, %c0_191] : memref<304x64xf32, #tpu.memory_space<vmem>>, vector<128x64xf32>
    %245 = vector.broadcast %241 : vector<128x1xf32> to vector<128x64xf32>
    %246 = arith.mulf %244, %245 : vector<128x64xf32>
    %247 = arith.truncf %246 : vector<128x64xf32> to vector<128x64xbf16>
    %c0_192 = arith.constant 0 : index
    %c0_193 = arith.constant 0 : index
    %c0_194 = arith.constant 0 : index
    %248 = vector.load %arg9[%c0_192, %c0_193, %c0_194] : memref<9x64x64xbf16, #tpu.memory_space<vmem>>, vector<1x64x64xbf16>
    %249 = vector.shape_cast %248 : vector<1x64x64xbf16> to vector<64x64xbf16>
    %cst_195 = arith.constant dense<0.000000e+00> : vector<128x64xf32>
    %250 = tpu.matmul %247, %249, %cst_195 {dimension_numbers = #tpu.dot_dimension_numbers<[1], [0], [0], [1], [0, 0, 1, 1], [], []>} : vector<128x64xbf16>, vector<64x64xbf16>, vector<128x64xf32> -> vector<128x64xf32>
    %251 = arith.addf %243, %250 : vector<128x64xf32>
    %c136_196 = arith.constant 136 : index
    %c0_197 = arith.constant 0 : index
    %252 = vector.load %arg17[%c136_196, %c0_197] : memref<304x64xf32, #tpu.memory_space<vmem>>, vector<128x64xf32>
    %253 = arith.truncf %252 : vector<128x64xf32> to vector<128x64xbf16>
    %c1_198 = arith.constant 1 : index
    %c0_199 = arith.constant 0 : index
    %c0_200 = arith.constant 0 : index
    %254 = vector.load %arg9[%c1_198, %c0_199, %c0_200] : memref<9x64x64xbf16, #tpu.memory_space<vmem>>, vector<1x64x64xbf16>
    %255 = vector.shape_cast %254 : vector<1x64x64xbf16> to vector<64x64xbf16>
    %cst_201 = arith.constant dense<0.000000e+00> : vector<128x64xf32>
    %256 = tpu.matmul %253, %255, %cst_201 {dimension_numbers = #tpu.dot_dimension_numbers<[1], [0], [0], [1], [0, 0, 1, 1], [], []>} : vector<128x64xbf16>, vector<64x64xbf16>, vector<128x64xf32> -> vector<128x64xf32>
    %257 = arith.addf %251, %256 : vector<128x64xf32>
    %c137_202 = arith.constant 137 : index
    %c0_203 = arith.constant 0 : index
    %258 = vector.load %arg17[%c137_202, %c0_203] : memref<304x64xf32, #tpu.memory_space<vmem>>, vector<128x64xf32>
    %259 = vector.broadcast %242 : vector<128x1xf32> to vector<128x64xf32>
    %260 = arith.mulf %258, %259 : vector<128x64xf32>
    %261 = arith.truncf %260 : vector<128x64xf32> to vector<128x64xbf16>
    %c2_204 = arith.constant 2 : index
    %c0_205 = arith.constant 0 : index
    %c0_206 = arith.constant 0 : index
    %262 = vector.load %arg9[%c2_204, %c0_205, %c0_206] : memref<9x64x64xbf16, #tpu.memory_space<vmem>>, vector<1x64x64xbf16>
    %263 = vector.shape_cast %262 : vector<1x64x64xbf16> to vector<64x64xbf16>
    %cst_207 = arith.constant dense<0.000000e+00> : vector<128x64xf32>
    %264 = tpu.matmul %261, %263, %cst_207 {dimension_numbers = #tpu.dot_dimension_numbers<[1], [0], [0], [1], [0, 0, 1, 1], [], []>} : vector<128x64xbf16>, vector<64x64xbf16>, vector<128x64xf32> -> vector<128x64xf32>
    %265 = arith.addf %257, %264 : vector<128x64xf32>
    %c151_208 = arith.constant 151 : index
    %c0_209 = arith.constant 0 : index
    %266 = vector.load %arg17[%c151_208, %c0_209] : memref<304x64xf32, #tpu.memory_space<vmem>>, vector<128x64xf32>
    %267 = vector.broadcast %241 : vector<128x1xf32> to vector<128x64xf32>
    %268 = arith.mulf %266, %267 : vector<128x64xf32>
    %269 = arith.truncf %268 : vector<128x64xf32> to vector<128x64xbf16>
    %c3_210 = arith.constant 3 : index
    %c0_211 = arith.constant 0 : index
    %c0_212 = arith.constant 0 : index
    %270 = vector.load %arg9[%c3_210, %c0_211, %c0_212] : memref<9x64x64xbf16, #tpu.memory_space<vmem>>, vector<1x64x64xbf16>
    %271 = vector.shape_cast %270 : vector<1x64x64xbf16> to vector<64x64xbf16>
    %cst_213 = arith.constant dense<0.000000e+00> : vector<128x64xf32>
    %272 = tpu.matmul %269, %271, %cst_213 {dimension_numbers = #tpu.dot_dimension_numbers<[1], [0], [0], [1], [0, 0, 1, 1], [], []>} : vector<128x64xbf16>, vector<64x64xbf16>, vector<128x64xf32> -> vector<128x64xf32>
    %273 = arith.addf %265, %272 : vector<128x64xf32>
    %c152_214 = arith.constant 152 : index
    %c0_215 = arith.constant 0 : index
    %274 = vector.load %arg17[%c152_214, %c0_215] : memref<304x64xf32, #tpu.memory_space<vmem>>, vector<128x64xf32>
    %275 = arith.truncf %274 : vector<128x64xf32> to vector<128x64xbf16>
    %c4_216 = arith.constant 4 : index
    %c0_217 = arith.constant 0 : index
    %c0_218 = arith.constant 0 : index
    %276 = vector.load %arg9[%c4_216, %c0_217, %c0_218] : memref<9x64x64xbf16, #tpu.memory_space<vmem>>, vector<1x64x64xbf16>
    %277 = vector.shape_cast %276 : vector<1x64x64xbf16> to vector<64x64xbf16>
    %cst_219 = arith.constant dense<0.000000e+00> : vector<128x64xf32>
    %278 = tpu.matmul %275, %277, %cst_219 {dimension_numbers = #tpu.dot_dimension_numbers<[1], [0], [0], [1], [0, 0, 1, 1], [], []>} : vector<128x64xbf16>, vector<64x64xbf16>, vector<128x64xf32> -> vector<128x64xf32>
    %279 = arith.addf %273, %278 : vector<128x64xf32>
    %c153_220 = arith.constant 153 : index
    %c0_221 = arith.constant 0 : index
    %280 = vector.load %arg17[%c153_220, %c0_221] : memref<304x64xf32, #tpu.memory_space<vmem>>, vector<128x64xf32>
    %281 = vector.broadcast %242 : vector<128x1xf32> to vector<128x64xf32>
    %282 = arith.mulf %280, %281 : vector<128x64xf32>
    %283 = arith.truncf %282 : vector<128x64xf32> to vector<128x64xbf16>
    %c5_222 = arith.constant 5 : index
    %c0_223 = arith.constant 0 : index
    %c0_224 = arith.constant 0 : index
    %284 = vector.load %arg9[%c5_222, %c0_223, %c0_224] : memref<9x64x64xbf16, #tpu.memory_space<vmem>>, vector<1x64x64xbf16>
    %285 = vector.shape_cast %284 : vector<1x64x64xbf16> to vector<64x64xbf16>
    %cst_225 = arith.constant dense<0.000000e+00> : vector<128x64xf32>
    %286 = tpu.matmul %283, %285, %cst_225 {dimension_numbers = #tpu.dot_dimension_numbers<[1], [0], [0], [1], [0, 0, 1, 1], [], []>} : vector<128x64xbf16>, vector<64x64xbf16>, vector<128x64xf32> -> vector<128x64xf32>
    %287 = arith.addf %279, %286 : vector<128x64xf32>
    %c167_226 = arith.constant 167 : index
    %c0_227 = arith.constant 0 : index
    %288 = vector.load %arg17[%c167_226, %c0_227] : memref<304x64xf32, #tpu.memory_space<vmem>>, vector<128x64xf32>
    %289 = vector.broadcast %241 : vector<128x1xf32> to vector<128x64xf32>
    %290 = arith.mulf %288, %289 : vector<128x64xf32>
    %291 = arith.truncf %290 : vector<128x64xf32> to vector<128x64xbf16>
    %c6_228 = arith.constant 6 : index
    %c0_229 = arith.constant 0 : index
    %c0_230 = arith.constant 0 : index
    %292 = vector.load %arg9[%c6_228, %c0_229, %c0_230] : memref<9x64x64xbf16, #tpu.memory_space<vmem>>, vector<1x64x64xbf16>
    %293 = vector.shape_cast %292 : vector<1x64x64xbf16> to vector<64x64xbf16>
    %cst_231 = arith.constant dense<0.000000e+00> : vector<128x64xf32>
    %294 = tpu.matmul %291, %293, %cst_231 {dimension_numbers = #tpu.dot_dimension_numbers<[1], [0], [0], [1], [0, 0, 1, 1], [], []>} : vector<128x64xbf16>, vector<64x64xbf16>, vector<128x64xf32> -> vector<128x64xf32>
    %295 = arith.addf %287, %294 : vector<128x64xf32>
    %c168_232 = arith.constant 168 : index
    %c0_233 = arith.constant 0 : index
    %296 = vector.load %arg17[%c168_232, %c0_233] : memref<304x64xf32, #tpu.memory_space<vmem>>, vector<128x64xf32>
    %297 = arith.truncf %296 : vector<128x64xf32> to vector<128x64xbf16>
    %c7_234 = arith.constant 7 : index
    %c0_235 = arith.constant 0 : index
    %c0_236 = arith.constant 0 : index
    %298 = vector.load %arg9[%c7_234, %c0_235, %c0_236] : memref<9x64x64xbf16, #tpu.memory_space<vmem>>, vector<1x64x64xbf16>
    %299 = vector.shape_cast %298 : vector<1x64x64xbf16> to vector<64x64xbf16>
    %cst_237 = arith.constant dense<0.000000e+00> : vector<128x64xf32>
    %300 = tpu.matmul %297, %299, %cst_237 {dimension_numbers = #tpu.dot_dimension_numbers<[1], [0], [0], [1], [0, 0, 1, 1], [], []>} : vector<128x64xbf16>, vector<64x64xbf16>, vector<128x64xf32> -> vector<128x64xf32>
    %301 = arith.addf %295, %300 : vector<128x64xf32>
    %c169_238 = arith.constant 169 : index
    %c0_239 = arith.constant 0 : index
    %302 = vector.load %arg17[%c169_238, %c0_239] : memref<304x64xf32, #tpu.memory_space<vmem>>, vector<128x64xf32>
    %303 = vector.broadcast %242 : vector<128x1xf32> to vector<128x64xf32>
    %304 = arith.mulf %302, %303 : vector<128x64xf32>
    %305 = arith.truncf %304 : vector<128x64xf32> to vector<128x64xbf16>
    %c8_240 = arith.constant 8 : index
    %c0_241 = arith.constant 0 : index
    %c0_242 = arith.constant 0 : index
    %306 = vector.load %arg9[%c8_240, %c0_241, %c0_242] : memref<9x64x64xbf16, #tpu.memory_space<vmem>>, vector<1x64x64xbf16>
    %307 = vector.shape_cast %306 : vector<1x64x64xbf16> to vector<64x64xbf16>
    %cst_243 = arith.constant dense<0.000000e+00> : vector<128x64xf32>
    %308 = tpu.matmul %305, %307, %cst_243 {dimension_numbers = #tpu.dot_dimension_numbers<[1], [0], [0], [1], [0, 0, 1, 1], [], []>} : vector<128x64xbf16>, vector<64x64xbf16>, vector<128x64xf32> -> vector<128x64xf32>
    %309 = arith.addf %301, %308 : vector<128x64xf32>
    %c0_244 = arith.constant 0 : index
    %c0_245 = arith.constant 0 : index
    %310 = vector.load %arg10[%c0_244, %c0_245] : memref<1x64xf32, #tpu.memory_space<vmem>>, vector<1x64xf32>
    %311 = vector.broadcast %310 : vector<1x64xf32> to vector<128x64xf32>
    %312 = arith.addf %309, %311 : vector<128x64xf32>
    %cst_246 = arith.constant 0.000000e+00 : f32
    %313 = vector.broadcast %cst_246 : f32 to vector<128x64xf32>
    %314 = arith.maximumf %312, %313 : vector<128x64xf32>
    %c128_247 = arith.constant 128 : index
    %c0_248 = arith.constant 0 : index
    %315 = vector.load %arg18[%c128_247, %c0_248] : memref<256x64xf32, #tpu.memory_space<vmem>>, vector<128x64xf32>
    tpu.vector_store %arg18[%c128_247, %c0_248], %314 {strides = array<i32>} : memref<256x64xf32, #tpu.memory_space<vmem>>, vector<128x64xf32>,
    %c0_249 = arith.constant 0 : index
    %c0_250 = arith.constant 0 : index
    %316 = tpu.strided_load %arg18[%c0_249, %c0_250] {strides = array<i32: 2, 1>} : memref<256x64xf32, #tpu.memory_space<vmem>>, vector<8x64xf32>
    %c1_251 = arith.constant 1 : index
    %c0_252 = arith.constant 0 : index
    %317 = tpu.strided_load %arg18[%c1_251, %c0_252] {strides = array<i32: 2, 1>} : memref<256x64xf32, #tpu.memory_space<vmem>>, vector<8x64xf32>
    %c16 = arith.constant 16 : index
    %c0_253 = arith.constant 0 : index
    %318 = tpu.strided_load %arg18[%c16, %c0_253] {strides = array<i32: 2, 1>} : memref<256x64xf32, #tpu.memory_space<vmem>>, vector<8x64xf32>
    %c17 = arith.constant 17 : index
    %c0_254 = arith.constant 0 : index
    %319 = tpu.strided_load %arg18[%c17, %c0_254] {strides = array<i32: 2, 1>} : memref<256x64xf32, #tpu.memory_space<vmem>>, vector<8x64xf32>
    %320 = arith.maximumf %316, %317 : vector<8x64xf32>
    %321 = arith.maximumf %318, %319 : vector<8x64xf32>
    %322 = arith.maximumf %320, %321 : vector<8x64xf32>
    %c16_255 = arith.constant 16 : index
    %c0_256 = arith.constant 0 : index
    %323 = vector.load %arg19[%c16_255, %c0_256] : memref<96x64xf32, #tpu.memory_space<vmem>>, vector<8x64xf32>
    tpu.vector_store %arg19[%c16_255, %c0_256], %322 {strides = array<i32>} : memref<96x64xf32, #tpu.memory_space<vmem>>, vector<8x64xf32>,
    %c32 = arith.constant 32 : index
    %c0_257 = arith.constant 0 : index
    %324 = tpu.strided_load %arg18[%c32, %c0_257] {strides = array<i32: 2, 1>} : memref<256x64xf32, #tpu.memory_space<vmem>>, vector<8x64xf32>
    %c33 = arith.constant 33 : index
    %c0_258 = arith.constant 0 : index
    %325 = tpu.strided_load %arg18[%c33, %c0_258] {strides = array<i32: 2, 1>} : memref<256x64xf32, #tpu.memory_space<vmem>>, vector<8x64xf32>
    %c48 = arith.constant 48 : index
    %c0_259 = arith.constant 0 : index
    %326 = tpu.strided_load %arg18[%c48, %c0_259] {strides = array<i32: 2, 1>} : memref<256x64xf32, #tpu.memory_space<vmem>>, vector<8x64xf32>
    %c49 = arith.constant 49 : index
    %c0_260 = arith.constant 0 : index
    %327 = tpu.strided_load %arg18[%c49, %c0_260] {strides = array<i32: 2, 1>} : memref<256x64xf32, #tpu.memory_space<vmem>>, vector<8x64xf32>
    %328 = arith.maximumf %324, %325 : vector<8x64xf32>
    %329 = arith.maximumf %326, %327 : vector<8x64xf32>
    %330 = arith.maximumf %328, %329 : vector<8x64xf32>
    %c24_261 = arith.constant 24 : index
    %c0_262 = arith.constant 0 : index
    %331 = vector.load %arg19[%c24_261, %c0_262] : memref<96x64xf32, #tpu.memory_space<vmem>>, vector<8x64xf32>
    tpu.vector_store %arg19[%c24_261, %c0_262], %330 {strides = array<i32>} : memref<96x64xf32, #tpu.memory_space<vmem>>, vector<8x64xf32>,
    %c64 = arith.constant 64 : index
    %c0_263 = arith.constant 0 : index
    %332 = tpu.strided_load %arg18[%c64, %c0_263] {strides = array<i32: 2, 1>} : memref<256x64xf32, #tpu.memory_space<vmem>>, vector<8x64xf32>
    %c65 = arith.constant 65 : index
    %c0_264 = arith.constant 0 : index
    %333 = tpu.strided_load %arg18[%c65, %c0_264] {strides = array<i32: 2, 1>} : memref<256x64xf32, #tpu.memory_space<vmem>>, vector<8x64xf32>
    %c80 = arith.constant 80 : index
    %c0_265 = arith.constant 0 : index
    %334 = tpu.strided_load %arg18[%c80, %c0_265] {strides = array<i32: 2, 1>} : memref<256x64xf32, #tpu.memory_space<vmem>>, vector<8x64xf32>
    %c81 = arith.constant 81 : index
    %c0_266 = arith.constant 0 : index
    %335 = tpu.strided_load %arg18[%c81, %c0_266] {strides = array<i32: 2, 1>} : memref<256x64xf32, #tpu.memory_space<vmem>>, vector<8x64xf32>
    %336 = arith.maximumf %332, %333 : vector<8x64xf32>
    %337 = arith.maximumf %334, %335 : vector<8x64xf32>
    %338 = arith.maximumf %336, %337 : vector<8x64xf32>
    %c32_267 = arith.constant 32 : index
    %c0_268 = arith.constant 0 : index
    %339 = vector.load %arg19[%c32_267, %c0_268] : memref<96x64xf32, #tpu.memory_space<vmem>>, vector<8x64xf32>
    tpu.vector_store %arg19[%c32_267, %c0_268], %338 {strides = array<i32>} : memref<96x64xf32, #tpu.memory_space<vmem>>, vector<8x64xf32>,
    %c96 = arith.constant 96 : index
    %c0_269 = arith.constant 0 : index
    %340 = tpu.strided_load %arg18[%c96, %c0_269] {strides = array<i32: 2, 1>} : memref<256x64xf32, #tpu.memory_space<vmem>>, vector<8x64xf32>
    %c97 = arith.constant 97 : index
    %c0_270 = arith.constant 0 : index
    %341 = tpu.strided_load %arg18[%c97, %c0_270] {strides = array<i32: 2, 1>} : memref<256x64xf32, #tpu.memory_space<vmem>>, vector<8x64xf32>
    %c112 = arith.constant 112 : index
    %c0_271 = arith.constant 0 : index
    %342 = tpu.strided_load %arg18[%c112, %c0_271] {strides = array<i32: 2, 1>} : memref<256x64xf32, #tpu.memory_space<vmem>>, vector<8x64xf32>
    %c113 = arith.constant 113 : index
    %c0_272 = arith.constant 0 : index
    %343 = tpu.strided_load %arg18[%c113, %c0_272] {strides = array<i32: 2, 1>} : memref<256x64xf32, #tpu.memory_space<vmem>>, vector<8x64xf32>
    %344 = arith.maximumf %340, %341 : vector<8x64xf32>
    %345 = arith.maximumf %342, %343 : vector<8x64xf32>
    %346 = arith.maximumf %344, %345 : vector<8x64xf32>
    %c40_273 = arith.constant 40 : index
    %c0_274 = arith.constant 0 : index
    %347 = vector.load %arg19[%c40_273, %c0_274] : memref<96x64xf32, #tpu.memory_space<vmem>>, vector<8x64xf32>
    tpu.vector_store %arg19[%c40_273, %c0_274], %346 {strides = array<i32>} : memref<96x64xf32, #tpu.memory_space<vmem>>, vector<8x64xf32>,
    %c128_275 = arith.constant 128 : index
    %c0_276 = arith.constant 0 : index
    %348 = tpu.strided_load %arg18[%c128_275, %c0_276] {strides = array<i32: 2, 1>} : memref<256x64xf32, #tpu.memory_space<vmem>>, vector<8x64xf32>
    %c129 = arith.constant 129 : index
    %c0_277 = arith.constant 0 : index
    %349 = tpu.strided_load %arg18[%c129, %c0_277] {strides = array<i32: 2, 1>} : memref<256x64xf32, #tpu.memory_space<vmem>>, vector<8x64xf32>
    %c144 = arith.constant 144 : index
    %c0_278 = arith.constant 0 : index
    %350 = tpu.strided_load %arg18[%c144, %c0_278] {strides = array<i32: 2, 1>} : memref<256x64xf32, #tpu.memory_space<vmem>>, vector<8x64xf32>
    %c145 = arith.constant 145 : index
    %c0_279 = arith.constant 0 : index
    %351 = tpu.strided_load %arg18[%c145, %c0_279] {strides = array<i32: 2, 1>} : memref<256x64xf32, #tpu.memory_space<vmem>>, vector<8x64xf32>
    %352 = arith.maximumf %348, %349 : vector<8x64xf32>
    %353 = arith.maximumf %350, %351 : vector<8x64xf32>
    %354 = arith.maximumf %352, %353 : vector<8x64xf32>
    %c48_280 = arith.constant 48 : index
    %c0_281 = arith.constant 0 : index
    %355 = vector.load %arg19[%c48_280, %c0_281] : memref<96x64xf32, #tpu.memory_space<vmem>>, vector<8x64xf32>
    tpu.vector_store %arg19[%c48_280, %c0_281], %354 {strides = array<i32>} : memref<96x64xf32, #tpu.memory_space<vmem>>, vector<8x64xf32>,
    %c160 = arith.constant 160 : index
    %c0_282 = arith.constant 0 : index
    %356 = tpu.strided_load %arg18[%c160, %c0_282] {strides = array<i32: 2, 1>} : memref<256x64xf32, #tpu.memory_space<vmem>>, vector<8x64xf32>
    %c161 = arith.constant 161 : index
    %c0_283 = arith.constant 0 : index
    %357 = tpu.strided_load %arg18[%c161, %c0_283] {strides = array<i32: 2, 1>} : memref<256x64xf32, #tpu.memory_space<vmem>>, vector<8x64xf32>
    %c176 = arith.constant 176 : index
    %c0_284 = arith.constant 0 : index
    %358 = tpu.strided_load %arg18[%c176, %c0_284] {strides = array<i32: 2, 1>} : memref<256x64xf32, #tpu.memory_space<vmem>>, vector<8x64xf32>
    %c177 = arith.constant 177 : index
    %c0_285 = arith.constant 0 : index
    %359 = tpu.strided_load %arg18[%c177, %c0_285] {strides = array<i32: 2, 1>} : memref<256x64xf32, #tpu.memory_space<vmem>>, vector<8x64xf32>
    %360 = arith.maximumf %356, %357 : vector<8x64xf32>
    %361 = arith.maximumf %358, %359 : vector<8x64xf32>
    %362 = arith.maximumf %360, %361 : vector<8x64xf32>
    %c56 = arith.constant 56 : index
    %c0_286 = arith.constant 0 : index
    %363 = vector.load %arg19[%c56, %c0_286] : memref<96x64xf32, #tpu.memory_space<vmem>>, vector<8x64xf32>
    tpu.vector_store %arg19[%c56, %c0_286], %362 {strides = array<i32>} : memref<96x64xf32, #tpu.memory_space<vmem>>, vector<8x64xf32>,
    %c192 = arith.constant 192 : index
    %c0_287 = arith.constant 0 : index
    %364 = tpu.strided_load %arg18[%c192, %c0_287] {strides = array<i32: 2, 1>} : memref<256x64xf32, #tpu.memory_space<vmem>>, vector<8x64xf32>
    %c193 = arith.constant 193 : index
    %c0_288 = arith.constant 0 : index
    %365 = tpu.strided_load %arg18[%c193, %c0_288] {strides = array<i32: 2, 1>} : memref<256x64xf32, #tpu.memory_space<vmem>>, vector<8x64xf32>
    %c208 = arith.constant 208 : index
    %c0_289 = arith.constant 0 : index
    %366 = tpu.strided_load %arg18[%c208, %c0_289] {strides = array<i32: 2, 1>} : memref<256x64xf32, #tpu.memory_space<vmem>>, vector<8x64xf32>
    %c209 = arith.constant 209 : index
    %c0_290 = arith.constant 0 : index
    %367 = tpu.strided_load %arg18[%c209, %c0_290] {strides = array<i32: 2, 1>} : memref<256x64xf32, #tpu.memory_space<vmem>>, vector<8x64xf32>
    %368 = arith.maximumf %364, %365 : vector<8x64xf32>
    %369 = arith.maximumf %366, %367 : vector<8x64xf32>
    %370 = arith.maximumf %368, %369 : vector<8x64xf32>
    %c64_291 = arith.constant 64 : index
    %c0_292 = arith.constant 0 : index
    %371 = vector.load %arg19[%c64_291, %c0_292] : memref<96x64xf32, #tpu.memory_space<vmem>>, vector<8x64xf32>
    tpu.vector_store %arg19[%c64_291, %c0_292], %370 {strides = array<i32>} : memref<96x64xf32, #tpu.memory_space<vmem>>, vector<8x64xf32>,
    %c224 = arith.constant 224 : index
    %c0_293 = arith.constant 0 : index
    %372 = tpu.strided_load %arg18[%c224, %c0_293] {strides = array<i32: 2, 1>} : memref<256x64xf32, #tpu.memory_space<vmem>>, vector<8x64xf32>
    %c225 = arith.constant 225 : index
    %c0_294 = arith.constant 0 : index
    %373 = tpu.strided_load %arg18[%c225, %c0_294] {strides = array<i32: 2, 1>} : memref<256x64xf32, #tpu.memory_space<vmem>>, vector<8x64xf32>
    %c240 = arith.constant 240 : index
    %c0_295 = arith.constant 0 : index
    %374 = tpu.strided_load %arg18[%c240, %c0_295] {strides = array<i32: 2, 1>} : memref<256x64xf32, #tpu.memory_space<vmem>>, vector<8x64xf32>
    %c241 = arith.constant 241 : index
    %c0_296 = arith.constant 0 : index
    %375 = tpu.strided_load %arg18[%c241, %c0_296] {strides = array<i32: 2, 1>} : memref<256x64xf32, #tpu.memory_space<vmem>>, vector<8x64xf32>
    %376 = arith.maximumf %372, %373 : vector<8x64xf32>
    %377 = arith.maximumf %374, %375 : vector<8x64xf32>
    %378 = arith.maximumf %376, %377 : vector<8x64xf32>
    %c72 = arith.constant 72 : index
    %c0_297 = arith.constant 0 : index
    %379 = vector.load %arg19[%c72, %c0_297] : memref<96x64xf32, #tpu.memory_space<vmem>>, vector<8x64xf32>
    tpu.vector_store %arg19[%c72, %c0_297], %378 {strides = array<i32>} : memref<96x64xf32, #tpu.memory_space<vmem>>, vector<8x64xf32>,
    %c0_298 = arith.constant 0 : index
    %c0_299 = arith.constant 0 : index
    %380 = vector.load %arg4[%c0_298, %c0_299] : memref<64x1xf32, #tpu.memory_space<vmem>>, vector<64x1xf32>
    %c0_300 = arith.constant 0 : index
    %c0_301 = arith.constant 0 : index
    %381 = vector.load %arg5[%c0_300, %c0_301] : memref<64x1xf32, #tpu.memory_space<vmem>>, vector<64x1xf32>
    %cst_302 = arith.constant 0.000000e+00 : f32
    %382 = vector.broadcast %cst_302 : f32 to vector<64x128xf32>
    %c7_303 = arith.constant 7 : index
    %c0_304 = arith.constant 0 : index
    %383 = vector.load %arg19[%c7_303, %c0_304] : memref<96x64xf32, #tpu.memory_space<vmem>>, vector<64x64xf32>
    %384 = vector.broadcast %380 : vector<64x1xf32> to vector<64x64xf32>
    %385 = arith.mulf %383, %384 : vector<64x64xf32>
    %386 = arith.truncf %385 : vector<64x64xf32> to vector<64x64xbf16>
    %c0_305 = arith.constant 0 : index
    %c0_306 = arith.constant 0 : index
    %c0_307 = arith.constant 0 : index
    %387 = vector.load %arg11[%c0_305, %c0_306, %c0_307] : memref<9x64x128xbf16, #tpu.memory_space<vmem>>, vector<1x64x128xbf16>
    %388 = vector.shape_cast %387 : vector<1x64x128xbf16> to vector<64x128xbf16>
    %cst_308 = arith.constant dense<0.000000e+00> : vector<64x128xf32>
    %389 = tpu.matmul %386, %388, %cst_308 {dimension_numbers = #tpu.dot_dimension_numbers<[1], [0], [0], [1], [0, 0, 1, 1], [], []>} : vector<64x64xbf16>, vector<64x128xbf16>, vector<64x128xf32> -> vector<64x128xf32>
    %390 = arith.addf %382, %389 : vector<64x128xf32>
    %c8_309 = arith.constant 8 : index
    %c0_310 = arith.constant 0 : index
    %391 = vector.load %arg19[%c8_309, %c0_310] : memref<96x64xf32, #tpu.memory_space<vmem>>, vector<64x64xf32>
    %392 = arith.truncf %391 : vector<64x64xf32> to vector<64x64xbf16>
    %c1_311 = arith.constant 1 : index
    %c0_312 = arith.constant 0 : index
    %c0_313 = arith.constant 0 : index
    %393 = vector.load %arg11[%c1_311, %c0_312, %c0_313] : memref<9x64x128xbf16, #tpu.memory_space<vmem>>, vector<1x64x128xbf16>
    %394 = vector.shape_cast %393 : vector<1x64x128xbf16> to vector<64x128xbf16>
    %cst_314 = arith.constant dense<0.000000e+00> : vector<64x128xf32>
    %395 = tpu.matmul %392, %394, %cst_314 {dimension_numbers = #tpu.dot_dimension_numbers<[1], [0], [0], [1], [0, 0, 1, 1], [], []>} : vector<64x64xbf16>, vector<64x128xbf16>, vector<64x128xf32> -> vector<64x128xf32>
    %396 = arith.addf %390, %395 : vector<64x128xf32>
    %c9_315 = arith.constant 9 : index
    %c0_316 = arith.constant 0 : index
    %397 = vector.load %arg19[%c9_315, %c0_316] : memref<96x64xf32, #tpu.memory_space<vmem>>, vector<64x64xf32>
    %398 = vector.broadcast %381 : vector<64x1xf32> to vector<64x64xf32>
    %399 = arith.mulf %397, %398 : vector<64x64xf32>
    %400 = arith.truncf %399 : vector<64x64xf32> to vector<64x64xbf16>
    %c2_317 = arith.constant 2 : index
    %c0_318 = arith.constant 0 : index
    %c0_319 = arith.constant 0 : index
    %401 = vector.load %arg11[%c2_317, %c0_318, %c0_319] : memref<9x64x128xbf16, #tpu.memory_space<vmem>>, vector<1x64x128xbf16>
    %402 = vector.shape_cast %401 : vector<1x64x128xbf16> to vector<64x128xbf16>
    %cst_320 = arith.constant dense<0.000000e+00> : vector<64x128xf32>
    %403 = tpu.matmul %400, %402, %cst_320 {dimension_numbers = #tpu.dot_dimension_numbers<[1], [0], [0], [1], [0, 0, 1, 1], [], []>} : vector<64x64xbf16>, vector<64x128xbf16>, vector<64x128xf32> -> vector<64x128xf32>
    %404 = arith.addf %396, %403 : vector<64x128xf32>
    %c15 = arith.constant 15 : index
    %c0_321 = arith.constant 0 : index
    %405 = vector.load %arg19[%c15, %c0_321] : memref<96x64xf32, #tpu.memory_space<vmem>>, vector<64x64xf32>
    %406 = vector.broadcast %380 : vector<64x1xf32> to vector<64x64xf32>
    %407 = arith.mulf %405, %406 : vector<64x64xf32>
    %408 = arith.truncf %407 : vector<64x64xf32> to vector<64x64xbf16>
    %c3_322 = arith.constant 3 : index
    %c0_323 = arith.constant 0 : index
    %c0_324 = arith.constant 0 : index
    %409 = vector.load %arg11[%c3_322, %c0_323, %c0_324] : memref<9x64x128xbf16, #tpu.memory_space<vmem>>, vector<1x64x128xbf16>
    %410 = vector.shape_cast %409 : vector<1x64x128xbf16> to vector<64x128xbf16>
    %cst_325 = arith.constant dense<0.000000e+00> : vector<64x128xf32>
    %411 = tpu.matmul %408, %410, %cst_325 {dimension_numbers = #tpu.dot_dimension_numbers<[1], [0], [0], [1], [0, 0, 1, 1], [], []>} : vector<64x64xbf16>, vector<64x128xbf16>, vector<64x128xf32> -> vector<64x128xf32>
    %412 = arith.addf %404, %411 : vector<64x128xf32>
    %c16_326 = arith.constant 16 : index
    %c0_327 = arith.constant 0 : index
    %413 = vector.load %arg19[%c16_326, %c0_327] : memref<96x64xf32, #tpu.memory_space<vmem>>, vector<64x64xf32>
    %414 = arith.truncf %413 : vector<64x64xf32> to vector<64x64xbf16>
    %c4_328 = arith.constant 4 : index
    %c0_329 = arith.constant 0 : index
    %c0_330 = arith.constant 0 : index
    %415 = vector.load %arg11[%c4_328, %c0_329, %c0_330] : memref<9x64x128xbf16, #tpu.memory_space<vmem>>, vector<1x64x128xbf16>
    %416 = vector.shape_cast %415 : vector<1x64x128xbf16> to vector<64x128xbf16>
    %cst_331 = arith.constant dense<0.000000e+00> : vector<64x128xf32>
    %417 = tpu.matmul %414, %416, %cst_331 {dimension_numbers = #tpu.dot_dimension_numbers<[1], [0], [0], [1], [0, 0, 1, 1], [], []>} : vector<64x64xbf16>, vector<64x128xbf16>, vector<64x128xf32> -> vector<64x128xf32>
    %418 = arith.addf %412, %417 : vector<64x128xf32>
    %c17_332 = arith.constant 17 : index
    %c0_333 = arith.constant 0 : index
    %419 = vector.load %arg19[%c17_332, %c0_333] : memref<96x64xf32, #tpu.memory_space<vmem>>, vector<64x64xf32>
    %420 = vector.broadcast %381 : vector<64x1xf32> to vector<64x64xf32>
    %421 = arith.mulf %419, %420 : vector<64x64xf32>
    %422 = arith.truncf %421 : vector<64x64xf32> to vector<64x64xbf16>
    %c5_334 = arith.constant 5 : index
    %c0_335 = arith.constant 0 : index
    %c0_336 = arith.constant 0 : index
    %423 = vector.load %arg11[%c5_334, %c0_335, %c0_336] : memref<9x64x128xbf16, #tpu.memory_space<vmem>>, vector<1x64x128xbf16>
    %424 = vector.shape_cast %423 : vector<1x64x128xbf16> to vector<64x128xbf16>
    %cst_337 = arith.constant dense<0.000000e+00> : vector<64x128xf32>
    %425 = tpu.matmul %422, %424, %cst_337 {dimension_numbers = #tpu.dot_dimension_numbers<[1], [0], [0], [1], [0, 0, 1, 1], [], []>} : vector<64x64xbf16>, vector<64x128xbf16>, vector<64x128xf32> -> vector<64x128xf32>
    %426 = arith.addf %418, %425 : vector<64x128xf32>
    %c23_338 = arith.constant 23 : index
    %c0_339 = arith.constant 0 : index
    %427 = vector.load %arg19[%c23_338, %c0_339] : memref<96x64xf32, #tpu.memory_space<vmem>>, vector<64x64xf32>
    %428 = vector.broadcast %380 : vector<64x1xf32> to vector<64x64xf32>
    %429 = arith.mulf %427, %428 : vector<64x64xf32>
    %430 = arith.truncf %429 : vector<64x64xf32> to vector<64x64xbf16>
    %c6_340 = arith.constant 6 : index
    %c0_341 = arith.constant 0 : index
    %c0_342 = arith.constant 0 : index
    %431 = vector.load %arg11[%c6_340, %c0_341, %c0_342] : memref<9x64x128xbf16, #tpu.memory_space<vmem>>, vector<1x64x128xbf16>
    %432 = vector.shape_cast %431 : vector<1x64x128xbf16> to vector<64x128xbf16>
    %cst_343 = arith.constant dense<0.000000e+00> : vector<64x128xf32>
    %433 = tpu.matmul %430, %432, %cst_343 {dimension_numbers = #tpu.dot_dimension_numbers<[1], [0], [0], [1], [0, 0, 1, 1], [], []>} : vector<64x64xbf16>, vector<64x128xbf16>, vector<64x128xf32> -> vector<64x128xf32>
    %434 = arith.addf %426, %433 : vector<64x128xf32>
    %c24_344 = arith.constant 24 : index
    %c0_345 = arith.constant 0 : index
    %435 = vector.load %arg19[%c24_344, %c0_345] : memref<96x64xf32, #tpu.memory_space<vmem>>, vector<64x64xf32>
    %436 = arith.truncf %435 : vector<64x64xf32> to vector<64x64xbf16>
    %c7_346 = arith.constant 7 : index
    %c0_347 = arith.constant 0 : index
    %c0_348 = arith.constant 0 : index
    %437 = vector.load %arg11[%c7_346, %c0_347, %c0_348] : memref<9x64x128xbf16, #tpu.memory_space<vmem>>, vector<1x64x128xbf16>
    %438 = vector.shape_cast %437 : vector<1x64x128xbf16> to vector<64x128xbf16>
    %cst_349 = arith.constant dense<0.000000e+00> : vector<64x128xf32>
    %439 = tpu.matmul %436, %438, %cst_349 {dimension_numbers = #tpu.dot_dimension_numbers<[1], [0], [0], [1], [0, 0, 1, 1], [], []>} : vector<64x64xbf16>, vector<64x128xbf16>, vector<64x128xf32> -> vector<64x128xf32>
    %440 = arith.addf %434, %439 : vector<64x128xf32>
    %c25_350 = arith.constant 25 : index
    %c0_351 = arith.constant 0 : index
    %441 = vector.load %arg19[%c25_350, %c0_351] : memref<96x64xf32, #tpu.memory_space<vmem>>, vector<64x64xf32>
    %442 = vector.broadcast %381 : vector<64x1xf32> to vector<64x64xf32>
    %443 = arith.mulf %441, %442 : vector<64x64xf32>
    %444 = arith.truncf %443 : vector<64x64xf32> to vector<64x64xbf16>
    %c8_352 = arith.constant 8 : index
    %c0_353 = arith.constant 0 : index
    %c0_354 = arith.constant 0 : index
    %445 = vector.load %arg11[%c8_352, %c0_353, %c0_354] : memref<9x64x128xbf16, #tpu.memory_space<vmem>>, vector<1x64x128xbf16>
    %446 = vector.shape_cast %445 : vector<1x64x128xbf16> to vector<64x128xbf16>
    %cst_355 = arith.constant dense<0.000000e+00> : vector<64x128xf32>
    %447 = tpu.matmul %444, %446, %cst_355 {dimension_numbers = #tpu.dot_dimension_numbers<[1], [0], [0], [1], [0, 0, 1, 1], [], []>} : vector<64x64xbf16>, vector<64x128xbf16>, vector<64x128xf32> -> vector<64x128xf32>
    %448 = arith.addf %440, %447 : vector<64x128xf32>
    %c0_356 = arith.constant 0 : index
    %c0_357 = arith.constant 0 : index
    %449 = vector.load %arg12[%c0_356, %c0_357] : memref<1x128xf32, #tpu.memory_space<vmem>>, vector<1x128xf32>
    %450 = vector.broadcast %449 : vector<1x128xf32> to vector<64x128xf32>
    %451 = arith.addf %448, %450 : vector<64x128xf32>
    %cst_358 = arith.constant 0.000000e+00 : f32
    %452 = vector.broadcast %cst_358 : f32 to vector<64x128xf32>
    %453 = arith.maximumf %451, %452 : vector<64x128xf32>
    %c16_359 = arith.constant 16 : index
    %c0_360 = arith.constant 0 : index
    %454 = vector.load %arg20[%c16_359, %c0_360] : memref<96x128xf32, #tpu.memory_space<vmem>>, vector<64x128xf32>
    tpu.vector_store %arg20[%c16_359, %c0_360], %453 {strides = array<i32>} : memref<96x128xf32, #tpu.memory_space<vmem>>, vector<64x128xf32>,
    %c0_361 = arith.constant 0 : index
    %c0_362 = arith.constant 0 : index
    %455 = vector.load %arg4[%c0_361, %c0_362] : memref<64x1xf32, #tpu.memory_space<vmem>>, vector<64x1xf32>
    %c0_363 = arith.constant 0 : index
    %c0_364 = arith.constant 0 : index
    %456 = vector.load %arg5[%c0_363, %c0_364] : memref<64x1xf32, #tpu.memory_space<vmem>>, vector<64x1xf32>
    %cst_365 = arith.constant 0.000000e+00 : f32
    %457 = vector.broadcast %cst_365 : f32 to vector<64x128xf32>
    %c7_366 = arith.constant 7 : index
    %c0_367 = arith.constant 0 : index
    %458 = vector.load %arg20[%c7_366, %c0_367] : memref<96x128xf32, #tpu.memory_space<vmem>>, vector<64x128xf32>
    %459 = vector.broadcast %455 : vector<64x1xf32> to vector<64x128xf32>
    %460 = arith.mulf %458, %459 : vector<64x128xf32>
    %461 = arith.truncf %460 : vector<64x128xf32> to vector<64x128xbf16>
    %c0_368 = arith.constant 0 : index
    %c0_369 = arith.constant 0 : index
    %c0_370 = arith.constant 0 : index
    %462 = vector.load %arg13[%c0_368, %c0_369, %c0_370] : memref<9x128x128xbf16, #tpu.memory_space<vmem>>, vector<1x128x128xbf16>
    %463 = vector.shape_cast %462 : vector<1x128x128xbf16> to vector<128x128xbf16>
    %cst_371 = arith.constant dense<0.000000e+00> : vector<64x128xf32>
    %464 = tpu.matmul %461, %463, %cst_371 {dimension_numbers = #tpu.dot_dimension_numbers<[1], [0], [0], [1], [0, 0, 1, 1], [], []>} : vector<64x128xbf16>, vector<128x128xbf16>, vector<64x128xf32> -> vector<64x128xf32>
    %465 = arith.addf %457, %464 : vector<64x128xf32>
    %c8_372 = arith.constant 8 : index
    %c0_373 = arith.constant 0 : index
    %466 = vector.load %arg20[%c8_372, %c0_373] : memref<96x128xf32, #tpu.memory_space<vmem>>, vector<64x128xf32>
    %467 = arith.truncf %466 : vector<64x128xf32> to vector<64x128xbf16>
    %c1_374 = arith.constant 1 : index
    %c0_375 = arith.constant 0 : index
    %c0_376 = arith.constant 0 : index
    %468 = vector.load %arg13[%c1_374, %c0_375, %c0_376] : memref<9x128x128xbf16, #tpu.memory_space<vmem>>, vector<1x128x128xbf16>
    %469 = vector.shape_cast %468 : vector<1x128x128xbf16> to vector<128x128xbf16>
    %cst_377 = arith.constant dense<0.000000e+00> : vector<64x128xf32>
    %470 = tpu.matmul %467, %469, %cst_377 {dimension_numbers = #tpu.dot_dimension_numbers<[1], [0], [0], [1], [0, 0, 1, 1], [], []>} : vector<64x128xbf16>, vector<128x128xbf16>, vector<64x128xf32> -> vector<64x128xf32>
    %471 = arith.addf %465, %470 : vector<64x128xf32>
    %c9_378 = arith.constant 9 : index
    %c0_379 = arith.constant 0 : index
    %472 = vector.load %arg20[%c9_378, %c0_379] : memref<96x128xf32, #tpu.memory_space<vmem>>, vector<64x128xf32>
    %473 = vector.broadcast %456 : vector<64x1xf32> to vector<64x128xf32>
    %474 = arith.mulf %472, %473 : vector<64x128xf32>
    %475 = arith.truncf %474 : vector<64x128xf32> to vector<64x128xbf16>
    %c2_380 = arith.constant 2 : index
    %c0_381 = arith.constant 0 : index
    %c0_382 = arith.constant 0 : index
    %476 = vector.load %arg13[%c2_380, %c0_381, %c0_382] : memref<9x128x128xbf16, #tpu.memory_space<vmem>>, vector<1x128x128xbf16>
    %477 = vector.shape_cast %476 : vector<1x128x128xbf16> to vector<128x128xbf16>
    %cst_383 = arith.constant dense<0.000000e+00> : vector<64x128xf32>
    %478 = tpu.matmul %475, %477, %cst_383 {dimension_numbers = #tpu.dot_dimension_numbers<[1], [0], [0], [1], [0, 0, 1, 1], [], []>} : vector<64x128xbf16>, vector<128x128xbf16>, vector<64x128xf32> -> vector<64x128xf32>
    %479 = arith.addf %471, %478 : vector<64x128xf32>
    %c15_384 = arith.constant 15 : index
    %c0_385 = arith.constant 0 : index
    %480 = vector.load %arg20[%c15_384, %c0_385] : memref<96x128xf32, #tpu.memory_space<vmem>>, vector<64x128xf32>
    %481 = vector.broadcast %455 : vector<64x1xf32> to vector<64x128xf32>
    %482 = arith.mulf %480, %481 : vector<64x128xf32>
    %483 = arith.truncf %482 : vector<64x128xf32> to vector<64x128xbf16>
    %c3_386 = arith.constant 3 : index
    %c0_387 = arith.constant 0 : index
    %c0_388 = arith.constant 0 : index
    %484 = vector.load %arg13[%c3_386, %c0_387, %c0_388] : memref<9x128x128xbf16, #tpu.memory_space<vmem>>, vector<1x128x128xbf16>
    %485 = vector.shape_cast %484 : vector<1x128x128xbf16> to vector<128x128xbf16>
    %cst_389 = arith.constant dense<0.000000e+00> : vector<64x128xf32>
    %486 = tpu.matmul %483, %485, %cst_389 {dimension_numbers = #tpu.dot_dimension_numbers<[1], [0], [0], [1], [0, 0, 1, 1], [], []>} : vector<64x128xbf16>, vector<128x128xbf16>, vector<64x128xf32> -> vector<64x128xf32>
    %487 = arith.addf %479, %486 : vector<64x128xf32>
    %c16_390 = arith.constant 16 : index
    %c0_391 = arith.constant 0 : index
    %488 = vector.load %arg20[%c16_390, %c0_391] : memref<96x128xf32, #tpu.memory_space<vmem>>, vector<64x128xf32>
    %489 = arith.truncf %488 : vector<64x128xf32> to vector<64x128xbf16>
    %c4_392 = arith.constant 4 : index
    %c0_393 = arith.constant 0 : index
    %c0_394 = arith.constant 0 : index
    %490 = vector.load %arg13[%c4_392, %c0_393, %c0_394] : memref<9x128x128xbf16, #tpu.memory_space<vmem>>, vector<1x128x128xbf16>
    %491 = vector.shape_cast %490 : vector<1x128x128xbf16> to vector<128x128xbf16>
    %cst_395 = arith.constant dense<0.000000e+00> : vector<64x128xf32>
    %492 = tpu.matmul %489, %491, %cst_395 {dimension_numbers = #tpu.dot_dimension_numbers<[1], [0], [0], [1], [0, 0, 1, 1], [], []>} : vector<64x128xbf16>, vector<128x128xbf16>, vector<64x128xf32> -> vector<64x128xf32>
    %493 = arith.addf %487, %492 : vector<64x128xf32>
    %c17_396 = arith.constant 17 : index
    %c0_397 = arith.constant 0 : index
    %494 = vector.load %arg20[%c17_396, %c0_397] : memref<96x128xf32, #tpu.memory_space<vmem>>, vector<64x128xf32>
    %495 = vector.broadcast %456 : vector<64x1xf32> to vector<64x128xf32>
    %496 = arith.mulf %494, %495 : vector<64x128xf32>
    %497 = arith.truncf %496 : vector<64x128xf32> to vector<64x128xbf16>
    %c5_398 = arith.constant 5 : index
    %c0_399 = arith.constant 0 : index
    %c0_400 = arith.constant 0 : index
    %498 = vector.load %arg13[%c5_398, %c0_399, %c0_400] : memref<9x128x128xbf16, #tpu.memory_space<vmem>>, vector<1x128x128xbf16>
    %499 = vector.shape_cast %498 : vector<1x128x128xbf16> to vector<128x128xbf16>
    %cst_401 = arith.constant dense<0.000000e+00> : vector<64x128xf32>
    %500 = tpu.matmul %497, %499, %cst_401 {dimension_numbers = #tpu.dot_dimension_numbers<[1], [0], [0], [1], [0, 0, 1, 1], [], []>} : vector<64x128xbf16>, vector<128x128xbf16>, vector<64x128xf32> -> vector<64x128xf32>
    %501 = arith.addf %493, %500 : vector<64x128xf32>
    %c23_402 = arith.constant 23 : index
    %c0_403 = arith.constant 0 : index
    %502 = vector.load %arg20[%c23_402, %c0_403] : memref<96x128xf32, #tpu.memory_space<vmem>>, vector<64x128xf32>
    %503 = vector.broadcast %455 : vector<64x1xf32> to vector<64x128xf32>
    %504 = arith.mulf %502, %503 : vector<64x128xf32>
    %505 = arith.truncf %504 : vector<64x128xf32> to vector<64x128xbf16>
    %c6_404 = arith.constant 6 : index
    %c0_405 = arith.constant 0 : index
    %c0_406 = arith.constant 0 : index
    %506 = vector.load %arg13[%c6_404, %c0_405, %c0_406] : memref<9x128x128xbf16, #tpu.memory_space<vmem>>, vector<1x128x128xbf16>
    %507 = vector.shape_cast %506 : vector<1x128x128xbf16> to vector<128x128xbf16>
    %cst_407 = arith.constant dense<0.000000e+00> : vector<64x128xf32>
    %508 = tpu.matmul %505, %507, %cst_407 {dimension_numbers = #tpu.dot_dimension_numbers<[1], [0], [0], [1], [0, 0, 1, 1], [], []>} : vector<64x128xbf16>, vector<128x128xbf16>, vector<64x128xf32> -> vector<64x128xf32>
    %509 = arith.addf %501, %508 : vector<64x128xf32>
    %c24_408 = arith.constant 24 : index
    %c0_409 = arith.constant 0 : index
    %510 = vector.load %arg20[%c24_408, %c0_409] : memref<96x128xf32, #tpu.memory_space<vmem>>, vector<64x128xf32>
    %511 = arith.truncf %510 : vector<64x128xf32> to vector<64x128xbf16>
    %c7_410 = arith.constant 7 : index
    %c0_411 = arith.constant 0 : index
    %c0_412 = arith.constant 0 : index
    %512 = vector.load %arg13[%c7_410, %c0_411, %c0_412] : memref<9x128x128xbf16, #tpu.memory_space<vmem>>, vector<1x128x128xbf16>
    %513 = vector.shape_cast %512 : vector<1x128x128xbf16> to vector<128x128xbf16>
    %cst_413 = arith.constant dense<0.000000e+00> : vector<64x128xf32>
    %514 = tpu.matmul %511, %513, %cst_413 {dimension_numbers = #tpu.dot_dimension_numbers<[1], [0], [0], [1], [0, 0, 1, 1], [], []>} : vector<64x128xbf16>, vector<128x128xbf16>, vector<64x128xf32> -> vector<64x128xf32>
    %515 = arith.addf %509, %514 : vector<64x128xf32>
    %c25_414 = arith.constant 25 : index
    %c0_415 = arith.constant 0 : index
    %516 = vector.load %arg20[%c25_414, %c0_415] : memref<96x128xf32, #tpu.memory_space<vmem>>, vector<64x128xf32>
    %517 = vector.broadcast %456 : vector<64x1xf32> to vector<64x128xf32>
    %518 = arith.mulf %516, %517 : vector<64x128xf32>
    %519 = arith.truncf %518 : vector<64x128xf32> to vector<64x128xbf16>
    %c8_416 = arith.constant 8 : index
    %c0_417 = arith.constant 0 : index
    %c0_418 = arith.constant 0 : index
    %520 = vector.load %arg13[%c8_416, %c0_417, %c0_418] : memref<9x128x128xbf16, #tpu.memory_space<vmem>>, vector<1x128x128xbf16>
    %521 = vector.shape_cast %520 : vector<1x128x128xbf16> to vector<128x128xbf16>
    %cst_419 = arith.constant dense<0.000000e+00> : vector<64x128xf32>
    %522 = tpu.matmul %519, %521, %cst_419 {dimension_numbers = #tpu.dot_dimension_numbers<[1], [0], [0], [1], [0, 0, 1, 1], [], []>} : vector<64x128xbf16>, vector<128x128xbf16>, vector<64x128xf32> -> vector<64x128xf32>
    %523 = arith.addf %515, %522 : vector<64x128xf32>
    %c0_420 = arith.constant 0 : index
    %c0_421 = arith.constant 0 : index
    %524 = vector.load %arg14[%c0_420, %c0_421] : memref<1x128xf32, #tpu.memory_space<vmem>>, vector<1x128xf32>
    %525 = vector.broadcast %524 : vector<1x128xf32> to vector<64x128xf32>
    %526 = arith.addf %523, %525 : vector<64x128xf32>
    %cst_422 = arith.constant 0.000000e+00 : f32
    %527 = vector.broadcast %cst_422 : f32 to vector<64x128xf32>
    %528 = arith.maximumf %526, %527 : vector<64x128xf32>
    %c0_423 = arith.constant 0 : index
    %c0_424 = arith.constant 0 : index
    %c0_425 = arith.constant 0 : index
    %529 = vector.load %arg15[%c0_423, %c0_424, %c0_425] : memref<1x64x128xf32, #tpu.memory_space<vmem>>, vector<1x64x128xf32>
    %530 = vector.shape_cast %529 : vector<1x64x128xf32> to vector<64x128xf32>
    %531 = vector.shape_cast %528 : vector<64x128xf32> to vector<1x64x128xf32>
    tpu.vector_store %arg15[%c0_423, %c0_424, %c0_425], %531 {strides = array<i32>} : memref<1x64x128xf32, #tpu.memory_space<vmem>>, vector<1x64x128xf32>,
    return
  }
  func.func @transform_0(%arg0: i32) -> (i32, i32) {
    %c0_i32 = arith.constant 0 : i32
    %c0_i32_0 = arith.constant 0 : i32
    %c0_i32_1 = arith.constant 0 : i32
    return %c0_i32, %c0_i32_0 : i32, i32
  }
  func.func @transform_1(%arg0: i32) -> (i32, i32) {
    %c0_i32 = arith.constant 0 : i32
    %c0_i32_0 = arith.constant 0 : i32
    %c0_i32_1 = arith.constant 0 : i32
    return %c0_i32, %c0_i32_0 : i32, i32
  }
  func.func @transform_2(%arg0: i32) -> (i32, i32) {
    %c0_i32 = arith.constant 0 : i32
    %c0_i32_0 = arith.constant 0 : i32
    %c0_i32_1 = arith.constant 0 : i32
    return %c0_i32, %c0_i32_0 : i32, i32
  }
  func.func @transform_3(%arg0: i32) -> (i32, i32) {
    %c0_i32 = arith.constant 0 : i32
    %c0_i32_0 = arith.constant 0 : i32
    %c0_i32_1 = arith.constant 0 : i32
    return %c0_i32, %c0_i32_0 : i32, i32
  }
  func.func @transform_4(%arg0: i32) -> (i32, i32) {
    %c0_i32 = arith.constant 0 : i32
    %c0_i32_0 = arith.constant 0 : i32
    %c0_i32_1 = arith.constant 0 : i32
    return %c0_i32, %c0_i32_0 : i32, i32
  }
  func.func @transform_5(%arg0: i32) -> (i32, i32, i32) {
    %c0_i32 = arith.constant 0 : i32
    %c0_i32_0 = arith.constant 0 : i32
    %c0_i32_1 = arith.constant 0 : i32
    return %arg0, %c0_i32, %c0_i32_0 : i32, i32, i32
  }
  func.func @transform_6(%arg0: i32) -> (i32, i32, i32) {
    %c0_i32 = arith.constant 0 : i32
    %c0_i32_0 = arith.constant 0 : i32
    %c0_i32_1 = arith.constant 0 : i32
    %c0_i32_2 = arith.constant 0 : i32
    return %c0_i32, %c0_i32_0, %c0_i32_1 : i32, i32, i32
  }
  func.func @transform_7(%arg0: i32) -> (i32, i32) {
    %c0_i32 = arith.constant 0 : i32
    %c0_i32_0 = arith.constant 0 : i32
    %c0_i32_1 = arith.constant 0 : i32
    return %c0_i32, %c0_i32_0 : i32, i32
  }
  func.func @transform_8(%arg0: i32) -> (i32, i32, i32) {
    %c0_i32 = arith.constant 0 : i32
    %c0_i32_0 = arith.constant 0 : i32
    %c0_i32_1 = arith.constant 0 : i32
    %c0_i32_2 = arith.constant 0 : i32
    return %c0_i32, %c0_i32_0, %c0_i32_1 : i32, i32, i32
  }
  func.func @transform_9(%arg0: i32) -> (i32, i32) {
    %c0_i32 = arith.constant 0 : i32
    %c0_i32_0 = arith.constant 0 : i32
    %c0_i32_1 = arith.constant 0 : i32
    return %c0_i32, %c0_i32_0 : i32, i32
  }
  func.func @transform_10(%arg0: i32) -> (i32, i32, i32) {
    %c0_i32 = arith.constant 0 : i32
    %c0_i32_0 = arith.constant 0 : i32
    %c0_i32_1 = arith.constant 0 : i32
    %c0_i32_2 = arith.constant 0 : i32
    return %c0_i32, %c0_i32_0, %c0_i32_1 : i32, i32, i32
  }
  func.func @transform_11(%arg0: i32) -> (i32, i32) {
    %c0_i32 = arith.constant 0 : i32
    %c0_i32_0 = arith.constant 0 : i32
    %c0_i32_1 = arith.constant 0 : i32
    return %c0_i32, %c0_i32_0 : i32, i32
  }
  func.func @transform_12(%arg0: i32) -> (i32, i32, i32) {
    %c0_i32 = arith.constant 0 : i32
    %c0_i32_0 = arith.constant 0 : i32
    %c0_i32_1 = arith.constant 0 : i32
    %c0_i32_2 = arith.constant 0 : i32
    return %c0_i32, %c0_i32_0, %c0_i32_1 : i32, i32, i32
  }
  func.func @transform_13(%arg0: i32) -> (i32, i32) {
    %c0_i32 = arith.constant 0 : i32
    %c0_i32_0 = arith.constant 0 : i32
    %c0_i32_1 = arith.constant 0 : i32
    return %c0_i32, %c0_i32_0 : i32, i32
  }
  func.func @transform_14(%arg0: i32) -> (i32, i32, i32) {
    %c0_i32 = arith.constant 0 : i32
    %c0_i32_0 = arith.constant 0 : i32
    %c0_i32_1 = arith.constant 0 : i32
    return %arg0, %c0_i32, %c0_i32_0 : i32, i32, i32
  }
}

</mosaic_0001>

<bundles_post_ra>
// kernel: vgg_features_pallas.1
= control target key start
LH: loop header
LB: loop body
LE: loop exit
PB: predicated region body
PF: predicated region fallthrough
CT: control target
= control target key end

     0   :  { %19 = vsyncpa [#allocation8], 0  ;;  %s20008_s0 = inlined_call_operand.vmem [shape: f32[1,8], index: 0, kind: input, shape index: {}]   ;;  %s20009_s1 = inlined_call_operand.vmem [shape: f32[256,1], index: 1, kind: input, shape index: {}]   ;;  %s20010_s2 = inlined_call_operand.vmem [shape: f32[256,1], index: 2, kind: input, shape index: {}]   ;;  %s20011_s3 = inlined_call_operand.vmem [shape: f32[64,1], index: 3, kind: input, shape index: {}]   ;;  %s20012_s4 = inlined_call_operand.vmem [shape: f32[64,1], index: 4, kind: input, shape index: {}]   ;;  %s20013_s5 = inlined_call_operand.vmem [shape: f32[2,256,8], index: 5, kind: input, shape index: {}]   ;;  %s20014_s6 = inlined_call_operand.vmem [shape: bf16[9,8,64], index: 6, kind: input, shape index: {}]   ;;  %s20015_s7 = inlined_call_operand.vmem [shape: f32[1,64], index: 7, kind: input, shape index: {}]   ;;  %s20016_s8 = inlined_call_operand.vmem [shape: bf16[9,64,64], index: 8, kind: input, shape index: {}]   ;;  %s20017_s9 = inlined_call_operand.vmem [shape: f32[1,64], index: 9, kind: input, shape index: {}]   ;;  %s20018_s10 = inlined_call_operand.vmem [shape: bf16[9,64,128], index: 10, kind: input, shape index: {}]   ;;  %s20019_s11 = inlined_call_operand.vmem [shape: f32[1,128], index: 11, kind: input, shape index: {}]   ;;  %s20020_s12 = inlined_call_operand.vmem [shape: bf16[9,128,128], index: 12, kind: input, shape index: {}]   ;;  %s20021_s13 = inlined_call_operand.vmem [shape: f32[1,128], index: 13, kind: input, shape index: {}]   ;;  %s20022_s14 = inlined_call_operand.hbm [shape: f32[2,64,128], index: 14, kind: output, shape index: {}]  }
   0x1   :  { %21 = vsyncpa [#allocation8 + $0x1], 0  ;;  %s14361_s29 = smov 0   ;;  %s14363_s30 = smov 0  }
   0x2   :  { %s14365_s15 = smov 0   ;;  %s14367_s16 = smov 0  }
   0x3 LB: > { %20214 = sst [smem:[#allocation10_spill]] %s14275_s15  ;;  %s14382_s17 = sadd.s32 4294967295, %s14279_s16   ;;  %s14279_s16 = sphi %s14367_s16, %s20894_s16   ;;  %s14275_s15 = sphi %s14365_s15, %s20896_s15   ;;  %s14271_s30 = sphi %s14363_s30, %s20898_s30   ;;  %s14267_s29 = sphi %s14361_s29, %s20897_s29  }
   0x4   : > { %s11416_s18 = sadd.s32 4294967294, %s14279_s16   ;;  %s14386_s19 = sadd.s32 1, %s14279_s16  }
   0x5   : > { %20215 = sst [smem:[#allocation11_spill]] %s14386_s19  ;;  %s333_s20 = sadd.s32 1, %s14275_s15 }
   0x6   : > { %s330_s21 = ssub.s32 %s14279_s16, %s14386_s19  ;;  %p343_p0 = scmp.ne.s32.totalorder %s14275_s15, %s14271_s30 }
   0x7   : > { %p331_p1 = scmp.eq.s32.totalorder %s330_s21, 0  ;;  %p344_p2 = scmp.eq.s32.totalorder %s14382_s17, 1 }
   0x8   : > { %p349_p3 = scmp.ne.s32.totalorder %s14271_s30, %s14267_s29  ;;  %p350_p4 = scmp.eq.s32.totalorder %s11416_s18, 1 }
   0x9   : > { %s14397_s22 = scalar_select %p331_p1, %s14275_s15, %s333_s20  }
   0xa   : > { %p14399_p5 = por %p344_p2, %p343_p0  ;;  %p14403_p6 = por %p350_p4, %p349_p3 }
   0xb   : > { %20216 = sst [smem:[#allocation12_spill]] %s14397_s22  ;;  %p11419_p7 = scmp.ge.s32.totalorder %s14279_s16, 1 }
   0xc   : > { %s20218_s24 = scalar_select %p14403_p6, 1, 0 }
   0xd   : > { %p415_p8 = scmp.lt.s32.totalorder %s14279_s16, 3 }
   0xe   : > { %20219 = sst [smem:[#allocation13_spill]] %s20218_s24 }
   0xf   : > { %p416_p9 = pnand %p11419_p7, %p415_p8 }
  0x11   : > { %419 = sbr.rel (%p416_p9) target bundleno = 1659 (0x67b), region = 76 }
  0x16   : > { %v710_v0 = vld [vmem:[%s20009_s1 + $0x30] sm:$0xff]  ;;  %v708_v1 = vld [vmem:[%s20009_s1 + $0x20] sm:$0xff]  ;;  %vm467_vm0 = vcmask 64512   ;;  %v14281_v2 = vmov 0   ;;  %v14282_v3 = vmov 0.0   ;;  %v711_v4 = vld [vmem:[%s20009_s1 + $0x38] sm:$0xff] }
  0x17   : > { %14016 = vset.pattern.permute.xlu1 %v14281_v2  ;;  %14015 = vset.pattern.permute.xlu0 %v14281_v2  ;;  %469 = vst.msk [vmem:[#allocation2 + $0x8] sm:$0xff] %vm467_vm0, %v14282_v3  ;;  %470 = vst.msk [vmem:[#allocation2 + $0x10] sm:$0xff] %vm467_vm0, %v14282_v3  ;;  %v709_v5 = vld [vmem:[%s20009_s1 + $0x28] sm:$0xff]  ;;  %v712_v7 = vld [vmem:[%s20009_s1 + $0x40] sm:$0xff]  ;;  %p461_p10 = scmp.lt.s32.totalorder %s14382_s17, 1  ;;  %vm907_vm1 = vcmask 1043456  }
  0x18   : > { %784 = vperm.xlu1 %14016, %v710_v0   ;;  %774 = vperm.xlu0 %14015, %v708_v1   ;;  %468 = vst.msk [vmem:[#allocation2] sm:$0xff] %vm467_vm0, %v14282_v3  ;;  %471 = vst.msk [vmem:[#allocation2 + $0x18] sm:$0xff] %vm467_vm0, %v14282_v3  ;;  %v713_v6 = vld [vmem:[%s20009_s1 + $0x48] sm:$0xff]  ;;  %v715_v8 = vld [vmem:[%s20009_s1 + $0x58] sm:$0xff]  ;;  %vm506_vm2 = vcmask 523264   ;;  %s12276_s18 = sshll.u32 %s14382_s17, 10 }
  0x19   : > { %472 = vst.msk [vmem:[#allocation2 + $0x20] sm:$0xff] %vm467_vm0, %v14282_v3  ;;  %473 = vst.msk [vmem:[#allocation2 + $0x28] sm:$0xff] %vm467_vm0, %v14282_v3  ;;  %v714_v9 = vld [vmem:[%s20009_s1 + $0x50] sm:$0xff]  ;;  %s462_s25 = scalar_select %p461_p10, %s14382_s17, 1  ;;  %v14518_v10 = vld [vmem:[%s20009_s1 + $0x8] sm:$0xff] }
  0x1a   : > { %474 = vst.msk [vmem:[#allocation2 + $0x30] sm:$0xff] %vm467_vm0, %v14282_v3  ;;  %475 = vst.msk [vmem:[#allocation2 + $0x38] sm:$0xff] %vm467_vm0, %v14282_v3  ;;  %v14523_v11 = vld [vmem:[%s20009_s1] sm:$0xff]  ;;  %v14538_v13 = vld [vmem:[%s20009_s1 + $0x18] sm:$0xff]  ;;  %s14283_s24 = smov [#allocation7]  }
  0x1b   : > { %476 = vst.msk [vmem:[#allocation2 + $0x40] sm:$0xff] %vm467_vm0, %v14282_v3  ;;  %477 = vst.msk [vmem:[#allocation2 + $0x48] sm:$0xff] %vm467_vm0, %v14282_v3  ;;  %s12275_s19 = sshll.u32 %s462_s25, 8  ;;  %v11424_v12 = vld [vmem:[%s20014_s6 + $0x4] sm:$0xf]  ;;  %v14543_v14 = vld [vmem:[%s20009_s1 + $0x10] sm:$0xff]  ;;  %s19960_s25 = scalar_lea.hbm %s20022_s14, %s12276_s18 }
  0x1c   : > { %478 = vst.msk [vmem:[#allocation2 + $0x50] sm:$0xff] %vm467_vm0, %v14282_v3  ;;  %479 = vst.msk [vmem:[#allocation2 + $0x58] sm:$0xff] %vm467_vm0, %v14282_v3  ;;  %789 = vperm.xlu1 %14016, %v711_v4   ;;  %779 = vperm.xlu0 %14015, %v709_v5   ;;  %s14533_s26 = scalar_lea.vmem %s20013_s5, %s12275_s19  ;;  %v909_v15 = vsel %vm907_vm1, %v11424_v12, 0  ;;  %v14552_v21 = vld [vmem:[%s20008_s0] ss:$0 sm:$0xff]  ;;  %v717_v22 = vld [vmem:[%s20009_s1 + $0x68] sm:$0xff] }
  0x1d   : > { %480 = vst.msk [vmem:[#allocation2 + $0x60] sm:$0xff] %vm467_vm0, %v14282_v3  ;;  %481 = vst.msk [vmem:[#allocation2 + $0x68] sm:$0xff] %vm467_vm0, %v14282_v3  ;;  %13953 = vmatprep.subr.msk.bf16.mxu0 %vm907_vm1, %v11424_v12  ;;  %v569_v19 = vld [vmem:[%s14533_s26] sm:$0xff]  ;;  %v570_v20 = vld [vmem:[%s14533_s26 + $0x8] sm:$0xff]  ;;  %s458_s19 = sand.u32 1, %s14271_s30  }
  0x1e   : > { %482 = vst.msk [vmem:[#allocation2 + $0x70] sm:$0xff] %vm467_vm0, %v14282_v3  ;;  %483 = vst.msk [vmem:[#allocation2 + $0x78] sm:$0xff] %vm467_vm0, %v14282_v3  ;;  %v857_v16 = vld [vmem:[#allocation2 + $0x8] sm:$0xff]  ;;  %12836 = vmatpush3.bf16.msra.mxu0 %v909_v15  ;;  %v858_v17 = vld [vmem:[#allocation2 + $0x10] sm:$0xff]  ;;  %v608_v24 = vsub.f32 %v569_v19, %v14552_v21  ;;  %v609_v25 = vsub.f32 %v570_v20, %v14552_v21  ;;  %s11420_s28 = sshll.u32 %s458_s19, 6  ;;  %s19968_s17 = scalar_lea.sflag [#allocation8], %s458_s19 }
  0x1f   : > { %484 = vst.msk [vmem:[#allocation2 + $0x80] sm:$0xff] %vm467_vm0, %v14282_v3  ;;  %485 = vst.msk [vmem:[#allocation2 + $0x88] sm:$0xff] %vm467_vm0, %v14282_v3  ;;  %v873_v18 = vpack.c.bf16 %v858_v17, %v857_v16  ;;  %v716_v23 = vld [vmem:[%s20009_s1 + $0x60] sm:$0xff]  ;;  %v572_v27 = vld [vmem:[%s14533_s26 + $0x18] sm:$0xff]  ;;  %s19939_s15 = scalar_lea.vmem [#allocation7], %s11420_s28 }
  0x20   : > { %486 = vst.msk [vmem:[#allocation2 + $0x90] sm:$0xff] %vm467_vm0, %v14282_v3  ;;  %487 = vst.msk [vmem:[#allocation2 + $0x98] sm:$0xff] %vm467_vm0, %v14282_v3  ;;  %799 = vperm.xlu1 %14016, %v713_v6   ;;  %794 = vperm.xlu0 %14015, %v712_v7   ;;  %v856_v26 = vld [vmem:[%s20014_s6] sm:$0xf]  ;;  %v574_v29 = vld [vmem:[%s14533_s26 + $0x28] sm:$0xff]  ;;  %v640_v31 = vmul.f32 255.0, %v608_v24  ;;  %v611_v36 = vsub.f32 %v572_v27, %v14552_v21 }
  0x21   : > { %488 = vst.msk [vmem:[#allocation2 + $0xa0] sm:$0xff] %vm467_vm0, %v14282_v3  ;;  %489 = vst.msk [vmem:[#allocation2 + $0xa8] sm:$0xff] %vm467_vm0, %v14282_v3  ;;  %12837 = vmatprep.mubr.msk.bf16.mxu0 %vm467_vm0, %v873_v18  ;;  %13954 = vmatprep.subr.msk.bf16.mxu0 %vm907_vm1, %v856_v26  ;;  %v573_v28 = vld [vmem:[%s14533_s26 + $0x20] sm:$0xff]  ;;  %v14573_v30 = vsel %vm907_vm1, %v856_v26, 0  ;;  %v641_v32 = vmul.f32 255.0, %v609_v25  ;;  %v575_v33 = vld [vmem:[%s14533_s26 + $0x30] sm:$0xff]  ;;  %v613_v40 = vsub.f32 %v574_v29, %v14552_v21 }
  0x22   : > { %490 = vst.msk [vmem:[#allocation2 + $0xb0] sm:$0xff] %vm467_vm0, %v14282_v3  ;;  %491 = vst.msk [vmem:[#allocation2 + $0xb8] sm:$0xff] %vm467_vm0, %v14282_v3  ;;  %v576_v34 = vld [vmem:[%s14533_s26 + $0x38] sm:$0xff]  ;;  %v577_v35 = vld [vmem:[%s14533_s26 + $0x40] sm:$0xff]  ;;  %v612_v37 = vsub.f32 %v573_v28, %v14552_v21  ;;  %13955 = vmatprep.subr.msk.bf16.mxu1 %vm907_vm1, %v856_v26  ;;  %v614_v41 = vsub.f32 %v575_v33, %v14552_v21  ;;  %v643_v45 = vmul.f32 255.0, %v611_v36  ;;  %s11354_s20 = sshll.u32 %s19939_s15, 4  ;;  %s19962_s20 = int_to_ptr.vmem [resolvable:$true] %s11354_s20 }
  0x23   : > { %492 = vst.msk [vmem:[#allocation2 + $0xc0] sm:$0xff] %vm467_vm0, %v14282_v3  ;;  %493 = vst.msk [vmem:[#allocation2 + $0xc8] sm:$0xff] %vm467_vm0, %v14282_v3  ;;  %v719_v38 = vld [vmem:[%s20009_s1 + $0x78] sm:$0xff]  ;;  %v718_v39 = vld [vmem:[%s20009_s1 + $0x70] sm:$0xff]  ;;  %v615_v42 = vsub.f32 %v576_v34, %v14552_v21  ;;  %v616_v43 = vsub.f32 %v577_v35, %v14552_v21  ;;  %13952 = vmatpush3.bf16.msra.mxu1 %v14573_v30  ;;  %v645_v51 = vmul.f32 255.0, %v613_v40  ;;  %s14219_s22 = scalar_lea.vmem %s19962_s20, 1024 }
  0x24   : > { %494 = vst.msk [vmem:[#allocation2 + $0xd0] sm:$0xff] %vm467_vm0, %v14282_v3  ;;  %495 = vst.msk [vmem:[#allocation2 + $0xd8] sm:$0xff] %vm467_vm0, %v14282_v3  ;;  %809 = vperm.xlu1 %14016, %v715_v8   ;;  %804 = vperm.xlu0 %14015, %v714_v9   ;;  %v571_v44 = vld [vmem:[%s14533_s26 + $0x10] sm:$0xff]  ;;  %v644_v46 = vmul.f32 255.0, %v612_v37  ;;  %v578_v48 = vld [vmem:[%s14533_s26 + $0x48] sm:$0xff]  ;;  %v646_v52 = vmul.f32 255.0, %v614_v41  ;;  %p14220_p11 = scmp.ne.s32.totalorder %s19962_s20, %s14219_s22 }
  0x25   : > { %496 = vst.msk [vmem:[#allocation2 + $0xe0] sm:$0xff] %vm467_vm0, %v14282_v3  ;;  %497 = vst.msk [vmem:[#allocation2 + $0xe8] sm:$0xff] %vm467_vm0, %v14282_v3  ;;  %v610_v47 = vsub.f32 %v571_v44, %v14552_v21  ;;  %v579_v49 = vld [vmem:[%s14533_s26 + $0x50] sm:$0xff]  ;;  %v580_v50 = vld [vmem:[%s14533_s26 + $0x58] sm:$0xff]  ;;  %v647_v53 = vmul.f32 255.0, %v615_v42  ;;  %v648_v54 = vmul.f32 255.0, %v616_v43  ;;  %v617_v58 = vsub.f32 %v578_v48, %v14552_v21 }
  0x26   : > { %498 = vst.msk [vmem:[#allocation2 + $0xf0] sm:$0xff] %vm467_vm0, %v14282_v3  ;;  %499 = vst.msk [vmem:[#allocation2 + $0xf8] sm:$0xff] %vm467_vm0, %v14282_v3  ;;  %v581_v55 = vld [vmem:[%s14533_s26 + $0x60] sm:$0xff]  ;;  %v582_v56 = vld [vmem:[%s14533_s26 + $0x68] sm:$0xff]  ;;  %v618_v59 = vsub.f32 %v579_v49, %v14552_v21  ;;  %v619_v60 = vsub.f32 %v580_v50, %v14552_v21  ;;  %p14221_p12 = pnand %p14220_p11, %p14399_p5 }
  0x27   : > { %500 = vst.msk [vmem:[#allocation2 + $0x100] sm:$0xff] %vm467_vm0, %v14282_v3  ;;  %501 = vst.msk [vmem:[#allocation2 + $0x108] sm:$0xff] %vm467_vm0, %v14282_v3  ;;  %v642_v57 = vmul.f32 255.0, %v610_v47  ;;  %v14609_v61 = vld [vmem:[%s20014_s6 + $0xc] sm:$0xf]  ;;  %v620_v62 = vsub.f32 %v581_v55, %v14552_v21  ;;  %v621_v63 = vsub.f32 %v582_v56, %v14552_v21  ;;  %v583_v0 = vld [vmem:[%s14533_s26 + $0x70] sm:$0xff] }
  0x28   : > { %502 = vst.msk [vmem:[#allocation2 + $0x110] sm:$0xff] %vm467_vm0, %v14282_v3  ;;  %503 = vst.msk [vmem:[#allocation2 + $0x118] sm:$0xff] %vm467_vm0, %v14282_v3  ;;  %759 = vperm.xlu1 %14016, %v14518_v10   ;;  %754 = vperm.xlu0 %14015, %v14523_v11   ;;  %v584_v1 = vld [vmem:[%s14533_s26 + $0x78] sm:$0xff]  ;;  %v585_v2 = vld [vmem:[%s14533_s26 + $0x80] sm:$0xff]  ;;  %v649_v4 = vmul.f32 255.0, %v617_v58  ;;  %v650_v5 = vmul.f32 255.0, %v618_v59  ;;  %v622_v7 = vsub.f32 %v583_v0, %v14552_v21  ;;  %p14222_p13 = pneg %p14221_p12 }
  0x29   : > { %504 = vst.msk [vmem:[#allocation2 + $0x120] sm:$0xff] %vm467_vm0, %v14282_v3  ;;  %505 = vst.msk [vmem:[#allocation2 + $0x128] sm:$0xff] %vm467_vm0, %v14282_v3  ;;  %13957 = vmatprep.subr.msk.bf16.mxu1 %vm907_vm1, %v14609_v61  ;;  %v651_v6 = vmul.f32 255.0, %v619_v60  ;;  %v586_v8 = vld [vmem:[%s14533_s26 + $0x88] sm:$0xff]  ;;  %v720_v12 = vld [vmem:[%s20010_s2] sm:$0xff]  ;;  %v652_v15 = vmul.f32 255.0, %v620_v62  ;;  %v623_v17 = vsub.f32 %v584_v1, %v14552_v21  ;;  %v624_v18 = vsub.f32 %v585_v2, %v14552_v21 }
  0x2a   : > { %557 = vst [vmem:[#allocation6] sm:$0xff] %v14282_v3  ;;  %558 = vst [vmem:[#allocation6 + $0x8] sm:$0xff] %v14282_v3  ;;  %v721_v9 = vld [vmem:[%s20010_s2 + $0x8] sm:$0xff]  ;;  %v653_v16 = vmul.f32 255.0, %v621_v63  ;;  %v654_v19 = vmul.f32 255.0, %v622_v7  ;;  %v625_v20 = vsub.f32 %v586_v8, %v14552_v21  ;;  %v723_v28 = vld [vmem:[%s20010_s2 + $0x18] sm:$0xff] }
  0x2b   : > { %567 = vst [vmem:[#allocation6 + $0x50] sm:$0xff] %v14282_v3  ;;  %568 = vst [vmem:[#allocation6 + $0x58] sm:$0xff] %v14282_v3  ;;  %v655_v24 = vmul.f32 255.0, %v623_v17  ;;  %v656_v25 = vmul.f32 255.0, %v624_v18  ;;  %v722_v29 = vld [vmem:[%s20010_s2 + $0x10] sm:$0xff]  ;;  %v724_v40 = vld [vmem:[%s20010_s2 + $0x20] sm:$0xff] }
  0x2c   : > { %769 = vperm.xlu1 %14016, %v14538_v13   ;;  %764 = vperm.xlu0 %14015, %v14543_v14   ;;  %672 = vst.msk [vmem:[#allocation2 + $0x18] sm:$0xff] %vm467_vm0, %v640_v31  ;;  %673 = vst.msk [vmem:[#allocation2 + $0x20] sm:$0xff] %vm467_vm0, %v641_v32  ;;  %v657_v27 = vmul.f32 255.0, %v625_v20  ;;  %v14653_v32 = vld [vmem:[%s20014_s6 + $0x8] sm:$0xf]  ;;  %v727_v42 = vld [vmem:[%s20010_s2 + $0x38] sm:$0xff] }
  0x2d   : > { %675 = vst.msk [vmem:[#allocation2 + $0x30] sm:$0xff] %vm467_vm0, %v643_v45  ;;  %676 = vst.msk [vmem:[#allocation2 + $0x38] sm:$0xff] %vm467_vm0, %v644_v46  ;;  %v726_v43 = vld [vmem:[%s20010_s2 + $0x30] sm:$0xff]  ;;  %v729_v48 = vld [vmem:[%s20010_s2 + $0x48] sm:$0xff] }
  0x2e   : > { %677 = vst.msk [vmem:[#allocation2 + $0x40] sm:$0xff] %vm467_vm0, %v645_v51  ;;  %678 = vst.msk [vmem:[#allocation2 + $0x48] sm:$0xff] %vm467_vm0, %v646_v52  ;;  %v728_v49 = vld [vmem:[%s20010_s2 + $0x40] sm:$0xff]  ;;  %v587_v52 = vld [vmem:[%s14533_s26 + $0x90] sm:$0xff] }
  0x2f   : > { %679 = vst.msk [vmem:[#allocation2 + $0x50] sm:$0xff] %vm467_vm0, %v647_v53  ;;  %680 = vst.msk [vmem:[#allocation2 + $0x58] sm:$0xff] %vm467_vm0, %v648_v54  ;;  %v731_v53 = vld [vmem:[%s20010_s2 + $0x58] sm:$0xff]  ;;  %v730_v54 = vld [vmem:[%s20010_s2 + $0x50] sm:$0xff]  ;;  %v626_v56 = vsub.f32 %v587_v52, %v14552_v21 }
  0x30   : > { %819 = vperm.xlu1 %14016, %v717_v22   ;;  %814 = vperm.xlu0 %14015, %v716_v23   ;;  %674 = vst.msk [vmem:[#allocation2 + $0x28] sm:$0xff] %vm467_vm0, %v642_v57  ;;  %681 = vst.msk [vmem:[#allocation2 + $0x60] sm:$0xff] %vm467_vm0, %v649_v4  ;;  %v588_v57 = vld [vmem:[%s14533_s26 + $0x98] sm:$0xff]  ;;  %v733_v62 = vld [vmem:[%s20010_s2 + $0x68] sm:$0xff] }
  0x31   : > { %682 = vst.msk [vmem:[#allocation2 + $0x68] sm:$0xff] %vm467_vm0, %v650_v5  ;;  %683 = vst.msk [vmem:[#allocation2 + $0x70] sm:$0xff] %vm467_vm0, %v651_v6  ;;  %v658_v59 = vmul.f32 255.0, %v626_v56  ;;  %v627_v60 = vsub.f32 %v588_v57, %v14552_v21  ;;  %v732_v63 = vld [vmem:[%s20010_s2 + $0x60] sm:$0xff]  ;;  %v590_v4 = vld [vmem:[%s14533_s26 + $0xa8] sm:$0xff] }
  0x32   : > { %684 = vst.msk [vmem:[#allocation2 + $0x78] sm:$0xff] %vm467_vm0, %v652_v15  ;;  %685 = vst.msk [vmem:[#allocation2 + $0x80] sm:$0xff] %vm467_vm0, %v653_v16  ;;  %v589_v2 = vld [vmem:[%s14533_s26 + $0xa0] sm:$0xff]  ;;  %v629_v6 = vsub.f32 %v590_v4, %v14552_v21  ;;  %v735_v7 = vld [vmem:[%s20010_s2 + $0x78] sm:$0xff] }
  0x33   : > { %v859_v22 = vld [vmem:[#allocation2 + $0x18] sm:$0xff]  ;;  %v860_v23 = vld [vmem:[#allocation2 + $0x20] sm:$0xff]  ;;  %686 = vst.msk [vmem:[#allocation2 + $0x88] sm:$0xff] %vm467_vm0, %v654_v19  ;;  %687 = vst.msk [vmem:[#allocation2 + $0x90] sm:$0xff] %vm467_vm0, %v655_v24  ;;  %v659_v0 = vmul.f32 255.0, %v627_v60  ;;  %v628_v5 = vsub.f32 %v589_v2, %v14552_v21 }
  0x34   : > { %829 = vperm.xlu1 %14016, %v719_v38   ;;  %824 = vperm.xlu0 %14015, %v718_v39   ;;  %v874_v26 = vpack.c.bf16 %v860_v23, %v859_v22  ;;  %v862_v31 = vld [vmem:[#allocation2 + $0x30] sm:$0xff]  ;;  %688 = vst.msk [vmem:[#allocation2 + $0x98] sm:$0xff] %vm467_vm0, %v656_v25  ;;  %689 = vst.msk [vmem:[#allocation2 + $0xa0] sm:$0xff] %vm467_vm0, %v657_v27  ;;  %v863_v34 = vld [vmem:[#allocation2 + $0x38] sm:$0xff] }
  0x35   : > { %v864_v35 = vld [vmem:[#allocation2 + $0x40] sm:$0xff]  ;;  %v865_v37 = vld [vmem:[#allocation2 + $0x48] sm:$0xff]  ;;  %690 = vst.msk [vmem:[#allocation2 + $0xa8] sm:$0xff] %vm467_vm0, %v658_v59  ;;  %691 = vst.msk [vmem:[#allocation2 + $0xb0] sm:$0xff] %vm467_vm0, %v659_v0 }
  0x36   : > { %12838 = vmatmul.mubr.msk.bf16.vlgmr.msra.gmra.mxu0 %vm467_vm0, %v874_v26  ;;  %v866_v38 = vld [vmem:[#allocation2 + $0x50] sm:$0xff]  ;;  %v725_v39 = vld [vmem:[%s20010_s2 + $0x28] sm:$0xff]  ;;  %v867_v44 = vld [vmem:[#allocation2 + $0x58] sm:$0xff]  ;;  %508 = vst.msk [vmem:[#allocation3 + $0x8] sm:$0xff] %vm506_vm2, %v14282_v3 }
  0x37   : > { %v861_v33 = vld [vmem:[#allocation2 + $0x28] sm:$0xff]  ;;  %12854 = vmatpush3.bf16.msra.mxu0 %v14573_v30  ;;  %v876_v30 = vpack.c.bf16 %v864_v35, %v863_v34  ;;  %v14668_v41 = vpack.c.bf16 %v866_v38, %v865_v37  ;;  %v868_v45 = vld [vmem:[#allocation2 + $0x60] sm:$0xff]  ;;  %v734_v8 = vld [vmem:[%s20010_s2 + $0x70] sm:$0xff]  ;;  %509 = vst.msk [vmem:[#allocation3 + $0x10] sm:$0xff] %vm506_vm2, %v14282_v3 }
  0x38   : > { %1155 = vperm.xlu1 %14016, %v721_v9   ;;  %1150 = vperm.xlu0 %14015, %v720_v12   ;;  %v14656_v36 = vpack.c.bf16 %v862_v31, %v861_v33  ;;  %v869_v46 = vld [vmem:[#allocation2 + $0x68] sm:$0xff]  ;;  %v870_v47 = vld [vmem:[#allocation2 + $0x70] sm:$0xff]  ;;  %v878_v50 = vpack.c.bf16 %v868_v45, %v867_v44  ;;  %v660_v9 = vmul.f32 255.0, %v628_v5  ;;  %v661_v12 = vmul.f32 255.0, %v629_v6  ;;  %v2509_v16 = vld [vmem:[%s20009_s1 + $0x80] sm:$0xff]  ;;  %507 = vst.msk [vmem:[#allocation3] sm:$0xff] %vm506_vm2, %v14282_v3 }
  0x39   : > { %13956 = vmatprep.subr.msk.bf16.mxu0 %vm907_vm1, %v14653_v32  ;;  %v14685_v51 = vpack.c.bf16 %v870_v47, %v869_v46  ;;  %v871_v55 = vld [vmem:[#allocation2 + $0x78] sm:$0xff]  ;;  %v872_v58 = vld [vmem:[#allocation2 + $0x80] sm:$0xff]  ;;  %v2510_v15 = vld [vmem:[%s20009_s1 + $0x88] sm:$0xff]  ;;  %510 = vst.msk [vmem:[#allocation3 + $0x18] sm:$0xff] %vm506_vm2, %v14282_v3 }
  0x3a   : > { %12841 = vmatprep.mubr.msk.bf16.mxu0 %vm467_vm0, %v14656_v36  ;;  %v880_v1 = vpack.c.bf16 %v872_v58, %v871_v55  ;;  %692 = vst.msk [vmem:[#allocation2 + $0xb8] sm:$0xff] %vm467_vm0, %v660_v9  ;;  %693 = vst.msk [vmem:[#allocation2 + $0xc0] sm:$0xff] %vm467_vm0, %v661_v12  ;;  %v591_v17 = vld [vmem:[%s14533_s26 + $0xb0] sm:$0xff]  ;;  %v2512_v19 = vld [vmem:[%s20009_s1 + $0x98] sm:$0xff] }
  0x3b   : > { %v630_v18 = vsub.f32 %v591_v17, %v14552_v21  ;;  %v2511_v20 = vld [vmem:[%s20009_s1 + $0x90] sm:$0xff]  ;;  %v592_v23 = vld [vmem:[%s14533_s26 + $0xb8] sm:$0xff]  ;;  %v2526_v26 = vld [vmem:[%s20010_s2 + $0x88] sm:$0xff]  ;;  %511 = vst.msk [vmem:[#allocation3 + $0x20] sm:$0xff] %vm506_vm2, %v14282_v3 }
  0x3c   : > { %1165 = vperm.xlu1 %14016, %v723_v28   ;;  %1160 = vperm.xlu0 %14015, %v722_v29   ;;  %v631_v24 = vsub.f32 %v592_v23, %v14552_v21  ;;  %v2525_v27 = vld [vmem:[%s20010_s2 + $0x80] sm:$0xff]  ;;  %v594_v29 = vld [vmem:[%s14533_s26 + $0xc8] sm:$0xff]  ;;  %v2528_v34 = vld [vmem:[%s20010_s2 + $0x98] sm:$0xff]  ;;  %512 = vst.msk [vmem:[#allocation3 + $0x28] sm:$0xff] %vm506_vm2, %v14282_v3 }
  0x3d   : > { %v662_v22 = vmul.f32 255.0, %v630_v18  ;;  %v593_v28 = vld [vmem:[%s14533_s26 + $0xc0] sm:$0xff]  ;;  %v633_v33 = vsub.f32 %v594_v29, %v14552_v21  ;;  %v2527_v35 = vld [vmem:[%s20010_s2 + $0x90] sm:$0xff]  ;;  %v596_v46 = vld [vmem:[%s14533_s26 + $0xd8] sm:$0xff]  ;;  %513 = vst.msk [vmem:[#allocation3 + $0x30] sm:$0xff] %vm506_vm2, %v14282_v3 }
  0x3e   : > { %12842 = vmatmul.mubr.msk.bf16.gmra.mxu0 %vm467_vm0, %v876_v30  ;;  %v663_v25 = vmul.f32 255.0, %v631_v24  ;;  %v632_v31 = vsub.f32 %v593_v28, %v14552_v21  ;;  %v595_v30 = vld [vmem:[%s14533_s26 + $0xd0] sm:$0xff]  ;;  %v635_v47 = vsub.f32 %v596_v46, %v14552_v21  ;;  %v597_v52 = vld [vmem:[%s14533_s26 + $0xe0] sm:$0xff]  ;;  %v2532_v56 = vld [vmem:[%s20010_s2 + $0xb8] sm:$0xff]  ;;  %514 = vst.msk [vmem:[#allocation3 + $0x38] sm:$0xff] %vm506_vm2, %v14282_v3 }
  0x3f   : > { %12845 = vmatprep.mubr.msk.bf16.mxu0 %vm467_vm0, %v14668_v41  ;;  %694 = vst.msk [vmem:[#allocation2 + $0xc8] sm:$0xff] %vm467_vm0, %v662_v22  ;;  %v665_v38 = vmul.f32 255.0, %v633_v33  ;;  %v2515_v44 = vld [vmem:[%s20009_s1 + $0xb0] sm:$0xff]  ;;  %v2518_v60 = vld [vmem:[%s20009_s1 + $0xc8] sm:$0xff]  ;;  %v600_v5 = vld [vmem:[%s14533_s26 + $0xf8] sm:$0xff] }
  0x40   : > { %1175 = vperm.xlu1 %14016, %v725_v39   ;;  %1170 = vperm.xlu0 %14015, %v724_v40   ;;  %695 = vst.msk [vmem:[#allocation2 + $0xd0] sm:$0xff] %vm467_vm0, %v663_v25  ;;  %v664_v37 = vmul.f32 255.0, %v632_v31  ;;  %v2514_v39 = vld [vmem:[%s20009_s1 + $0xa8] sm:$0xff]  ;;  %v2513_v40 = vld [vmem:[%s20009_s1 + $0xa0] sm:$0xff]  ;;  %v2531_v57 = vld [vmem:[%s20010_s2 + $0xb0] sm:$0xff]  ;;  %v639_v6 = vsub.f32 %v600_v5, %v14552_v21 }
  0x41   : > { %697 = vst.msk [vmem:[#allocation2 + $0xe0] sm:$0xff] %vm467_vm0, %v665_v38  ;;  %v2519_v2 = vld [vmem:[%s20009_s1 + $0xd0] sm:$0xff]  ;;  %v2533_v9 = vld [vmem:[%s20010_s2 + $0xc0] sm:$0xff]  ;;  %v2524_v17 = vld [vmem:[%s20009_s1 + $0xf8] sm:$0xff] }
  0x42   : > { %696 = vst.msk [vmem:[#allocation2 + $0xd8] sm:$0xff] %vm467_vm0, %v664_v37  ;;  %v2535_v12 = vld [vmem:[%s20010_s2 + $0xd0] sm:$0xff]  ;;  %v2540_v22 = vld [vmem:[%s20010_s2 + $0xf8] sm:$0xff]  ;;  %v14963_v33 = vld [vmem:[#allocation2 + $0x27] sm:$0xff] }
  0x43   : > { %v2523_v18 = vld [vmem:[%s20009_s1 + $0xf0] sm:$0xff]  ;;  %515 = vst.msk [vmem:[#allocation3 + $0x40] sm:$0xff] %vm506_vm2, %v14282_v3  ;;  %516 = vst.msk [vmem:[#allocation3 + $0x48] sm:$0xff] %vm506_vm2, %v14282_v3  ;;  %v14955_v28 = vld [vmem:[#allocation2 + $0x3f] sm:$0xff] }
  0x44   : > { %1185 = vperm.xlu1 %14016, %v727_v42   ;;  %1180 = vperm.xlu0 %14015, %v726_v43   ;;  %v634_v42 = vsub.f32 %v595_v30, %v14552_v21  ;;  %v2516_v43 = vld [vmem:[%s20009_s1 + $0xb8] sm:$0xff]  ;;  %517 = vst.msk [vmem:[#allocation3 + $0x50] sm:$0xff] %vm506_vm2, %v14282_v3  ;;  %518 = vst.msk [vmem:[#allocation3 + $0x58] sm:$0xff] %vm506_vm2, %v14282_v3  ;;  %v2539_v23 = vld [vmem:[%s20010_s2 + $0xf0] sm:$0xff] }
  0x45   : > { %519 = vst.msk [vmem:[#allocation3 + $0x60] sm:$0xff] %vm506_vm2, %v14282_v3  ;;  %520 = vst.msk [vmem:[#allocation3 + $0x68] sm:$0xff] %vm506_vm2, %v14282_v3  ;;  %v14949_v25 = vld [vmem:[#allocation2 + $0x37] sm:$0xff]  ;;  %v14959_v29 = vld [vmem:[#allocation2 + $0x4f] sm:$0xff] }
  0x46   : > { %12846 = vmatmul.mubr.msk.bf16.gmra.mxu0 %vm467_vm0, %v878_v50  ;;  %v666_v45 = vmul.f32 255.0, %v634_v42  ;;  %v2529_v50 = vld [vmem:[%s20010_s2 + $0xa0] sm:$0xff]  ;;  %521 = vst.msk [vmem:[#allocation3 + $0x70] sm:$0xff] %vm506_vm2, %v14282_v3  ;;  %522 = vst.msk [vmem:[#allocation3 + $0x78] sm:$0xff] %vm506_vm2, %v14282_v3  ;;  %v14984_v42 = vld [vmem:[#allocation2 + $0x6f] sm:$0xff] }
  0x47   : > { %12849 = vmatprep.mubr.msk.bf16.mxu0 %vm467_vm0, %v14685_v51  ;;  %523 = vst.msk [vmem:[#allocation3 + $0x80] sm:$0xff] %vm506_vm2, %v14282_v3  ;;  %524 = vst.msk [vmem:[#allocation3 + $0x88] sm:$0xff] %vm506_vm2, %v14282_v3  ;;  %v14961_v31 = vld [vmem:[#allocation2 + $0x5f] sm:$0xff] }
  0x48   : > { %1195 = vperm.xlu1 %14016, %v729_v48   ;;  %1190 = vperm.xlu0 %14015, %v728_v49   ;;  %698 = vst.msk [vmem:[#allocation2 + $0xe8] sm:$0xff] %vm467_vm0, %v666_v45  ;;  %v667_v48 = vmul.f32 255.0, %v635_v47  ;;  %v2530_v49 = vld [vmem:[%s20010_s2 + $0xa8] sm:$0xff] }
  0x49   : > { %525 = vst.msk [vmem:[#allocation3 + $0x90] sm:$0xff] %vm506_vm2, %v14282_v3  ;;  %526 = vst.msk [vmem:[#allocation3 + $0x98] sm:$0xff] %vm506_vm2, %v14282_v3 }
  0x4a   : > { %699 = vst.msk [vmem:[#allocation2 + $0xf0] sm:$0xff] %vm467_vm0, %v667_v48  ;;  %v15170_v48 = vld [vmem:[#allocation2 + $0x39] sm:$0xff] }
  0x4b   : > { %527 = vst.msk [vmem:[#allocation3 + $0xa0] sm:$0xff] %vm506_vm2, %v14282_v3  ;;  %528 = vst.msk [vmem:[#allocation3 + $0xa8] sm:$0xff] %vm506_vm2, %v14282_v3 }
  0x4c   : > { %1205 = vperm.xlu1 %14016, %v731_v53   ;;  %1200 = vperm.xlu0 %14015, %v730_v54   ;;  %v598_v53 = vld [vmem:[%s14533_s26 + $0xe8] sm:$0xff]  ;;  %v636_v54 = vsub.f32 %v597_v52, %v14552_v21  ;;  %529 = vst.msk [vmem:[#allocation3 + $0xb0] sm:$0xff] %vm506_vm2, %v14282_v3  ;;  %530 = vst.msk [vmem:[#allocation3 + $0xb8] sm:$0xff] %vm506_vm2, %v14282_v3 }
  0x4d   : > { %v637_v55 = vsub.f32 %v598_v53, %v14552_v21  ;;  %531 = vst.msk [vmem:[#allocation3 + $0xc0] sm:$0xff] %vm506_vm2, %v14282_v3  ;;  %532 = vst.msk [vmem:[#allocation3 + $0xc8] sm:$0xff] %vm506_vm2, %v14282_v3 }
  0x4e   : > { %12850 = vmatmul.mubr.msk.bf16.gmra.mxu0 %vm467_vm0, %v880_v1  ;;  %v668_v58 = vmul.f32 255.0, %v636_v54  ;;  %v2520_v1 = vld [vmem:[%s20009_s1 + $0xd8] sm:$0xff]  ;;  %533 = vst.msk [vmem:[#allocation3 + $0xd0] sm:$0xff] %vm506_vm2, %v14282_v3  ;;  %534 = vst.msk [vmem:[#allocation3 + $0xd8] sm:$0xff] %vm506_vm2, %v14282_v3 }
  0x4f   : > { %v669_v59 = vmul.f32 255.0, %v637_v55  ;;  %535 = vst.msk [vmem:[#allocation3 + $0xe0] sm:$0xff] %vm506_vm2, %v14282_v3  ;;  %536 = vst.msk [vmem:[#allocation3 + $0xe8] sm:$0xff] %vm506_vm2, %v14282_v3 }
  0x50   : > { %1215 = vperm.xlu1 %14016, %v733_v62   ;;  %1210 = vperm.xlu0 %14015, %v732_v63   ;;  %700 = vst.msk [vmem:[#allocation2 + $0xf8] sm:$0xff] %vm467_vm0, %v668_v58  ;;  %v2517_v62 = vld [vmem:[%s20009_s1 + $0xc0] sm:$0xff]  ;;  %v599_v63 = vld [vmem:[%s14533_s26 + $0xf0] sm:$0xff]  ;;  %s14223_s26 = sshll.u32 %s14283_s24, 4  ;;  %s14224_s26 = int_to_ptr.vmem [resolvable:$false] %s14223_s26 }
  0x51   : > { %701 = vst.msk [vmem:[#allocation2 + $0x100] sm:$0xff] %vm467_vm0, %v669_v59  ;;  %v638_v0 = vsub.f32 %v599_v63, %v14552_v21  ;;  %v2536_v21 = vld [vmem:[%s20010_s2 + $0xd8] sm:$0xff]  ;;  %s14225_s28 = scalar_lea.vmem %s14224_s26, 2048  ;;  %p14226_p0 = scmp.lt.s32.totalorder %s19962_s20, %s14224_s26 }
  0x52   : > { %537 = vst.msk [vmem:[#allocation3 + $0xf0] sm:$0xff] %vm506_vm2, %v14282_v3  ;;  %538 = vst.msk [vmem:[#allocation3 + $0xf8] sm:$0xff] %vm506_vm2, %v14282_v3  ;;  %v15029_v59 = vld [vmem:[#allocation2 + $0x77] sm:$0xff]  ;;  %p14227_p1 = scmp.lt.s32.totalorder %s14225_s28, %s14219_s22 }
  0x53   : > { %v670_v4 = vmul.f32 255.0, %v638_v0  ;;  %539 = vst.msk [vmem:[#allocation3 + $0x100] sm:$0xff] %vm506_vm2, %v14282_v3  ;;  %540 = vst.msk [vmem:[#allocation3 + $0x108] sm:$0xff] %vm506_vm2, %v14282_v3 }
  0x54   : > { %1225 = vperm.xlu1 %14016, %v735_v7   ;;  %1220 = vperm.xlu0 %14015, %v734_v8   ;;  %v671_v7 = vmul.f32 255.0, %v639_v6  ;;  %v2534_v8 = vld [vmem:[%s20010_s2 + $0xc8] sm:$0xff]  ;;  %541 = vst.msk [vmem:[#allocation3 + $0x110] sm:$0xff] %vm506_vm2, %v14282_v3  ;;  %542 = vst.msk [vmem:[#allocation3 + $0x118] sm:$0xff] %vm506_vm2, %v14282_v3  ;;  %v14198_v6 = vld [vmem:[%s20009_s1 + $0x20] sm:$0xff]  ;;  %p14228_p2 = por %p14227_p1, %p14226_p0 }
  0x55   : > { %702 = vst.msk [vmem:[#allocation2 + $0x108] sm:$0xff] %vm467_vm0, %v670_v4  ;;  %v737_v4 = vld [vmem:[#allocation2 + $0xf] sm:$0xff] }
  0x56   : > { %703 = vst.msk [vmem:[#allocation2 + $0x110] sm:$0xff] %vm467_vm0, %v671_v7  ;;  %v736_v7 = vld [vmem:[#allocation2 + $0x7] sm:$0xff]  ;;  %p14229_p3 = pnand %p14228_p2, %p14222_p13 }
  0x57   : > { %543 = vst.msk [vmem:[#allocation3 + $0x120] sm:$0xff] %vm506_vm2, %v14282_v3  ;;  %544 = vst.msk [vmem:[#allocation3 + $0x128] sm:$0xff] %vm506_vm2, %v14282_v3 }
  0x58   : > { %2564 = vperm.xlu1 %14016, %v2510_v15   ;;  %2559 = vperm.xlu0 %14015, %v2509_v16   ;;  %v2522_v15 = vld [vmem:[%s20009_s1 + $0xe8] sm:$0xff]  ;;  %v2521_v16 = vld [vmem:[%s20009_s1 + $0xe0] sm:$0xff]  ;;  %545 = vst.msk [vmem:[#allocation5] sm:$0xff] %vm506_vm2, %v14282_v3  ;;  %546 = vst.msk [vmem:[#allocation5 + $0x8] sm:$0xff] %vm506_vm2, %v14282_v3 }
  0x59   : > { %547 = vst.msk [vmem:[#allocation5 + $0x10] sm:$0xff] %vm506_vm2, %v14282_v3  ;;  %548 = vst.msk [vmem:[#allocation5 + $0x18] sm:$0xff] %vm506_vm2, %v14282_v3 }
  0x5a   : > { %549 = vst.msk [vmem:[#allocation5 + $0x20] sm:$0xff] %vm506_vm2, %v14282_v3  ;;  %550 = vst.msk [vmem:[#allocation5 + $0x28] sm:$0xff] %vm506_vm2, %v14282_v3 }
  0x5b   : > { %551 = vst.msk [vmem:[#allocation5 + $0x30] sm:$0xff] %vm506_vm2, %v14282_v3  ;;  %552 = vst.msk [vmem:[#allocation5 + $0x38] sm:$0xff] %vm506_vm2, %v14282_v3 }
  0x5c   : > { %2574 = vperm.xlu1 %14016, %v2512_v19   ;;  %2569 = vperm.xlu0 %14015, %v2511_v20   ;;  %v2538_v19 = vld [vmem:[%s20010_s2 + $0xe8] sm:$0xff]  ;;  %v2537_v20 = vld [vmem:[%s20010_s2 + $0xe0] sm:$0xff]  ;;  %553 = vst.msk [vmem:[#allocation5 + $0x40] sm:$0xff] %vm506_vm2, %v14282_v3  ;;  %554 = vst.msk [vmem:[#allocation5 + $0x48] sm:$0xff] %vm506_vm2, %v14282_v3 }
  0x5d   : > { %555 = vst.msk [vmem:[#allocation5 + $0x50] sm:$0xff] %vm506_vm2, %v14282_v3  ;;  %556 = vst.msk [vmem:[#allocation5 + $0x58] sm:$0xff] %vm506_vm2, %v14282_v3  ;;  %v14957_v3 = vld [vmem:[#allocation2 + $0x47] sm:$0xff] }
  0x60   : > { %2958 = vperm.xlu1 %14016, %v2526_v26   ;;  %2953 = vperm.xlu0 %14015, %v2525_v27   ;;  %v14951_v26 = vld [vmem:[#allocation2 + $0x57] sm:$0xff] }
  0x64   : > { %2968 = vperm.xlu1 %14016, %v2528_v34   ;;  %2963 = vperm.xlu0 %14015, %v2527_v35   ;;  %v14965_v34 = vld [vmem:[#allocation2 + $0x2f] sm:$0xff] }
  0x68   : > { %2584 = vperm.xlu1 %14016, %v2514_v39   ;;  %2579 = vperm.xlu0 %14015, %v2513_v40  }
  0x6c   : > { %2594 = vperm.xlu1 %14016, %v2516_v43   ;;  %2589 = vperm.xlu0 %14015, %v2515_v44   ;;  %v14986_v43 = vld [vmem:[#allocation2 + $0x67] sm:$0xff] }
  0x70   : > { %2978 = vperm.xlu1 %14016, %v2530_v49   ;;  %2973 = vperm.xlu0 %14015, %v2529_v50  }
  0x74   : > { %2988 = vperm.xlu1 %14016, %v2532_v56   ;;  %2983 = vperm.xlu0 %14015, %v2531_v57   ;;  %v15018_v56 = vld [vmem:[#allocation2 + $0x7f] sm:$0xff]  ;;  %v1461_v57 = vsel %vm907_vm1, %v14609_v61, 0  ;;  %v15038_v61 = vld [vmem:[%s20014_s6 + $0x14] sm:$0xf] }
  0x78   : > { %2604 = vperm.xlu1 %14016, %v2518_v60   ;;  %2599 = vperm.xlu0 %14015, %v2517_v62  }
  0x7c   : > { %2614 = vperm.xlu1 %14016, %v2520_v1   ;;  %2609 = vperm.xlu0 %14015, %v2519_v2   ;;  %v14197_v2 = vld [vmem:[%s20009_s1 + $0x28] sm:$0xff] }
  0x80   : > { %2998 = vperm.xlu1 %14016, %v2534_v8   ;;  %2993 = vperm.xlu0 %14015, %v2533_v9  }
  0x84   : > { %3008 = vperm.xlu1 %14016, %v2536_v21   ;;  %3003 = vperm.xlu0 %14015, %v2535_v12  }
  0x88   : > { %2624 = vperm.xlu1 %14016, %v2522_v15   ;;  %2619 = vperm.xlu0 %14015, %v2521_v16  }
  0x8c   : > { %2634 = vperm.xlu1 %14016, %v2524_v17   ;;  %2629 = vperm.xlu0 %14015, %v2523_v18   ;;  %v14199_v18 = vld [vmem:[%s20009_s1 + $0x38] sm:$0xff] }
  0x90   : > { %3018 = vperm.xlu1 %14016, %v2538_v19   ;;  %3013 = vperm.xlu0 %14015, %v2537_v20   ;;  %v1395_v19 = vld [vmem:[#allocation2 + $0x1f] sm:$0xff]  ;;  %v1394_v20 = vld [vmem:[#allocation2 + $0x17] sm:$0xff] }
  0x93   : > { %v14947_v24 = vpop.permute.xlu1 %784  ;;  %v14953_v27 = vpop.permute.xlu0 %774 }
  0x94   : > { %3028 = vperm.xlu1 %14016, %v2540_v22   ;;  %3023 = vperm.xlu0 %14015, %v2539_v23   ;;  %v838_v38 = vmul.f32 %v14947_v24, %v14949_v25  ;;  %v14975_v39 = vmul.f32 %v14951_v26, %v14947_v24  ;;  %v14990_v44 = vmul.f32 %v14957_v3, %v14953_v27  ;;  %v14200_v23 = vld [vmem:[%s20009_s1 + $0x30] sm:$0xff] }
  0x95   : > { %v836_v46 = vmul.f32 %v14953_v27, %v14963_v33 }
  0x96   : > { %20220 = vst [vmem:[#allocation14_spill] sm:$0xff] %v14975_v39  ;;  %v15260_v39 = vld [vmem:[#allocation2 + $0x71] sm:$0xff] }
  0x97   : > { %v14967_v35 = vpop.permute.xlu1 %789  ;;  %v14969_v37 = vpop.permute.xlu0 %779 }
  0x98   : > { %v839_v40 = vmul.f32 %v14967_v35, %v14955_v28  ;;  %v14981_v30 = vmul.f32 %v14961_v31, %v14967_v35  ;;  %4360 = vperm.xlu1 %14016, %v14518_v10   ;;  %v14994_v45 = vmul.f32 %v14959_v29, %v14969_v37  ;;  %4355 = vperm.xlu0 %14015, %v14523_v11  }
  0x99   : > { %v837_v10 = vmul.f32 %v14969_v37, %v14965_v34 }
  0x9a   : > { %v851_v47 = vpack.c.bf16 %v839_v40, %v838_v38 }
  0x9b   : > { %v15003_v49 = vpop.permute.xlu1 %799  ;;  %v15005_v50 = vpop.permute.xlu0 %794  ;;  %v850_v52 = vpack.c.bf16 %v837_v10, %v836_v46 }
  0x9c   : > { %v841_v11 = vmul.f32 %v14959_v29, %v15003_v49  ;;  %v15013_v54 = vmul.f32 %v14984_v42, %v15003_v49  ;;  %v840_v55 = vmul.f32 %v14957_v3, %v15005_v50  ;;  %4370 = vperm.xlu1 %14016, %v14538_v13   ;;  %v15024_v58 = vmul.f32 %v14986_v43, %v15005_v50 }
  0x9d   : > { %4365 = vperm.xlu0 %14015, %v14543_v14   ;;  %12859 = vmatprep.mubr.msk.bf16.mxu1 %vm467_vm0, %v850_v52  ;;  %v15156_v14 = vld [vmem:[#allocation2 + $0x21] sm:$0xff] }
  0x9e   : > { %20221 = vst [vmem:[#allocation15_spill] sm:$0xff] %v15013_v54  ;;  %20222 = vst [vmem:[#allocation16_spill] sm:$0xff] %v15024_v58  ;;  %12860 = vmatmul.mubr.msk.bf16.vlgmr.msra.gmra.mxu1 %vm467_vm0, %v851_v47  ;;  %v852_v60 = vpack.c.bf16 %v841_v11, %v840_v55  ;;  %v14201_v55 = vld [vmem:[%s20009_s1 + $0x48] sm:$0xff] }
  0x9f   : > { %v15031_v62 = vpop.permute.xlu1 %809  ;;  %v15033_v13 = vpop.permute.xlu0 %804  ;;  %12890 = vmatpush3.bf16.msra.mxu1 %v1461_v57 }
  0xa0   : > { %v843_v63 = vmul.f32 %v14961_v31, %v15031_v62  ;;  %v15046_v0 = vmul.f32 %v15018_v56, %v15031_v62  ;;  %v842_v1 = vmul.f32 %v14951_v26, %v15033_v13  ;;  %4380 = vperm.xlu1 %14016, %v14197_v2   ;;  %v15055_v5 = vmul.f32 %v15029_v59, %v15033_v13 }
  0xa1   : > { %4375 = vperm.xlu0 %14015, %v14198_v6   ;;  %12863 = vmatprep.mubr.msk.bf16.mxu1 %vm467_vm0, %v852_v60  ;;  %v14202_v60 = vld [vmem:[%s20009_s1 + $0x40] sm:$0xff]  ;;  %v1279_v6 = vsel %vm907_vm1, %v14653_v32, 0 }
  0xa2   : > { %20223 = vst [vmem:[#allocation17_spill] sm:$0xff] %v15046_v0  ;;  %20224 = vst [vmem:[#allocation18_spill] sm:$0xff] %v15055_v5  ;;  %v853_v8 = vpack.c.bf16 %v843_v63, %v842_v1  ;;  %13959 = vmatprep.subr.msk.bf16.mxu1 %vm907_vm1, %v15038_v61  ;;  %v4326_v5 = vld [vmem:[%s20010_s2 + $0x28] sm:$0xff]  ;;  %v11486_v0 = vld [vmem:[%s20014_s6 + $0x1c] sm:$0xf] }
  0xa3   : > { %v760_v9 = vpop.permute.xlu1 %759  ;;  %v755_v21 = vpop.permute.xlu0 %754 }
  0xa4   : > { %v833_v15 = vmul.f32 %v760_v9, %v737_v4  ;;  %v15066_v16 = vmul.f32 %v760_v9, %v14965_v34  ;;  %v832_v17 = vmul.f32 %v755_v21, %v736_v7  ;;  %4390 = vperm.xlu1 %14016, %v14199_v18   ;;  %v15072_v22 = vmul.f32 %v755_v21, %v14963_v33  ;;  %v14204_v18 = vld [vmem:[%s20009_s1 + $0x50] sm:$0xff] }
  0xa5   : > { %4385 = vperm.xlu0 %14015, %v14200_v23  }
  0xa6   : > { %12864 = vmatmul.mubr.msk.bf16.gmra.mxu1 %vm467_vm0, %v853_v8  ;;  %v848_v38 = vpack.c.bf16 %v833_v15, %v832_v17  ;;  %v14203_v15 = vld [vmem:[%s20009_s1 + $0x58] sm:$0xff]  ;;  %v11459_v17 = vld [vmem:[%s20014_s6 + $0x10] sm:$0xf] }
  0xa7   : > { %v15078_v40 = vpop.permute.xlu1 %769  ;;  %v15080_v46 = vpop.permute.xlu0 %764 }
  0xa8   : > { %v835_v47 = vmul.f32 %v1395_v19, %v15078_v40  ;;  %v15087_v52 = vmul.f32 %v15078_v40, %v14955_v28  ;;  %v834_v11 = vmul.f32 %v1394_v20, %v15080_v46  ;;  %4400 = vperm.xlu1 %14016, %v14201_v55   ;;  %v15095_v57 = vmul.f32 %v15080_v46, %v14949_v25 }
  0xa9   : > { %4395 = vperm.xlu0 %14015, %v14202_v60   ;;  %12855 = vmatprep.mubr.msk.bf16.mxu0 %vm467_vm0, %v848_v38  ;;  %v1410_v55 = vmul.f32 %v1394_v20, %v755_v21  ;;  %v1413_v53 = vmul.f32 %v15078_v40, %v14965_v34  ;;  %v14209_v40 = vld [vmem:[%s20010_s2 + $0x8] sm:$0xff] }
  0xaa   : > { %v849_v63 = vpack.c.bf16 %v835_v47, %v834_v11  ;;  %v1132_v47 = vld [vmem:[#allocation2 + $0x9] sm:$0xff]  ;;  %v1411_v11 = vmul.f32 %v1395_v19, %v760_v9 }
  0xab   : > { %v15103_v2 = vpop.permute.xlu1 %819  ;;  %v15105_v4 = vpop.permute.xlu0 %814  ;;  %v15141_v9 = vld [vmem:[#allocation2 + $0x29] sm:$0xff] }
  0xac   : > { %20225 = vst [vmem:[#allocation19_spill] sm:$0xff] %v15105_v4  ;;  %v845_v7 = vmul.f32 %v14984_v42, %v15103_v2  ;;  %v844_v8 = vmul.f32 %v14986_v43, %v15105_v4  ;;  %4410 = vperm.xlu1 %14016, %v14203_v15   ;;  %12856 = vmatmul.mubr.msk.bf16.vlgmr.msra.gmra.mxu0 %vm467_vm0, %v849_v63  ;;  %v14205_v63 = vld [vmem:[%s20009_s1 + $0x68] sm:$0xff] }
  0xad   : > { %4405 = vperm.xlu0 %14015, %v14204_v18   ;;  %12872 = vmatpush3.bf16.msra.mxu0 %v1279_v6  ;;  %v1133_v6 = vld [vmem:[#allocation2 + $0x11] sm:$0xff] }
  0xae   : > { %v854_v32 = vpack.c.bf16 %v845_v7, %v844_v8  ;;  %13958 = vmatprep.subr.msk.bf16.mxu0 %vm907_vm1, %v11459_v17  ;;  %v15135_v7 = vld [vmem:[#allocation2 + $0x31] sm:$0xff]  ;;  %v14206_v8 = vld [vmem:[%s20009_s1 + $0x60] sm:$0xff] }
  0xaf   : > { %v15123_v23 = vpop.permute.xlu1 %829  ;;  %v15125_v38 = vpop.permute.xlu0 %824 }
  0xb0   : > { %20226 = vst [vmem:[#allocation20_spill] sm:$0xff] %v15123_v23  ;;  %20227 = vst [vmem:[#allocation21_spill] sm:$0xff] %v15125_v38  ;;  %v847_v60 = vmul.f32 %v15018_v56, %v15123_v23  ;;  %v846_v15 = vmul.f32 %v15029_v59, %v15125_v38  ;;  %4420 = vperm.xlu1 %14016, %v14205_v63   ;;  %12867 = vmatprep.mubr.msk.bf16.mxu1 %vm467_vm0, %v854_v32 }
  0xb1   : > { %4415 = vperm.xlu0 %14015, %v14206_v8   ;;  %v14207_v8 = vld [vmem:[%s20009_s1 + $0x78] sm:$0xff]  ;;  %v1426_v32 = vpack.c.bf16 %v1411_v11, %v1410_v55  ;;  %v1627_v11 = vsel %vm907_vm1, %v11459_v17, 0  ;;  %v1809_v55 = vsel %vm907_vm1, %v15038_v61, 0  ;;  %v1412_v17 = vmul.f32 %v15080_v46, %v14963_v33 }
  0xb2   : > { %v855_v21 = vpack.c.bf16 %v847_v60, %v846_v15  ;;  %v15158_v60 = vld [vmem:[#allocation2 + $0x19] sm:$0xff]  ;;  %v1415_v33 = vmul.f32 %v14969_v37, %v14955_v28  ;;  %v15219_v37 = vld [vmem:[#allocation2 + $0x61] sm:$0xff] }
  0xb3   : > { %v15143_v19 = vpop.permute.xlu1 %1155  ;;  %v15145_v20 = vpop.permute.xlu0 %1150 }
  0xb4   : > { %v1229_v18 = vmul.f32 %v15143_v19, %v1133_v6  ;;  %v15150_v63 = vmul.f32 %v15135_v7, %v15143_v19  ;;  %v1228_v12 = vmul.f32 %v15145_v20, %v1132_v47  ;;  %4430 = vperm.xlu1 %14016, %v14207_v8   ;;  %v15162_v15 = vmul.f32 %v15141_v9, %v15145_v20  ;;  %v14208_v6 = vld [vmem:[%s20009_s1 + $0x70] sm:$0xff]  ;;  %v15168_v47 = vld [vmem:[#allocation2 + $0x41] sm:$0xff] }
  0xb5   : > { %4425 = vperm.xlu0 %14015, %v14208_v6   ;;  %12868 = vmatmul.mubr.msk.bf16.gmra.mxu1 %vm467_vm0, %v855_v21  ;;  %v15182_v21 = vld [vmem:[#allocation2 + $0x51] sm:$0xff] }
  0xb6   : > { %20228 = vst [vmem:[#allocation22_spill] sm:$0xff] %v15150_v63  ;;  %20229 = vst [vmem:[#allocation23_spill] sm:$0xff] %v15162_v15  ;;  %12891 = vmatprep.mubr.msk.bf16.mxu1 %vm467_vm0, %v1426_v32  ;;  %v1244_v8 = vpack.c.bf16 %v1229_v18, %v1228_v12  ;;  %v15199_v18 = vld [vmem:[#allocation2 + $0x49] sm:$0xff]  ;;  %v14210_v32 = vld [vmem:[%s20010_s2] sm:$0xff] }
  0xb7   : > { %v15178_v1 = vpop.permute.xlu1 %1165  ;;  %v15180_v6 = vpop.permute.xlu0 %1160 }
  0xb8   : > { %v1231_v61 = vmul.f32 %v15156_v14, %v15178_v1  ;;  %v15192_v12 = vmul.f32 %v15168_v47, %v15178_v1  ;;  %v1230_v34 = vmul.f32 %v15158_v60, %v15180_v6  ;;  %4811 = vperm.xlu1 %14016, %v14209_v40   ;;  %v15205_v46 = vmul.f32 %v15170_v48, %v15180_v6 }
  0xb9   : > { %4806 = vperm.xlu0 %14015, %v14210_v32   ;;  %12873 = vmatprep.mubr.msk.bf16.mxu0 %vm467_vm0, %v1244_v8  ;;  %v1414_v40 = vmul.f32 %v14953_v27, %v14949_v25  ;;  %v1427_v32 = vpack.c.bf16 %v1413_v53, %v1412_v17  ;;  %v4325_v53 = vld [vmem:[%s20010_s2 + $0x20] sm:$0xff]  ;;  %v11477_v17 = vld [vmem:[%s20014_s6 + $0x18] sm:$0xf] }
  0xba   : > { %20230 = vst [vmem:[#allocation24_spill] sm:$0xff] %v15192_v12  ;;  %20231 = vst [vmem:[#allocation25_spill] sm:$0xff] %v15205_v46  ;;  %v1245_v10 = vpack.c.bf16 %v1231_v61, %v1230_v34  ;;  %v14211_v61 = vld [vmem:[%s20010_s2 + $0x18] sm:$0xff]  ;;  %v14212_v46 = vld [vmem:[%s20010_s2 + $0x10] sm:$0xff] }
  0xbb   : > { %v15215_v63 = vpop.permute.xlu1 %1175  ;;  %v15217_v28 = vpop.permute.xlu0 %1170  ;;  %v15235_v34 = vld [vmem:[#allocation2 + $0x59] sm:$0xff] }
  0xbc   : > { %v1233_v8 = vmul.f32 %v15135_v7, %v15215_v63  ;;  %v15228_v25 = vmul.f32 %v15182_v21, %v15215_v63  ;;  %v1232_v27 = vmul.f32 %v15141_v9, %v15217_v28  ;;  %4821 = vperm.xlu1 %14016, %v14211_v61   ;;  %v15245_v15 = vmul.f32 %v15199_v18, %v15217_v28 }
  0xbd   : > { %4816 = vperm.xlu0 %14015, %v14212_v46   ;;  %12874 = vmatmul.mubr.msk.bf16.vlgmr.msra.gmra.mxu0 %vm467_vm0, %v1245_v10  ;;  %v1428_v61 = vpack.c.bf16 %v1415_v33, %v1414_v40  ;;  %v4328_v10 = vld [vmem:[%s20010_s2 + $0x38] sm:$0xff]  ;;  %v1417_v46 = vmul.f32 %v14959_v29, %v14967_v35  ;;  %v4327_v35 = vld [vmem:[%s20010_s2 + $0x30] sm:$0xff] }
  0xbe   : > { %20232 = vst [vmem:[#allocation26_spill] sm:$0xff] %v15228_v25  ;;  %20233 = vst [vmem:[#allocation27_spill] sm:$0xff] %v15245_v15  ;;  %12892 = vmatmul.mubr.msk.bf16.vlgmr.msra.gmra.mxu1 %vm467_vm0, %v1427_v32  ;;  %12908 = vmatpush3.bf16.msra.mxu0 %v1627_v11  ;;  %v1246_v12 = vpack.c.bf16 %v1233_v8, %v1232_v27  ;;  %v15266_v11 = vsel %vm907_vm1, %v11477_v17, 0  ;;  %v15280_v8 = vld [vmem:[#allocation2 + $0x69] sm:$0xff]  ;;  %v1419_v27 = vmul.f32 %v14961_v31, %v15003_v49  ;;  %v4332_v15 = vld [vmem:[%s20010_s2 + $0x58] sm:$0xff] }
  0xbf   : > { %12895 = vmatprep.mubr.msk.bf16.mxu1 %vm467_vm0, %v1428_v61  ;;  %12926 = vmatpush3.bf16.msra.mxu1 %v1809_v55  ;;  %v15256_v58 = vpop.permute.xlu1 %1185  ;;  %v15258_v54 = vpop.permute.xlu0 %1180  ;;  %v1418_v61 = vmul.f32 %v14951_v26, %v15005_v50  ;;  %v1416_v31 = vmul.f32 %v14957_v3, %v14947_v24 }
  0xc0   : > { %v1235_v55 = vmul.f32 %v15168_v47, %v15256_v58  ;;  %v15276_v40 = vmul.f32 %v15219_v37, %v15256_v58  ;;  %v1234_v32 = vmul.f32 %v15170_v48, %v15258_v54  ;;  %4831 = vperm.xlu1 %14016, %v4326_v5   ;;  %v15288_v29 = vmul.f32 %v15235_v34, %v15258_v54 }
  0xc1   : > { %4826 = vperm.xlu0 %14015, %v4325_v53   ;;  %12877 = vmatprep.mubr.msk.bf16.mxu0 %vm467_vm0, %v1246_v12  ;;  %v15295_v5 = vsel %vm907_vm1, %v11486_v0, 0  ;;  %v15305_v12 = vld [vmem:[#allocation2 + $0x81] sm:$0xff] }
  0xc2   : > { %20234 = vst [vmem:[#allocation28_spill] sm:$0xff] %v15276_v40  ;;  %20235 = vst [vmem:[#allocation29_spill] sm:$0xff] %v15288_v29  ;;  %v1247_v49 = vpack.c.bf16 %v1235_v55, %v1234_v32  ;;  %13960 = vmatprep.subr.msk.bf16.mxu0 %vm907_vm1, %v11477_v17  ;;  %13961 = vmatprep.subr.msk.bf16.mxu1 %vm907_vm1, %v11486_v0  ;;  %v4330_v53 = vld [vmem:[%s20010_s2 + $0x48] sm:$0xff]  ;;  %v1429_v17 = vpack.c.bf16 %v1417_v46, %v1416_v31  ;;  %v15320_v55 = vld [vmem:[#allocation2 + $0x79] sm:$0xff] }
  0xc3   : > { %v15301_v26 = vpop.permute.xlu1 %1195  ;;  %v15303_v50 = vpop.permute.xlu0 %1190  ;;  %v4329_v32 = vld [vmem:[%s20010_s2 + $0x40] sm:$0xff]  ;;  %v1430_v29 = vpack.c.bf16 %v1419_v27, %v1418_v61  ;;  %v1420_v27 = vmul.f32 %v14986_v43, %v15033_v13  ;;  %v1422_v43 = vmul.f32 %v15029_v59, %v15105_v4  ;;  %v6362_v4 = vld [vmem:[%s20009_s1 + $0x88] sm:$0xff] }
  0xc4   : > { %v1237_v24 = vmul.f32 %v15182_v21, %v15301_v26  ;;  %v15316_v3 = vmul.f32 %v15260_v39, %v15301_v26  ;;  %v1236_v0 = vmul.f32 %v15199_v18, %v15303_v50  ;;  %4841 = vperm.xlu1 %14016, %v4328_v10   ;;  %v15327_v33 = vmul.f32 %v15280_v8, %v15303_v50 }
  0xc5   : > { %4836 = vperm.xlu0 %14015, %v4327_v35   ;;  %12878 = vmatmul.mubr.msk.bf16.gmra.mxu0 %vm467_vm0, %v1247_v49  ;;  %v1421_v10 = vmul.f32 %v14984_v42, %v15031_v62  ;;  %v1423_v49 = vmul.f32 %v15018_v56, %v15103_v2  ;;  %v15383_v35 = vld [vmem:[#allocation2 + $0x87] sm:$0xff] }
  0xc6   : > { %20236 = vst [vmem:[#allocation30_spill] sm:$0xff] %v15316_v3  ;;  %20237 = vst [vmem:[#allocation31_spill] sm:$0xff] %v15327_v33  ;;  %12896 = vmatmul.mubr.msk.bf16.gmra.mxu1 %vm467_vm0, %v1429_v17  ;;  %v1248_v40 = vpack.c.bf16 %v1237_v24, %v1236_v0  ;;  %v4334_v17 = vld [vmem:[%s20010_s2 + $0x68] sm:$0xff]  ;;  %v15413_v3 = vld [vmem:[#allocation2 + $0x97] sm:$0xff] }
  0xc7   : > { %12899 = vmatprep.mubr.msk.bf16.mxu1 %vm467_vm0, %v1430_v29  ;;  %v15334_v46 = vpop.permute.xlu1 %1205  ;;  %v15336_v31 = vpop.permute.xlu0 %1200  ;;  %v4331_v29 = vld [vmem:[%s20010_s2 + $0x50] sm:$0xff]  ;;  %v1432_v56 = vpack.c.bf16 %v1423_v49, %v1422_v43  ;;  %v1424_v49 = vmul.f32 %v15383_v35, %v15125_v38 }
  0xc8   : > { %v1239_v61 = vmul.f32 %v15219_v37, %v15334_v46  ;;  %v15349_v42 = vmul.f32 %v15305_v12, %v15334_v46  ;;  %v1238_v62 = vmul.f32 %v15235_v34, %v15336_v31  ;;  %4851 = vperm.xlu1 %14016, %v4330_v53   ;;  %v15362_v13 = vmul.f32 %v15320_v55, %v15336_v31 }
  0xc9   : > { %4846 = vperm.xlu0 %14015, %v4329_v32   ;;  %12881 = vmatprep.mubr.msk.bf16.mxu0 %vm467_vm0, %v1248_v40  ;;  %v1431_v40 = vpack.c.bf16 %v1421_v10, %v1420_v27  ;;  %v4336_v27 = vld [vmem:[%s20010_s2 + $0x78] sm:$0xff] }
  0xca   : > { %20238 = vst [vmem:[#allocation32_spill] sm:$0xff] %v15349_v42  ;;  %20239 = vst [vmem:[#allocation33_spill] sm:$0xff] %v15362_v13  ;;  %v1249_v24 = vpack.c.bf16 %v1239_v61, %v1238_v62  ;;  %v4333_v61 = vld [vmem:[%s20010_s2 + $0x60] sm:$0xff]  ;;  %v15381_v62 = vld [vmem:[#allocation2 + $0x8f] sm:$0xff] }
  0xcb   : > { %v15365_v0 = vpop.permute.xlu1 %1215  ;;  %v15367_v53 = vpop.permute.xlu0 %1210  ;;  %v1576_v13 = vld [vmem:[#allocation2 + $0x18] sm:$0xff]  ;;  %v1577_v42 = vld [vmem:[#allocation2 + $0x20] sm:$0xff] }
  0xcc   : > { %v1241_v59 = vmul.f32 %v15260_v39, %v15365_v0  ;;  %v1240_v32 = vmul.f32 %v15280_v8, %v15367_v53  ;;  %4861 = vperm.xlu1 %14016, %v4332_v15   ;;  %v1592_v38 = vpack.c.bf16 %v1577_v42, %v1576_v13 }
  0xcd   : > { %4856 = vperm.xlu0 %14015, %v4331_v29   ;;  %12882 = vmatmul.mubr.msk.bf16.gmra.mxu0 %vm467_vm0, %v1249_v24  ;;  %v1425_v29 = vmul.f32 %v15381_v62, %v15123_v23 }
  0xce   : > { %12900 = vmatmul.mubr.msk.bf16.gmra.mxu1 %vm467_vm0, %v1431_v40  ;;  %v1250_v33 = vpack.c.bf16 %v1241_v59, %v1240_v32  ;;  %v15406_v59 = vld [vmem:[#allocation2 + $0x9f] sm:$0xff]  ;;  %v1759_v32 = vmul.f32 %v15156_v14, %v15143_v19  ;;  %v1758_v40 = vmul.f32 %v15158_v60, %v15145_v20 }
  0xcf   : > { %12903 = vmatprep.mubr.msk.bf16.mxu1 %vm467_vm0, %v1432_v56  ;;  %v15388_v15 = vpop.permute.xlu1 %1225  ;;  %v15390_v10 = vpop.permute.xlu0 %1220  ;;  %v4335_v56 = vld [vmem:[%s20010_s2 + $0x70] sm:$0xff]  ;;  %v1433_v60 = vpack.c.bf16 %v1425_v29, %v1424_v49  ;;  %v1761_v29 = vmul.f32 %v15135_v7, %v15178_v1  ;;  %v1760_v49 = vmul.f32 %v15141_v9, %v15180_v6  ;;  %v1763_v9 = vmul.f32 %v15168_v47, %v15215_v63 }
  0xd0   : > { %v1243_v43 = vmul.f32 %v15305_v12, %v15388_v15  ;;  %v1242_v24 = vmul.f32 %v15320_v55, %v15390_v10  ;;  %4871 = vperm.xlu1 %14016, %v4334_v17   ;;  %12885 = vmatprep.mubr.msk.bf16.mxu0 %vm467_vm0, %v1250_v33  ;;  %v6361_v33 = vld [vmem:[%s20009_s1 + $0x80] sm:$0xff]  ;;  %v1774_v13 = vpack.c.bf16 %v1759_v32, %v1758_v40  ;;  %v15462_v1 = vld [vmem:[#allocation2 + $0xa9] sm:$0xff]  ;;  %v15471_v40 = vld [vmem:[#allocation2 + $0x91] sm:$0xff] }
  0xd1   : > { %4866 = vperm.xlu0 %14015, %v4333_v61   ;;  %v1580_v61 = vld [vmem:[#allocation2 + $0x38] sm:$0xff]  ;;  %20245 = vst [vmem:[#allocation39_spill] sm:$0xff] %v15462_v1  ;;  %v6363_v7 = vld [vmem:[%s20009_s1 + $0x90] sm:$0xff]  ;;  %v1762_v6 = vmul.f32 %v15170_v48, %v15217_v28  ;;  %v1775_v32 = vpack.c.bf16 %v1761_v29, %v1760_v49  ;;  %v15496_v29 = vld [vmem:[#allocation2 + $0xc1] sm:$0xff] }
  0xd2   : > { %v1251_v25 = vpack.c.bf16 %v1243_v43, %v1242_v24  ;;  %v1581_v43 = vld [vmem:[#allocation2 + $0x40] sm:$0xff] }
  0xd3   : > { %v15415_v17 = vpop.permute.xlu1 %2564  ;;  %v15417_v23 = vpop.permute.xlu0 %2559  ;;  %v15482_v63 = vpack.c.bf16 %v1581_v43, %v1580_v61  ;;  %v15498_v49 = vld [vmem:[#allocation2 + $0xb9] sm:$0xff] }
  0xd4   : > { %20240 = vst [vmem:[#allocation34_spill] sm:$0xff] %v15415_v17  ;;  %20241 = vst [vmem:[#allocation35_spill] sm:$0xff] %v15417_v23  ;;  %v15424_v14 = vmul.f32 %v15415_v17, %v15381_v62  ;;  %v15428_v19 = vmul.f32 %v15415_v17, %v15406_v59  ;;  %v15432_v20 = vmul.f32 %v15417_v23, %v15383_v35  ;;  %4881 = vperm.xlu1 %14016, %v4336_v27   ;;  %v6378_v17 = vld [vmem:[%s20010_s2 + $0x88] sm:$0xff]  ;;  %v6377_v61 = vld [vmem:[%s20010_s2 + $0x80] sm:$0xff] }
  0xd5   : > { %v15439_v42 = vmul.f32 %v15417_v23, %v15413_v3  ;;  %4876 = vperm.xlu0 %14015, %v4335_v56   ;;  %12886 = vmatmul.mubr.msk.bf16.gmra.mxu0 %vm467_vm0, %v1251_v25  ;;  %v15455_v56 = vld [vmem:[#allocation2 + $0xb1] sm:$0xff] }
  0xd6   : > { %20242 = vst [vmem:[#allocation36_spill] sm:$0xff] %v15428_v19  ;;  %12904 = vmatmul.mubr.msk.bf16.gmra.mxu1 %vm467_vm0, %v1433_v60  ;;  %12909 = vmatprep.mubr.msk.bf16.mxu0 %vm467_vm0, %v1592_v38  ;;  %20244 = vst [vmem:[#allocation38_spill] sm:$0xff] %v15455_v56  ;;  %v6364_v38 = vld [vmem:[%s20009_s1 + $0x98] sm:$0xff]  ;;  %v15473_v60 = vld [vmem:[#allocation2 + $0x89] sm:$0xff] }
  0xd7   : > { %20243 = vst [vmem:[#allocation37_spill] sm:$0xff] %v15439_v42  ;;  %12927 = vmatprep.mubr.msk.bf16.mxu1 %vm467_vm0, %v1774_v13  ;;  %v15451_v24 = vpop.permute.xlu1 %2574  ;;  %v15453_v25 = vpop.permute.xlu0 %2569  ;;  %v15475_v13 = vld [vmem:[#allocation2 + $0xa1] sm:$0xff] }
  0xd8   : > { %6416 = vperm.xlu1 %14016, %v6362_v4   ;;  %v15477_v4 = vld [vmem:[#allocation2 + $0x99] sm:$0xff] }
  0xd9   : > { %6411 = vperm.xlu0 %14015, %v6361_v33   ;;  %v1585_v19 = vld [vmem:[#allocation2 + $0x60] sm:$0xff] }
  0xdb   : > { %v2959_v27 = vpop.permute.xlu1 %2958  ;;  %v2954_v23 = vpop.permute.xlu0 %2953 }
  0xdc   : > { %v15485_v48 = vmul.f32 %v2959_v27, %v15471_v40  ;;  %v15488_v47 = vmul.f32 %v2959_v27, %v15475_v13  ;;  %v15491_v28 = vmul.f32 %v15455_v56, %v2959_v27  ;;  %v15494_v33 = vmul.f32 %v2954_v23, %v15473_v60  ;;  %6426 = vperm.xlu1 %14016, %v6364_v38   ;;  %v1584_v38 = vld [vmem:[#allocation2 + $0x58] sm:$0xff]  ;;  %v15516_v56 = vld [vmem:[%s20014_s6 + $0x20] sm:$0xf] }
  0xdd   : > { %v15504_v43 = vmul.f32 %v2954_v23, %v15477_v4  ;;  %v15507_v42 = vmul.f32 %v15462_v1, %v2954_v23  ;;  %6421 = vperm.xlu0 %14015, %v6363_v7   ;;  %12910 = vmatmul.mubr.msk.bf16.vlgmr.msra.gmra.mxu0 %vm467_vm0, %v14656_v36  ;;  %v1776_v27 = vpack.c.bf16 %v1763_v9, %v1762_v6 }
  0xde   : > { %20246 = vst [vmem:[#allocation40_spill] sm:$0xff] %v15488_v47  ;;  %20247 = vst [vmem:[#allocation41_spill] sm:$0xff] %v15491_v28  ;;  %12928 = vmatmul.mubr.msk.bf16.vlgmr.msra.gmra.mxu1 %vm467_vm0, %v1775_v32  ;;  %12944 = vmatpush3.bf16.msra.mxu0 %v15266_v11  ;;  %v6380_v11 = vld [vmem:[%s20010_s2 + $0x98] sm:$0xff]  ;;  %v15532_v32 = vld [vmem:[%s20014_s6 + $0x4] sm:$0xf]  ;;  %v1767_v1 = vmul.f32 %v15219_v37, %v15301_v26  ;;  %v1766_v9 = vmul.f32 %v15235_v34, %v15303_v50 }
  0xdf   : > { %20248 = vst [vmem:[#allocation42_spill] sm:$0xff] %v15504_v43  ;;  %20249 = vst [vmem:[#allocation43_spill] sm:$0xff] %v15507_v42  ;;  %12931 = vmatprep.mubr.msk.bf16.mxu1 %vm467_vm0, %v1776_v27  ;;  %12962 = vmatpush3.bf16.msra.mxu1 %v15295_v5  ;;  %v15522_v36 = vpop.permute.xlu1 %2968  ;;  %v15524_v7 = vpop.permute.xlu0 %2963  ;;  %v1765_v5 = vmul.f32 %v15182_v21, %v15256_v58  ;;  %v1764_v27 = vmul.f32 %v15199_v18, %v15258_v54  ;;  %v6379_v54 = vld [vmem:[%s20010_s2 + $0x90] sm:$0xff]  ;;  %v6366_v34 = vld [vmem:[%s20009_s1 + $0xa8] sm:$0xff] }
  0xe0   : > { %v15544_v23 = vmul.f32 %v15496_v29, %v15522_v36  ;;  %6866 = vperm.xlu1 %14016, %v6378_v17   ;;  %v15552_v6 = vmul.f32 %v15498_v49, %v15524_v7  ;;  %12913 = vmatprep.mubr.msk.bf16.mxu0 %vm467_vm0, %v15482_v63  ;;  %v15559_v58 = vpack.c.bf16 %v1585_v19, %v1584_v38  ;;  %v6365_v50 = vld [vmem:[%s20009_s1 + $0xa0] sm:$0xff]  ;;  %v1588_v19 = vld [vmem:[#allocation2 + $0x78] sm:$0xff] }
  0xe1   : > { %6861 = vperm.xlu0 %14015, %v6377_v61   ;;  %13962 = vmatprep.subr.msk.bf16.mxu0 %vm907_vm1, %v15516_v56  ;;  %v1777_v26 = vpack.c.bf16 %v1765_v5, %v1764_v27  ;;  %v1778_v17 = vpack.c.bf16 %v1767_v1, %v1766_v9  ;;  %v1589_v61 = vld [vmem:[#allocation2 + $0x80] sm:$0xff]  ;;  %v15587_v5 = vld [vmem:[#allocation2 + $0xd1] sm:$0xff]  ;;  %v1769_v1 = vmul.f32 %v15260_v39, %v15334_v46  ;;  %v15596_v27 = vld [vmem:[#allocation2 + $0xc9] sm:$0xff] }
  0xe2   : > { %20250 = vst [vmem:[#allocation44_spill] sm:$0xff] %v15544_v23  ;;  %20251 = vst [vmem:[#allocation45_spill] sm:$0xff] %v15552_v6  ;;  %13963 = vmatprep.subr.msk.bf16.mxu1 %vm907_vm1, %v15532_v32  ;;  %v1768_v9 = vmul.f32 %v15280_v8, %v15336_v31  ;;  %v15605_v21 = vpack.c.bf16 %v1589_v61, %v1588_v19  ;;  %v15611_v8 = vld [vmem:[#allocation2 + $0xe1] sm:$0xff]  ;;  %v1591_v61 = vld [vmem:[#allocation2 + $0x90] sm:$0xff] }
  0xe3   : > { %v15567_v18 = vpop.permute.xlu1 %2584  ;;  %v15569_v37 = vpop.permute.xlu0 %2579  ;;  %v6382_v31 = vld [vmem:[%s20010_s2 + $0xa8] sm:$0xff] }
  0xe4   : > { %6876 = vperm.xlu1 %14016, %v6380_v11   ;;  %v1590_v19 = vld [vmem:[#allocation2 + $0x88] sm:$0xff] }
  0xe5   : > { %6871 = vperm.xlu0 %14015, %v6379_v54   ;;  %12914 = vmatmul.mubr.msk.bf16.gmra.mxu0 %vm467_vm0, %v14668_v41  ;;  %v6368_v41 = vld [vmem:[%s20009_s1 + $0xb8] sm:$0xff]  ;;  %v6367_v54 = vld [vmem:[%s20009_s1 + $0xb0] sm:$0xff] }
  0xe6   : > { %12932 = vmatmul.mubr.msk.bf16.gmra.mxu1 %vm467_vm0, %v1777_v26  ;;  %12917 = vmatprep.mubr.msk.bf16.mxu0 %vm467_vm0, %v15559_v58  ;;  %v1771_v26 = vmul.f32 %v15305_v12, %v15365_v0  ;;  %v1779_v12 = vpack.c.bf16 %v1769_v1, %v1768_v9  ;;  %v2107_v1 = vld [vmem:[#allocation2 + $0x30] sm:$0xff] }
  0xe7   : > { %12935 = vmatprep.mubr.msk.bf16.mxu1 %vm467_vm0, %v1778_v17  ;;  %v15583_v38 = vpop.permute.xlu1 %2594  ;;  %v15585_v11 = vpop.permute.xlu0 %2589  ;;  %v1770_v17 = vmul.f32 %v15320_v55, %v15367_v53  ;;  %v15620_v55 = vld [vmem:[#allocation2 + $0xd9] sm:$0xff] }
  0xe8   : > { %6436 = vperm.xlu1 %14016, %v6366_v34  }
  0xe9   : > { %6431 = vperm.xlu0 %14015, %v6365_v50   ;;  %v6381_v50 = vld [vmem:[%s20010_s2 + $0xa0] sm:$0xff]  ;;  %v1780_v23 = vpack.c.bf16 %v1771_v26, %v1770_v17  ;;  %v1773_v26 = vmul.f32 %v15471_v40, %v15388_v15  ;;  %v1772_v17 = vmul.f32 %v15473_v60, %v15390_v10 }
  0xeb   : > { %v15607_v39 = vpop.permute.xlu1 %2978  ;;  %v15609_v46 = vpop.permute.xlu0 %2973 }
  0xec   : > { %20252 = vst [vmem:[#allocation46_spill] sm:$0xff] %v15609_v46  ;;  %v15618_v34 = vmul.f32 %v15587_v5, %v15607_v39  ;;  %6446 = vperm.xlu1 %14016, %v6368_v41   ;;  %v15627_v6 = vmul.f32 %v15596_v27, %v15609_v46  ;;  %v2106_v41 = vld [vmem:[#allocation2 + $0x28] sm:$0xff] }
  0xed   : > { %6441 = vperm.xlu0 %14015, %v6367_v54   ;;  %12918 = vmatmul.mubr.msk.bf16.gmra.mxu0 %vm467_vm0, %v14685_v51  ;;  %v6384_v54 = vld [vmem:[%s20010_s2 + $0xb8] sm:$0xff]  ;;  %v15659_v51 = vpack.c.bf16 %v1591_v61, %v1590_v19  ;;  %v2122_v47 = vpack.c.bf16 %v2107_v1, %v2106_v41  ;;  %v20257_v19 = vpack.c.bf16 %v15066_v16, %v15072_v22  ;;  %v6369_v61 = vld [vmem:[%s20009_s1 + $0xc0] sm:$0xff]  ;;  %v6371_v22 = vld [vmem:[%s20009_s1 + $0xd0] sm:$0xff] }
  0xee   : > { %20253 = vst [vmem:[#allocation47_spill] sm:$0xff] %v15618_v34  ;;  %20254 = vst [vmem:[#allocation48_spill] sm:$0xff] %v15627_v6  ;;  %12936 = vmatmul.mubr.msk.bf16.gmra.mxu1 %vm467_vm0, %v1779_v12  ;;  %12921 = vmatprep.mubr.msk.bf16.mxu0 %vm467_vm0, %v15605_v21  ;;  %v6383_v12 = vld [vmem:[%s20010_s2 + $0xb0] sm:$0xff]  ;;  %v6372_v16 = vld [vmem:[%s20009_s1 + $0xd8] sm:$0xff] }
  0xef   : > { %12939 = vmatprep.mubr.msk.bf16.mxu1 %vm467_vm0, %v1780_v23  ;;  %v15635_v9 = vpop.permute.xlu1 %2988  ;;  %v15637_v42 = vpop.permute.xlu0 %2983 }
  0xf0   : > { %v15650_v23 = vmul.f32 %v15611_v8, %v15635_v9  ;;  %6886 = vperm.xlu1 %14016, %v6382_v31   ;;  %v15657_v28 = vmul.f32 %v15620_v55, %v15637_v42  ;;  %v1781_v31 = vpack.c.bf16 %v1773_v26, %v1772_v17  ;;  %v15687_v26 = vld [vmem:[#allocation2 + $0xe9] sm:$0xff] }
  0xf1   : > { %6881 = vperm.xlu0 %14015, %v6381_v50   ;;  %v6370_v50 = vld [vmem:[%s20009_s1 + $0xc8] sm:$0xff]  ;;  %20259 = vst [vmem:[#allocation52_spill] sm:$0xff] %v15687_v26 }
  0xf2   : > { %20255 = vst [vmem:[#allocation49_spill] sm:$0xff] %v15650_v23  ;;  %20256 = vst [vmem:[#allocation50_spill] sm:$0xff] %v15657_v28  ;;  %v2110_v17 = vld [vmem:[#allocation2 + $0x48] sm:$0xff]  ;;  %v20262_v28 = vpack.c.bf16 %v15087_v52, %v15095_v57  ;;  %v20265_v52 = vpack.c.bf16 %v14994_v45, %v14990_v44  ;;  %v6387_v44 = vld [vmem:[%s20010_s2 + $0xd0] sm:$0xff] }
  0xf3   : > { %v15663_v34 = vpop.permute.xlu1 %2604  ;;  %v15665_v43 = vpop.permute.xlu0 %2599  ;;  %v15715_v23 = vld [vmem:[#allocation2 + $0x101] sm:$0xff] }
  0xf4   : > { %6896 = vperm.xlu1 %14016, %v6384_v54   ;;  %v15685_v54 = vld [vmem:[#allocation2 + $0xf1] sm:$0xff]  ;;  %20263 = vst [vmem:[#allocation55_spill] sm:$0xff] %v15715_v23 }
  0xf5   : > { %6891 = vperm.xlu0 %14015, %v6383_v12   ;;  %12922 = vmatmul.mubr.msk.bf16.gmra.mxu0 %vm467_vm0, %v15659_v51  ;;  %20258 = vst [vmem:[#allocation51_spill] sm:$0xff] %v15685_v54  ;;  %v2111_v12 = vld [vmem:[#allocation2 + $0x50] sm:$0xff] }
  0xf6   : > { %12940 = vmatmul.mubr.msk.bf16.gmra.mxu1 %vm467_vm0, %v1781_v31  ;;  %12945 = vmatprep.mubr.msk.bf16.mxu0 %vm467_vm0, %v20257_v19 }
  0xf7   : > { %v15680_v41 = vpop.permute.xlu1 %2614  ;;  %v15682_v1 = vpop.permute.xlu0 %2609  ;;  %12963 = vmatprep.mubr.msk.bf16.mxu1 %vm467_vm0, %v2122_v47  ;;  %v2339_v47 = vsel %vm907_vm1, %v15516_v56, 0  ;;  %v6386_v56 = vld [vmem:[%s20010_s2 + $0xc8] sm:$0xff] }
  0xf8   : > { %6456 = vperm.xlu1 %14016, %v6370_v50  }
  0xf9   : > { %6451 = vperm.xlu0 %14015, %v6369_v61   ;;  %v2712_v61 = vsel %vm907_vm1, %v15532_v32, 0  ;;  %v15722_v32 = vld [vmem:[#allocation2 + $0xf9] sm:$0xff] }
  0xfa   : > { %20264 = vst [vmem:[#allocation56_spill] sm:$0xff] %v15722_v32 }
  0xfb   : > { %v15695_v31 = vpop.permute.xlu1 %2998  ;;  %v15697_v19 = vpop.permute.xlu0 %2993 }
  0xfc   : > { %v15703_v50 = vmul.f32 %v15685_v54, %v15695_v31  ;;  %6466 = vperm.xlu1 %14016, %v6372_v16   ;;  %v15709_v6 = vmul.f32 %v15687_v26, %v15697_v19  ;;  %v2124_v16 = vpack.c.bf16 %v2111_v12, %v2110_v17  ;;  %v15743_v17 = vld [vmem:[%s20014_s6 + $0x8] sm:$0xf] }
  0xfd   : > { %6461 = vperm.xlu0 %14015, %v6371_v22   ;;  %12946 = vmatmul.mubr.msk.bf16.vlgmr.msra.gmra.mxu0 %vm467_vm0, %v20262_v28  ;;  %v6385_v22 = vld [vmem:[%s20010_s2 + $0xc0] sm:$0xff]  ;;  %v2114_v12 = vld [vmem:[#allocation2 + $0x68] sm:$0xff] }
  0xfe   : > { %20260 = vst [vmem:[#allocation53_spill] sm:$0xff] %v15703_v50  ;;  %20261 = vst [vmem:[#allocation54_spill] sm:$0xff] %v15709_v6  ;;  %12964 = vmatmul.mubr.msk.bf16.vlgmr.msra.gmra.mxu1 %vm467_vm0, %v15482_v63  ;;  %12980 = vmatpush3.bf16.msra.mxu0 %v2339_v47  ;;  %v15738_v63 = vld [vmem:[%s20014_s6] sm:$0xf]  ;;  %v2115_v47 = vld [vmem:[#allocation2 + $0x70] sm:$0xff] }
  0xff   : > { %12949 = vmatprep.mubr.msk.bf16.mxu0 %vm467_vm0, %v20265_v52  ;;  %12998 = vmatpush3.bf16.msra.mxu1 %v2712_v61  ;;  %v15731_v57 = vpop.permute.xlu1 %3008  ;;  %v15733_v28 = vpop.permute.xlu0 %3003  ;;  %v6388_v52 = vld [vmem:[%s20010_s2 + $0xd8] sm:$0xff]  ;;  %v2126_v6 = vpack.c.bf16 %v2115_v47, %v2114_v12  ;;  %v20271_v50 = vld [vmem:[#allocation14_spill] sm:$0xff]  ;;  %v6375_v47 = vld [vmem:[%s20009_s1 + $0xf0] sm:$0xff] }
 0x100   : > { %20266 = vst [vmem:[#allocation57_spill] sm:$0xff] %v15731_v57  ;;  %20267 = vst [vmem:[#allocation58_spill] sm:$0xff] %v15733_v28  ;;  %v15749_v45 = vmul.f32 %v15715_v23, %v15731_v57  ;;  %6906 = vperm.xlu1 %14016, %v6386_v56   ;;  %v15753_v61 = vmul.f32 %v15722_v32, %v15733_v28  ;;  %12967 = vmatprep.mubr.msk.bf16.mxu1 %vm467_vm0, %v2124_v16  ;;  %v6374_v23 = vld [vmem:[%s20009_s1 + $0xe8] sm:$0xff] }
 0x101   : > { %6901 = vperm.xlu0 %14015, %v6385_v22   ;;  %13964 = vmatprep.subr.msk.bf16.mxu0 %vm907_vm1, %v15738_v63  ;;  %v20272_v32 = vpack.c.bf16 %v14981_v30, %v20271_v50  ;;  %v20273_v56 = vld [vmem:[#allocation15_spill] sm:$0xff]  ;;  %v1953_v50 = vmul.f32 %v15381_v62, %v15103_v2  ;;  %v20281_v2 = vld [vmem:[#allocation17_spill] sm:$0xff]  ;;  %v20282_v62 = vld [vmem:[#allocation18_spill] sm:$0xff] }
 0x102   : > { %20268 = vst [vmem:[#allocation59_spill] sm:$0xff] %v15749_v45  ;;  %20269 = vst [vmem:[#allocation60_spill] sm:$0xff] %v15753_v61  ;;  %13965 = vmatprep.subr.msk.bf16.mxu1 %vm907_vm1, %v15743_v17  ;;  %v20274_v61 = vld [vmem:[#allocation16_spill] sm:$0xff] }
 0x103   : > { %v15768_v22 = vpop.permute.xlu1 %2624  ;;  %v15770_v16 = vpop.permute.xlu0 %2619  ;;  %v20275_v45 = vpack.c.bf16 %v20273_v56, %v20274_v61  ;;  %v6390_v56 = vld [vmem:[%s20010_s2 + $0xe8] sm:$0xff] }
 0x104   : > { %20270 = vst [vmem:[#allocation61_spill] sm:$0xff] %v15770_v16  ;;  %6916 = vperm.xlu1 %14016, %v6388_v52  }
 0x105   : > { %6911 = vperm.xlu0 %14015, %v6387_v44   ;;  %12950 = vmatmul.mubr.msk.bf16.gmra.mxu0 %vm467_vm0, %v20272_v32  ;;  %v6373_v44 = vld [vmem:[%s20009_s1 + $0xe0] sm:$0xff]  ;;  %v20278_v32 = vld [vmem:[#allocation19_spill] sm:$0xff] }
 0x106   : > { %12968 = vmatmul.mubr.msk.bf16.gmra.mxu1 %vm467_vm0, %v15559_v58  ;;  %12953 = vmatprep.mubr.msk.bf16.mxu0 %vm467_vm0, %v20275_v45  ;;  %v1952_v58 = vmul.f32 %v15383_v35, %v20278_v32  ;;  %v6376_v45 = vld [vmem:[%s20009_s1 + $0xf8] sm:$0xff]  ;;  %v20283_v35 = vpack.c.bf16 %v20281_v2, %v20282_v62  ;;  %v20284_v32 = vld [vmem:[#allocation20_spill] sm:$0xff] }
 0x107   : > { %v15788_v12 = vpop.permute.xlu1 %2634  ;;  %v15790_v30 = vpop.permute.xlu0 %2629  ;;  %12971 = vmatprep.mubr.msk.bf16.mxu1 %vm467_vm0, %v2126_v6  ;;  %v2120_v62 = vld [vmem:[#allocation2 + $0x98] sm:$0xff] }
 0x108   : > { %20276 = vst [vmem:[#allocation14_spill] sm:$0xff] %v15788_v12  ;;  %20277 = vst [vmem:[#allocation15_spill] sm:$0xff] %v15790_v30  ;;  %6476 = vperm.xlu1 %14016, %v6374_v23   ;;  %v1962_v6 = vpack.c.bf16 %v1953_v50, %v1952_v58  ;;  %v4084_v23 = vld [vmem:[#allocation2 + $0x121] sm:$0xff]  ;;  %v1955_v58 = vmul.f32 %v15406_v59, %v20284_v32  ;;  %v6392_v32 = vld [vmem:[%s20010_s2 + $0xf8] sm:$0xff] }
 0x109   : > { %6471 = vperm.xlu0 %14015, %v6373_v44   ;;  %v4083_v44 = vld [vmem:[#allocation2 + $0x119] sm:$0xff] }
 0x10a   : > { %v6389_v50 = vld [vmem:[%s20010_s2 + $0xe0] sm:$0xff] }
 0x10b   : > { %v15803_v61 = vpop.permute.xlu1 %3018  ;;  %v15805_v52 = vpop.permute.xlu0 %3013 }
 0x10c   : > { %20279 = vst [vmem:[#allocation16_spill] sm:$0xff] %v15803_v61  ;;  %20280 = vst [vmem:[#allocation19_spill] sm:$0xff] %v15805_v52  ;;  %6486 = vperm.xlu1 %14016, %v6376_v45   ;;  %v20285_v45 = vld [vmem:[#allocation21_spill] sm:$0xff]  ;;  %v15946_v52 = vld [vmem:[%s20011_s3 + $0x28] sm:$0xff] }
 0x10d   : > { %6481 = vperm.xlu0 %14015, %v6375_v47   ;;  %12954 = vmatmul.mubr.msk.bf16.gmra.mxu0 %vm467_vm0, %v20283_v35  ;;  %v1954_v47 = vmul.f32 %v15413_v3, %v20285_v45  ;;  %v6391_v45 = vld [vmem:[%s20010_s2 + $0xf0] sm:$0xff]  ;;  %v15990_v61 = vld [vmem:[%s20012_s4 + $0x28] sm:$0xff] }
 0x10e   : > { %12972 = vmatmul.mubr.msk.bf16.gmra.mxu1 %vm467_vm0, %v15605_v21  ;;  %12957 = vmatprep.mubr.msk.bf16.mxu0 %vm467_vm0, %v1962_v6  ;;  %v2121_v21 = vld [vmem:[#allocation2 + $0xa0] sm:$0xff] }
 0x10f   : > { %v15824_v2 = vpop.permute.xlu1 %3028  ;;  %12975 = vmatprep.mubr.msk.bf16.mxu1 %vm467_vm0, %v15659_v51  ;;  %v15831_v35 = vpop.permute.xlu0 %3023  ;;  %v15842_v12 = vpack.c.bf16 %v2121_v21, %v2120_v62  ;;  %v2667_v21 = vld [vmem:[#allocation2 + $0xb0] sm:$0xff] }
 0x110   : > { %20286 = vst [vmem:[#allocation17_spill] sm:$0xff] %v15824_v2  ;;  %v15829_v6 = vmul.f32 %v4084_v23, %v15824_v2  ;;  %20288 = vst [vmem:[#allocation20_spill] sm:$0xff] %v15831_v35  ;;  %6926 = vperm.xlu1 %14016, %v6390_v56   ;;  %v15834_v30 = vmul.f32 %v4083_v44, %v15831_v35  ;;  %v1963_v2 = vpack.c.bf16 %v1955_v58, %v1954_v47  ;;  %v15850_v56 = vld [vmem:[%s20011_s3 + $0x8] sm:$0xff]  ;;  %v20291_v44 = vld [vmem:[#allocation22_spill] sm:$0xff] }
 0x111   : > { %6921 = vperm.xlu0 %14015, %v6389_v50   ;;  %20290 = vst [vmem:[#allocation62_spill] sm:$0xff] %v15842_v12  ;;  %v20292_v50 = vld [vmem:[#allocation23_spill] sm:$0xff]  ;;  %v15861_v58 = vld [vmem:[%s20011_s3] sm:$0xff]  ;;  %v15870_v47 = vld [vmem:[%s20011_s3 + $0x18] sm:$0xff] }
 0x112   : > { %20287 = vst [vmem:[#allocation18_spill] sm:$0xff] %v15829_v6  ;;  %20289 = vst [vmem:[#allocation21_spill] sm:$0xff] %v15834_v30  ;;  %v20293_v62 = vpack.c.bf16 %v20291_v44, %v20292_v50  ;;  %v20295_v50 = vld [vmem:[#allocation24_spill] sm:$0xff]  ;;  %v15892_v30 = vld [vmem:[%s20012_s4 + $0x8] sm:$0xff] }
 0x113   : > { %v2670_v6 = vld [vmem:[#allocation2 + $0xc8] sm:$0xff]  ;;  %v20304_v35 = vld [vmem:[#allocation29_spill] sm:$0xff] }
 0x114   : > { %6936 = vperm.xlu1 %14016, %v6392_v32   ;;  %v15875_v32 = vld [vmem:[%s20011_s3 + $0x10] sm:$0xff] }
 0x115   : > { %6931 = vperm.xlu0 %14015, %v6391_v45   ;;  %12958 = vmatmul.mubr.msk.bf16.gmra.mxu0 %vm467_vm0, %v1963_v2  ;;  %v2666_v2 = vld [vmem:[#allocation2 + $0xa8] sm:$0xff]  ;;  %v2836_v45 = vsel %vm907_vm1, %v15738_v63, 0  ;;  %v15899_v63 = vld [vmem:[%s20012_s4] sm:$0xff] }
 0x116   : > { %12976 = vmatmul.mubr.msk.bf16.gmra.mxu1 %vm467_vm0, %v15842_v12  ;;  %12981 = vmatprep.mubr.msk.bf16.mxu0 %vm467_vm0, %v20293_v62  ;;  %v15882_v44 = vpack.c.bf16 %v2667_v21, %v2666_v2  ;;  %v20296_v62 = vld [vmem:[#allocation25_spill] sm:$0xff]  ;;  %v20299_v2 = vld [vmem:[#allocation27_spill] sm:$0xff] }
 0x117   : > { %12999 = vmatprep.mubr.msk.bf16.mxu1 %vm467_vm0, %v15659_v51  ;;  %v3081_v51 = vsel %vm907_vm1, %v15743_v17, 0  ;;  %v20297_v23 = vpack.c.bf16 %v20295_v50, %v20296_v62  ;;  %v15904_v17 = vld [vmem:[%s20014_s6 + $0xc] sm:$0xf]  ;;  %v2668_v50 = vld [vmem:[#allocation2 + $0xb8] sm:$0xff]  ;;  %v2669_v62 = vld [vmem:[#allocation2 + $0xc0] sm:$0xff] }
 0x118   : > { %8535 = vperm.xlu1 %14016, %v15850_v56   ;;  %20294 = vst [vmem:[#allocation22_spill] sm:$0xff] %v15882_v44 }
 0x119   : > { %8530 = vperm.xlu0 %14015, %v15861_v58  }
 0x11c   : > { %8545 = vperm.xlu1 %14016, %v15870_v47  }
 0x11d   : > { %8540 = vperm.xlu0 %14015, %v15875_v32   ;;  %12982 = vmatmul.mubr.msk.bf16.vlgmr.msra.gmra.mxu0 %vm467_vm0, %v20297_v23  ;;  %v20298_v23 = vld [vmem:[#allocation26_spill] sm:$0xff] }
 0x11e   : > { %13000 = vmatmul.mubr.msk.bf16.vlgmr.msra.gmra.mxu1 %vm467_vm0, %v15842_v12  ;;  %13016 = vmatpush3.bf16.msra.mxu0 %v2836_v45  ;;  %v20300_v21 = vpack.c.bf16 %v20298_v23, %v20299_v2  ;;  %v15913_v45 = vld [vmem:[%s20014_s6 + $0x10] sm:$0xf]  ;;  %v15931_v2 = vpack.c.bf16 %v2669_v62, %v2668_v50  ;;  %v20306_v50 = vld [vmem:[#allocation30_spill] sm:$0xff] }
 0x11f   : > { %13034 = vmatpush3.bf16.msra.mxu1 %v3081_v51  ;;  %13003 = vmatprep.mubr.msk.bf16.mxu1 %vm467_vm0, %v15882_v44  ;;  %v2671_v12 = vld [vmem:[#allocation2 + $0xd0] sm:$0xff]  ;;  %v15922_v51 = vld [vmem:[%s20012_s4 + $0x18] sm:$0xff]  ;;  %v15957_v62 = vld [vmem:[%s20011_s3 + $0x20] sm:$0xff] }
 0x120   : > { %12985 = vmatprep.mubr.msk.bf16.mxu0 %vm467_vm0, %v20300_v21  ;;  %8826 = vperm.xlu1 %14016, %v15892_v30   ;;  %v15929_v23 = vld [vmem:[%s20012_s4 + $0x10] sm:$0xff]  ;;  %20301 = vst [vmem:[#allocation23_spill] sm:$0xff] %v15931_v2  ;;  %v15935_v21 = vpack.c.bf16 %v2671_v12, %v2670_v6  ;;  %v20307_v12 = vld [vmem:[#allocation31_spill] sm:$0xff]  ;;  %20309 = vst [vmem:[#allocation25_spill] sm:$0xff] %v15957_v62 }
 0x121   : > { %8821 = vperm.xlu0 %14015, %v15899_v63   ;;  %13966 = vmatprep.subr.msk.bf16.mxu0 %vm907_vm1, %v15904_v17  ;;  %v20303_v44 = vld [vmem:[#allocation28_spill] sm:$0xff]  ;;  %v20308_v6 = vpack.c.bf16 %v20306_v50, %v20307_v12  ;;  %v2674_v50 = vld [vmem:[#allocation2 + $0xe8] sm:$0xff] }
 0x122   : > { %13967 = vmatprep.subr.msk.bf16.mxu1 %vm907_vm1, %v15913_v45  ;;  %20302 = vst [vmem:[#allocation24_spill] sm:$0xff] %v15935_v21  ;;  %v20305_v26 = vpack.c.bf16 %v20303_v44, %v20304_v35  ;;  %v2673_v35 = vld [vmem:[#allocation2 + $0xe0] sm:$0xff]  ;;  %v2301_v44 = vmul.f32 %v15471_v40, %v15365_v0  ;;  %v2675_v12 = vld [vmem:[#allocation2 + $0xf0] sm:$0xff] }
 0x123   : > { %v15979_v40 = vpack.c.bf16 %v2675_v12, %v2674_v50  ;;  %v16013_v50 = vld [vmem:[%s20012_s4 + $0x38] sm:$0xff] }
 0x124   : > { %8836 = vperm.xlu1 %14016, %v15922_v51  }
 0x125   : > { %8831 = vperm.xlu0 %14015, %v15929_v23   ;;  %12986 = vmatmul.mubr.msk.bf16.gmra.mxu0 %vm467_vm0, %v20305_v26  ;;  %v2672_v26 = vld [vmem:[#allocation2 + $0xd8] sm:$0xff]  ;;  %20311 = vst [vmem:[#allocation27_spill] sm:$0xff] %v15979_v40 }
 0x126   : > { %13004 = vmatmul.mubr.msk.bf16.gmra.mxu1 %vm467_vm0, %v15931_v2  ;;  %12989 = vmatprep.mubr.msk.bf16.mxu0 %vm467_vm0, %v20308_v6  ;;  %v2300_v2 = vmul.f32 %v15473_v60, %v15367_v53  ;;  %v15970_v6 = vld [vmem:[%s20011_s3 + $0x38] sm:$0xff]  ;;  %v15977_v0 = vpack.c.bf16 %v2673_v35, %v2672_v26  ;;  %v20312_v60 = vld [vmem:[#allocation32_spill] sm:$0xff]  ;;  %v2677_v35 = vld [vmem:[#allocation2 + $0x100] sm:$0xff] }
 0x127   : > { %13007 = vmatprep.mubr.msk.bf16.mxu1 %vm467_vm0, %v15935_v21  ;;  %v15975_v21 = vld [vmem:[%s20011_s3 + $0x30] sm:$0xff]  ;;  %v2676_v26 = vld [vmem:[#allocation2 + $0xf8] sm:$0xff] }
 0x128   : > { %8555 = vperm.xlu1 %14016, %v15946_v52   ;;  %20310 = vst [vmem:[#allocation26_spill] sm:$0xff] %v15977_v0  ;;  %v2310_v53 = vpack.c.bf16 %v2301_v44, %v2300_v2  ;;  %v15998_v2 = vld [vmem:[%s20012_s4 + $0x20] sm:$0xff]  ;;  %v16006_v44 = vpop.f32.mrf.mxu0 }
 0x129   : > { %8550 = vperm.xlu0 %14015, %v15957_v62   ;;  %v20313_v62 = vld [vmem:[#allocation33_spill] sm:$0xff]  ;;  %20315 = vst [vmem:[#allocation28_spill] sm:$0xff] %v16006_v44 }
 0x12a   : > { %v20314_v54 = vpack.c.bf16 %v20312_v60, %v20313_v62  ;;  %v2303_v62 = vmul.f32 %v15475_v13, %v15388_v15  ;;  %v16018_v15 = vld [vmem:[%s20012_s4 + $0x30] sm:$0xff]  ;;  %v20318_v60 = vpack.c.bf16 %v15424_v14, %v15432_v20  ;;  %v3034_v14 = vmul.f32 %v15522_v36, %v15475_v13 }
 0x12c   : > { %8565 = vperm.xlu1 %14016, %v15970_v6  }
 0x12d   : > { %8560 = vperm.xlu0 %14015, %v15975_v21   ;;  %12990 = vmatmul.mubr.msk.bf16.gmra.mxu0 %vm467_vm0, %v20314_v54  ;;  %v2302_v54 = vmul.f32 %v15477_v4, %v15390_v10  ;;  %v16020_v10 = vpack.c.bf16 %v2677_v35, %v2676_v26  ;;  %v2640_v26 = vmul.f32 %v15451_v24, %v15406_v59 }
 0x12e   : > { %13008 = vmatmul.mubr.msk.bf16.gmra.mxu1 %vm467_vm0, %v15977_v0  ;;  %12993 = vmatprep.mubr.msk.bf16.mxu0 %vm467_vm0, %v2310_v53  ;;  %v16022_v53 = vpop.f32.mrf.mxu0  ;;  %v3033_v59 = vmul.f32 %v15524_v7, %v15477_v4  ;;  %v3262_v4 = vsel %vm907_vm1, %v15904_v17, 0  ;;  %v16082_v17 = vld [vmem:[#allocation2 + $0xc7] sm:$0xff] }
 0x12f   : > { %13011 = vmatprep.mubr.msk.bf16.mxu1 %vm467_vm0, %v15979_v40  ;;  %20316 = vst [vmem:[#allocation29_spill] sm:$0xff] %v16020_v10  ;;  %v2311_v12 = vpack.c.bf16 %v2303_v62, %v2302_v54  ;;  %20317 = vst [vmem:[#allocation30_spill] sm:$0xff] %v16022_v53  ;;  %v2639_v62 = vmul.f32 %v15453_v25, %v15413_v3  ;;  %v20319_v54 = vpack.c.bf16 %v15485_v48, %v15494_v33  ;;  %v16045_v53 = vld [vmem:[#allocation2 + $0xa7] sm:$0xff] }
 0x130   : > { %8846 = vperm.xlu1 %14016, %v15990_v61   ;;  %v16041_v35 = vpop.f32.mrf.mxu0  ;;  %v2641_v20 = vmul.f32 %v16045_v53, %v15569_v37  ;;  %v20321_v48 = vld [vmem:[#allocation38_spill] sm:$0xff] }
 0x131   : > { %8841 = vperm.xlu0 %14015, %v15998_v2   ;;  %20320 = vst [vmem:[#allocation31_spill] sm:$0xff] %v16041_v35  ;;  %v3036_v33 = vmul.f32 %v20321_v48, %v15607_v39  ;;  %v2654_v13 = vpack.c.bf16 %v2640_v26, %v2639_v62  ;;  %v3038_v62 = vmul.f32 %v15496_v29, %v15635_v9 }
 0x132   : > { %v16063_v35 = vpop.f32.mrf.mxu0  ;;  %v2645_v29 = vmul.f32 %v16082_v17, %v15665_v43 }
 0x134   : > { %8856 = vperm.xlu1 %14016, %v16013_v50  }
 0x135   : > { %8851 = vperm.xlu0 %14015, %v16018_v15   ;;  %12994 = vmatmul.mubr.msk.bf16.gmra.mxu0 %vm467_vm0, %v2311_v12  ;;  %v16043_v12 = vld [vmem:[#allocation2 + $0xaf] sm:$0xff] }
 0x136   : > { %13012 = vmatmul.mubr.msk.bf16.gmra.mxu1 %vm467_vm0, %v16020_v10  ;;  %13017 = vmatprep.mubr.msk.bf16.mxu0 %vm467_vm0, %v20318_v60  ;;  %v2642_v3 = vmul.f32 %v16043_v12, %v15567_v18  ;;  %v20322_v60 = vld [vmem:[#allocation39_spill] sm:$0xff] }
 0x137   : > { %13035 = vmatprep.mubr.msk.bf16.mxu1 %vm467_vm0, %v20319_v54  ;;  %v3035_v54 = vmul.f32 %v20322_v60, %v15609_v46  ;;  %v3427_v60 = vsel %vm907_vm1, %v15913_v45, 0  ;;  %v16070_v46 = vld [vmem:[#allocation2 + $0xbf] sm:$0xff] }
 0x138   : > { %9863 = vperm.xlu1 %14016, %v15850_v56   ;;  %v3048_v56 = vpack.c.bf16 %v3034_v14, %v3033_v59  ;;  %v2655_v44 = vpack.c.bf16 %v2642_v3, %v2641_v20  ;;  %v2644_v26 = vmul.f32 %v16070_v46, %v15583_v38  ;;  %v16092_v14 = vpop.f32.mrf.mxu0  ;;  %v16097_v59 = vld [vmem:[%s20014_s6 + $0x18] sm:$0xf]  ;;  %v3037_v3 = vmul.f32 %v15498_v49, %v15637_v42 }
 0x139   : > { %9858 = vperm.xlu0 %14015, %v15861_v58   ;;  %v3049_v48 = vpack.c.bf16 %v3036_v33, %v3035_v54  ;;  %v16072_v58 = vld [vmem:[#allocation2 + $0xb7] sm:$0xff]  ;;  %20323 = vst [vmem:[#allocation32_spill] sm:$0xff] %v16092_v14  ;;  %v3039_v33 = vmul.f32 %v15596_v27, %v15697_v19  ;;  %v16156_v14 = vld [vmem:[#allocation2 + $0xff] sm:$0xff] }
 0x13a   : > { %v2643_v45 = vmul.f32 %v16072_v58, %v15585_v11  ;;  %v16115_v54 = vpop.f32.mrf.mxu0 }
 0x13b   : > { %20324 = vst [vmem:[#allocation33_spill] sm:$0xff] %v16115_v54 }
 0x13c   : > { %9873 = vperm.xlu1 %14016, %v15870_v47   ;;  %v16078_v47 = vld [vmem:[%s20014_s6 + $0x14] sm:$0xf]  ;;  %v2656_v49 = vpack.c.bf16 %v2644_v26, %v2643_v45  ;;  %v16135_v26 = vpop.f32.mrf.mxu0  ;;  %v3042_v45 = vmul.f32 %v15611_v8, %v15731_v57 }
 0x13d   : > { %9868 = vperm.xlu0 %14015, %v15875_v32   ;;  %13018 = vmatmul.mubr.msk.bf16.vlgmr.msra.gmra.mxu0 %vm467_vm0, %v2654_v13  ;;  %v16080_v32 = vld [vmem:[#allocation2 + $0xcf] sm:$0xff]  ;;  %20325 = vst [vmem:[#allocation38_spill] sm:$0xff] %v16135_v26 }
 0x13e   : > { %13036 = vmatmul.mubr.msk.bf16.vlgmr.msra.gmra.mxu1 %vm467_vm0, %v3048_v56  ;;  %13052 = vmatpush3.bf16.msra.mxu0 %v3262_v4  ;;  %v2646_v20 = vmul.f32 %v16080_v32, %v15663_v34  ;;  %v16120_v56 = vld [vmem:[#allocation2 + $0xdf] sm:$0xff]  ;;  %v16151_v57 = vpop.f32.mrf.mxu0 }
 0x13f   : > { %13021 = vmatprep.mubr.msk.bf16.mxu0 %vm467_vm0, %v2655_v44  ;;  %13039 = vmatprep.mubr.msk.bf16.mxu1 %vm467_vm0, %v3049_v48  ;;  %v3040_v44 = vmul.f32 %v15587_v5, %v15695_v31  ;;  %v16126_v48 = vld [vmem:[#allocation2 + $0xef] sm:$0xff]  ;;  %20331 = vst [vmem:[#allocation39_spill] sm:$0xff] %v16151_v57 }
 0x140   : > { %13070 = vmatpush3.bf16.msra.mxu1 %v3427_v60  ;;  %10194 = vperm.xlu1 %14016, %v15892_v30   ;;  %v3050_v30 = vpack.c.bf16 %v3038_v62, %v3037_v3  ;;  %v2657_v13 = vpack.c.bf16 %v2646_v20, %v2645_v29  ;;  %v16128_v60 = vld [vmem:[#allocation2 + $0xe7] sm:$0xff]  ;;  %v3041_v62 = vmul.f32 %v15620_v55, %v15733_v28  ;;  %v20326_v29 = vld [vmem:[#allocation16_spill] sm:$0xff] }
 0x141   : > { %10189 = vperm.xlu0 %14015, %v15899_v63   ;;  %13968 = vmatprep.subr.msk.bf16.mxu0 %vm907_vm1, %v16078_v47  ;;  %v3051_v4 = vpack.c.bf16 %v3040_v44, %v3039_v33  ;;  %v16122_v63 = vld [vmem:[#allocation2 + $0xd7] sm:$0xff]  ;;  %v2650_v3 = vmul.f32 %v16126_v48, %v15768_v22  ;;  %v2649_v20 = vmul.f32 %v16128_v60, %v15770_v16  ;;  %v20327_v44 = vld [vmem:[#allocation51_spill] sm:$0xff] }
 0x142   : > { %13969 = vmatprep.subr.msk.bf16.mxu1 %vm907_vm1, %v16097_v59  ;;  %v3044_v33 = vmul.f32 %v20327_v44, %v20326_v29  ;;  %v3052_v28 = vpack.c.bf16 %v3042_v45, %v3041_v62  ;;  %v16158_v29 = vld [vmem:[#allocation2 + $0xf7] sm:$0xff]  ;;  %v20336_v45 = vld [vmem:[#allocation55_spill] sm:$0xff] }
 0x143   : > { %v2659_v54 = vpack.c.bf16 %v2650_v3, %v2649_v20  ;;  %v20337_v3 = vld [vmem:[#allocation20_spill] sm:$0xff] }
 0x144   : > { %10204 = vperm.xlu1 %14016, %v15922_v51   ;;  %v2648_v51 = vmul.f32 %v16120_v56, %v15680_v41  ;;  %v20338_v20 = vld [vmem:[#allocation56_spill] sm:$0xff] }
 0x145   : > { %10199 = vperm.xlu0 %14015, %v15929_v23   ;;  %13022 = vmatmul.mubr.msk.bf16.gmra.mxu0 %vm467_vm0, %v2656_v49  ;;  %v2647_v23 = vmul.f32 %v16122_v63, %v15682_v1  ;;  %v20328_v49 = vld [vmem:[#allocation19_spill] sm:$0xff] }
 0x146   : > { %13040 = vmatmul.mubr.msk.bf16.gmra.mxu1 %vm467_vm0, %v3050_v30  ;;  %13025 = vmatprep.mubr.msk.bf16.mxu0 %vm467_vm0, %v2657_v13  ;;  %v20329_v30 = vld [vmem:[#allocation52_spill] sm:$0xff] }
 0x147   : > { %13043 = vmatprep.mubr.msk.bf16.mxu1 %vm467_vm0, %v3051_v4  ;;  %v3043_v13 = vmul.f32 %v20329_v30, %v20328_v49  ;;  %v20330_v4 = vld [vmem:[#allocation25_spill] sm:$0xff]  ;;  %v2658_v26 = vpack.c.bf16 %v2648_v51, %v2647_v23  ;;  %v20332_v51 = vld [vmem:[#allocation14_spill] sm:$0xff] }
 0x148   : > { %9883 = vperm.xlu1 %14016, %v15946_v52   ;;  %v2652_v23 = vmul.f32 %v16156_v14, %v20332_v51 }
 0x149   : > { %9878 = vperm.xlu0 %14015, %v20330_v4   ;;  %v3053_v52 = vpack.c.bf16 %v3044_v33, %v3043_v13  ;;  %v20333_v4 = vld [vmem:[#allocation15_spill] sm:$0xff]  ;;  %v3045_v33 = vmul.f32 %v20338_v20, %v20337_v3  ;;  %v3222_v3 = vmul.f32 %v16128_v60, %v15682_v1 }
 0x14c   : > { %9893 = vperm.xlu1 %14016, %v15970_v6   ;;  %v2651_v6 = vmul.f32 %v16158_v29, %v20333_v4 }
 0x14d   : > { %9888 = vperm.xlu0 %14015, %v15975_v21   ;;  %13026 = vmatmul.mubr.msk.bf16.gmra.mxu0 %vm467_vm0, %v2658_v26  ;;  %v16167_v21 = vpop.f32.mrf.mxu0  ;;  %v20335_v26 = vld [vmem:[#allocation17_spill] sm:$0xff] }
 0x14e   : > { %13044 = vmatmul.mubr.msk.bf16.gmra.mxu1 %vm467_vm0, %v3052_v28  ;;  %13029 = vmatprep.mubr.msk.bf16.mxu0 %vm467_vm0, %v2659_v54  ;;  %20334 = vst [vmem:[#allocation51_spill] sm:$0xff] %v16167_v21  ;;  %v3046_v62 = vmul.f32 %v20336_v45, %v20335_v26  ;;  %v2660_v28 = vpack.c.bf16 %v2652_v23, %v2651_v6  ;;  %v20341_v26 = vld [vmem:[#allocation37_spill] sm:$0xff]  ;;  %v20343_v23 = vld [vmem:[#allocation62_spill] sm:$0xff] }
 0x14f   : > { %13047 = vmatprep.mubr.msk.bf16.mxu1 %vm467_vm0, %v3053_v52  ;;  %v16175_v54 = vpop.f32.mrf.mxu0  ;;  %v20340_v52 = vld [vmem:[#allocation36_spill] sm:$0xff]  ;;  %v3216_v6 = vmul.f32 %v16072_v58, %v15569_v37 }
 0x150   : > { %10214 = vperm.xlu1 %14016, %v15990_v61   ;;  %20339 = vst [vmem:[#allocation19_spill] sm:$0xff] %v16175_v54  ;;  %v3054_v13 = vpack.c.bf16 %v3046_v62, %v3045_v33  ;;  %v20342_v21 = vpack.c.bf16 %v20340_v52, %v20341_v26  ;;  %v3215_v61 = vmul.f32 %v16043_v12, %v15451_v24  ;;  %v3789_v33 = vsel %vm907_vm1, %v16097_v59, 0  ;;  %v20346_v52 = vld [vmem:[#allocation22_spill] sm:$0xff] }
 0x151   : > { %10209 = vperm.xlu0 %14015, %v15998_v2   ;;  %v3214_v2 = vmul.f32 %v16045_v53, %v15453_v25  ;;  %v3219_v59 = vmul.f32 %v16080_v32, %v15583_v38 }
 0x153   : > { %v3229_v26 = vpack.c.bf16 %v3215_v61, %v3214_v2  ;;  %v3218_v2 = vmul.f32 %v16082_v17, %v15585_v11 }
 0x154   : > { %10224 = vperm.xlu1 %14016, %v16013_v50   ;;  %v16191_v50 = vpop.f32.mrf.mxu0 }
 0x155   : > { %10219 = vperm.xlu0 %14015, %v16018_v15   ;;  %13030 = vmatmul.mubr.msk.bf16.gmra.mxu0 %vm467_vm0, %v2660_v28  ;;  %20344 = vst [vmem:[#allocation52_spill] sm:$0xff] %v16191_v50  ;;  %v3217_v15 = vmul.f32 %v16070_v46, %v15567_v18  ;;  %v20351_v50 = vld [vmem:[#allocation24_spill] sm:$0xff] }
 0x156   : > { %13048 = vmatmul.mubr.msk.bf16.gmra.mxu1 %vm467_vm0, %v3054_v13  ;;  %13053 = vmatprep.mubr.msk.bf16.mxu0 %vm467_vm0, %v20342_v21  ;;  %v3608_v21 = vsel %vm907_vm1, %v16078_v47, 0  ;;  %v16199_v62 = vpop.f32.mrf.mxu0  ;;  %v16207_v13 = vld [vmem:[%s20014_s6 + $0x1c] sm:$0xf]  ;;  %v16216_v47 = vld [vmem:[%s20014_s6 + $0x20] sm:$0xf] }
 0x157   : > { %13071 = vmatprep.mubr.msk.bf16.mxu1 %vm467_vm0, %v20343_v23  ;;  %20345 = vst [vmem:[#allocation25_spill] sm:$0xff] %v16199_v62  ;;  %v3230_v28 = vpack.c.bf16 %v3217_v15, %v3216_v6  ;;  %v3221_v15 = vmul.f32 %v16120_v56, %v15663_v34  ;;  %v3220_v6 = vmul.f32 %v16122_v63, %v15665_v43 }
 0x158   : > { %v16223_v23 = vpop.f32.mrf.mxu0 }
 0x159   : > { %20347 = vst [vmem:[#allocation55_spill] sm:$0xff] %v16223_v23  ;;  %v3232_v62 = vpack.c.bf16 %v3221_v15, %v3220_v6  ;;  %v3224_v15 = vmul.f32 %v16158_v29, %v15770_v16  ;;  %v20360_v16 = vld [vmem:[#allocation42_spill] sm:$0xff] }
 0x15d   : > { %13054 = vmatmul.mubr.msk.bf16.vlgmr.msra.gmra.mxu0 %vm467_vm0, %v3229_v26 }
 0x15e   : > { %13072 = vmatmul.mubr.msk.bf16.vlgmr.msra.gmra.mxu1 %vm467_vm0, %v20346_v52  ;;  %13088 = vmatpush3.bf16.msra.mxu0 %v3608_v21  ;;  %v16211_v61 = vpop.f32.mrf.mxu1  ;;  %v20348_v21 = vld [vmem:[#allocation23_spill] sm:$0xff]  ;;  %v16239_v52 = vpop.f32.mrf.mxu0 }
 0x15f   : > { %13057 = vmatprep.mubr.msk.bf16.mxu0 %vm467_vm0, %v3230_v28  ;;  %13106 = vmatpush3.bf16.msra.mxu1 %v3789_v33  ;;  %v3231_v28 = vpack.c.bf16 %v3219_v59, %v3218_v2  ;;  %20349 = vst [vmem:[#allocation56_spill] sm:$0xff] %v16239_v52  ;;  %v3225_v2 = vmul.f32 %v16156_v14, %v15768_v22  ;;  %v16264_v52 = vld [vmem:[#allocation2 + $0x10f] sm:$0xff] }
 0x160   : > { %v16229_v26 = vpop.f32.mrf.mxu1  ;;  %13075 = vmatprep.mubr.msk.bf16.mxu1 %vm467_vm0, %v20348_v21  ;;  %13970 = vmatprep.subr.msk.bf16.mxu0 %vm907_vm1, %v16207_v13  ;;  %v3223_v21 = vmul.f32 %v16126_v48, %v15680_v41  ;;  %v16253_v59 = vpop.f32.mrf.mxu0 }
 0x161   : > { %13971 = vmatprep.subr.msk.bf16.mxu1 %vm907_vm1, %v16216_v47  ;;  %20353 = vst [vmem:[#allocation62_spill] sm:$0xff] %v16253_v59 }
 0x162   : > { %v16237_v33 = vpop.f32.mrf.mxu1  ;;  %v996_v6 = vpop.f32.mrf.mxu0 }
 0x164   : > { %v16241_v23 = vpop.f32.mrf.mxu1 }
 0x165   : > { %20350 = vst [vmem:[#allocation36_spill] sm:$0xff] %v16241_v23  ;;  %13058 = vmatmul.mubr.msk.bf16.gmra.mxu0 %vm467_vm0, %v3231_v28  ;;  %v3233_v28 = vpack.c.bf16 %v3223_v21, %v3222_v3  ;;  %v3391_v21 = vld [vmem:[#allocation2 + $0x108] sm:$0xff] }
 0x166   : > { %13076 = vmatmul.mubr.msk.bf16.gmra.mxu1 %vm467_vm0, %v20351_v50  ;;  %13061 = vmatprep.mubr.msk.bf16.mxu0 %vm467_vm0, %v3232_v62  ;;  %v16251_v54 = vpop.f32.mrf.mxu1  ;;  %v3234_v50 = vpack.c.bf16 %v3225_v2, %v3224_v15  ;;  %v3392_v2 = vld [vmem:[#allocation2 + $0x110] sm:$0xff]  ;;  %v20357_v15 = vld [vmem:[#allocation34_spill] sm:$0xff] }
 0x167   : > { %20352 = vst [vmem:[#allocation37_spill] sm:$0xff] %v16251_v54  ;;  %13079 = vmatprep.mubr.msk.bf16.mxu1 %vm467_vm0, %v15977_v0  ;;  %v16266_v54 = vld [vmem:[#allocation2 + $0x107] sm:$0xff]  ;;  %v3227_v0 = vmul.f32 %v16264_v52, %v20332_v51  ;;  %v16283_v23 = vpack.c.bf16 %v3392_v2, %v3391_v21 }
 0x168   : > { %v16261_v62 = vpop.f32.mrf.mxu1  ;;  %20355 = vst [vmem:[#allocation64_spill] sm:$0xff] %v16266_v54  ;;  %v3226_v59 = vmul.f32 %v16266_v54, %v20333_v4 }
 0x169   : > { %20354 = vst [vmem:[#allocation63_spill] sm:$0xff] %v16261_v62 }
 0x16a   : > { %v16275_v62 = vpop.f32.mrf.mxu1  ;;  %v3235_v51 = vpack.c.bf16 %v3227_v0, %v3226_v59  ;;  %v14214_v0 = vld [vmem:[#allocation2 + $0xa9] sm:$0xff] }
 0x16b   : > { %20356 = vst [vmem:[#allocation65_spill] sm:$0xff] %v16275_v62  ;;  %v3560_v59 = vmul.f32 %v14214_v0, %v15524_v7 }
 0x16c   : > { %v12857_v3 = vpop.f32.mrf.mxu0  ;;  %v16285_v57 = vpop.f32.mrf.mxu1 }
 0x16d   : > { %13062 = vmatmul.mubr.msk.bf16.gmra.mxu0 %vm467_vm0, %v3233_v28  ;;  %v3740_v28 = vmul.f32 %v16043_v12, %v20357_v15  ;;  %v3741_v15 = vmul.f32 %v16072_v58, %v15453_v25  ;;  %v3954_v25 = vsel %vm907_vm1, %v16207_v13, 0  ;;  %v20363_v58 = vld [vmem:[#allocation28_spill] sm:$0xff] }
 0x16e   : > { %13080 = vmatmul.mubr.msk.bf16.gmra.mxu1 %vm467_vm0, %v15979_v40  ;;  %13065 = vmatprep.mubr.msk.bf16.mxu0 %vm467_vm0, %v3234_v50  ;;  %v20358_v40 = vld [vmem:[#allocation35_spill] sm:$0xff]  ;;  %v1069_v4 = vpop.f32.mrf.mxu0 }
 0x16f   : > { %13083 = vmatprep.mubr.msk.bf16.mxu1 %vm467_vm0, %v16020_v10  ;;  %v3739_v50 = vmul.f32 %v16045_v53, %v20358_v40  ;;  %v20359_v10 = vld [vmem:[#allocation40_spill] sm:$0xff] }
 0x170   : > { %v20361_v12 = vpack.c.bf16 %v20359_v10, %v20360_v16  ;;  %v14213_v40 = vld [vmem:[#allocation2 + $0xb1] sm:$0xff]  ;;  %v12858_v21 = vpop.f32.mrf.mxu0  ;;  %v3744_v16 = vmul.f32 %v16080_v32, %v15567_v18  ;;  %v14215_v10 = vld [vmem:[#allocation2 + $0xc1] sm:$0xff]  ;;  %v1078_v18 = vadd.f32 %v12857_v3, %v20363_v58 }
 0x171   : > { %v3755_v62 = vpack.c.bf16 %v3740_v28, %v3739_v50  ;;  %v3561_v53 = vmul.f32 %v14213_v40, %v15522_v36  ;;  %v3743_v36 = vmul.f32 %v16082_v17, %v15569_v37  ;;  %v3563_v7 = vmul.f32 %v14215_v10, %v15607_v39  ;;  %v14216_v28 = vld [vmem:[#allocation2 + $0xb9] sm:$0xff] }
 0x172   : > { %v20362_v50 = vld [vmem:[#allocation46_spill] sm:$0xff]  ;;  %v1072_v0 = vpop.f32.mrf.mxu0  ;;  %v16321_v39 = vld [vmem:[%s20016_s8 + $0x38] sm:$0xff]   ;;  %v3746_v17 = vmul.f32 %v16120_v56, %v15583_v38 }
 0x173   : > { %v3575_v40 = vpack.c.bf16 %v3561_v53, %v3560_v59  ;;  %v3757_v37 = vpack.c.bf16 %v3744_v16, %v3743_v36  ;;  %v3745_v53 = vmul.f32 %v16122_v63, %v15585_v11  ;;  %v16333_v3 = vld [vmem:[%s20016_s8 + $0x18] sm:$0xff]   ;;  %v3564_v11 = vmul.f32 %v15596_v27, %v15637_v42 }
 0x174   : > { %v3567_v63 = vmul.f32 %v15611_v8, %v15695_v31  ;;  %v3748_v42 = vmul.f32 %v16126_v48, %v15663_v34  ;;  %v3747_v27 = vmul.f32 %v16128_v60, %v15665_v43  ;;  %v3750_v60 = vmul.f32 %v16156_v14, %v15680_v41  ;;  %v20369_v14 = vld [vmem:[#allocation58_spill] sm:$0xff] }
 0x175   : > { %v16287_v54 = vpop.f32.mrf.mxu1  ;;  %13066 = vmatmul.mubr.msk.bf16.gmra.mxu0 %vm467_vm0, %v3235_v51  ;;  %v3742_v51 = vmul.f32 %v16070_v46, %v15451_v24 }
 0x176   : > { %13084 = vmatmul.mubr.msk.bf16.gmra.mxu1 %vm467_vm0, %v16283_v23  ;;  %13089 = vmatprep.mubr.msk.bf16.mxu0 %vm467_vm0, %v20361_v12 }
 0x177   : > { %13107 = vmatprep.mubr.msk.bf16.mxu1 %vm467_vm0, %v3755_v62  ;;  %v16299_v2 = vpop.f32.mrf.mxu1  ;;  %v3562_v62 = vmul.f32 %v14216_v28, %v20362_v50  ;;  %v3756_v46 = vpack.c.bf16 %v3742_v51, %v3741_v15  ;;  %v3565_v51 = vmul.f32 %v15587_v5, %v15635_v9  ;;  %v20364_v15 = vld [vmem:[#allocation30_spill] sm:$0xff]  ;;  %v20365_v9 = vld [vmem:[#allocation31_spill] sm:$0xff]  ;;  %v3758_v28 = vpack.c.bf16 %v3746_v17, %v3745_v53  ;;  %v20368_v53 = vld [vmem:[#allocation57_spill] sm:$0xff] }
 0x178   : > { %v1070_v38 = vadd.f32 %v1069_v4, %v20364_v15  ;;  %v1081_v4 = vadd.f32 %v12858_v21, %v20365_v9  ;;  %v3569_v41 = vmul.f32 %v20327_v44, %v20368_v53  ;;  %v20371_v15 = vld [vmem:[#allocation38_spill] sm:$0xff]  ;;  %v3752_v44 = vmul.f32 %v16264_v52, %v15768_v22 }
 0x179   : > { %v16311_v12 = vpop.f32.mrf.mxu1  ;;  %v3576_v13 = vpack.c.bf16 %v3563_v7, %v3562_v62  ;;  %v3577_v50 = vpack.c.bf16 %v3565_v51, %v3564_v11  ;;  %v3570_v51 = vmul.f32 %v20338_v20, %v20328_v49 }
 0x17b   : > { %v1120_v24 = vpop.f32.mrf.mxu1 }
 0x17c   : > { %v16316_v32 = vadd.f32 %v1120_v24, %v996_v6  ;;  %v4135_v6 = vsel %vm907_vm1, %v16216_v47, 0  ;;  %v3566_v47 = vmul.f32 %v15620_v55, %v15697_v19  ;;  %v1073_v55 = vadd.f32 %v1072_v0, %v16063_v35  ;;  %v20367_v0 = vld [vmem:[#allocation33_spill] sm:$0xff] }
 0x17d   : > { %v12875_v59 = vpop.f32.mrf.mxu0  ;;  %13090 = vmatmul.mubr.msk.bf16.vlgmr.msra.gmra.mxu0 %vm467_vm0, %v3575_v40  ;;  %v20366_v40 = vld [vmem:[#allocation32_spill] sm:$0xff]  ;;  %v3759_v35 = vpack.c.bf16 %v3748_v42, %v3747_v27  ;;  %v1086_v58 = vadd.f32 %v16229_v26, %v20367_v0  ;;  %v3738_v42 = vld [vmem:[#allocation2 + $0x11f] sm:$0xff]  ;;  %v20376_v27 = vld [vmem:[#allocation51_spill] sm:$0xff] }
 0x17e   : > { %v1380_v56 = vadd.f32 %v12875_v59, %v1078_v18  ;;  %v12893_v16 = vpop.f32.mrf.mxu1  ;;  %13108 = vmatmul.mubr.msk.bf16.vlgmr.msra.gmra.mxu1 %vm467_vm0, %v3756_v46  ;;  %13124 = vmatpush3.bf16.msra.mxu0 %v3954_v25  ;;  %v1094_v24 = vadd.f32 %v16211_v61, %v20366_v40  ;;  %v3578_v43 = vpack.c.bf16 %v3567_v63, %v3566_v47  ;;  %v20374_v63 = vld [vmem:[#allocation39_spill] sm:$0xff]  ;;  %v20375_v47 = vld [vmem:[#allocation36_spill] sm:$0xff]  ;;  %v20380_v0 = vld [vmem:[#allocation14_spill] sm:$0xff] }
 0x17f   : > { %13093 = vmatprep.mubr.msk.bf16.mxu0 %vm467_vm0, %v3576_v13  ;;  %13111 = vmatprep.mubr.msk.bf16.mxu1 %vm467_vm0, %v3757_v37  ;;  %v1315_v5 = vpop.f32.mrf.mxu0  ;;  %v3749_v61 = vmul.f32 %v16158_v29, %v15682_v1  ;;  %v3568_v59 = vmul.f32 %v20329_v30, %v20369_v14  ;;  %v20370_v13 = vld [vmem:[#allocation16_spill] sm:$0xff]  ;;  %v20372_v30 = vld [vmem:[#allocation61_spill] sm:$0xff]  ;;  %v20383_v14 = vld [vmem:[#allocation15_spill] sm:$0xff] }
 0x180   : > { %v16348_v36 = vadd.f32 %v12893_v16, %v1380_v56  ;;  %v1378_v10 = vadd.f32 %v1315_v5, %v1070_v38  ;;  %v1497_v7 = vpop.f32.mrf.mxu1  ;;  %13142 = vmatpush3.bf16.msra.mxu1 %v4135_v6  ;;  %13159 = vmatprep.subr.bf16.mxu0 %v16321_v39  ;;  %v3571_v26 = vmul.f32 %v20336_v45, %v20370_v13  ;;  %v20373_v16 = vld [vmem:[#allocation64_spill] sm:$0xff] }
 0x181   : > { %v12876_v8 = vpop.f32.mrf.mxu0  ;;  %13183 = vmatprep.subr.bf16.mxu1 %v16333_v3  ;;  %v1097_v38 = vadd.f32 %v16237_v33, %v20371_v15  ;;  %v3751_v11 = vmul.f32 %v20373_v16, %v20372_v30  ;;  %v1089_v5 = vadd.f32 %v20375_v47, %v20374_v63  ;;  %v3579_v33 = vpack.c.bf16 %v3569_v41, %v3568_v59  ;;  %v16400_v40 = vld [vmem:[#allocation2 + $0x111] sm:$0xff] }
 0x182   : > { %v16357_v31 = vadd.f32 %v1497_v7, %v1378_v10  ;;  %v1381_v19 = vadd.f32 %v12876_v8, %v1081_v4  ;;  %v12894_v21 = vpop.f32.mrf.mxu1  ;;  %v3760_v10 = vpack.c.bf16 %v3750_v60, %v3749_v61  ;;  %v20377_v8 = vld [vmem:[#allocation37_spill] sm:$0xff]  ;;  %v20382_v61 = vld [vmem:[#allocation20_spill] sm:$0xff] }
 0x183   : > { %v1318_v62 = vpop.f32.mrf.mxu0 }
 0x184   : > { %v16361_v25 = vadd.f32 %v12894_v21, %v1381_v19  ;;  %v1379_v34 = vadd.f32 %v1318_v62, %v1073_v55  ;;  %v1500_v48 = vpop.f32.mrf.mxu1  ;;  %v1110_v55 = vadd.f32 %v20377_v8, %v20376_v27  ;;  %v3580_v21 = vpack.c.bf16 %v3571_v26, %v3570_v51  ;;  %v20384_v26 = vld [vmem:[#allocation52_spill] sm:$0xff] }
 0x185   : > { %v12879_v46 = vpop.f32.mrf.mxu0  ;;  %13094 = vmatmul.mubr.msk.bf16.gmra.mxu0 %vm467_vm0, %v3577_v50  ;;  %v3761_v62 = vpack.c.bf16 %v3752_v44, %v3751_v11  ;;  %v20386_v44 = vld [vmem:[#allocation25_spill] sm:$0xff]  ;;  %v20388_v27 = vld [vmem:[#allocation56_spill] sm:$0xff] }
 0x186   : > { %v16368_v18 = vadd.f32 %v1500_v48, %v1379_v34  ;;  %v1384_v37 = vadd.f32 %v12879_v46, %v1094_v24  ;;  %v12897_v17 = vpop.f32.mrf.mxu1  ;;  %13112 = vmatmul.mubr.msk.bf16.gmra.mxu1 %vm467_vm0, %v3758_v28  ;;  %13097 = vmatprep.mubr.msk.bf16.mxu0 %vm467_vm0, %v3578_v43  ;;  %v3737_v28 = vld [vmem:[#allocation2 + $0x117] sm:$0xff]  ;;  %v16402_v24 = vld [vmem:[#allocation2 + $0x109] sm:$0xff]  ;;  %v1105_v30 = vadd.f32 %v16285_v57, %v20386_v44 }
 0x187   : > { %13115 = vmatprep.mubr.msk.bf16.mxu1 %vm467_vm0, %v3759_v35  ;;  %v1331_v6 = vpop.f32.mrf.mxu0  ;;  %v20378_v34 = vld [vmem:[#allocation19_spill] sm:$0xff]  ;;  %v3572_v53 = vmul.f32 %v16402_v24, %v20382_v61  ;;  %v3753_v59 = vmul.f32 %v3737_v28, %v20383_v14  ;;  %v1118_v57 = vadd.f32 %v16299_v2, %v20388_v27  ;;  %v20403_v44 = vld [vmem:[#allocation48_spill] sm:$0xff] }
 0x188   : > { %v16385_v56 = vadd.f32 %v12897_v17, %v1384_v37  ;;  %v1382_v1 = vadd.f32 %v1331_v6, %v1086_v58  ;;  %v1513_v29 = vpop.f32.mrf.mxu1  ;;  %v20379_v48 = vld [vmem:[#allocation63_spill] sm:$0xff]  ;;  %v3754_v58 = vmul.f32 %v3738_v42, %v20380_v0  ;;  %v20381_v37 = vld [vmem:[#allocation17_spill] sm:$0xff] }
 0x189   : > { %v12880_v45 = vpop.f32.mrf.mxu0  ;;  %v1102_v43 = vadd.f32 %v20379_v48, %v20378_v34  ;;  %v3573_v17 = vmul.f32 %v16400_v40, %v20381_v37  ;;  %v20385_v6 = vld [vmem:[#allocation65_spill] sm:$0xff]  ;;  %v20396_v14 = vld [vmem:[#allocation23_spill] sm:$0xff] }
 0x18a   : > { %v16393_v9 = vadd.f32 %v1513_v29, %v1382_v1  ;;  %v1385_v20 = vadd.f32 %v12880_v45, %v1097_v38  ;;  %v12898_v4 = vpop.f32.mrf.mxu1  ;;  %v1113_v51 = vadd.f32 %v20385_v6, %v20384_v26 }
 0x18b   : > { %v1334_v7 = vpop.f32.mrf.mxu0  ;;  %v3581_v63 = vpack.c.bf16 %v3573_v17, %v3572_v53 }
 0x18c   : > { %v16397_v19 = vadd.f32 %v12898_v4, %v1385_v20  ;;  %v1383_v22 = vadd.f32 %v1334_v7, %v1089_v5  ;;  %v1516_v52 = vpop.f32.mrf.mxu1  ;;  %v3762_v5 = vpack.c.bf16 %v3754_v58, %v3753_v59  ;;  %v20387_v20 = vld [vmem:[#allocation55_spill] sm:$0xff]  ;;  %v14020_v59 = vld [vmem:[%s20016_s8 + $0x10] sm:$0xff]  }
 0x18d   : > { %v12883_v50 = vpop.f32.mrf.mxu0  ;;  %13098 = vmatmul.mubr.msk.bf16.gmra.mxu0 %vm467_vm0, %v3579_v33  ;;  %v1126_v4 = vadd.f32 %v16287_v54, %v20387_v20  ;;  %v20390_v54 = vld [vmem:[#allocation41_spill] sm:$0xff] }
 0x18e   : > { %v16406_v60 = vadd.f32 %v1516_v52, %v1383_v22  ;;  %v1388_v46 = vadd.f32 %v12883_v50, %v1110_v55  ;;  %v12901_v35 = vpop.f32.mrf.mxu1  ;;  %13116 = vmatmul.mubr.msk.bf16.gmra.mxu1 %vm467_vm0, %v3760_v10  ;;  %13101 = vmatprep.mubr.msk.bf16.mxu0 %vm467_vm0, %v3580_v21  ;;  %v20389_v52 = vld [vmem:[#allocation22_spill] sm:$0xff]  ;;  %v20391_v21 = vld [vmem:[#allocation43_spill] sm:$0xff] }
 0x18f   : > { %13119 = vmatprep.mubr.msk.bf16.mxu1 %vm467_vm0, %v3761_v62  ;;  %v1347_v41 = vpop.f32.mrf.mxu0  ;;  %v20392_v28 = vpack.c.bf16 %v20390_v54, %v20391_v21  ;;  %v20393_v62 = vld [vmem:[#allocation62_spill] sm:$0xff]  ;;  %v20410_v54 = vld [vmem:[#allocation53_spill] sm:$0xff] }
 0x190   : > { %v16419_v15 = vadd.f32 %v12901_v35, %v1388_v46  ;;  %v1386_v38 = vadd.f32 %v1347_v41, %v1102_v43  ;;  %v1529_v1 = vpop.f32.mrf.mxu1  ;;  %v1129_v34 = vadd.f32 %v16311_v12, %v20393_v62  ;;  %v14019_v41 = vld [vmem:[%s20016_s8 + $0x30] sm:$0xff]   ;;  %v20411_v21 = vld [vmem:[#allocation54_spill] sm:$0xff] }
 0x191   : > { %v12884_v29 = vpop.f32.mrf.mxu0 }
 0x192   : > { %v16423_v16 = vadd.f32 %v1529_v1, %v1386_v38  ;;  %v1389_v11 = vadd.f32 %v12884_v29, %v1113_v51  ;;  %v12902_v45 = vpop.f32.mrf.mxu1  ;;  %v20398_v51 = vld [vmem:[#allocation44_spill] sm:$0xff]  ;;  %v20402_v29 = vld [vmem:[#allocation47_spill] sm:$0xff] }
 0x193   : > { %v1350_v47 = vpop.f32.mrf.mxu0  ;;  %v20401_v1 = vld [vmem:[#allocation24_spill] sm:$0xff] }
 0x194   : > { %v16427_v10 = vadd.f32 %v12902_v45, %v1389_v11  ;;  %v1387_v33 = vadd.f32 %v1350_v47, %v1105_v30  ;;  %v1532_v7 = vpop.f32.mrf.mxu1  ;;  %v20404_v30 = vpack.c.bf16 %v20402_v29, %v20403_v44  ;;  %v3919_v29 = vld [vmem:[#allocation2 + $0x120] sm:$0xff] }
 0x195   : > { %v12887_v42 = vpop.f32.mrf.mxu0  ;;  %13102 = vmatmul.mubr.msk.bf16.gmra.mxu0 %vm467_vm0, %v3581_v63  ;;  %v14021_v63 = vld [vmem:[%s20016_s8 + $0x28] sm:$0xff]  }
 0x196   : > { %v16432_v8 = vadd.f32 %v1532_v7, %v1387_v33  ;;  %v1392_v55 = vadd.f32 %v12887_v42, %v1126_v4  ;;  %v12905_v22 = vpop.f32.mrf.mxu1  ;;  %13120 = vmatmul.mubr.msk.bf16.gmra.mxu1 %vm467_vm0, %v3762_v5  ;;  %13125 = vmatprep.mubr.msk.bf16.mxu0 %vm467_vm0, %v20389_v52  ;;  %v14022_v5 = vld [vmem:[%s20016_s8 + $0x8] sm:$0xff]   ;;  %v20405_v7 = vld [vmem:[#allocation26_spill] sm:$0xff] }
 0x197   : > { %13143 = vmatprep.mubr.msk.bf16.mxu1 %vm467_vm0, %v20392_v28  ;;  %v1363_v50 = vpop.f32.mrf.mxu0  ;;  %v14024_v42 = vld [vmem:[%s20016_s8] sm:$0xff]   ;;  %v20409_v52 = vld [vmem:[#allocation27_spill] sm:$0xff]  ;;  %v20412_v28 = vpack.c.bf16 %v20410_v54, %v20411_v21 }
 0x198   : > { %v16443_v48 = vadd.f32 %v12905_v22, %v1392_v55  ;;  %v1390_v2 = vadd.f32 %v1363_v50, %v1118_v57  ;;  %v1545_v43 = vpop.f32.mrf.mxu1  ;;  %v20406_v57 = vld [vmem:[#allocation49_spill] sm:$0xff]  ;;  %v20407_v55 = vld [vmem:[#allocation50_spill] sm:$0xff] }
 0x199   : > { %v12888_v46 = vpop.f32.mrf.mxu0  ;;  %v20408_v22 = vpack.c.bf16 %v20406_v57, %v20407_v55 }
 0x19a   : > { %v16445_v35 = vadd.f32 %v1545_v43, %v1390_v2  ;;  %v1393_v0 = vadd.f32 %v12888_v46, %v1129_v34  ;;  %v12906_v58 = vpop.f32.mrf.mxu1  ;;  %v16523_v34 = vld [vmem:[%s20016_s8 + $0x58] sm:$0xff]   ;;  %v4098_v2 = vmul.f32 %v16400_v40, %v20370_v13  ;;  %v4097_v43 = vmul.f32 %v16402_v24, %v20328_v49  ;;  %v16543_v13 = vpop.permute.xlu1 %4360 }
 0x19b   : > { %v1366_v37 = vpop.f32.mrf.mxu0  ;;  %20413 = vst [vmem:[#allocation42_spill] sm:$0xff] %v16523_v34  ;;  %20415 = vst [vmem:[#allocation28_spill] sm:$0xff] %v16543_v13  ;;  %v4338_v49 = vld [vmem:[#allocation3 + $0xf] sm:$0xff] }
 0x19c   : > { %20394 = vst [vmem:[#allocation34_spill] sm:$0xff] %v16445_v35  ;;  %v16447_v17 = vadd.f32 %v12906_v58, %v1393_v0  ;;  %v1391_v61 = vadd.f32 %v1366_v37, %v16316_v32  ;;  %v1548_v53 = vpop.f32.mrf.mxu1  ;;  %v20399_v32 = vld [vmem:[#allocation45_spill] sm:$0xff] }
 0x19d   : > { %v16453_v12 = vpop.f32.mrf.mxu0  ;;  %13126 = vmatmul.mubr.msk.bf16.vlgmr.msra.gmra.mxu0 %vm467_vm0, %v20396_v14  ;;  %v20400_v38 = vpack.c.bf16 %v20398_v51, %v20399_v32  ;;  %v16534_v0 = vld [vmem:[%s20016_s8 + $0x78] sm:$0xff]   ;;  %v20418_v51 = vld [vmem:[#allocation59_spill] sm:$0xff]  ;;  %v20419_v32 = vld [vmem:[#allocation60_spill] sm:$0xff] }
 0x19e   : > { %20395 = vst [vmem:[#allocation35_spill] sm:$0xff] %v16447_v17  ;;  %v16460_v26 = vadd.f32 %v1548_v53, %v1391_v61  ;;  %v16462_v6 = vpop.f32.mrf.mxu1  ;;  %13129 = vmatprep.mubr.msk.bf16.mxu0 %vm467_vm0, %v20401_v1  ;;  %13160 = vmatpush3.bf16.msra.mxu0 %v16321_v39  ;;  %20414 = vst [vmem:[#allocation46_spill] sm:$0xff] %v16534_v0  ;;  %v20416_v24 = vld [vmem:[#allocation29_spill] sm:$0xff]  ;;  %v4107_v53 = vpack.c.bf16 %v4098_v2, %v4097_v43  ;;  %v20422_v2 = vld [vmem:[#allocation18_spill] sm:$0xff] }
 0x19f   : > { %13144 = vmatmul.mubr.msk.bf16.vlgmr.msra.gmra.mxu1 %vm467_vm0, %v20400_v38  ;;  %v16474_v11 = vpop.f32.mrf.mxu0  ;;  %13161 = vmatprep.subr.bf16.mxu0 %v14019_v41  ;;  %v4337_v14 = vld [vmem:[#allocation3 + $0x7] sm:$0xff]  ;;  %v20420_v38 = vpack.c.bf16 %v20418_v51, %v20419_v32 }
 0x1a0   : > { %20397 = vst [vmem:[#allocation40_spill] sm:$0xff] %v16460_v26  ;;  %13147 = vmatprep.mubr.msk.bf16.mxu1 %vm467_vm0, %v20404_v30  ;;  %v16477_v45 = vpop.f32.mrf.mxu1  ;;  %13184 = vmatpush3.bf16.msra.mxu1 %v16333_v3  ;;  %v14023_v3 = vld [vmem:[%s20016_s8 + $0x20] sm:$0xff]   ;;  %v3918_v1 = vld [vmem:[#allocation2 + $0x118] sm:$0xff] }
 0x1a1   : > { %v16483_v47 = vpop.f32.mrf.mxu0  ;;  %13185 = vmatprep.subr.bf16.mxu1 %v14020_v59  ;;  %v4465_v30 = vld [vmem:[#allocation3 + $0x8] sm:$0xff]  ;;  %v3927_v57 = vpack.c.bf16 %v3919_v29, %v3918_v1 }
 0x1a2   : > { %v16488_v20 = vpop.f32.mrf.mxu1  ;;  %13162 = vmatpush3.bf16.msra.mxu0 %v14019_v41  ;;  %v16550_v41 = vpop.permute.xlu0 %4355  ;;  %v20423_v43 = vld [vmem:[#allocation21_spill] sm:$0xff] }
 0x1a3   : > { %v16490_v4 = vpop.f32.mrf.mxu0  ;;  %13163 = vmatprep.subr.bf16.mxu0 %v14021_v63  ;;  %20417 = vst [vmem:[#allocation30_spill] sm:$0xff] %v16550_v41 }
 0x1a4   : > { %v16492_v39 = vpop.f32.mrf.mxu1  ;;  %13186 = vmatpush3.bf16.msra.mxu1 %v14020_v59 }
 0x1a5   : > { %v16497_v33 = vpop.f32.mrf.mxu0  ;;  %13130 = vmatmul.mubr.msk.bf16.gmra.mxu0 %vm467_vm0, %v20405_v7  ;;  %13187 = vmatprep.subr.bf16.mxu1 %v14022_v5  ;;  %v4433_v7 = vmul.f32 %v16550_v41, %v4337_v14 }
 0x1a6   : > { %v16504_v27 = vpop.f32.mrf.mxu1  ;;  %13133 = vmatprep.mubr.msk.bf16.mxu0 %vm467_vm0, %v20409_v52  ;;  %13164 = vmatpush3.bf16.msra.mxu0 %v14021_v63  ;;  %v4466_v63 = vld [vmem:[#allocation3 + $0x10] sm:$0xff] }
 0x1a7   : > { %13148 = vmatmul.mubr.msk.bf16.gmra.mxu1 %vm467_vm0, %v20408_v22  ;;  %v16516_v50 = vpop.f32.mrf.mxu0  ;;  %13165 = vmatprep.subr.bf16.mxu0 %v14023_v3 }
 0x1a8   : > { %13151 = vmatprep.mubr.msk.bf16.mxu1 %vm467_vm0, %v20412_v28  ;;  %v16518_v62 = vpop.f32.mrf.mxu1  ;;  %13188 = vmatpush3.bf16.msra.mxu1 %v14022_v5 }
 0x1a9   : > { %v16529_v46 = vpop.f32.mrf.mxu0  ;;  %13189 = vmatprep.subr.bf16.mxu1 %v14024_v42 }
 0x1aa   : > { %v16536_v58 = vpop.f32.mrf.mxu1  ;;  %13166 = vmatpush3.bf16.msra.mxu0 %v14023_v3  ;;  %v4434_v3 = vmul.f32 %v16543_v13, %v4338_v49  ;;  %v20424_v49 = vpack.c.bf16 %v20422_v2, %v20423_v43 }
 0x1ab   : > { %v16538_v37 = vpop.f32.mrf.mxu0  ;;  %13207 = vmatprep.subr.bf16.mxu0 %v16523_v34 }
 0x1ac   : > { %v16540_v61 = vpop.f32.mrf.mxu1  ;;  %13190 = vmatpush3.bf16.msra.mxu1 %v14024_v42  ;;  %v4449_v54 = vpack.c.bf16 %v4434_v3, %v4433_v7 }
 0x1ad   : > { %v16545_v40 = vpop.f32.mrf.mxu0  ;;  %13134 = vmatmul.mubr.msk.bf16.gmra.mxu0 %vm467_vm0, %v20416_v24  ;;  %13231 = vmatprep.subr.bf16.mxu1 %v16534_v0 }
 0x1ae   : > { %v16552_v59 = vpop.f32.mrf.mxu1  ;;  %13137 = vmatprep.mubr.msk.bf16.mxu0 %vm467_vm0, %v16283_v23  ;;  %v4481_v23 = vpack.c.bf16 %v4466_v63, %v4465_v30 }
 0x1af   : > { %13152 = vmatmul.mubr.msk.bf16.gmra.mxu1 %vm467_vm0, %v20420_v38  ;;  %v16561_v44 = vpop.f32.mrf.mxu0 }
 0x1b0   : > { %13155 = vmatprep.mubr.msk.bf16.mxu1 %vm467_vm0, %v4107_v53  ;;  %v16563_v5 = vpop.f32.mrf.mxu1 }
 0x1b1   : > { %v16567_v42 = vpop.f32.mrf.mxu0 }
 0x1b2   : > { %v16569_v55 = vpop.f32.mrf.mxu1 }
 0x1b3   : > { %v16571_v22 = vpop.f32.mrf.mxu0 }
 0x1b4   : > { %v16573_v52 = vpop.f32.mrf.mxu1 }
 0x1b5   : > { %v16575_v21 = vpop.f32.mrf.mxu0  ;;  %13138 = vmatmul.mubr.msk.bf16.gmra.mxu0 %vm467_vm0, %v3927_v57 }
 0x1b6   : > { %v16578_v28 = vpop.f32.mrf.mxu1  ;;  %13167 = vmatprep.mubr.msk.bf16.mxu0 %vm506_vm2, %v4481_v23 }
 0x1b7   : > { %20421 = vst [vmem:[#allocation31_spill] sm:$0xff] %v16578_v28  ;;  %13156 = vmatmul.mubr.msk.bf16.gmra.mxu1 %vm467_vm0, %v20424_v49  ;;  %v16586_v24 = vpop.f32.mrf.mxu0 }
 0x1b8   : > { %13191 = vmatprep.mubr.msk.bf16.mxu1 %vm506_vm2, %v4449_v54  ;;  %20425 = vst [vmem:[#allocation32_spill] sm:$0xff] %v16586_v24  ;;  %v16588_v53 = vpop.f32.mrf.mxu1  ;;  %v1728_v24 = vadd.f32 %v16453_v12, %v16348_v36  ;;  %v1727_v12 = vadd.f32 %v16490_v4, %v16368_v18 }
 0x1b9   : > { %20426 = vst [vmem:[#allocation33_spill] sm:$0xff] %v16588_v53  ;;  %v16590_v14 = vpop.f32.mrf.mxu0 }
 0x1ba   : > { %20427 = vst [vmem:[#allocation57_spill] sm:$0xff] %v16590_v14  ;;  %v16592_v51 = vpop.f32.mrf.mxu1  ;;  %v16624_v14 = vpop.permute.xlu0 %4365 }
 0x1bb   : > { %20428 = vst [vmem:[#allocation58_spill] sm:$0xff] %v16592_v51  ;;  %v16594_v32 = vpop.f32.mrf.mxu0  ;;  %20436 = vst [vmem:[#allocation37_spill] sm:$0xff] %v16624_v14  ;;  %v1910_v14 = vadd.f32 %v16462_v6, %v1728_v24  ;;  %v1732_v6 = vadd.f32 %v16497_v33, %v16385_v56 }
 0x1bc   : > { %20429 = vst [vmem:[#allocation16_spill] sm:$0xff] %v16594_v32  ;;  %v16596_v38 = vpop.f32.mrf.mxu1  ;;  %v16620_v32 = vpop.permute.xlu1 %4370 }
 0x1bd   : > { %20430 = vst [vmem:[#allocation38_spill] sm:$0xff] %v16596_v38  ;;  %v12947_v1 = vpop.f32.mrf.mxu0  ;;  %20434 = vst [vmem:[#allocation36_spill] sm:$0xff] %v16620_v32 }
 0x1be   : > { %v12965_v29 = vpop.f32.mrf.mxu1  ;;  %v16647_v36 = vpop.permute.xlu0 %4375 }
 0x1bf   : > { %v2027_v30 = vpop.f32.mrf.mxu0  ;;  %20441 = vst [vmem:[#allocation20_spill] sm:$0xff] %v16647_v36  ;;  %v1909_v36 = vadd.f32 %v16492_v39, %v1727_v12 }
 0x1c0   : > { %v2193_v63 = vpop.f32.mrf.mxu1  ;;  %v16640_v32 = vpop.permute.xlu1 %4380 }
 0x1c1   : > { %v12948_v3 = vpop.f32.mrf.mxu0  ;;  %20440 = vst [vmem:[#allocation17_spill] sm:$0xff] %v16640_v32 }
 0x1c2   : > { %v12966_v7 = vpop.f32.mrf.mxu1  ;;  %v16672_v56 = vpop.permute.xlu0 %4385 }
 0x1c3   : > { %v2030_v57 = vpop.f32.mrf.mxu0 }
 0x1c4   : > { %v16598_v23 = vpop.f32.mrf.mxu1  ;;  %v16666_v4 = vpop.permute.xlu1 %4390  ;;  %v2091_v33 = vadd.f32 %v2030_v57, %v1909_v36 }
 0x1c5   : > { %v12951_v54 = vpop.f32.mrf.mxu0 }
 0x1c6   : > { %v16600_v2 = vpop.f32.mrf.mxu1 }
 0x1c7   : > { %v16602_v43 = vpop.f32.mrf.mxu0 }
 0x1c8   : > { %v16604_v49 = vpop.f32.mrf.mxu1 }
 0x1c9   : > { %v16606_v41 = vpop.f32.mrf.mxu0 }
 0x1ca   : > { %v16608_v13 = vpop.f32.mrf.mxu1 }
 0x1cb   : > { %v16610_v0 = vpop.f32.mrf.mxu0 }
 0x1cc   : > { %v16612_v34 = vpop.f32.mrf.mxu1 }
 0x1cd   : > { %20431 = vst [vmem:[#allocation61_spill] sm:$0xff] %v16612_v34  ;;  %v16614_v38 = vpop.f32.mrf.mxu0 }
 0x1ce   : > { %v16616_v51 = vpop.f32.mrf.mxu1 }
 0x1cf   : > { %20432 = vst [vmem:[#allocation64_spill] sm:$0xff] %v16616_v51  ;;  %v16618_v53 = vpop.f32.mrf.mxu0  ;;  %v1726_v51 = vadd.f32 %v16474_v11, %v16357_v31  ;;  %v2092_v11 = vadd.f32 %v12947_v1, %v1910_v14 }
 0x1d0   : > { %20433 = vst [vmem:[#allocation39_spill] sm:$0xff] %v16618_v53  ;;  %v16622_v26 = vpop.f32.mrf.mxu1 }
 0x1d1   : > { %20435 = vst [vmem:[#allocation51_spill] sm:$0xff] %v16622_v26  ;;  %v16626_v17 = vpop.f32.mrf.mxu0  ;;  %v1729_v26 = vadd.f32 %v16483_v47, %v16361_v25  ;;  %v1908_v31 = vadd.f32 %v16477_v45, %v1726_v51  ;;  %v1730_v45 = vadd.f32 %v16516_v50, %v16393_v9  ;;  %v2258_v14 = vadd.f32 %v12965_v29, %v2092_v11 }
 0x1d2   : > { %20437 = vst [vmem:[#allocation19_spill] sm:$0xff] %v16626_v17  ;;  %v16630_v35 = vpop.f32.mrf.mxu1  ;;  %v1731_v29 = vadd.f32 %v16538_v37, %v16406_v60 }
 0x1d3   : > { %20438 = vst [vmem:[#allocation63_spill] sm:$0xff] %v16630_v35  ;;  %v16632_v34 = vpop.f32.mrf.mxu0  ;;  %v1911_v25 = vadd.f32 %v16488_v20, %v1729_v26  ;;  %v2090_v47 = vadd.f32 %v2027_v30, %v1908_v31  ;;  %v1914_v26 = vadd.f32 %v16504_v27, %v1732_v6  ;;  %v1733_v20 = vadd.f32 %v16529_v46, %v16397_v19  ;;  %v16680_v30 = vld [vmem:[%s20015_s7] ss:$0 sm:$0xff] }
 0x1d4   : > { %v16636_v28 = vpop.f32.mrf.mxu1  ;;  %v1736_v27 = vadd.f32 %v16545_v40, %v16419_v15  ;;  %v1912_v19 = vadd.f32 %v16518_v62, %v1730_v45  ;;  %v2257_v6 = vadd.f32 %v16598_v23, %v2091_v33 }
 0x1d5   : > { %20439 = vst [vmem:[#allocation14_spill] sm:$0xff] %v16636_v28  ;;  %v16638_v53 = vpop.f32.mrf.mxu0  ;;  %v2093_v51 = vadd.f32 %v12948_v3, %v1911_v25  ;;  %v2256_v12 = vadd.f32 %v2193_v63, %v2090_v47  ;;  %v2096_v3 = vadd.f32 %v12951_v54, %v1914_v26  ;;  %v1915_v63 = vadd.f32 %v16536_v58, %v1733_v20  ;;  %v16694_v47 = vpop.permute.xlu1 %4400 }
 0x1d6   : > { %v16645_v17 = vpop.f32.mrf.mxu1  ;;  %v2094_v60 = vadd.f32 %v16602_v43, %v1912_v19  ;;  %v1913_v54 = vadd.f32 %v16540_v61, %v1731_v29  ;;  %v1918_v45 = vadd.f32 %v16552_v59, %v1736_v27  ;;  %v1734_v58 = vadd.f32 %v16561_v44, %v16423_v16 }
 0x1d7   : > { %v16651_v35 = vpop.f32.mrf.mxu0  ;;  %v2259_v46 = vadd.f32 %v12966_v7, %v2093_v51  ;;  %v16700_v7 = vpop.permute.xlu0 %4395  ;;  %v2262_v23 = vadd.f32 %v16600_v2, %v2096_v3  ;;  %v2097_v43 = vadd.f32 %v16606_v41, %v1915_v63  ;;  %v1737_v61 = vadd.f32 %v16567_v42, %v16427_v10 }
 0x1d8   : > { %v16654_v28 = vpop.f32.mrf.mxu1  ;;  %v1735_v59 = vadd.f32 %v16571_v22, %v16432_v8  ;;  %v1740_v16 = vadd.f32 %v16575_v21, %v16443_v48  ;;  %v2095_v44 = vadd.f32 %v16610_v0, %v1913_v54  ;;  %v2260_v2 = vadd.f32 %v16604_v49, %v2094_v60  ;;  %v20448_v54 = vld [vmem:[#allocation35_spill] sm:$0xff] }
 0x1d9   : > { %v16658_v24 = vpop.f32.mrf.mxu0  ;;  %v1916_v10 = vadd.f32 %v16563_v5, %v1734_v58  ;;  %v2100_v8 = vadd.f32 %v16614_v38, %v1918_v45  ;;  %v16726_v22 = vpop.permute.xlu1 %4410  ;;  %v2263_v48 = vadd.f32 %v16608_v13, %v2097_v43  ;;  %v20443_v38 = vld [vmem:[#allocation31_spill] sm:$0xff]  ;;  %v20450_v58 = vld [vmem:[#allocation40_spill] sm:$0xff] }
 0x1da   : > { %v16661_v32 = vpop.f32.mrf.mxu1  ;;  %v1917_v5 = vadd.f32 %v16573_v52, %v1735_v59  ;;  %v1922_v19 = vadd.f32 %v20443_v38, %v1740_v16  ;;  %v20445_v13 = vld [vmem:[#allocation39_spill] sm:$0xff]  ;;  %v20449_v52 = vld [vmem:[#allocation57_spill] sm:$0xff]  ;;  %v20452_v43 = vld [vmem:[#allocation64_spill] sm:$0xff] }
 0x1db   : > { %v16664_v18 = vpop.f32.mrf.mxu0  ;;  %v16733_v3 = vpop.permute.xlu0 %4405  ;;  %v2098_v63 = vadd.f32 %v20445_v13, %v1916_v10  ;;  %v1741_v45 = vadd.f32 %v20449_v52, %v20448_v54  ;;  %v20455_v10 = vld [vmem:[#allocation51_spill] sm:$0xff] }
 0x1dc   : > { %v16670_v1 = vpop.f32.mrf.mxu1 }
 0x1dd   : > { %v12983_v39 = vpop.f32.mrf.mxu0 }
 0x1de   : > { %v2440_v9 = vadd.f32 %v12983_v39, %v2258_v14  ;;  %v16682_v50 = vpop.f32.mrf.mxu1 }
 0x1df   : > { %v2375_v31 = vpop.f32.mrf.mxu0 }
 0x1e0   : > { %v2463_v57 = vadd.f32 %v16680_v30, %v2440_v9  ;;  %v2438_v36 = vadd.f32 %v2375_v31, %v2256_v12  ;;  %v16690_v11 = vpop.f32.mrf.mxu1  ;;  %v1919_v31 = vadd.f32 %v16569_v55, %v1737_v61 }
 0x1e1   : > { %v12984_v25 = vpop.f32.mrf.mxu0 }
 0x1e2   : > { %v2479_v15 = vmax.f32 %v2463_v57, 0.0  ;;  %v2461_v37 = vadd.f32 %v16680_v30, %v2438_v36  ;;  %v2441_v40 = vadd.f32 %v12984_v25, %v2259_v46  ;;  %v16698_v62 = vpop.f32.mrf.mxu1  ;;  %v20444_v46 = vld [vmem:[#allocation61_spill] sm:$0xff] }
 0x1e3   : > { %v2378_v14 = vpop.f32.mrf.mxu0  ;;  %v2261_v57 = vadd.f32 %v20444_v46, %v2095_v44 }
 0x1e4   : > { %2495 = vst.msk [vmem:[#allocation3 + $0x28] sm:$0xff] %vm506_vm2, %v2479_v15  ;;  %v2477_v51 = vmax.f32 %v2461_v37, 0.0  ;;  %v2464_v26 = vadd.f32 %v16680_v30, %v2441_v40  ;;  %v2439_v20 = vadd.f32 %v2378_v14, %v2257_v6  ;;  %v16710_v33 = vpop.f32.mrf.mxu1  ;;  %v20446_v37 = vld [vmem:[#allocation34_spill] sm:$0xff]  ;;  %v20447_v40 = vld [vmem:[#allocation32_spill] sm:$0xff] }
 0x1e5   : > { %20442 = vst [vmem:[#allocation15_spill] sm:$0xff] %v16710_v33  ;;  %v12987_v41 = vpop.f32.mrf.mxu0  ;;  %v1738_v55 = vadd.f32 %v20447_v40, %v20446_v37 }
 0x1e6   : > { %2493 = vst.msk [vmem:[#allocation3 + $0x18] sm:$0xff] %vm506_vm2, %v2477_v51  ;;  %v2480_v39 = vmax.f32 %v2464_v26, 0.0  ;;  %v2462_v12 = vadd.f32 %v16680_v30, %v2439_v20  ;;  %v2444_v9 = vadd.f32 %v12987_v41, %v2262_v23  ;;  %v16722_v29 = vpop.f32.mrf.mxu1  ;;  %v20451_v23 = vld [vmem:[#allocation16_spill] sm:$0xff]  ;;  %v2266_v51 = vadd.f32 %v20452_v43, %v2100_v8  ;;  %v20453_v20 = vld [vmem:[#allocation19_spill] sm:$0xff] }
 0x1e7   : > { %v2391_v42 = vpop.f32.mrf.mxu0  ;;  %v1739_v14 = vadd.f32 %v20451_v23, %v20450_v58  ;;  %v2101_v61 = vadd.f32 %v20453_v20, %v1919_v31  ;;  %v2264_v8 = vadd.f32 %v20455_v10, %v2098_v63  ;;  %v16767_v31 = vpop.permute.xlu0 %4415  ;;  %v20464_v10 = vld [vmem:[#allocation36_spill] sm:$0xff] }
 0x1e8   : > { %2496 = vst.msk [vmem:[#allocation3 + $0x30] sm:$0xff] %vm506_vm2, %v2480_v39  ;;  %v2478_v0 = vmax.f32 %v2462_v12, 0.0  ;;  %v2467_v21 = vadd.f32 %v16680_v30, %v2444_v9  ;;  %v2442_v49 = vadd.f32 %v2391_v42, %v2260_v2  ;;  %v16731_v27 = vpop.f32.mrf.mxu1  ;;  %v2099_v2 = vadd.f32 %v16632_v34, %v1917_v5  ;;  %v16758_v9 = vpop.permute.xlu1 %4420  ;;  %v20456_v34 = vld [vmem:[#allocation33_spill] sm:$0xff] }
 0x1e9   : > { %v12988_v36 = vpop.f32.mrf.mxu0  ;;  %v2104_v39 = vadd.f32 %v16638_v53, %v1922_v19  ;;  %v1920_v5 = vadd.f32 %v20456_v34, %v1738_v55  ;;  %v20457_v53 = vld [vmem:[#allocation58_spill] sm:$0xff] }
 0x1ea   : > { %2494 = vst.msk [vmem:[#allocation3 + $0x20] sm:$0xff] %vm506_vm2, %v2478_v0  ;;  %v2483_v6 = vmax.f32 %v2467_v21, 0.0  ;;  %v2465_v25 = vadd.f32 %v16680_v30, %v2442_v49  ;;  %v2445_v60 = vadd.f32 %v12988_v36, %v2263_v48  ;;  %v16742_v15 = vpop.f32.mrf.mxu1  ;;  %v1923_v38 = vadd.f32 %v20457_v53, %v1741_v45  ;;  %v20458_v19 = vld [vmem:[#allocation38_spill] sm:$0xff]  ;;  %v20459_v36 = vld [vmem:[#allocation63_spill] sm:$0xff] }
 0x1eb   : > { %v2394_v26 = vpop.f32.mrf.mxu0  ;;  %v1921_v46 = vadd.f32 %v20458_v19, %v1739_v14  ;;  %v2267_v13 = vadd.f32 %v20459_v36, %v2101_v61  ;;  %v20460_v55 = vld [vmem:[#allocation14_spill] sm:$0xff]  ;;  %v2270_v45 = vadd.f32 %v16645_v17, %v2104_v39  ;;  %v2102_v58 = vadd.f32 %v16651_v35, %v1920_v5  ;;  %v4469_v35 = vld [vmem:[#allocation3 + $0x28] sm:$0xff] }
 0x1ec   : > { %2499 = vst.msk [vmem:[#allocation3 + $0x48] sm:$0xff] %vm506_vm2, %v2483_v6  ;;  %v2481_v59 = vmax.f32 %v2465_v25, 0.0  ;;  %v2468_v16 = vadd.f32 %v16680_v30, %v2445_v60  ;;  %v2443_v44 = vadd.f32 %v2394_v26, %v2261_v57  ;;  %v16754_v41 = vpop.f32.mrf.mxu1  ;;  %v2265_v52 = vadd.f32 %v20460_v55, %v2099_v2  ;;  %v14027_v2 = vld [vmem:[%s20016_s8 + $0x50] sm:$0xff]   ;;  %v16805_v5 = vpop.permute.xlu1 %4430 }
 0x1ed   : > { %20454 = vst [vmem:[#allocation52_spill] sm:$0xff] %v16754_v41  ;;  %v12991_v12 = vpop.f32.mrf.mxu0  ;;  %v16765_v49 = vld [vmem:[#allocation3 + $0x17] sm:$0xff]  ;;  %20467 = vst [vmem:[#allocation55_spill] sm:$0xff] %v16805_v5  ;;  %v2105_v53 = vadd.f32 %v16658_v24, %v1923_v38  ;;  %v2268_v55 = vadd.f32 %v16654_v28, %v2102_v58 }
 0x1ee   : > { %2497 = vst.msk [vmem:[#allocation3 + $0x38] sm:$0xff] %vm506_vm2, %v2481_v59  ;;  %v2484_v42 = vmax.f32 %v2468_v16, 0.0  ;;  %v2466_v48 = vadd.f32 %v16680_v30, %v2443_v44  ;;  %v2448_v0 = vadd.f32 %v12991_v12, %v2266_v51  ;;  %v16763_v21 = vpop.f32.mrf.mxu1  ;;  %v4467_v37 = vld [vmem:[#allocation3 + $0x18] sm:$0xff]  ;;  %v20461_v51 = vld [vmem:[#allocation37_spill] sm:$0xff] }
 0x1ef   : > { %v2407_v57 = vpop.f32.mrf.mxu0  ;;  %v4470_v40 = vld [vmem:[#allocation3 + $0x30] sm:$0xff]  ;;  %v4435_v26 = vmul.f32 %v20461_v51, %v16765_v49  ;;  %v2271_v28 = vadd.f32 %v16661_v32, %v2105_v53 }
 0x1f0   : > { %2500 = vst.msk [vmem:[#allocation3 + $0x50] sm:$0xff] %vm506_vm2, %v2484_v42  ;;  %v2482_v63 = vmax.f32 %v2466_v48, 0.0  ;;  %v2471_v6 = vadd.f32 %v16680_v30, %v2448_v0  ;;  %v2446_v25 = vadd.f32 %v2407_v57, %v2264_v8  ;;  %v16775_v60 = vpop.f32.mrf.mxu1  ;;  %v16777_v54 = vld [vmem:[#allocation3 + $0x2f] sm:$0xff]  ;;  %v16797_v12 = vpack.c.bf16 %v4470_v40, %v4469_v35  ;;  %v20465_v42 = vld [vmem:[#allocation20_spill] sm:$0xff] }
 0x1f1   : > { %v12992_v23 = vpop.f32.mrf.mxu0  ;;  %v4468_v14 = vld [vmem:[#allocation3 + $0x20] sm:$0xff]  ;;  %v20466_v0 = vld [vmem:[#allocation17_spill] sm:$0xff] }
 0x1f2   : > { %v16782_v43 = vld [vmem:[#allocation3 + $0x1f] sm:$0xff]  ;;  %v16786_v20 = vld [vmem:[#allocation3 + $0x27] sm:$0xff]  ;;  %2498 = vst.msk [vmem:[#allocation3 + $0x40] sm:$0xff] %vm506_vm2, %v2482_v63  ;;  %v2487_v61 = vmax.f32 %v2471_v6, 0.0  ;;  %v2469_v59 = vadd.f32 %v16680_v30, %v2446_v25  ;;  %v2449_v16 = vadd.f32 %v12992_v23, %v2267_v13  ;;  %v16790_v44 = vpop.f32.mrf.mxu1  ;;  %v16792_v17 = vpack.c.bf16 %v4468_v14, %v4467_v37  ;;  %20463 = vst [vmem:[#allocation25_spill] sm:$0xff] %v16797_v12  ;;  %v16814_v63 = vpop.permute.xlu0 %4425 }
 0x1f3   : > { %v2410_v39 = vpop.f32.mrf.mxu0  ;;  %v4436_v8 = vmul.f32 %v20464_v10, %v16782_v43  ;;  %v4437_v48 = vmul.f32 %v20465_v42, %v16786_v20  ;;  %v4438_v34 = vmul.f32 %v20466_v0, %v16777_v54  ;;  %20469 = vst [vmem:[#allocation22_spill] sm:$0xff] %v16814_v63  ;;  %v2103_v6 = vadd.f32 %v16664_v18, %v1921_v46  ;;  %v20470_v37 = vld [vmem:[#allocation42_spill] sm:$0xff]  ;;  %v14028_v40 = vld [vmem:[%s20016_s8 + $0x70] sm:$0xff]  }
 0x1f4   : > { %20462 = vst [vmem:[#allocation65_spill] sm:$0xff] %v16792_v17  ;;  %2503 = vst.msk [vmem:[#allocation3 + $0x68] sm:$0xff] %vm506_vm2, %v2487_v61  ;;  %v2485_v19 = vmax.f32 %v2469_v59, 0.0  ;;  %v2472_v57 = vadd.f32 %v16680_v30, %v2449_v16  ;;  %v2447_v36 = vadd.f32 %v2410_v39, %v2265_v52  ;;  %v16810_v13 = vpop.f32.mrf.mxu1  ;;  %13168 = vmatmul.mubr.msk.bf16.vlgmr.msra.gmra.mxu0 %vm506_vm2, %v16792_v17 }
 0x1f5   : > { %20468 = vst [vmem:[#allocation56_spill] sm:$0xff] %v16810_v13  ;;  %v12995_v25 = vpop.f32.mrf.mxu0  ;;  %13171 = vmatprep.mubr.msk.bf16.mxu0 %vm506_vm2, %v16797_v12  ;;  %v4450_v24 = vpack.c.bf16 %v4436_v8, %v4435_v26  ;;  %v4451_v38 = vpack.c.bf16 %v4438_v34, %v4437_v48  ;;  %13208 = vmatpush3.bf16.msra.mxu0 %v20470_v37  ;;  %v16828_v14 = vld [vmem:[#allocation3 + $0x37] sm:$0xff] }
 0x1f6   : > { %2501 = vst.msk [vmem:[#allocation3 + $0x58] sm:$0xff] %vm506_vm2, %v2485_v19  ;;  %v2488_v52 = vmax.f32 %v2472_v57, 0.0  ;;  %v2470_v23 = vadd.f32 %v16680_v30, %v2447_v36  ;;  %v2452_v18 = vadd.f32 %v12995_v25, %v2270_v45  ;;  %v16826_v46 = vpop.f32.mrf.mxu1  ;;  %13209 = vmatprep.subr.bf16.mxu0 %v14027_v2  ;;  %v14029_v26 = vld [vmem:[%s20016_s8 + $0x48] sm:$0xff]   ;;  %v20471_v48 = vld [vmem:[#allocation46_spill] sm:$0xff]  ;;  %v2269_v34 = vadd.f32 %v16670_v1, %v2103_v6  ;;  %v16850_v25 = vpop.permute.xlu1 %4811 }
 0x1f7   : > { %13192 = vmatmul.mubr.msk.bf16.vlgmr.msra.gmra.mxu1 %vm506_vm2, %v4450_v24  ;;  %v2423_v61 = vpop.f32.mrf.mxu0  ;;  %v4471_v35 = vld [vmem:[#allocation3 + $0x38] sm:$0xff]  ;;  %v4474_v39 = vld [vmem:[#allocation3 + $0x50] sm:$0xff]  ;;  %v4439_v57 = vmul.f32 %v16672_v56, %v16828_v14  ;;  %20472 = vst [vmem:[#allocation41_spill] sm:$0xff] %v16850_v25 }
 0x1f8   : > { %2504 = vst.msk [vmem:[#allocation3 + $0x70] sm:$0xff] %vm506_vm2, %v2488_v52  ;;  %v2486_v58 = vmax.f32 %v2470_v23, 0.0  ;;  %v2475_v59 = vadd.f32 %v16680_v30, %v2452_v18  ;;  %v2450_v45 = vadd.f32 %v2423_v61, %v2268_v55  ;;  %v16837_v16 = vpop.f32.mrf.mxu1  ;;  %13195 = vmatprep.mubr.msk.bf16.mxu1 %vm506_vm2, %v4451_v38  ;;  %v16840_v8 = vld [vmem:[#allocation3 + $0x4f] sm:$0xff]  ;;  %13232 = vmatpush3.bf16.msra.mxu1 %v20471_v48  ;;  %v14030_v52 = vld [vmem:[%s20016_s8 + $0x68] sm:$0xff]   ;;  %v16864_v23 = vpop.permute.xlu0 %4806 }
 0x1f9   : > { %v12996_v19 = vpop.f32.mrf.mxu0  ;;  %v4472_v32 = vld [vmem:[#allocation3 + $0x40] sm:$0xff]  ;;  %13210 = vmatpush3.bf16.msra.mxu0 %v14027_v2  ;;  %13233 = vmatprep.subr.bf16.mxu1 %v14028_v40  ;;  %v4473_v55 = vld [vmem:[#allocation3 + $0x48] sm:$0xff]  ;;  %v14031_v2 = vld [vmem:[%s20016_s8 + $0x40] sm:$0xff]  }
 0x1fa   : > { %v16844_v53 = vld [vmem:[#allocation3 + $0x3f] sm:$0xff]  ;;  %v16848_v36 = vld [vmem:[#allocation3 + $0x47] sm:$0xff]  ;;  %2502 = vst.msk [vmem:[#allocation3 + $0x60] sm:$0xff] %vm506_vm2, %v2486_v58  ;;  %v2491_v24 = vmax.f32 %v2475_v59, 0.0  ;;  %v2473_v38 = vadd.f32 %v16680_v30, %v2450_v45  ;;  %v2453_v37 = vadd.f32 %v12996_v19, %v2271_v28  ;;  %v16854_v1 = vpop.f32.mrf.mxu1  ;;  %v16856_v6 = vpack.c.bf16 %v4472_v32, %v4471_v35  ;;  %13211 = vmatprep.subr.bf16.mxu0 %v14029_v26  ;;  %v16977_v12 = vld [vmem:[#allocation3 + $0x31] sm:$0xff] }
 0x1fb   : > { %v2426_v18 = vpop.f32.mrf.mxu0  ;;  %v16866_v61 = vpack.c.bf16 %v4474_v39, %v4473_v55  ;;  %v4440_v28 = vmul.f32 %v16666_v4, %v16844_v53  ;;  %v4441_v58 = vmul.f32 %v16700_v7, %v16848_v36  ;;  %v4442_v59 = vmul.f32 %v16694_v47, %v16840_v8  ;;  %20492 = vst [vmem:[#allocation21_spill] sm:$0xff] %v16977_v12 }
 0x1fc   : > { %20473 = vst [vmem:[#allocation43_spill] sm:$0xff] %v16856_v6  ;;  %2507 = vst.msk [vmem:[#allocation3 + $0x88] sm:$0xff] %vm506_vm2, %v2491_v24  ;;  %v2489_v45 = vmax.f32 %v2473_v38, 0.0  ;;  %v2476_v35 = vadd.f32 %v16680_v30, %v2453_v37  ;;  %v2451_v48 = vadd.f32 %v2426_v18, %v2269_v34  ;;  %v16876_v19 = vpop.f32.mrf.mxu1  ;;  %13172 = vmatmul.mubr.msk.bf16.gmra.mxu0 %vm506_vm2, %v16856_v6  ;;  %13234 = vmatpush3.bf16.msra.mxu1 %v14028_v40  ;;  %v14032_v24 = vld [vmem:[%s20016_s8 + $0x60] sm:$0xff]   ;;  %v16975_v6 = vld [vmem:[#allocation3 + $0x21] sm:$0xff] }
 0x1fd   : > { %20474 = vst [vmem:[#allocation62_spill] sm:$0xff] %v16866_v61  ;;  %20475 = vst [vmem:[#allocation23_spill] sm:$0xff] %v16876_v19  ;;  %v13019_v39 = vpop.f32.mrf.mxu0  ;;  %13175 = vmatprep.mubr.msk.bf16.mxu0 %vm506_vm2, %v16866_v61  ;;  %v4452_v32 = vpack.c.bf16 %v4440_v28, %v4439_v57  ;;  %v4453_v55 = vpack.c.bf16 %v4442_v59, %v4441_v58  ;;  %13212 = vmatpush3.bf16.msra.mxu0 %v14029_v26  ;;  %v16888_v40 = vld [vmem:[#allocation3 + $0x57] sm:$0xff]  ;;  %v16893_v26 = vld [vmem:[%s20016_s8 + $0x98] sm:$0xff]   ;;  %v16896_v28 = vpop.permute.xlu1 %4821 }
 0x1fe   : > { %2505 = vst.msk [vmem:[#allocation3 + $0x78] sm:$0xff] %vm506_vm2, %v2489_v45  ;;  %v2492_v34 = vmax.f32 %v2476_v35, 0.0  ;;  %v2474_v38 = vadd.f32 %v16680_v30, %v2451_v48  ;;  %v2881_v37 = vadd.f32 %v13019_v39, %v16682_v50  ;;  %v13037_v18 = vpop.f32.mrf.mxu1  ;;  %13235 = vmatprep.subr.bf16.mxu1 %v14030_v52  ;;  %13213 = vmatprep.subr.bf16.mxu0 %v14031_v2  ;;  %20476 = vst [vmem:[#allocation44_spill] sm:$0xff] %v16896_v28  ;;  %v4475_v45 = vld [vmem:[#allocation3 + $0x58] sm:$0xff]  ;;  %v16905_v39 = vpop.permute.xlu0 %4816 }
 0x1ff   : > { %13196 = vmatmul.mubr.msk.bf16.gmra.mxu1 %vm506_vm2, %v4452_v32  ;;  %v2872_v57 = vpop.f32.mrf.mxu0  ;;  %v4478_v35 = vld [vmem:[#allocation3 + $0x70] sm:$0xff]  ;;  %20478 = vst [vmem:[#allocation24_spill] sm:$0xff] %v16905_v39 }
 0x200   : > { %2508 = vst.msk [vmem:[#allocation3 + $0x90] sm:$0xff] %vm506_vm2, %v2492_v34  ;;  %v2490_v30 = vmax.f32 %v2474_v38, 0.0  ;;  %v16899_v58 = vadd.f32 %v13037_v18, %v2881_v37  ;;  %v2873_v50 = vadd.f32 %v2872_v57, %v16690_v11  ;;  %v3117_v59 = vpop.f32.mrf.mxu1  ;;  %13199 = vmatprep.mubr.msk.bf16.mxu1 %vm506_vm2, %v4453_v55  ;;  %v16903_v48 = vld [vmem:[#allocation3 + $0x6f] sm:$0xff]  ;;  %13236 = vmatpush3.bf16.msra.mxu1 %v14030_v52 }
 0x201   : > { %v13020_v32 = vpop.f32.mrf.mxu0  ;;  %v4476_v19 = vld [vmem:[#allocation3 + $0x60] sm:$0xff]  ;;  %v4443_v34 = vmul.f32 %v16733_v3, %v16888_v40  ;;  %13214 = vmatpush3.bf16.msra.mxu0 %v14031_v2  ;;  %13237 = vmatprep.subr.bf16.mxu1 %v14032_v24  ;;  %v4477_v18 = vld [vmem:[#allocation3 + $0x68] sm:$0xff] }
 0x202   : > { %20477 = vst [vmem:[#allocation45_spill] sm:$0xff] %v16899_v58  ;;  %v16907_v13 = vld [vmem:[#allocation3 + $0x5f] sm:$0xff]  ;;  %v16911_v38 = vld [vmem:[#allocation3 + $0x67] sm:$0xff]  ;;  %2506 = vst.msk [vmem:[#allocation3 + $0x80] sm:$0xff] %vm506_vm2, %v2490_v30  ;;  %v16914_v11 = vadd.f32 %v3117_v59, %v2873_v50  ;;  %v2884_v55 = vadd.f32 %v13020_v32, %v16698_v62  ;;  %v13038_v52 = vpop.f32.mrf.mxu1  ;;  %v16917_v37 = vpack.c.bf16 %v4476_v19, %v4475_v45  ;;  %13255 = vmatprep.subr.bf16.mxu0 %v16893_v26  ;;  %v16943_v58 = vpop.permute.xlu1 %4831 }
 0x203   : > { %v4444_v57 = vmul.f32 %v16726_v22, %v16907_v13  ;;  %v16925_v2 = vld [vmem:[%s20016_s8 + $0xb8] sm:$0xff]   ;;  %v16927_v41 = vpop.f32.mrf.mxu0  ;;  %v16929_v30 = vpack.c.bf16 %v4478_v35, %v4477_v18  ;;  %v4445_v62 = vmul.f32 %v16767_v31, %v16911_v38  ;;  %v4446_v19 = vmul.f32 %v16758_v9, %v16903_v48  ;;  %v4789_v32 = vld [vmem:[#allocation3 + $0x11] sm:$0xff]  ;;  %20485 = vst [vmem:[#allocation53_spill] sm:$0xff] %v16943_v58 }
 0x204   : > { %20479 = vst [vmem:[#allocation47_spill] sm:$0xff] %v16914_v11  ;;  %20480 = vst [vmem:[#allocation48_spill] sm:$0xff] %v16917_v37  ;;  %v16935_v50 = vadd.f32 %v13038_v52, %v2884_v55  ;;  %v16937_v59 = vpop.f32.mrf.mxu1  ;;  %13176 = vmatmul.mubr.msk.bf16.gmra.mxu0 %vm506_vm2, %v16917_v37  ;;  %13238 = vmatpush3.bf16.msra.mxu1 %v14032_v24  ;;  %v4788_v18 = vld [vmem:[#allocation3 + $0x9] sm:$0xff]  ;;  %v20488_v37 = vld [vmem:[#allocation28_spill] sm:$0xff] }
 0x205   : > { %20481 = vst [vmem:[#allocation26_spill] sm:$0xff] %v16927_v41  ;;  %20482 = vst [vmem:[#allocation49_spill] sm:$0xff] %v16929_v30  ;;  %v4454_v45 = vpack.c.bf16 %v4444_v57, %v4443_v34  ;;  %v13023_v11 = vpop.f32.mrf.mxu0  ;;  %13179 = vmatprep.mubr.msk.bf16.mxu0 %vm506_vm2, %v16929_v30  ;;  %v4455_v35 = vpack.c.bf16 %v4446_v19, %v4445_v62  ;;  %v16946_v52 = vld [vmem:[#allocation3 + $0x77] sm:$0xff]  ;;  %13279 = vmatprep.subr.bf16.mxu1 %v16925_v2 }
 0x206   : > { %20483 = vst [vmem:[#allocation50_spill] sm:$0xff] %v16935_v50  ;;  %20484 = vst [vmem:[#allocation27_spill] sm:$0xff] %v16937_v59  ;;  %v2897_v41 = vadd.f32 %v13023_v11, %v16722_v29  ;;  %v13041_v55 = vpop.f32.mrf.mxu1  ;;  %v16949_v50 = vpop.permute.xlu0 %4826  ;;  %v4885_v34 = vmul.f32 %v16850_v25, %v4789_v32  ;;  %v4884_v29 = vmul.f32 %v16864_v23, %v4788_v18  ;;  %v4479_v59 = vld [vmem:[#allocation3 + $0x78] sm:$0xff] }
 0x207   : > { %20486 = vst [vmem:[#allocation54_spill] sm:$0xff] %v16949_v50  ;;  %13200 = vmatmul.mubr.msk.bf16.gmra.mxu1 %vm506_vm2, %v4454_v45  ;;  %v2888_v24 = vpop.f32.mrf.mxu0  ;;  %v4447_v45 = vmul.f32 %v16814_v63, %v16946_v52  ;;  %v5095_v32 = vmul.f32 %v20488_v37, %v16782_v43  ;;  %v16971_v18 = vld [vmem:[#allocation3 + $0x19] sm:$0xff]  ;;  %v16979_v43 = vpop.permute.xlu1 %4841 }
 0x208   : > { %v16953_v57 = vadd.f32 %v13041_v55, %v2897_v41  ;;  %v2889_v62 = vadd.f32 %v2888_v24, %v16731_v27  ;;  %v3133_v19 = vpop.f32.mrf.mxu1  ;;  %13203 = vmatprep.mubr.msk.bf16.mxu1 %vm506_vm2, %v4455_v35  ;;  %v4900_v61 = vpack.c.bf16 %v4885_v34, %v4884_v29  ;;  %20493 = vst [vmem:[#allocation31_spill] sm:$0xff] %v16979_v43  ;;  %v16991_v34 = vld [vmem:[#allocation3 + $0x41] sm:$0xff] }
 0x209   : > { %v13024_v11 = vpop.f32.mrf.mxu0  ;;  %v4480_v33 = vld [vmem:[#allocation3 + $0x80] sm:$0xff]  ;;  %20498 = vst [vmem:[#allocation32_spill] sm:$0xff] %v16991_v34 }
 0x20a   : > { %20487 = vst [vmem:[#allocation29_spill] sm:$0xff] %v16953_v57  ;;  %v16958_v30 = vld [vmem:[#allocation3 + $0x7f] sm:$0xff]  ;;  %v16964_v41 = vadd.f32 %v3133_v19, %v2889_v62  ;;  %v2900_v27 = vadd.f32 %v13024_v11, %v16742_v15  ;;  %v13042_v55 = vpop.f32.mrf.mxu1  ;;  %v16967_v24 = vpack.c.bf16 %v4480_v33, %v4479_v59  ;;  %v20496_v59 = vld [vmem:[#allocation30_spill] sm:$0xff]  ;;  %v16993_v29 = vpop.permute.xlu0 %4836 }
 0x20b   : > { %v4448_v35 = vmul.f32 %v16805_v5, %v16958_v30  ;;  %v16973_v57 = vpop.f32.mrf.mxu0  ;;  %v5094_v19 = vmul.f32 %v20496_v59, %v16765_v49  ;;  %v16989_v11 = vld [vmem:[#allocation3 + $0x39] sm:$0xff]  ;;  %20499 = vst [vmem:[#allocation35_spill] sm:$0xff] %v16993_v29  ;;  %v4887_v49 = vmul.f32 %v16896_v28, %v16975_v6  ;;  %v5097_v28 = vmul.f32 %v20464_v10, %v16777_v54 }
 0x20c   : > { %20489 = vst [vmem:[#allocation59_spill] sm:$0xff] %v16964_v41  ;;  %20490 = vst [vmem:[#allocation60_spill] sm:$0xff] %v16967_v24  ;;  %v16981_v62 = vadd.f32 %v13042_v55, %v2900_v27  ;;  %v16983_v15 = vpop.f32.mrf.mxu1  ;;  %13180 = vmatmul.mubr.msk.bf16.gmra.mxu0 %vm506_vm2, %v16967_v24  ;;  %v4886_v27 = vmul.f32 %v16905_v39, %v16971_v18  ;;  %v16998_v55 = vld [vmem:[#allocation3 + $0x29] sm:$0xff]  ;;  %v5099_v24 = vmul.f32 %v20466_v0, %v16844_v53 }
 0x20d   : > { %20491 = vst [vmem:[#allocation18_spill] sm:$0xff] %v16973_v57  ;;  %20495 = vst [vmem:[#allocation39_spill] sm:$0xff] %v16983_v15  ;;  %v4456_v33 = vpack.c.bf16 %v4448_v35, %v4447_v45  ;;  %v13027_v41 = vpop.f32.mrf.mxu0  ;;  %13215 = vmatprep.mubr.msk.bf16.mxu0 %vm506_vm2, %v4900_v61  ;;  %v5110_v35 = vpack.c.bf16 %v5095_v32, %v5094_v19  ;;  %v4889_v15 = vmul.f32 %v16943_v58, %v16977_v12 }
 0x20e   : > { %20494 = vst [vmem:[#allocation61_spill] sm:$0xff] %v16981_v62  ;;  %20497 = vst [vmem:[#allocation34_spill] sm:$0xff] %v16989_v11  ;;  %v2913_v62 = vadd.f32 %v13027_v41, %v16763_v21  ;;  %v13045_v45 = vpop.f32.mrf.mxu1  ;;  %v5096_v61 = vmul.f32 %v20461_v51, %v16786_v20  ;;  %v17012_v21 = vmul.f32 %v16993_v29, %v16989_v11  ;;  %v17028_v11 = vld [vmem:[#allocation3 + $0x49] sm:$0xff] }
 0x20f   : > { %20500 = vst [vmem:[#allocation57_spill] sm:$0xff] %v16998_v55  ;;  %13204 = vmatmul.mubr.msk.bf16.gmra.mxu1 %vm506_vm2, %v4456_v33  ;;  %v2904_v57 = vpop.f32.mrf.mxu0  ;;  %v17016_v32 = vmul.f32 %v16979_v43, %v16991_v34  ;;  %v4888_v39 = vmul.f32 %v16949_v50, %v16998_v55  ;;  %v5098_v29 = vmul.f32 %v20465_v42, %v16828_v14  ;;  %v17030_v43 = vld [vmem:[#allocation3 + $0x51] sm:$0xff]  ;;  %v14035_v55 = vld [vmem:[%s20016_s8 + $0x90] sm:$0xff]   ;;  %v17040_v34 = vpop.permute.xlu0 %4846 }
 0x210   : > { %v17018_v41 = vadd.f32 %v13045_v45, %v2913_v62  ;;  %v2905_v19 = vadd.f32 %v2904_v57, %v16775_v60  ;;  %v3149_v33 = vpop.f32.mrf.mxu1  ;;  %13239 = vmatprep.mubr.msk.bf16.mxu1 %vm506_vm2, %v5110_v35  ;;  %v17032_v62 = vpop.permute.xlu1 %4851  ;;  %v4901_v35 = vpack.c.bf16 %v4887_v49, %v4886_v27  ;;  %20504 = vst [vmem:[#allocation19_spill] sm:$0xff] %v17040_v34 }
 0x211   : > { %v13028_v58 = vpop.f32.mrf.mxu0  ;;  %20502 = vst [vmem:[#allocation16_spill] sm:$0xff] %v17032_v62  ;;  %v5111_v12 = vpack.c.bf16 %v5097_v28, %v5096_v61  ;;  %v5112_v17 = vpack.c.bf16 %v5099_v24, %v5098_v29  ;;  %v4903_v5 = vpack.c.bf16 %v17016_v32, %v17012_v21  ;;  %v4893_v28 = vmul.f32 %v17032_v62, %v17030_v43 }
 0x212   : > { %20501 = vst [vmem:[#allocation40_spill] sm:$0xff] %v17018_v41  ;;  %v17034_v60 = vadd.f32 %v3149_v33, %v2905_v19  ;;  %v2916_v57 = vadd.f32 %v13028_v58, %v16790_v44  ;;  %v13046_v45 = vpop.f32.mrf.mxu1  ;;  %v4902_v41 = vpack.c.bf16 %v4889_v15, %v4888_v39  ;;  %v17048_v19 = vmul.f32 %v20496_v59, %v16786_v20  ;;  %v14036_v20 = vld [vmem:[%s20016_s8 + $0xb0] sm:$0xff]  }
 0x213   : > { %v17042_v50 = vpop.f32.mrf.mxu0  ;;  %v4892_v39 = vmul.f32 %v17040_v34, %v17028_v11  ;;  %v17061_v24 = vmul.f32 %v20488_v37, %v16777_v54  ;;  %v17070_v59 = vmul.f32 %v20461_v51, %v16828_v14  ;;  %v17074_v29 = vmul.f32 %v20464_v10, %v16844_v53  ;;  %v14037_v51 = vld [vmem:[%s20016_s8 + $0x88] sm:$0xff]   ;;  %v17116_v32 = vpop.permute.xlu0 %4856 }
 0x214   : > { %20503 = vst [vmem:[#allocation64_spill] sm:$0xff] %v17034_v60  ;;  %v17050_v44 = vadd.f32 %v13046_v45, %v2916_v57  ;;  %v17052_v58 = vpop.f32.mrf.mxu1  ;;  %13216 = vmatmul.mubr.msk.bf16.vlgmr.msra.gmra.mxu0 %vm506_vm2, %v4901_v35  ;;  %v17078_v54 = vmul.f32 %v20465_v42, %v16848_v36  ;;  %v17090_v10 = vmul.f32 %v20466_v0, %v16840_v8  ;;  %v17107_v0 = vpop.permute.xlu1 %4861  ;;  %v14038_v35 = vld [vmem:[%s20016_s8 + $0xa8] sm:$0xff]  }
 0x215   : > { %v13031_v15 = vpop.f32.mrf.mxu0  ;;  %13219 = vmatprep.mubr.msk.bf16.mxu0 %vm506_vm2, %v4902_v41  ;;  %13256 = vmatpush3.bf16.msra.mxu0 %v16893_v26  ;;  %v5100_v26 = vmul.f32 %v16672_v56, %v16848_v36  ;;  %v17097_v53 = vmul.f32 %v16672_v56, %v16888_v40  ;;  %v17101_v36 = vmul.f32 %v16666_v4, %v16907_v13 }
 0x216   : > { %20505 = vst [vmem:[#allocation51_spill] sm:$0xff] %v17050_v44  ;;  %v2929_v37 = vadd.f32 %v13031_v15, %v16826_v46  ;;  %v13049_v27 = vpop.f32.mrf.mxu1  ;;  %13257 = vmatprep.subr.bf16.mxu0 %v14035_v55  ;;  %v17105_v49 = vmul.f32 %v16700_v7, %v16911_v38  ;;  %v5103_v33 = vmul.f32 %v16694_v47, %v16907_v13  ;;  %v14039_v13 = vld [vmem:[%s20016_s8 + $0x80] sm:$0xff]  }
 0x217   : > { %13240 = vmatmul.mubr.msk.bf16.vlgmr.msra.gmra.mxu1 %vm506_vm2, %v5111_v12  ;;  %v2920_v42 = vpop.f32.mrf.mxu0  ;;  %v5102_v57 = vmul.f32 %v16700_v7, %v16888_v40  ;;  %v5104_v56 = vmul.f32 %v16733_v3, %v16911_v38  ;;  %v5105_v38 = vmul.f32 %v16726_v22, %v16903_v48  ;;  %v5499_v60 = vmul.f32 %v16850_v25, %v16975_v6 }
 0x218   : > { %v17109_v61 = vadd.f32 %v13049_v27, %v2929_v37  ;;  %v2921_v12 = vadd.f32 %v2920_v42, %v16837_v16  ;;  %v3165_v21 = vpop.f32.mrf.mxu1  ;;  %13243 = vmatprep.mubr.msk.bf16.mxu1 %vm506_vm2, %v5112_v17  ;;  %13280 = vmatpush3.bf16.msra.mxu1 %v16925_v2  ;;  %v17124_v16 = vmul.f32 %v16694_v47, %v16903_v48  ;;  %v17147_v27 = vld [vmem:[#allocation3 + $0x59] sm:$0xff]  ;;  %v17149_v42 = vld [vmem:[#allocation3 + $0x61] sm:$0xff] }
 0x219   : > { %v13032_v41 = vpop.f32.mrf.mxu0  ;;  %13258 = vmatpush3.bf16.msra.mxu0 %v14035_v55  ;;  %13281 = vmatprep.subr.bf16.mxu1 %v14036_v20  ;;  %v17137_v55 = vmul.f32 %v16733_v3, %v16946_v52  ;;  %v17141_v47 = vmul.f32 %v16726_v22, %v16958_v30  ;;  %v5101_v37 = vmul.f32 %v16666_v4, %v16840_v8  ;;  %v17178_v4 = vld [vmem:[#allocation3 + $0x69] sm:$0xff] }
 0x21a   : > { %20506 = vst [vmem:[#allocation33_spill] sm:$0xff] %v17109_v61  ;;  %v17126_v17 = vadd.f32 %v3165_v21, %v2921_v12  ;;  %v2932_v2 = vadd.f32 %v13032_v41, %v16854_v1  ;;  %v13050_v45 = vpop.f32.mrf.mxu1  ;;  %13259 = vmatprep.subr.bf16.mxu0 %v14037_v51  ;;  %v4904_v1 = vpack.c.bf16 %v4893_v28, %v4892_v39  ;;  %v17160_v39 = vld [vmem:[#allocation3 + $0x71] sm:$0xff] }
 0x21b   : > { %20508 = vst [vmem:[#allocation38_spill] sm:$0xff] %v17137_v55  ;;  %20509 = vst [vmem:[#allocation63_spill] sm:$0xff] %v17141_v47  ;;  %v17143_v15 = vpop.f32.mrf.mxu0  ;;  %v5113_v28 = vpack.c.bf16 %v5101_v37, %v5100_v26  ;;  %v5114_v7 = vpack.c.bf16 %v5103_v33, %v5102_v57  ;;  %v4894_v40 = vmul.f32 %v17116_v32, %v17147_v27  ;;  %v17183_v26 = vld [vmem:[%s20016_s8 + $0xd8] sm:$0xff]  }
 0x21c   : > { %20507 = vst [vmem:[#allocation58_spill] sm:$0xff] %v17126_v17  ;;  %v17153_v21 = vadd.f32 %v13050_v45, %v2932_v2  ;;  %v17155_v41 = vpop.f32.mrf.mxu1  ;;  %13220 = vmatmul.mubr.msk.bf16.gmra.mxu0 %vm506_vm2, %v4903_v5  ;;  %13282 = vmatpush3.bf16.msra.mxu1 %v14036_v20  ;;  %v14040_v2 = vld [vmem:[%s20016_s8 + $0xa0] sm:$0xff]   ;;  %v17170_v5 = vpop.permute.xlu1 %4871  ;;  %v4895_v20 = vmul.f32 %v17107_v0, %v17149_v42 }
 0x21d   : > { %20511 = vst [vmem:[#allocation37_spill] sm:$0xff] %v17155_v41  ;;  %v17164_v8 = vpop.f32.mrf.mxu0  ;;  %13223 = vmatprep.mubr.msk.bf16.mxu0 %vm506_vm2, %v4904_v1  ;;  %13260 = vmatpush3.bf16.msra.mxu0 %v14037_v51  ;;  %20512 = vst [vmem:[#allocation36_spill] sm:$0xff] %v17170_v5  ;;  %v17185_v51 = vpop.permute.xlu0 %4866  ;;  %v4897_v57 = vmul.f32 %v17170_v5, %v17160_v39  ;;  %v20519_v41 = vld [vmem:[#allocation55_spill] sm:$0xff] }
 0x21e   : > { %20510 = vst [vmem:[#allocation14_spill] sm:$0xff] %v17153_v21  ;;  %v17172_v45 = vpop.f32.mrf.mxu1  ;;  %13283 = vmatprep.subr.bf16.mxu1 %v14038_v35  ;;  %13261 = vmatprep.subr.bf16.mxu0 %v14039_v13  ;;  %20513 = vst [vmem:[#allocation20_spill] sm:$0xff] %v17185_v51  ;;  %v4896_v12 = vmul.f32 %v17185_v51, %v17178_v4  ;;  %v4905_v14 = vpack.c.bf16 %v4895_v20, %v4894_v40 }
 0x21f   : > { %13244 = vmatmul.mubr.msk.bf16.gmra.mxu1 %vm506_vm2, %v5113_v28  ;;  %v17188_v33 = vpop.f32.mrf.mxu0  ;;  %v17204_v28 = vld [vmem:[%s20016_s8 + $0xf8] sm:$0xff]  }
 0x220   : > { %v17192_v1 = vpop.f32.mrf.mxu1  ;;  %13247 = vmatprep.mubr.msk.bf16.mxu1 %vm506_vm2, %v5114_v7  ;;  %13284 = vmatpush3.bf16.msra.mxu1 %v14038_v35  ;;  %v5107_v35 = vmul.f32 %v16758_v9, %v16958_v30  ;;  %v17210_v7 = vld [vmem:[#allocation3 + $0x79] sm:$0xff]  ;;  %v4906_v3 = vpack.c.bf16 %v4897_v57, %v4896_v12  ;;  %v17219_v17 = vpop.permute.xlu1 %4881  ;;  %v5106_v30 = vmul.f32 %v16767_v31, %v16946_v52  ;;  %v17242_v57 = vld [vmem:[#allocation3 + $0x87] sm:$0xff] }
 0x221   : > { %v17195_v37 = vpop.f32.mrf.mxu0  ;;  %13262 = vmatpush3.bf16.msra.mxu0 %v14039_v13  ;;  %13285 = vmatprep.subr.bf16.mxu1 %v14040_v2  ;;  %v17217_v13 = vld [vmem:[#allocation3 + $0x81] sm:$0xff]  ;;  %20514 = vst [vmem:[#allocation17_spill] sm:$0xff] %v17219_v17  ;;  %v17226_v40 = vpop.permute.xlu0 %4876  ;;  %v5115_v12 = vpack.c.bf16 %v5105_v38, %v5104_v56  ;;  %v17234_v22 = vmul.f32 %v17116_v32, %v17210_v7 }
 0x222   : > { %v17206_v46 = vpop.f32.mrf.mxu1  ;;  %13303 = vmatprep.subr.bf16.mxu0 %v17183_v26  ;;  %v4898_v52 = vmul.f32 %v17226_v40, %v17210_v7  ;;  %v17246_v56 = vmul.f32 %v17107_v0, %v17217_v13  ;;  %v5108_v44 = vmul.f32 %v17242_v57, %v16814_v63 }
 0x223   : > { %v17213_v21 = vpop.f32.mrf.mxu0  ;;  %20515 = vst [vmem:[#allocation42_spill] sm:$0xff] %v17234_v22 }
 0x224   : > { %v17221_v61 = vpop.f32.mrf.mxu1  ;;  %13224 = vmatmul.mubr.msk.bf16.gmra.mxu0 %vm506_vm2, %v4905_v14  ;;  %13286 = vmatpush3.bf16.msra.mxu1 %v14040_v2  ;;  %v5116_v14 = vpack.c.bf16 %v5107_v35, %v5106_v30  ;;  %v4899_v2 = vmul.f32 %v17219_v17, %v17217_v13  ;;  %20516 = vst [vmem:[#allocation46_spill] sm:$0xff] %v17246_v56  ;;  %v17254_v35 = vld [vmem:[#allocation3 + $0x8f] sm:$0xff] }
 0x225   : > { %v17228_v20 = vpop.f32.mrf.mxu0  ;;  %13227 = vmatprep.mubr.msk.bf16.mxu0 %vm506_vm2, %v4906_v3  ;;  %13327 = vmatprep.subr.bf16.mxu1 %v17204_v28  ;;  %v20522_v56 = vld [vmem:[#allocation65_spill] sm:$0xff] }
 0x226   : > { %v17236_v48 = vpop.f32.mrf.mxu1  ;;  %v4907_v47 = vpack.c.bf16 %v4899_v2, %v4898_v52 }
 0x227   : > { %13248 = vmatmul.mubr.msk.bf16.gmra.mxu1 %vm506_vm2, %v5115_v12  ;;  %v17249_v3 = vpop.f32.mrf.mxu0  ;;  %v5498_v12 = vmul.f32 %v16864_v23, %v16971_v18 }
 0x228   : > { %v17251_v38 = vpop.f32.mrf.mxu1  ;;  %13251 = vmatprep.mubr.msk.bf16.mxu1 %vm506_vm2, %v5116_v14 }
 0x229   : > { %20517 = vst [vmem:[#allocation28_spill] sm:$0xff] %v17251_v38  ;;  %v17258_v17 = vpop.f32.mrf.mxu0  ;;  %v5109_v38 = vmul.f32 %v17254_v35, %v20519_v41  ;;  %v5514_v18 = vpack.c.bf16 %v5499_v60, %v5498_v12  ;;  %v20532_v60 = vld [vmem:[#allocation53_spill] sm:$0xff] }
 0x22a   : > { %v17262_v55 = vpop.f32.mrf.mxu1 }
 0x22b   : > { %20518 = vst [vmem:[#allocation30_spill] sm:$0xff] %v17262_v55  ;;  %v17268_v14 = vpop.f32.mrf.mxu0  ;;  %v5117_v52 = vpack.c.bf16 %v5109_v38, %v5108_v44  ;;  %v20530_v44 = vld [vmem:[#allocation54_spill] sm:$0xff] }
 0x22c   : > { %v17272_v30 = vpop.f32.mrf.mxu1  ;;  %13228 = vmatmul.mubr.msk.bf16.gmra.mxu0 %vm506_vm2, %v4907_v47  ;;  %v20527_v47 = vld [vmem:[#allocation21_spill] sm:$0xff] }
 0x22d   : > { %20520 = vst [vmem:[#allocation66_spill] sm:$0xff] %v17272_v30  ;;  %v17275_v22 = vpop.f32.mrf.mxu0  ;;  %13263 = vmatprep.mubr.msk.bf16.mxu0 %vm506_vm2, %v20522_v56  ;;  %v20528_v30 = vld [vmem:[#allocation44_spill] sm:$0xff]  ;;  %v20529_v56 = vld [vmem:[#allocation34_spill] sm:$0xff] }
 0x22e   : > { %20521 = vst [vmem:[#allocation67_spill] sm:$0xff] %v17275_v22  ;;  %v17279_v2 = vpop.f32.mrf.mxu1  ;;  %v5501_v22 = vmul.f32 %v20528_v30, %v20527_v47  ;;  %v5502_v38 = vmul.f32 %v20530_v44, %v20529_v56  ;;  %v20536_v47 = vld [vmem:[#allocation25_spill] sm:$0xff]  ;;  %v20537_v56 = vld [vmem:[#allocation43_spill] sm:$0xff]  ;;  %v14046_v44 = vld [vmem:[%s20016_s8 + $0xf0] sm:$0xff]  }
 0x22f   : > { %20523 = vst [vmem:[#allocation65_spill] sm:$0xff] %v17279_v2  ;;  %13252 = vmatmul.mubr.msk.bf16.gmra.mxu1 %vm506_vm2, %v5117_v52  ;;  %v17282_v6 = vpop.f32.mrf.mxu0  ;;  %v20531_v2 = vld [vmem:[#allocation32_spill] sm:$0xff] }
 0x230   : > { %20524 = vst [vmem:[#allocation68_spill] sm:$0xff] %v17282_v6  ;;  %v17284_v63 = vpop.f32.mrf.mxu1  ;;  %13287 = vmatprep.mubr.msk.bf16.mxu1 %vm506_vm2, %v5514_v18  ;;  %v5503_v12 = vmul.f32 %v20532_v60, %v20531_v2  ;;  %v14042_v52 = vld [vmem:[%s20016_s8 + $0xd0] sm:$0xff]   ;;  %v20533_v18 = vld [vmem:[#allocation57_spill] sm:$0xff] }
 0x231   : > { %20525 = vst [vmem:[#allocation69_spill] sm:$0xff] %v17284_v63  ;;  %v17287_v41 = vpop.f32.mrf.mxu0  ;;  %v20534_v6 = vld [vmem:[#allocation24_spill] sm:$0xff] }
 0x232   : > { %20526 = vst [vmem:[#allocation70_spill] sm:$0xff] %v17287_v41  ;;  %v17291_v55 = vpop.f32.mrf.mxu1  ;;  %v5500_v41 = vmul.f32 %v20534_v6, %v20533_v18  ;;  %v5516_v18 = vpack.c.bf16 %v5503_v12, %v5502_v38  ;;  %v5506_v12 = vmul.f32 %v17040_v34, %v17147_v27  ;;  %v20547_v27 = vld [vmem:[#allocation62_spill] sm:$0xff]  ;;  %v20548_v34 = vld [vmem:[#allocation48_spill] sm:$0xff] }
 0x233   : > { %v17300_v63 = vpop.f32.mrf.mxu0 }
 0x234   : > { %v17304_v25 = vpop.f32.mrf.mxu1  ;;  %13264 = vmatmul.mubr.msk.bf16.vlgmr.msra.gmra.mxu0 %vm506_vm2, %v20536_v47  ;;  %v5515_v2 = vpack.c.bf16 %v5501_v22, %v5500_v41  ;;  %v14043_v47 = vld [vmem:[%s20016_s8 + $0xc8] sm:$0xff]  }
 0x235   : > { %20535 = vst [vmem:[#allocation21_spill] sm:$0xff] %v17304_v25  ;;  %v17308_v30 = vpop.f32.mrf.mxu0  ;;  %13267 = vmatprep.mubr.msk.bf16.mxu0 %vm506_vm2, %v20537_v56  ;;  %13304 = vmatpush3.bf16.msra.mxu0 %v17183_v26  ;;  %v20542_v26 = vld [vmem:[#allocation31_spill] sm:$0xff] }
 0x236   : > { %v17316_v60 = vpop.f32.mrf.mxu1  ;;  %13305 = vmatprep.subr.bf16.mxu0 %v14042_v52  ;;  %v5505_v22 = vmul.f32 %v20542_v26, %v17030_v43 }
 0x237   : > { %20538 = vst [vmem:[#allocation34_spill] sm:$0xff] %v17316_v60  ;;  %13288 = vmatmul.mubr.msk.bf16.vlgmr.msra.gmra.mxu1 %vm506_vm2, %v5515_v2  ;;  %v17322_v6 = vpop.f32.mrf.mxu0  ;;  %v5507_v2 = vmul.f32 %v17032_v62, %v17149_v42 }
 0x238   : > { %20539 = vst [vmem:[#allocation32_spill] sm:$0xff] %v17322_v6  ;;  %v17324_v56 = vpop.f32.mrf.mxu1  ;;  %13291 = vmatprep.mubr.msk.bf16.mxu1 %vm506_vm2, %v5516_v18  ;;  %13328 = vmatpush3.bf16.msra.mxu1 %v17204_v28  ;;  %v14044_v28 = vld [vmem:[%s20016_s8 + $0xc0] sm:$0xff]   ;;  %v14047_v18 = vld [vmem:[%s20016_s8 + $0xe8] sm:$0xff]   ;;  %v20559_v6 = vld [vmem:[#allocation45_spill] sm:$0xff] }
 0x239   : > { %20540 = vst [vmem:[#allocation57_spill] sm:$0xff] %v17324_v56  ;;  %v17328_v41 = vpop.f32.mrf.mxu0  ;;  %13306 = vmatpush3.bf16.msra.mxu0 %v14042_v52  ;;  %13329 = vmatprep.subr.bf16.mxu1 %v14046_v44  ;;  %v20545_v52 = vld [vmem:[#allocation35_spill] sm:$0xff] }
 0x23a   : > { %20541 = vst [vmem:[#allocation25_spill] sm:$0xff] %v17328_v41  ;;  %v17332_v38 = vpop.f32.mrf.mxu1  ;;  %13307 = vmatprep.subr.bf16.mxu0 %v14043_v47  ;;  %v5504_v26 = vmul.f32 %v20545_v52, %v17028_v11  ;;  %v5518_v11 = vpack.c.bf16 %v5507_v2, %v5506_v12  ;;  %v5510_v12 = vmul.f32 %v17185_v51, %v17210_v7  ;;  %v20551_v52 = vld [vmem:[#allocation60_spill] sm:$0xff]  ;;  %v20558_v41 = vld [vmem:[#allocation26_spill] sm:$0xff] }
 0x23b   : > { %20543 = vst [vmem:[#allocation43_spill] sm:$0xff] %v17332_v38  ;;  %v17344_v43 = vpop.f32.mrf.mxu0  ;;  %v5511_v2 = vmul.f32 %v17170_v5, %v17217_v13 }
 0x23c   : > { %20544 = vst [vmem:[#allocation71_spill] sm:$0xff] %v17344_v43  ;;  %v17348_v38 = vpop.f32.mrf.mxu1  ;;  %13268 = vmatmul.mubr.msk.bf16.gmra.mxu0 %vm506_vm2, %v20547_v27  ;;  %13330 = vmatpush3.bf16.msra.mxu1 %v14046_v44  ;;  %v5517_v62 = vpack.c.bf16 %v5505_v22, %v5504_v26  ;;  %v14049_v43 = vld [vmem:[%s20016_s8 + $0xe0] sm:$0xff]   ;;  %v14048_v44 = vld [vmem:[%s20016_s8 + $0x118] sm:$0xff]   ;;  %v5509_v26 = vmul.f32 %v17107_v0, %v17160_v39 }
 0x23d   : > { %20546 = vst [vmem:[#allocation72_spill] sm:$0xff] %v17348_v38  ;;  %v17352_v42 = vpop.f32.mrf.mxu0  ;;  %13271 = vmatprep.mubr.msk.bf16.mxu0 %vm506_vm2, %v20548_v34  ;;  %13308 = vmatpush3.bf16.msra.mxu0 %v14043_v47  ;;  %v17377_v22 = vld [vmem:[%s20016_s8 + $0x38] sm:$0xff]   ;;  %v5508_v0 = vmul.f32 %v17116_v32, %v17178_v4  ;;  %v5520_v51 = vpack.c.bf16 %v5511_v2, %v5510_v12  ;;  %v5303_v4 = vld [vmem:[#allocation3 + $0x90] sm:$0xff] }
 0x23e   : > { %v17359_v56 = vpop.f32.mrf.mxu1  ;;  %13309 = vmatprep.subr.bf16.mxu0 %v14044_v28  ;;  %13331 = vmatprep.subr.bf16.mxu1 %v14047_v18  ;;  %20549 = vst [vmem:[#allocation62_spill] sm:$0xff] %v17377_v22  ;;  %v20553_v2 = vpack.c.bf16 %v17061_v24, %v17048_v19  ;;  %v14050_v19 = vld [vmem:[%s20016_s8 + $0x110] sm:$0xff]  }
 0x23f   : > { %13292 = vmatmul.mubr.msk.bf16.gmra.mxu1 %vm506_vm2, %v5517_v62  ;;  %v17365_v27 = vpop.f32.mrf.mxu0  ;;  %v5519_v7 = vpack.c.bf16 %v5509_v26, %v5508_v0 }
 0x240   : > { %v17367_v34 = vpop.f32.mrf.mxu1  ;;  %13295 = vmatprep.mubr.msk.bf16.mxu1 %vm506_vm2, %v5518_v11  ;;  %13332 = vmatpush3.bf16.msra.mxu1 %v14047_v18 }
 0x241   : > { %v17370_v47 = vpop.f32.mrf.mxu0  ;;  %13310 = vmatpush3.bf16.msra.mxu0 %v14044_v28  ;;  %13333 = vmatprep.subr.bf16.mxu1 %v14049_v43  ;;  %v20550_v28 = vld [vmem:[#allocation49_spill] sm:$0xff] }
 0x242   : > { %v17379_v62 = vpop.f32.mrf.mxu1  ;;  %13351 = vmatprep.subr.bf16.mxu0 %v14048_v44 }
 0x243   : > { %v17385_v18 = vpop.f32.mrf.mxu0 }
 0x244   : > { %v17389_v39 = vpop.f32.mrf.mxu1  ;;  %13272 = vmatmul.mubr.msk.bf16.gmra.mxu0 %vm506_vm2, %v20550_v28  ;;  %13334 = vmatpush3.bf16.msra.mxu1 %v14049_v43  ;;  %v5302_v28 = vld [vmem:[#allocation3 + $0x88] sm:$0xff] }
 0x245   : > { %v17393_v11 = vpop.f32.mrf.mxu0  ;;  %13275 = vmatprep.mubr.msk.bf16.mxu0 %vm506_vm2, %v20551_v52  ;;  %13375 = vmatprep.subr.bf16.mxu1 %v17377_v22  ;;  %v17410_v52 = vpack.c.bf16 %v5303_v4, %v5302_v28  ;;  %v20557_v22 = vld [vmem:[#allocation15_spill] sm:$0xff] }
 0x246   : > { %v17398_v13 = vpop.f32.mrf.mxu1  ;;  %v2876_v60 = vadd.f32 %v20558_v41, %v20557_v22 }
 0x247   : > { %13296 = vmatmul.mubr.msk.bf16.gmra.mxu1 %vm506_vm2, %v5519_v7  ;;  %v17401_v32 = vpop.f32.mrf.mxu0  ;;  %20552 = vst [vmem:[#allocation48_spill] sm:$0xff] %v17410_v52 }
 0x248   : > { %v17403_v5 = vpop.f32.mrf.mxu1  ;;  %13299 = vmatprep.mubr.msk.bf16.mxu1 %vm506_vm2, %v5520_v51 }
 0x249   : > { %v17406_v43 = vpop.f32.mrf.mxu0 }
 0x24a   : > { %v17408_v38 = vpop.f32.mrf.mxu1 }
 0x24b   : > { %v17412_v26 = vpop.f32.mrf.mxu0 }
 0x24c   : > { %v17414_v0 = vpop.f32.mrf.mxu1  ;;  %13276 = vmatmul.mubr.msk.bf16.gmra.mxu0 %vm506_vm2, %v17410_v52  ;;  %v3363_v52 = vadd.f32 %v17164_v8, %v20559_v6  ;;  %v20565_v8 = vpack.c.bf16 %v17090_v10, %v17078_v54  ;;  %v20566_v6 = vld [vmem:[#allocation27_spill] sm:$0xff]  ;;  %v20570_v10 = vld [vmem:[#allocation56_spill] sm:$0xff] }
 0x24d   : > { %v17418_v12 = vpop.f32.mrf.mxu0  ;;  %13311 = vmatprep.mubr.msk.bf16.mxu0 %vm506_vm2, %v20553_v2  ;;  %v20562_v2 = vld [vmem:[#allocation47_spill] sm:$0xff]  ;;  %v3181_v22 = vadd.f32 %v20566_v6, %v2876_v60  ;;  %v17483_v6 = vld [vmem:[#allocation3 + $0x30] sm:$0xff] }
 0x24e   : > { %v17424_v51 = vpop.f32.mrf.mxu1  ;;  %v14051_v54 = vld [vmem:[%s20016_s8 + $0x108] sm:$0xff]  }
 0x24f   : > { %20554 = vst [vmem:[#allocation49_spill] sm:$0xff] %v17424_v51  ;;  %v17426_v7 = vpop.f32.mrf.mxu0  ;;  %v3361_v51 = vadd.f32 %v17188_v33, %v20562_v2  ;;  %v3528_v2 = vadd.f32 %v17172_v45, %v3363_v52 }
 0x250   : > { %v17428_v4 = vpop.f32.mrf.mxu1 }
 0x251   : > { %20555 = vst [vmem:[#allocation60_spill] sm:$0xff] %v17428_v4  ;;  %v17430_v28 = vpop.f32.mrf.mxu0  ;;  %v3526_v60 = vadd.f32 %v17192_v1, %v3361_v51  ;;  %v3709_v45 = vadd.f32 %v17352_v42, %v3528_v2  ;;  %v17492_v42 = vmul.f32 %v17242_v57, %v16767_v31  ;;  %v17508_v2 = vmul.f32 %v17254_v35, %v16758_v9  ;;  %v17514_v57 = vld [vmem:[#allocation3 + $0x28] sm:$0xff] }
 0x252   : > { %20556 = vst [vmem:[#allocation73_spill] sm:$0xff] %v17430_v28  ;;  %v17436_v25 = vpop.f32.mrf.mxu1  ;;  %v20564_v28 = vpack.c.bf16 %v17074_v29, %v17070_v59  ;;  %v20574_v9 = vpack.c.bf16 %v17101_v36, %v17097_v53  ;;  %v6097_v53 = vld [vmem:[#allocation3 + $0x31] sm:$0xff] }
 0x253   : > { %20560 = vst [vmem:[#allocation15_spill] sm:$0xff] %v17436_v25  ;;  %v17441_v24 = vpop.f32.mrf.mxu0  ;;  %v20567_v25 = vld [vmem:[#allocation52_spill] sm:$0xff] }
 0x254   : > { %20561 = vst [vmem:[#allocation26_spill] sm:$0xff] %v17441_v24  ;;  %v17445_v4 = vpop.f32.mrf.mxu1  ;;  %13312 = vmatmul.mubr.msk.bf16.vlgmr.msra.gmra.mxu0 %vm506_vm2, %v20564_v28  ;;  %v20568_v24 = vld [vmem:[#allocation18_spill] sm:$0xff] }
 0x255   : > { %20563 = vst [vmem:[#allocation45_spill] sm:$0xff] %v17445_v4  ;;  %v17451_v41 = vpop.f32.mrf.mxu0  ;;  %13315 = vmatprep.mubr.msk.bf16.mxu0 %vm506_vm2, %v20565_v8  ;;  %13352 = vmatpush3.bf16.msra.mxu0 %v14048_v44  ;;  %v2892_v33 = vadd.f32 %v20568_v24, %v20567_v25  ;;  %v20569_v4 = vld [vmem:[#allocation50_spill] sm:$0xff]  ;;  %v2908_v44 = vadd.f32 %v17042_v50, %v20570_v10  ;;  %v20572_v50 = vld [vmem:[#allocation39_spill] sm:$0xff] }
 0x256   : > { %v3364_v59 = vadd.f32 %v17195_v37, %v20569_v4  ;;  %v17463_v29 = vpop.f32.mrf.mxu1  ;;  %13353 = vmatprep.subr.bf16.mxu0 %v14050_v19  ;;  %v3362_v25 = vadd.f32 %v17213_v21, %v3181_v22  ;;  %v17477_v37 = vld [vmem:[#allocation3 + $0x89] sm:$0xff]  ;;  %v3707_v21 = vadd.f32 %v17365_v27, %v3526_v60  ;;  %v17497_v22 = vpop.permute.xlu1 %6416 }
 0x257   : > { %v17470_v28 = vpop.f32.mrf.mxu0  ;;  %v20571_v4 = vld [vmem:[#allocation29_spill] sm:$0xff]  ;;  %v3185_v10 = vadd.f32 %v20572_v50, %v2892_v33  ;;  %v20573_v33 = vld [vmem:[#allocation59_spill] sm:$0xff]  ;;  %v17512_v31 = vmul.f32 %v17477_v37, %v17226_v40 }
 0x258   : > { %v17475_v52 = vpop.f32.mrf.mxu1  ;;  %v3367_v24 = vadd.f32 %v17228_v20, %v20571_v4  ;;  %v3529_v1 = vadd.f32 %v17206_v46, %v3364_v59  ;;  %v14053_v20 = vld [vmem:[%s20016_s8 + $0x100] sm:$0xff]   ;;  %v3365_v46 = vadd.f32 %v17249_v3, %v20573_v33  ;;  %v17516_v59 = vpop.permute.xlu0 %6411  ;;  %v20575_v50 = vld [vmem:[#allocation23_spill] sm:$0xff]  ;;  %v3888_v36 = vadd.f32 %v17367_v34, %v3707_v21 }
 0x259   : > { %v17481_v8 = vpop.f32.mrf.mxu0  ;;  %13354 = vmatpush3.bf16.msra.mxu0 %v14050_v19  ;;  %v17500_v19 = vadd.f32 %v17052_v58, %v2908_v44  ;;  %v3527_v58 = vadd.f32 %v17221_v61, %v3362_v25  ;;  %v3890_v44 = vadd.f32 %v17359_v56, %v3709_v45  ;;  %v6096_v4 = vld [vmem:[#allocation3 + $0x29] sm:$0xff]  ;;  %v2924_v33 = vadd.f32 %v17143_v15, %v20575_v50 }
 0x25a   : > { %v17488_v51 = vpop.f32.mrf.mxu1  ;;  %13355 = vmatprep.subr.bf16.mxu0 %v14051_v54  ;;  %v3710_v3 = vadd.f32 %v17370_v47, %v3529_v1  ;;  %v3532_v61 = vadd.f32 %v17236_v48, %v3367_v24  ;;  %v20576_v25 = vld [vmem:[#allocation61_spill] sm:$0xff]  ;;  %v20577_v45 = vpack.c.bf16 %v17124_v16, %v17105_v49  ;;  %v5730_v15 = vpack.c.bf16 %v17508_v2, %v17492_v42  ;;  %v20578_v49 = vld [vmem:[#allocation28_spill] sm:$0xff]  ;;  %v17553_v34 = vld [vmem:[%s20015_s7] ss:$0 sm:$0xff] }
 0x25b   : > { %v17504_v27 = vpop.f32.mrf.mxu0  ;;  %v3368_v56 = vadd.f32 %v17258_v17, %v20576_v25  ;;  %v3708_v1 = vadd.f32 %v17385_v18, %v3527_v58  ;;  %v17545_v17 = vld [vmem:[%s20016_s8 + $0x18] sm:$0xff]   ;;  %v3530_v16 = vadd.f32 %v20578_v49, %v3365_v46  ;;  %v3366_v48 = vadd.f32 %v17268_v14, %v3185_v10  ;;  %v17562_v14 = vpop.permute.xlu1 %6426  ;;  %v20582_v50 = vld [vmem:[#allocation30_spill] sm:$0xff]  ;;  %v20583_v25 = vld [vmem:[#allocation40_spill] sm:$0xff] }
 0x25c   : > { %v17521_v60 = vpop.f32.mrf.mxu1  ;;  %13316 = vmatmul.mubr.msk.bf16.gmra.mxu0 %vm506_vm2, %v20574_v9  ;;  %v17556_v24 = vmul.f32 %v6096_v4, %v16864_v23  ;;  %v3891_v21 = vadd.f32 %v17379_v62, %v3710_v3  ;;  %20580 = vst [vmem:[#allocation47_spill] sm:$0xff] %v17562_v14  ;;  %v17571_v62 = vpop.permute.xlu0 %6421  ;;  %v20586_v49 = vld [vmem:[#allocation64_spill] sm:$0xff] }
 0x25d   : > { %v13127_v47 = vpop.f32.mrf.mxu0  ;;  %13319 = vmatprep.mubr.msk.bf16.mxu0 %vm506_vm2, %v20577_v45  ;;  %13356 = vmatpush3.bf16.msra.mxu0 %v14051_v54  ;;  %v3713_v54 = vadd.f32 %v17393_v11, %v3532_v61  ;;  %v20581_v11 = vld [vmem:[#allocation37_spill] sm:$0xff]  ;;  %v3533_v61 = vadd.f32 %v20582_v50, %v3368_v56  ;;  %v3711_v23 = vadd.f32 %v17401_v32, %v3530_v16 }
 0x25e   : > { %v4055_v9 = vadd.f32 %v13127_v47, %v3890_v44  ;;  %13357 = vmatprep.subr.bf16.mxu0 %v14053_v20  ;;  %v20579_v44 = vld [vmem:[#allocation41_spill] sm:$0xff]  ;;  %v17565_v10 = vadd.f32 %v20581_v11, %v2924_v33  ;;  %v20584_v47 = vld [vmem:[#allocation67_spill] sm:$0xff]  ;;  %v3889_v3 = vadd.f32 %v17389_v39, %v3708_v1  ;;  %v20585_v33 = vld [vmem:[#allocation66_spill] sm:$0xff] }
 0x25f   : > { %v13145_v35 = vpop.f32.mrf.mxu1  ;;  %v3990_v18 = vpop.f32.mrf.mxu0  ;;  %v17560_v46 = vmul.f32 %v6097_v53, %v20579_v44  ;;  %v3371_v45 = vadd.f32 %v20584_v47, %v20583_v25  ;;  %v3531_v56 = vadd.f32 %v20585_v33, %v3366_v48  ;;  %v3894_v32 = vadd.f32 %v17398_v13, %v3713_v54  ;;  %v20591_v48 = vld [vmem:[#allocation65_spill] sm:$0xff]  ;;  %v20592_v47 = vld [vmem:[#allocation51_spill] sm:$0xff] }
 0x260   : > { %v4236_v42 = vadd.f32 %v13145_v35, %v4055_v9  ;;  %v4053_v2 = vadd.f32 %v3990_v18, %v3888_v36  ;;  %v20587_v18 = vld [vmem:[#allocation68_spill] sm:$0xff]  ;;  %v3892_v13 = vadd.f32 %v17403_v5, %v3711_v23  ;;  %v3370_v5 = vadd.f32 %v17300_v63, %v17500_v19 }
 0x261   : > { %v4171_v58 = vpop.f32.mrf.mxu1  ;;  %v13128_v4 = vpop.f32.mrf.mxu0  ;;  %13358 = vmatpush3.bf16.msra.mxu0 %v14053_v20  ;;  %v3369_v44 = vadd.f32 %v20587_v18, %v20586_v49  ;;  %v3714_v20 = vadd.f32 %v17406_v43, %v3533_v61  ;;  %v3536_v25 = vadd.f32 %v20591_v48, %v3371_v45  ;;  %v3712_v43 = vadd.f32 %v17412_v26, %v3531_v56  ;;  %v20594_v45 = vld [vmem:[#allocation69_spill] sm:$0xff] }
 0x262   : > { %v4259_v35 = vadd.f32 %v17553_v34, %v4236_v42  ;;  %v4234_v53 = vadd.f32 %v4171_v58, %v4053_v2  ;;  %v4056_v36 = vadd.f32 %v13128_v4, %v3891_v21  ;;  %13399 = vmatprep.subr.bf16.mxu0 %v17545_v17  ;;  %v20588_v21 = vld [vmem:[#allocation63_spill] sm:$0xff]  ;;  %v20589_v58 = vld [vmem:[#allocation38_spill] sm:$0xff]  ;;  %v17601_v56 = vpop.permute.xlu0 %6861 }
 0x263   : > { %v13146_v9 = vpop.f32.mrf.mxu1  ;;  %v3993_v16 = vpop.f32.mrf.mxu0  ;;  %v20590_v50 = vpack.c.bf16 %v20588_v21, %v20589_v58  ;;  %v20593_v4 = vld [vmem:[#allocation70_spill] sm:$0xff]  ;;  %v3534_v49 = vadd.f32 %v20594_v45, %v3369_v44  ;;  %v3895_v26 = vadd.f32 %v17408_v38, %v3714_v20  ;;  %v3717_v23 = vadd.f32 %v17418_v12, %v3536_v25 }
 0x264   : > { %v4275_v11 = vmax.f32 %v4259_v35, 0.0  ;;  %v4257_v39 = vadd.f32 %v17553_v34, %v4234_v53  ;;  %v4237_v1 = vadd.f32 %v13146_v9, %v4056_v36  ;;  %v4054_v42 = vadd.f32 %v3993_v16, %v3889_v3  ;;  %v17594_v9 = vpop.permute.xlu1 %6866  ;;  %v20597_v25 = vld [vmem:[#allocation58_spill] sm:$0xff] }
 0x265   : > { %v4174_v2 = vpop.f32.mrf.mxu1  ;;  %13320 = vmatmul.mubr.msk.bf16.gmra.mxu0 %vm506_vm2, %v20590_v50  ;;  %v3372_v33 = vadd.f32 %v20593_v4, %v20592_v47  ;;  %v13131_v54 = vpop.f32.mrf.mxu0  ;;  %v3893_v38 = vadd.f32 %v17414_v0, %v3712_v43  ;;  %v3715_v12 = vadd.f32 %v17426_v7, %v3534_v49  ;;  %v20596_v50 = vld [vmem:[#allocation21_spill] sm:$0xff]  ;;  %v20602_v45 = vld [vmem:[#allocation14_spill] sm:$0xff] }
 0x266   : > { %13323 = vmatprep.mubr.msk.bf16.mxu0 %vm506_vm2, %v5730_v15  ;;  %4291 = vst.msk [vmem:[#allocation3 + $0xa8] sm:$0xff] %vm506_vm2, %v4275_v11  ;;  %v4273_v61 = vmax.f32 %v4257_v39, 0.0  ;;  %v4260_v3 = vadd.f32 %v17553_v34, %v4237_v1  ;;  %v4235_v35 = vadd.f32 %v4174_v2, %v4054_v42  ;;  %v4059_v53 = vadd.f32 %v13131_v54, %v3894_v32  ;;  %v20595_v1 = vld [vmem:[#allocation33_spill] sm:$0xff] }
 0x267   : > { %v13149_v36 = vpop.f32.mrf.mxu1  ;;  %v4006_v15 = vpop.f32.mrf.mxu0  ;;  %v3537_v44 = vadd.f32 %v17291_v55, %v3372_v33  ;;  %v3375_v63 = vadd.f32 %v17308_v30, %v20595_v1  ;;  %v3535_v48 = vadd.f32 %v20596_v50, %v3370_v5  ;;  %v20598_v55 = vld [vmem:[#allocation32_spill] sm:$0xff]  ;;  %v20599_v4 = vld [vmem:[#allocation49_spill] sm:$0xff] }
 0x268   : > { %4289 = vst.msk [vmem:[#allocation3 + $0x98] sm:$0xff] %vm506_vm2, %v4273_v61  ;;  %v4276_v18 = vmax.f32 %v4260_v3, 0.0  ;;  %v4258_v32 = vadd.f32 %v17553_v34, %v4235_v35  ;;  %v4240_v16 = vadd.f32 %v13149_v36, %v4059_v53  ;;  %v4057_v11 = vadd.f32 %v4006_v15, %v3892_v13  ;;  %v20600_v33 = vld [vmem:[#allocation73_spill] sm:$0xff]  ;;  %v17619_v35 = vpop.permute.xlu1 %6876  ;;  %v20601_v53 = vld [vmem:[#allocation34_spill] sm:$0xff] }
 0x269   : > { %v4187_v39 = vpop.f32.mrf.mxu1  ;;  %v13132_v19 = vpop.f32.mrf.mxu0  ;;  %v3373_v47 = vadd.f32 %v20598_v55, %v20597_v25  ;;  %v3898_v30 = vadd.f32 %v20599_v4, %v3717_v23  ;;  %v3718_v0 = vadd.f32 %v20600_v33, %v3537_v44  ;;  %v3540_v36 = vadd.f32 %v20601_v53, %v3375_v63  ;;  %v20603_v49 = vld [vmem:[#allocation25_spill] sm:$0xff]  ;;  %v20605_v15 = vld [vmem:[#allocation26_spill] sm:$0xff]  ;;  %v20609_v33 = vld [vmem:[#allocation43_spill] sm:$0xff] }
 0x26a   : > { %4292 = vst.msk [vmem:[#allocation3 + $0xb0] sm:$0xff] %vm506_vm2, %v4276_v18  ;;  %v4274_v20 = vmax.f32 %v4258_v32, 0.0  ;;  %v4263_v42 = vadd.f32 %v17553_v34, %v4240_v16  ;;  %v4238_v2 = vadd.f32 %v4187_v39, %v4057_v11  ;;  %v4060_v21 = vadd.f32 %v13132_v19, %v3895_v26  ;;  %v20604_v26 = vld [vmem:[#allocation60_spill] sm:$0xff]  ;;  %v17626_v16 = vpop.permute.xlu0 %6871  ;;  %v20606_v19 = vld [vmem:[#allocation57_spill] sm:$0xff] }
 0x26b   : > { %v13150_v58 = vpop.f32.mrf.mxu1  ;;  %v4009_v13 = vpop.f32.mrf.mxu0  ;;  %v3376_v5 = vadd.f32 %v20603_v49, %v20602_v45  ;;  %v3896_v23 = vadd.f32 %v20604_v26, %v3715_v12  ;;  %v3716_v18 = vadd.f32 %v20605_v15, %v3535_v48  ;;  %v3538_v63 = vadd.f32 %v20606_v19, %v3373_v47 }
 0x26c   : > { %4290 = vst.msk [vmem:[#allocation3 + $0xa0] sm:$0xff] %vm506_vm2, %v4274_v20  ;;  %v4279_v7 = vmax.f32 %v4263_v42, 0.0  ;;  %v4261_v43 = vadd.f32 %v17553_v34, %v4238_v2  ;;  %v4241_v54 = vadd.f32 %v13150_v58, %v4060_v21  ;;  %v4058_v61 = vadd.f32 %v4009_v13, %v3893_v38  ;;  %v20607_v20 = vld [vmem:[#allocation71_spill] sm:$0xff]  ;;  %v20610_v13 = vld [vmem:[#allocation45_spill] sm:$0xff]  ;;  %v17648_v49 = vpop.permute.xlu1 %6436 }
 0x26d   : > { %v4190_v3 = vpop.f32.mrf.mxu1  ;;  %v13135_v32 = vpop.f32.mrf.mxu0  ;;  %v3374_v42 = vadd.f32 %v20607_v20, %v17565_v10  ;;  %v20608_v2 = vld [vmem:[#allocation15_spill] sm:$0xff]  ;;  %v3721_v21 = vadd.f32 %v17451_v41, %v3540_v36  ;;  %v3541_v47 = vadd.f32 %v20609_v33, %v3376_v5  ;;  %v3719_v10 = vadd.f32 %v17470_v28, %v3538_v63  ;;  %v20612_v5 = vld [vmem:[#allocation72_spill] sm:$0xff]  ;;  %v20613_v20 = vld [vmem:[#allocation22_spill] sm:$0xff] }
 0x26e   : > { %4295 = vst.msk [vmem:[#allocation3 + $0xc8] sm:$0xff] %vm506_vm2, %v4279_v7  ;;  %v4277_v11 = vmax.f32 %v4261_v43, 0.0  ;;  %v4264_v39 = vadd.f32 %v17553_v34, %v4241_v54  ;;  %v4239_v44 = vadd.f32 %v4190_v3, %v4058_v61  ;;  %v4063_v1 = vadd.f32 %v13135_v32, %v3898_v30  ;;  %v20611_v43 = vld [vmem:[#allocation17_spill] sm:$0xff]  ;;  %v5905_v63 = vld [vmem:[#allocation3 + $0x40] sm:$0xff] }
 0x26f   : > { %v13153_v38 = vpop.f32.mrf.mxu1  ;;  %v3899_v12 = vadd.f32 %v20608_v2, %v3718_v0  ;;  %v4022_v58 = vpop.f32.mrf.mxu0  ;;  %v17635_v50 = vld [vmem:[#allocation3 + $0x91] sm:$0xff]  ;;  %v3897_v7 = vadd.f32 %v20610_v13, %v3716_v18  ;;  %v3539_v26 = vadd.f32 %v20612_v5, %v3374_v42  ;;  %v3902_v28 = vadd.f32 %v17463_v29, %v3721_v21 }
 0x270   : > { %4293 = vst.msk [vmem:[#allocation3 + $0xb8] sm:$0xff] %vm506_vm2, %v4277_v11  ;;  %v4280_v48 = vmax.f32 %v4264_v39, 0.0  ;;  %v4262_v25 = vadd.f32 %v17553_v34, %v4239_v44  ;;  %v4244_v55 = vadd.f32 %v13153_v38, %v4063_v1  ;;  %v4061_v4 = vadd.f32 %v4022_v58, %v3896_v23  ;;  %v17646_v45 = vld [vmem:[#allocation3 + $0x97] sm:$0xff]  ;;  %v17656_v11 = vpop.permute.xlu0 %6431 }
 0x271   : > { %v4203_v30 = vpop.f32.mrf.mxu1  ;;  %v13136_v0 = vpop.f32.mrf.mxu0  ;;  %v5513_v41 = vmul.f32 %v17635_v50, %v20611_v43  ;;  %v3722_v23 = vadd.f32 %v17481_v8, %v3541_v47  ;;  %v3900_v29 = vadd.f32 %v17475_v52, %v3719_v10  ;;  %v3720_v8 = vadd.f32 %v17504_v27, %v3539_v26  ;;  %v20614_v2 = vld [vmem:[#allocation55_spill] sm:$0xff]  ;;  %v5906_v10 = vld [vmem:[#allocation3 + $0x48] sm:$0xff] }
 0x272   : > { %4296 = vst.msk [vmem:[#allocation3 + $0xd0] sm:$0xff] %vm506_vm2, %v4280_v48  ;;  %v4278_v54 = vmax.f32 %v4262_v25, 0.0  ;;  %v4267_v61 = vadd.f32 %v17553_v34, %v4244_v55  ;;  %v4242_v3 = vadd.f32 %v4203_v30, %v4061_v4  ;;  %v4064_v53 = vadd.f32 %v13136_v0, %v3899_v12  ;;  %v5904_v27 = vld [vmem:[#allocation3 + $0x38] sm:$0xff]  ;;  %v5907_v4 = vld [vmem:[#allocation3 + $0x50] sm:$0xff] }
 0x273   : > { %v13154_v36 = vpop.f32.mrf.mxu1  ;;  %v4025_v15 = vpop.f32.mrf.mxu0  ;;  %v5521_v18 = vpack.c.bf16 %v5513_v41, %v17512_v31  ;;  %v17654_v32 = vld [vmem:[#allocation3 + $0x9f] sm:$0xff]  ;;  %v5722_v42 = vmul.f32 %v17646_v45, %v20613_v20  ;;  %v20615_v52 = vpack.c.bf16 %v17483_v6, %v17514_v57  ;;  %v3903_v30 = vadd.f32 %v17488_v51, %v3722_v23 }
 0x274   : > { %4294 = vst.msk [vmem:[#allocation3 + $0xc0] sm:$0xff] %vm506_vm2, %v4278_v54  ;;  %v4283_v39 = vmax.f32 %v4267_v61, 0.0  ;;  %v4265_v44 = vadd.f32 %v17553_v34, %v4242_v3  ;;  %v4245_v1 = vadd.f32 %v13154_v36, %v4064_v53  ;;  %v4062_v38 = vadd.f32 %v4025_v15, %v3897_v7  ;;  %v6098_v61 = vld [vmem:[#allocation3 + $0x39] sm:$0xff]  ;;  %v6099_v3 = vld [vmem:[#allocation3 + $0x41] sm:$0xff]  ;;  %v6101_v53 = vld [vmem:[#allocation3 + $0x51] sm:$0xff]  ;;  %v17678_v36 = vpop.permute.xlu1 %6446 }
 0x275   : > { %v4206_v19 = vpop.f32.mrf.mxu1  ;;  %13300 = vmatmul.mubr.msk.bf16.gmra.mxu1 %vm506_vm2, %v5521_v18  ;;  %v13139_v31 = vpop.f32.mrf.mxu0  ;;  %v5723_v12 = vmul.f32 %v17654_v32, %v20614_v2  ;;  %v6128_v13 = vpack.c.bf16 %v17560_v46, %v17556_v24  ;;  %v5919_v7 = vpack.c.bf16 %v5905_v63, %v5904_v27  ;;  %v3901_v51 = vadd.f32 %v17521_v60, %v3720_v8  ;;  %v20618_v8 = vld [vmem:[#allocation53_spill] sm:$0xff]  ;;  %v14054_v20 = vld [vmem:[%s20016_s8 + $0x30] sm:$0xff]  }
 0x276   : > { %4299 = vst.msk [vmem:[#allocation3 + $0xe8] sm:$0xff] %vm506_vm2, %v4283_v39  ;;  %v4281_v21 = vmax.f32 %v4265_v44, 0.0  ;;  %v4268_v58 = vadd.f32 %v17553_v34, %v4245_v1  ;;  %v4243_v48 = vadd.f32 %v4206_v19, %v4062_v38  ;;  %v4067_v25 = vadd.f32 %v13139_v31, %v3902_v28  ;;  %13335 = vmatprep.mubr.msk.bf16.mxu1 %vm506_vm2, %v20615_v52  ;;  %v17690_v28 = vpop.permute.xlu0 %6441  ;;  %v20616_v1 = vld [vmem:[#allocation24_spill] sm:$0xff] }
 0x277   : > { %v13157_v55 = vpop.f32.mrf.mxu1  ;;  %v4038_v33 = vpop.f32.mrf.mxu0  ;;  %v5731_v47 = vpack.c.bf16 %v5723_v12, %v5722_v42  ;;  %v5920_v46 = vpack.c.bf16 %v5907_v4, %v5906_v10  ;;  %v17684_v5 = vmul.f32 %v17601_v56, %v17477_v37  ;;  %v17688_v26 = vmul.f32 %v17594_v9, %v17635_v50  ;;  %v20617_v19 = vld [vmem:[#allocation44_spill] sm:$0xff]  ;;  %v14055_v10 = vld [vmem:[%s20016_s8 + $0x28] sm:$0xff]  }
 0x278   : > { %4297 = vst.msk [vmem:[#allocation3 + $0xd8] sm:$0xff] %vm506_vm2, %v4281_v21  ;;  %v4284_v0 = vmax.f32 %v4268_v58, 0.0  ;;  %v4266_v41 = vadd.f32 %v17553_v34, %v4243_v48  ;;  %v4248_v54 = vadd.f32 %v13157_v55, %v4067_v25  ;;  %v4065_v6 = vadd.f32 %v4038_v33, %v3900_v29  ;;  %v6100_v29 = vld [vmem:[#allocation3 + $0x49] sm:$0xff] }
 0x279   : > { %v4219_v57 = vpop.f32.mrf.mxu1  ;;  %13324 = vmatmul.mubr.msk.bf16.gmra.mxu0 %vm506_vm2, %v5731_v47  ;;  %v13140_v24 = vpop.f32.mrf.mxu0  ;;  %v6114_v38 = vmul.f32 %v6098_v61, %v20616_v1  ;;  %v6115_v63 = vmul.f32 %v6099_v3, %v20617_v19  ;;  %v6117_v31 = vmul.f32 %v6101_v53, %v20618_v8  ;;  %v17708_v25 = vmul.f32 %v17516_v59, %v17646_v45  ;;  %v20620_v33 = vld [vmem:[#allocation54_spill] sm:$0xff]  ;;  %v6102_v3 = vld [vmem:[#allocation3 + $0x59] sm:$0xff]  ;;  %v6103_v53 = vld [vmem:[#allocation3 + $0x61] sm:$0xff] }
 0x27a   : > { %4300 = vst.msk [vmem:[#allocation3 + $0xf0] sm:$0xff] %vm506_vm2, %v4284_v0  ;;  %v4282_v23 = vmax.f32 %v4266_v41, 0.0  ;;  %v4271_v15 = vadd.f32 %v17553_v34, %v4248_v54  ;;  %v4246_v60 = vadd.f32 %v4219_v57, %v4065_v6  ;;  %v4068_v18 = vadd.f32 %v13140_v24, %v3903_v30  ;;  %13359 = vmatprep.mubr.msk.bf16.mxu0 %vm506_vm2, %v6128_v13  ;;  %v20619_v30 = vld [vmem:[#allocation62_spill] sm:$0xff]  ;;  %v17724_v41 = vpop.permute.xlu1 %6886  ;;  %v17726_v54 = vpop.permute.xlu0 %6881 }
 0x27b   : > { %v13158_v39 = vpop.f32.mrf.mxu1  ;;  %v4041_v44 = vpop.f32.mrf.mxu0  ;;  %v17712_v55 = vmul.f32 %v17497_v22, %v17654_v32  ;;  %v6116_v47 = vmul.f32 %v6100_v29, %v20620_v33  ;;  %v6129_v13 = vpack.c.bf16 %v6115_v63, %v6114_v38  ;;  %v5911_v24 = vld [vmem:[#allocation3 + $0x70] sm:$0xff]  ;;  %v20623_v29 = vld [vmem:[#allocation16_spill] sm:$0xff] }
 0x27c   : > { %4298 = vst.msk [vmem:[#allocation3 + $0xe0] sm:$0xff] %vm506_vm2, %v4282_v23  ;;  %v4287_v2 = vmax.f32 %v4271_v15, 0.0  ;;  %v4269_v12 = vadd.f32 %v17553_v34, %v4246_v60  ;;  %v4249_v21 = vadd.f32 %v13158_v39, %v4068_v18  ;;  %v4066_v58 = vadd.f32 %v4041_v44, %v3901_v51  ;;  %v14058_v51 = vld [vmem:[%s20016_s8 + $0x10] sm:$0xff]   ;;  %v5908_v15 = vld [vmem:[#allocation3 + $0x58] sm:$0xff]  ;;  %v6104_v38 = vld [vmem:[#allocation3 + $0x69] sm:$0xff] }
 0x27d   : > { %v4222_v48 = vpop.f32.mrf.mxu1  ;;  %13336 = vmatmul.mubr.msk.bf16.vlgmr.msra.gmra.mxu1 %vm506_vm2, %v5919_v7  ;;  %v5909_v7 = vld [vmem:[#allocation3 + $0x60] sm:$0xff]  ;;  %v6130_v61 = vpack.c.bf16 %v6117_v31, %v6116_v47  ;;  %v20621_v18 = vld [vmem:[#allocation35_spill] sm:$0xff]  ;;  %v14057_v19 = vld [vmem:[%s20016_s8 + $0x20] sm:$0xff]  }
 0x27e   : > { %4303 = vst.msk [vmem:[#allocation3 + $0x108] sm:$0xff] %vm506_vm2, %v4287_v2  ;;  %v4285_v52 = vmax.f32 %v4269_v12, 0.0  ;;  %v4272_v27 = vadd.f32 %v17553_v34, %v4249_v21  ;;  %v4247_v4 = vadd.f32 %v4222_v48, %v4066_v58  ;;  %13376 = vmatpush3.bf16.msra.mxu1 %v20619_v30  ;;  %13339 = vmatprep.mubr.msk.bf16.mxu1 %vm506_vm2, %v5920_v46  ;;  %v6105_v46 = vld [vmem:[#allocation3 + $0x71] sm:$0xff]  ;;  %v17750_v2 = vpop.permute.xlu0 %6891  ;;  %v17757_v58 = vld [vmem:[%s20016_s8 + $0x58] sm:$0xff]   ;;  %v17764_v33 = vld [vmem:[#allocation3 + $0x99] sm:$0xff] }
 0x27f   : > { %13377 = vmatprep.subr.bf16.mxu1 %v14054_v20  ;;  %v5921_v60 = vpack.c.bf16 %v5909_v7, %v5908_v15  ;;  %v6118_v39 = vmul.f32 %v6102_v3, %v20621_v18  ;;  %v20622_v44 = vld [vmem:[#allocation31_spill] sm:$0xff]  ;;  %v6121_v8 = vmul.f32 %v6105_v46, %v20623_v29  ;;  %v17766_v47 = vld [vmem:[#allocation3 + $0xa1] sm:$0xff] }
 0x280   : > { %4301 = vst.msk [vmem:[#allocation3 + $0xf8] sm:$0xff] %vm506_vm2, %v4285_v52  ;;  %v4288_v6 = vmax.f32 %v4272_v27, 0.0  ;;  %v4270_v57 = vadd.f32 %v17553_v34, %v4247_v4  ;;  %v5910_v34 = vld [vmem:[#allocation3 + $0x68] sm:$0xff]  ;;  %v6119_v1 = vmul.f32 %v6103_v53, %v20622_v44  ;;  %v14059_v31 = vld [vmem:[%s20016_s8 + $0x8] sm:$0xff]   ;;  %v5913_v52 = vld [vmem:[#allocation3 + $0x80] sm:$0xff]  ;;  %v6127_v29 = vmul.f32 %v17766_v47, %v20611_v43 }
 0x281   : > { %13360 = vmatmul.mubr.msk.bf16.vlgmr.msra.gmra.mxu0 %vm506_vm2, %v6129_v13  ;;  %v5922_v63 = vpack.c.bf16 %v5911_v24, %v5910_v34  ;;  %v14061_v27 = vld [vmem:[%s20016_s8] sm:$0xff]   ;;  %v5912_v4 = vld [vmem:[#allocation3 + $0x78] sm:$0xff]  ;;  %v20627_v3 = vld [vmem:[#allocation20_spill] sm:$0xff] }
 0x282   : > { %4304 = vst.msk [vmem:[#allocation3 + $0x110] sm:$0xff] %vm506_vm2, %v4288_v6  ;;  %v4286_v23 = vmax.f32 %v4270_v57, 0.0  ;;  %13363 = vmatprep.mubr.msk.bf16.mxu0 %vm506_vm2, %v6130_v61  ;;  %13378 = vmatpush3.bf16.msra.mxu1 %v14054_v20  ;;  %v17748_v20 = vpop.permute.xlu1 %6896  ;;  %v6131_v21 = vpack.c.bf16 %v6119_v1, %v6118_v39  ;;  %v5923_v30 = vpack.c.bf16 %v5913_v52, %v5912_v4  ;;  %v17771_v7 = vpop.permute.xlu0 %6451  ;;  %v17778_v57 = vld [vmem:[%s20016_s8 + $0x78] sm:$0xff]   ;;  %v20626_v61 = vld [vmem:[#allocation48_spill] sm:$0xff]  ;;  %v20631_v34 = vld [vmem:[#allocation42_spill] sm:$0xff] }
 0x283   : > { %13379 = vmatprep.subr.bf16.mxu1 %v14055_v10  ;;  %13400 = vmatpush3.bf16.msra.mxu0 %v17545_v17  ;;  %v20624_v17 = vld [vmem:[#allocation19_spill] sm:$0xff]  ;;  %v6124_v53 = vmul.f32 %v17477_v37, %v20627_v3  ;;  %v5917_v46 = vld [vmem:[#allocation3 + $0xa0] sm:$0xff]  ;;  %v17802_v44 = vld [vmem:[#allocation3 + $0xaf] sm:$0xff] }
 0x284   : > { %4302 = vst.msk [vmem:[#allocation3 + $0x100] sm:$0xff] %vm506_vm2, %v4286_v23  ;;  %13401 = vmatprep.subr.bf16.mxu0 %v14058_v51  ;;  %v6120_v12 = vmul.f32 %v6104_v38, %v20624_v17  ;;  %v6394_v23 = vld [vmem:[#allocation3 + $0x8f] sm:$0xff]  ;;  %v6393_v18 = vld [vmem:[#allocation3 + $0x87] sm:$0xff]  ;;  %v17824_v52 = vld [vmem:[#allocation3 + $0xd7] sm:$0xff]  ;;  %v17836_v4 = vmul.f32 %v17497_v22, %v17802_v44 }
 0x285   : > { %13340 = vmatmul.mubr.msk.bf16.gmra.mxu1 %vm506_vm2, %v5921_v60  ;;  %v20630_v60 = vld [vmem:[#allocation46_spill] sm:$0xff]  ;;  %v17800_v39 = vld [vmem:[#allocation3 + $0xa7] sm:$0xff] }
 0x286   : > { %13343 = vmatprep.mubr.msk.bf16.mxu1 %vm506_vm2, %v5922_v63  ;;  %13380 = vmatpush3.bf16.msra.mxu1 %v14055_v10  ;;  %v6132_v48 = vpack.c.bf16 %v6121_v8, %v6120_v12  ;;  %v17769_v13 = vpop.permute.xlu1 %6456  ;;  %v20625_v10 = vld [vmem:[#allocation36_spill] sm:$0xff]  ;;  %v20632_v37 = vpack.c.bf16 %v20630_v60, %v20631_v34  ;;  %v17806_v38 = vpop.permute.xlu0 %6461  ;;  %v6126_v63 = vmul.f32 %v17764_v33, %v17226_v40  ;;  %v17813_v8 = vld [vmem:[#allocation3 + $0xb7] sm:$0xff] }
 0x287   : > { %13381 = vmatprep.subr.bf16.mxu1 %v14057_v19  ;;  %13402 = vmatpush3.bf16.msra.mxu0 %v14058_v51  ;;  %v6125_v6 = vmul.f32 %v17635_v50, %v20625_v10  ;;  %v17787_v51 = vmul.f32 %v17601_v56, %v17764_v33  ;;  %v17791_v50 = vmul.f32 %v17594_v9, %v17766_v47  ;;  %v17819_v12 = vld [vmem:[#allocation3 + $0xc7] sm:$0xff]  ;;  %v17841_v10 = vld [vmem:[#allocation3 + $0xef] sm:$0xff] }
 0x288   : > { %13403 = vmatprep.subr.bf16.mxu0 %v14059_v31  ;;  %v17828_v40 = vld [vmem:[#allocation3 + $0xe7] sm:$0xff]  ;;  %v17832_v43 = vmul.f32 %v17516_v59, %v17800_v39  ;;  %20635 = vst [vmem:[#allocation56_spill] sm:$0xff] %v17836_v4  ;;  %v6526_v60 = vld [vmem:[#allocation3 + $0xb0] sm:$0xff]  ;;  %v17871_v34 = vmul.f32 %v17690_v28, %v17824_v52  ;;  %v17895_v42 = vmul.f32 %v17769_v13, %v17841_v10 }
 0x289   : > { %13364 = vmatmul.mubr.msk.bf16.gmra.mxu0 %vm506_vm2, %v6131_v21  ;;  %20628 = vst [vmem:[#allocation27_spill] sm:$0xff] %v17787_v51  ;;  %20629 = vst [vmem:[#allocation52_spill] sm:$0xff] %v17791_v50  ;;  %v6134_v24 = vpack.c.bf16 %v6125_v6, %v6124_v53  ;;  %v17821_v21 = vld [vmem:[#allocation3 + $0xcf] sm:$0xff]  ;;  %v17845_v6 = vmul.f32 %v17571_v62, %v17813_v8  ;;  %v17853_v53 = vld [vmem:[#allocation3 + $0xf7] sm:$0xff] }
 0x28a   : > { %13367 = vmatprep.mubr.msk.bf16.mxu0 %vm506_vm2, %v6132_v48  ;;  %13382 = vmatpush3.bf16.msra.mxu1 %v14057_v19  ;;  %v17804_v1 = vpop.permute.xlu1 %6466  ;;  %v5916_v19 = vld [vmem:[#allocation3 + $0x98] sm:$0xff]  ;;  %v6489_v48 = vmul.f32 %v17516_v59, %v6393_v18  ;;  %20634 = vst [vmem:[#allocation50_spill] sm:$0xff] %v17832_v43  ;;  %v6135_v59 = vpack.c.bf16 %v6127_v29, %v6126_v63  ;;  %20640 = vst [vmem:[#allocation61_spill] sm:$0xff] %v17871_v34  ;;  %v17883_v63 = vpop.permute.xlu0 %6901 }
 0x28b   : > { %13404 = vmatpush3.bf16.msra.mxu0 %v14059_v31  ;;  %13423 = vmatprep.subr.bf16.mxu1 %v17757_v58  ;;  %v17815_v31 = vld [vmem:[#allocation3 + $0xbf] sm:$0xff]  ;;  %v17817_v17 = vpack.c.bf16 %v5917_v46, %v5916_v19  ;;  %20636 = vst [vmem:[#allocation29_spill] sm:$0xff] %v17845_v6  ;;  %v17861_v46 = vmul.f32 %v17656_v11, %v17819_v12  ;;  %v17889_v15 = vld [vmem:[#allocation3 + $0xb1] sm:$0xff]  ;;  %20643 = vst [vmem:[#allocation37_spill] sm:$0xff] %v17895_v42 }
 0x28c   : > { %13405 = vmatprep.subr.bf16.mxu0 %v14061_v27  ;;  %v17849_v3 = vmul.f32 %v17562_v14, %v17815_v31  ;;  %v17879_v18 = vmul.f32 %v17771_v7, %v17828_v40  ;;  %v6525_v6 = vld [vmem:[#allocation3 + $0xa8] sm:$0xff]  ;;  %v17919_v43 = vld [vmem:[#allocation3 + $0xd1] sm:$0xff]  ;;  %v17942_v34 = vmul.f32 %v17594_v9, %v17889_v15  ;;  %v6493_v42 = vmul.f32 %v17656_v11, %v17800_v39  ;;  %v17948_v50 = vld [vmem:[#allocation3 + $0xf9] sm:$0xff] }
 0x28d   : > { %13344 = vmatmul.mubr.msk.bf16.gmra.mxu1 %vm506_vm2, %v5923_v30  ;;  %20633 = vst [vmem:[#allocation18_spill] sm:$0xff] %v17817_v17  ;;  %v6490_v30 = vmul.f32 %v17497_v22, %v6394_v23  ;;  %20638 = vst [vmem:[#allocation59_spill] sm:$0xff] %v17861_v46  ;;  %v17865_v23 = vmul.f32 %v17648_v49, %v17821_v21  ;;  %v17887_v22 = vld [vmem:[#allocation3 + $0xa9] sm:$0xff]  ;;  %v17913_v46 = vpack.c.bf16 %v6526_v60, %v6525_v6  ;;  %v14062_v6 = vld [vmem:[%s20016_s8 + $0x50] sm:$0xff]  }
 0x28e   : > { %13347 = vmatprep.mubr.msk.bf16.mxu1 %vm506_vm2, %v20626_v61  ;;  %20637 = vst [vmem:[#allocation39_spill] sm:$0xff] %v17849_v3  ;;  %20642 = vst [vmem:[#allocation41_spill] sm:$0xff] %v17879_v18  ;;  %v17881_v19 = vpop.permute.xlu1 %6906  ;;  %v17898_v3 = vld [vmem:[#allocation3 + $0xb9] sm:$0xff]  ;;  %v17930_v60 = vld [vmem:[#allocation3 + $0xe1] sm:$0xff]  ;;  %v17938_v4 = vmul.f32 %v17601_v56, %v17887_v22 }
 0x28f   : > { %13406 = vmatpush3.bf16.msra.mxu0 %v14061_v27  ;;  %v17826_v27 = vld [vmem:[#allocation3 + $0xdf] sm:$0xff]  ;;  %20639 = vst [vmem:[#allocation23_spill] sm:$0xff] %v17865_v23  ;;  %v6505_v29 = vpack.c.bf16 %v6490_v30, %v6489_v48  ;;  %v17906_v30 = vmul.f32 %v17806_v38, %v17853_v53  ;;  %20647 = vst [vmem:[#allocation66_spill] sm:$0xff] %v17913_v46  ;;  %v17917_v23 = vld [vmem:[#allocation3 + $0xc9] sm:$0xff] }
 0x290   : > { %13447 = vmatprep.subr.bf16.mxu0 %v17778_v57  ;;  %v17900_v48 = vld [vmem:[#allocation3 + $0xc1] sm:$0xff]  ;;  %20648 = vst [vmem:[#allocation64_spill] sm:$0xff] %v17930_v60  ;;  %20650 = vst [vmem:[#allocation63_spill] sm:$0xff] %v17938_v4  ;;  %v17946_v51 = vld [vmem:[#allocation3 + $0xf1] sm:$0xff]  ;;  %v17987_v4 = vmul.f32 %v17748_v20, %v17930_v60 }
 0x291   : > { %13368 = vmatmul.mubr.msk.bf16.gmra.mxu0 %vm506_vm2, %v20632_v37  ;;  %v17875_v37 = vmul.f32 %v17678_v36, %v17826_v27  ;;  %20644 = vst [vmem:[#allocation30_spill] sm:$0xff] %v17900_v48  ;;  %20645 = vst [vmem:[#allocation40_spill] sm:$0xff] %v17906_v30  ;;  %v17958_v56 = vmul.f32 %v17619_v35, %v17900_v48  ;;  %v17978_v48 = vpop.permute.xlu0 %6911  ;;  %v14066_v60 = vld [vmem:[%s20016_s8 + $0x70] sm:$0xff]  }
 0x292   : > { %13371 = vmatprep.mubr.msk.bf16.mxu0 %vm506_vm2, %v6134_v24  ;;  %v17855_v24 = vld [vmem:[#allocation3 + $0xff] sm:$0xff]  ;;  %20651 = vst [vmem:[#allocation38_spill] sm:$0xff] %v17942_v34  ;;  %20652 = vst [vmem:[#allocation65_spill] sm:$0xff] %v17946_v51  ;;  %v18004_v9 = vmul.f32 %v17978_v48, %v17948_v50 }
 0x293   : > { %20641 = vst [vmem:[#allocation28_spill] sm:$0xff] %v17875_v37  ;;  %v17910_v0 = vmul.f32 %v17804_v1, %v17855_v24  ;;  %v6494_v37 = vmul.f32 %v17648_v49, %v17802_v44  ;;  %20653 = vst [vmem:[#allocation51_spill] sm:$0xff] %v17948_v50  ;;  %v6532_v50 = vld [vmem:[#allocation3 + $0xe0] sm:$0xff] }
 0x294   : > { %20656 = vst [vmem:[#allocation33_spill] sm:$0xff] %v17958_v56  ;;  %20660 = vst [vmem:[#allocation49_spill] sm:$0xff] %v17987_v4 }
 0x295   : > { %13348 = vmatmul.mubr.msk.bf16.gmra.mxu1 %vm506_vm2, %v17817_v17  ;;  %20646 = vst [vmem:[#allocation67_spill] sm:$0xff] %v17910_v0  ;;  %v17976_v0 = vpop.permute.xlu1 %6916  ;;  %20663 = vst [vmem:[#allocation14_spill] sm:$0xff] %v18004_v9  ;;  %v6507_v56 = vpack.c.bf16 %v6494_v37, %v6493_v42  ;;  %v6527_v42 = vld [vmem:[#allocation3 + $0xb8] sm:$0xff]  ;;  %v6534_v9 = vld [vmem:[#allocation3 + $0xf0] sm:$0xff] }
 0x296   : > { %13383 = vmatprep.mubr.msk.bf16.mxu1 %vm506_vm2, %v20626_v61  ;;  %v6492_v61 = vmul.f32 %v17562_v14, %v17654_v32  ;;  %v17921_v32 = vld [vmem:[#allocation3 + $0xd9] sm:$0xff]  ;;  %v17950_v14 = vld [vmem:[#allocation3 + $0x101] sm:$0xff] }
 0x297   : > { %20654 = vst [vmem:[#allocation70_spill] sm:$0xff] %v17950_v14  ;;  %v17974_v30 = vmul.f32 %v17750_v2, %v17921_v32 }
 0x299   : > { %13372 = vmatmul.mubr.msk.bf16.gmra.mxu0 %vm506_vm2, %v6135_v59  ;;  %v6491_v59 = vmul.f32 %v17571_v62, %v17646_v45  ;;  %v17954_v45 = vmul.f32 %v17626_v16, %v17898_v3  ;;  %20659 = vst [vmem:[#allocation32_spill] sm:$0xff] %v17974_v30 }
 0x29a   : > { %13407 = vmatprep.mubr.msk.bf16.mxu0 %vm506_vm2, %v6505_v29  ;;  %v17932_v29 = vld [vmem:[#allocation3 + $0xe9] sm:$0xff] }
 0x29b   : > { %20649 = vst [vmem:[#allocation68_spill] sm:$0xff] %v17932_v29  ;;  %v6506_v18 = vpack.c.bf16 %v6492_v61, %v6491_v59  ;;  %20655 = vst [vmem:[#allocation69_spill] sm:$0xff] %v17954_v45  ;;  %v17966_v61 = vmul.f32 %v17726_v54, %v17917_v23  ;;  %v17970_v59 = vmul.f32 %v17724_v41, %v17919_v43 }
 0x29c   : > { %v17991_v34 = vmul.f32 %v17883_v63, %v17932_v29  ;;  %v18008_v45 = vmul.f32 %v17976_v0, %v17950_v14  ;;  %v6528_v29 = vld [vmem:[#allocation3 + $0xc0] sm:$0xff]  ;;  %v6529_v14 = vld [vmem:[#allocation3 + $0xc8] sm:$0xff] }
 0x29d   : > { %13384 = vmatmul.mubr.msk.bf16.vlgmr.msra.gmra.mxu1 %vm506_vm2, %v17817_v17  ;;  %20657 = vst [vmem:[#allocation21_spill] sm:$0xff] %v17966_v61  ;;  %20658 = vst [vmem:[#allocation58_spill] sm:$0xff] %v17970_v59  ;;  %v14063_v17 = vld [vmem:[%s20016_s8 + $0x48] sm:$0xff]   ;;  %v6530_v61 = vld [vmem:[#allocation3 + $0xd0] sm:$0xff]  ;;  %v18021_v37 = vpack.c.bf16 %v6528_v29, %v6527_v42 }
 0x29e   : > { %13424 = vmatpush3.bf16.msra.mxu1 %v17757_v58  ;;  %13387 = vmatprep.mubr.msk.bf16.mxu1 %vm506_vm2, %v17913_v46  ;;  %20661 = vst [vmem:[#allocation73_spill] sm:$0xff] %v17991_v34  ;;  %v18000_v46 = vmul.f32 %v17881_v19, %v17946_v51  ;;  %20664 = vst [vmem:[#allocation25_spill] sm:$0xff] %v18008_v45  ;;  %v6496_v51 = vmul.f32 %v17678_v36, %v17815_v31  ;;  %v14069_v58 = vld [vmem:[%s20016_s8 + $0x60] sm:$0xff]   ;;  %v6535_v34 = vld [vmem:[#allocation3 + $0xf8] sm:$0xff] }
 0x29f   : > { %13425 = vmatprep.subr.bf16.mxu1 %v14062_v6  ;;  %v18029_v59 = vpack.c.bf16 %v6530_v61, %v6529_v14  ;;  %v6498_v14 = vmul.f32 %v17769_v13, %v17821_v21  ;;  %v18047_v61 = vld [vmem:[%s20016_s8 + $0x98] sm:$0xff]  }
 0x2a0   : > { %20662 = vst [vmem:[#allocation34_spill] sm:$0xff] %v18000_v46 }
 0x2a1   : > { %13408 = vmatmul.mubr.msk.bf16.vlgmr.msra.gmra.mxu0 %vm506_vm2, %v6506_v18  ;;  %v14065_v18 = vld [vmem:[%s20016_s8 + $0x40] sm:$0xff]  }
 0x2a2   : > { %13411 = vmatprep.mubr.msk.bf16.mxu0 %vm506_vm2, %v6507_v56  ;;  %13426 = vmatpush3.bf16.msra.mxu1 %v14062_v6  ;;  %v6497_v56 = vmul.f32 %v17771_v7, %v17819_v12  ;;  %v14067_v6 = vld [vmem:[%s20016_s8 + $0x68] sm:$0xff]  }
 0x2a3   : > { %13427 = vmatprep.subr.bf16.mxu1 %v14063_v17  ;;  %13448 = vmatpush3.bf16.msra.mxu0 %v17778_v57  ;;  %v6495_v57 = vmul.f32 %v17690_v28, %v17813_v8 }
 0x2a4   : > { %13449 = vmatprep.subr.bf16.mxu0 %v14066_v60  ;;  %v6509_v42 = vpack.c.bf16 %v6498_v14, %v6497_v56  ;;  %v6500_v56 = vmul.f32 %v17804_v1, %v17826_v27  ;;  %v18061_v14 = vpop.permute.xlu1 %6476 }
 0x2a5   : > { %13388 = vmatmul.mubr.msk.bf16.gmra.mxu1 %vm506_vm2, %v18021_v37  ;;  %v6508_v29 = vpack.c.bf16 %v6496_v51, %v6495_v57  ;;  %v6531_v51 = vld [vmem:[#allocation3 + $0xd8] sm:$0xff]  ;;  %v6533_v57 = vld [vmem:[#allocation3 + $0xe8] sm:$0xff]  ;;  %20666 = vst [vmem:[#allocation26_spill] sm:$0xff] %v18061_v14 }
 0x2a6   : > { %13391 = vmatprep.mubr.msk.bf16.mxu1 %vm506_vm2, %v18029_v59  ;;  %13428 = vmatpush3.bf16.msra.mxu1 %v14063_v17  ;;  %v18054_v17 = vpop.permute.xlu0 %6471  ;;  %v18063_v45 = vpack.c.bf16 %v6534_v9, %v6533_v57  ;;  %v6502_v9 = vmul.f32 %v18061_v14, %v17841_v10 }
 0x2a7   : > { %13429 = vmatprep.subr.bf16.mxu1 %v14065_v18  ;;  %13450 = vmatpush3.bf16.msra.mxu0 %v14066_v60  ;;  %v18056_v60 = vpack.c.bf16 %v6532_v50, %v6531_v51  ;;  %v18070_v50 = vld [vmem:[%s20016_s8 + $0xb8] sm:$0xff]   ;;  %v6536_v51 = vld [vmem:[#allocation3 + $0x100] sm:$0xff] }
 0x2a8   : > { %13451 = vmatprep.subr.bf16.mxu0 %v14067_v6  ;;  %20667 = vst [vmem:[#allocation57_spill] sm:$0xff] %v18063_v45  ;;  %v18082_v57 = vpop.permute.xlu1 %6486  ;;  %v18085_v46 = vpack.c.bf16 %v6536_v51, %v6535_v34 }
 0x2a9   : > { %13412 = vmatmul.mubr.msk.bf16.gmra.mxu0 %vm506_vm2, %v6508_v29  ;;  %20665 = vst [vmem:[#allocation60_spill] sm:$0xff] %v18056_v60  ;;  %v6501_v29 = vmul.f32 %v18054_v17, %v17828_v40  ;;  %v6504_v30 = vmul.f32 %v18082_v57, %v17855_v24 }
 0x2aa   : > { %13415 = vmatprep.mubr.msk.bf16.mxu0 %vm506_vm2, %v6509_v42  ;;  %13430 = vmatpush3.bf16.msra.mxu1 %v14065_v18  ;;  %v6499_v18 = vmul.f32 %v17806_v38, %v17824_v52  ;;  %20668 = vst [vmem:[#allocation71_spill] sm:$0xff] %v18085_v46  ;;  %v18089_v4 = vpop.permute.xlu0 %6481 }
 0x2ab   : > { %13452 = vmatpush3.bf16.msra.mxu0 %v14067_v6  ;;  %13471 = vmatprep.subr.bf16.mxu1 %v18047_v61  ;;  %v6511_v42 = vpack.c.bf16 %v6502_v9, %v6501_v29  ;;  %v20669_v29 = vpack.c.bf16 %v17688_v26, %v17684_v5  ;;  %v20670_v26 = vpack.c.bf16 %v17712_v55, %v17708_v25 }
 0x2ac   : > { %13453 = vmatprep.subr.bf16.mxu0 %v14069_v58  ;;  %v6510_v6 = vpack.c.bf16 %v6500_v56, %v6499_v18  ;;  %v7153_v25 = vmul.f32 %v17648_v49, %v17815_v31  ;;  %v6945_v49 = vmul.f32 %v17750_v2, %v17898_v3  ;;  %v20672_v31 = vld [vmem:[#allocation30_spill] sm:$0xff] }
 0x2ad   : > { %13392 = vmatmul.mubr.msk.bf16.gmra.mxu1 %vm506_vm2, %v18056_v60 }
 0x2ae   : > { %13395 = vmatprep.mubr.msk.bf16.mxu1 %vm506_vm2, %v18063_v45  ;;  %v6944_v45 = vmul.f32 %v17724_v41, %v17889_v15 }
 0x2af   : > { %13454 = vmatpush3.bf16.msra.mxu0 %v14069_v58  ;;  %v6503_v58 = vmul.f32 %v18089_v4, %v17853_v53 }
 0x2b0   : > { %13495 = vmatprep.subr.bf16.mxu0 %v18070_v50 }
 0x2b1   : > { %13416 = vmatmul.mubr.msk.bf16.gmra.mxu0 %vm506_vm2, %v6510_v6  ;;  %v6512_v9 = vpack.c.bf16 %v6504_v30, %v6503_v58  ;;  %v6941_v6 = vmul.f32 %v17626_v16, %v17764_v33  ;;  %v7150_v58 = vmul.f32 %v17571_v62, %v17800_v39  ;;  %v7152_v39 = vmul.f32 %v17656_v11, %v17813_v8  ;;  %v14074_v8 = vld [vmem:[%s20016_s8 + $0xb0] sm:$0xff]  }
 0x2b2   : > { %13419 = vmatprep.mubr.msk.bf16.mxu0 %vm506_vm2, %v6511_v42  ;;  %v6942_v42 = vmul.f32 %v17619_v35, %v17766_v47  ;;  %v6943_v47 = vmul.f32 %v17726_v54, %v17887_v22  ;;  %v6948_v11 = vmul.f32 %v17881_v19, %v17919_v43 }
 0x2b4   : > { %v13169_v56 = vpop.f32.mrf.mxu0 }
 0x2b5   : > { %13396 = vmatmul.mubr.msk.bf16.gmra.mxu1 %vm506_vm2, %v18085_v46 }
 0x2b6   : > { %13431 = vmatprep.mubr.msk.bf16.mxu1 %vm506_vm2, %v20669_v29  ;;  %v4580_v18 = vpop.f32.mrf.mxu0  ;;  %v14070_v29 = vld [vmem:[%s20016_s8 + $0x90] sm:$0xff]  }
 0x2b7   : > { %v13193_v34 = vpop.f32.mrf.mxu1 }
 0x2b8   : > { %v18103_v51 = vadd.f32 %v13193_v34, %v13169_v56  ;;  %v13170_v46 = vpop.f32.mrf.mxu0  ;;  %v6956_v56 = vpack.c.bf16 %v6942_v42, %v6941_v6  ;;  %v6957_v34 = vpack.c.bf16 %v6944_v45, %v6943_v47  ;;  %v7166_v47 = vpack.c.bf16 %v7153_v25, %v7152_v39 }
 0x2b9   : > { %v4725_v60 = vpop.f32.mrf.mxu1  ;;  %13420 = vmatmul.mubr.msk.bf16.gmra.mxu0 %vm506_vm2, %v6512_v9  ;;  %v20671_v9 = vld [vmem:[#allocation47_spill] sm:$0xff] }
 0x2ba   : > { %v18108_v5 = vadd.f32 %v4725_v60, %v4580_v18  ;;  %13455 = vmatprep.mubr.msk.bf16.mxu0 %vm506_vm2, %v20670_v26  ;;  %v4583_v33 = vpop.f32.mrf.mxu0  ;;  %v7151_v6 = vmul.f32 %v20671_v9, %v17802_v44  ;;  %v6946_v26 = vmul.f32 %v17748_v20, %v20672_v31  ;;  %v14071_v44 = vld [vmem:[%s20016_s8 + $0x88] sm:$0xff]   ;;  %v14073_v9 = vld [vmem:[%s20016_s8 + $0x80] sm:$0xff]  }
 0x2bb   : > { %v13194_v30 = vpop.f32.mrf.mxu1 }
 0x2bc   : > { %v18121_v60 = vadd.f32 %v13194_v30, %v13170_v46  ;;  %v13173_v18 = vpop.f32.mrf.mxu0  ;;  %v7165_v45 = vpack.c.bf16 %v7151_v6, %v7150_v58  ;;  %v6958_v25 = vpack.c.bf16 %v6946_v26, %v6945_v49  ;;  %v7156_v49 = vmul.f32 %v17771_v7, %v17824_v52 }
 0x2bd   : > { %v4728_v55 = vpop.f32.mrf.mxu1  ;;  %13432 = vmatmul.mubr.msk.bf16.vlgmr.msra.gmra.mxu1 %vm506_vm2, %v6956_v56 }
 0x2be   : > { %v18128_v42 = vadd.f32 %v4728_v55, %v4583_v33  ;;  %13472 = vmatpush3.bf16.msra.mxu1 %v18047_v61  ;;  %13435 = vmatprep.mubr.msk.bf16.mxu1 %vm506_vm2, %v6957_v34  ;;  %v4596_v62 = vpop.f32.mrf.mxu0  ;;  %v7154_v55 = vmul.f32 %v17690_v28, %v17819_v12  ;;  %v7155_v12 = vmul.f32 %v17678_v36, %v17821_v21  ;;  %v18184_v36 = vld [vmem:[%s20016_s8 + $0xd8] sm:$0xff]   ;;  %v18186_v21 = vpop.permute.xlu0 %6921 }
 0x2bf   : > { %v13197_v46 = vpop.f32.mrf.mxu1  ;;  %13473 = vmatprep.subr.bf16.mxu1 %v14070_v29 }
 0x2c0   : > { %v18141_v61 = vadd.f32 %v13197_v46, %v13173_v18  ;;  %v13174_v33 = vpop.f32.mrf.mxu0  ;;  %v6947_v18 = vmul.f32 %v17883_v63, %v17917_v23  ;;  %v14075_v46 = vld [vmem:[%s20016_s8 + $0xa8] sm:$0xff]   ;;  %v7167_v26 = vpack.c.bf16 %v7155_v12, %v7154_v55  ;;  %v20675_v55 = vld [vmem:[#allocation68_spill] sm:$0xff] }
 0x2c1   : > { %v4741_v30 = vpop.f32.mrf.mxu1  ;;  %13456 = vmatmul.mubr.msk.bf16.vlgmr.msra.gmra.mxu0 %vm506_vm2, %v7165_v45 }
 0x2c2   : > { %v18149_v56 = vadd.f32 %v4741_v30, %v4596_v62  ;;  %13459 = vmatprep.mubr.msk.bf16.mxu0 %vm506_vm2, %v7166_v47  ;;  %v4599_v58 = vpop.f32.mrf.mxu0  ;;  %13474 = vmatpush3.bf16.msra.mxu1 %v14070_v29  ;;  %v6959_v39 = vpack.c.bf16 %v6948_v11, %v6947_v18  ;;  %v7157_v29 = vmul.f32 %v17769_v13, %v17826_v27  ;;  %v18175_v13 = vpop.permute.xlu1 %6926  ;;  %v20673_v47 = vld [vmem:[#allocation64_spill] sm:$0xff]  ;;  %v20674_v30 = vld [vmem:[#allocation65_spill] sm:$0xff]  ;;  %v14077_v18 = vld [vmem:[%s20016_s8 + $0xa0] sm:$0xff]  }
 0x2c3   : > { %v13198_v34 = vpop.f32.mrf.mxu1  ;;  %13475 = vmatprep.subr.bf16.mxu1 %v14071_v44  ;;  %13496 = vmatpush3.bf16.msra.mxu0 %v18070_v50  ;;  %v6950_v11 = vmul.f32 %v17976_v0, %v20673_v47 }
 0x2c4   : > { %v18160_v6 = vadd.f32 %v13198_v34, %v13174_v33  ;;  %v13177_v62 = vpop.f32.mrf.mxu0  ;;  %13497 = vmatprep.subr.bf16.mxu0 %v14074_v8  ;;  %v6949_v33 = vmul.f32 %v17978_v48, %v17921_v32 }
 0x2c5   : > { %v4744_v28 = vpop.f32.mrf.mxu1  ;;  %13436 = vmatmul.mubr.msk.bf16.gmra.mxu1 %vm506_vm2, %v6958_v25 }
 0x2c6   : > { %v18170_v50 = vadd.f32 %v4744_v28, %v4599_v58  ;;  %13439 = vmatprep.mubr.msk.bf16.mxu1 %vm506_vm2, %v6959_v39  ;;  %v4612_v45 = vpop.f32.mrf.mxu0  ;;  %13476 = vmatpush3.bf16.msra.mxu1 %v14071_v44  ;;  %v7168_v44 = vpack.c.bf16 %v7157_v29, %v7156_v49  ;;  %v6952_v58 = vmul.f32 %v18175_v13, %v20674_v30 }
 0x2c7   : > { %v13201_v27 = vpop.f32.mrf.mxu1  ;;  %13477 = vmatprep.subr.bf16.mxu1 %v14073_v9  ;;  %13498 = vmatpush3.bf16.msra.mxu0 %v14074_v8  ;;  %v6960_v29 = vpack.c.bf16 %v6950_v11, %v6949_v33  ;;  %v7158_v28 = vmul.f32 %v17806_v38, %v17828_v40  ;;  %v7159_v38 = vmul.f32 %v17804_v1, %v17841_v10  ;;  %v18218_v40 = vpop.permute.xlu0 %6931 }
 0x2c8   : > { %v18188_v7 = vadd.f32 %v13201_v27, %v13177_v62  ;;  %v13178_v52 = vpop.f32.mrf.mxu0  ;;  %13499 = vmatprep.subr.bf16.mxu0 %v14075_v46  ;;  %v6951_v62 = vmul.f32 %v18186_v21, %v20675_v55  ;;  %v7161_v27 = vmul.f32 %v18061_v14, %v17855_v24  ;;  %v7160_v11 = vmul.f32 %v18054_v17, %v17853_v53 }
 0x2c9   : > { %v4757_v8 = vpop.f32.mrf.mxu1  ;;  %13460 = vmatmul.mubr.msk.bf16.gmra.mxu0 %vm506_vm2, %v7167_v26  ;;  %v18213_v26 = vpop.permute.xlu1 %6936 }
 0x2ca   : > { %v18196_v34 = vadd.f32 %v4757_v8, %v4612_v45  ;;  %13463 = vmatprep.mubr.msk.bf16.mxu0 %vm506_vm2, %v7168_v44  ;;  %v4615_v25 = vpop.f32.mrf.mxu0  ;;  %13478 = vmatpush3.bf16.msra.mxu1 %v14073_v9  ;;  %v6961_v45 = vpack.c.bf16 %v6952_v58, %v6951_v62  ;;  %v18211_v9 = vld [vmem:[%s20016_s8 + $0xf8] sm:$0xff]   ;;  %v7169_v44 = vpack.c.bf16 %v7159_v38, %v7158_v28  ;;  %v20676_v58 = vld [vmem:[#allocation51_spill] sm:$0xff]  ;;  %v20677_v62 = vld [vmem:[#allocation70_spill] sm:$0xff] }
 0x2cb   : > { %v13202_v39 = vpop.f32.mrf.mxu1  ;;  %13500 = vmatpush3.bf16.msra.mxu0 %v14075_v46  ;;  %13519 = vmatprep.subr.bf16.mxu1 %v18184_v36  ;;  %v6953_v8 = vmul.f32 %v18218_v40, %v20676_v58 }
 0x2cc   : > { %v18204_v12 = vadd.f32 %v13202_v39, %v13178_v52  ;;  %v13181_v49 = vpop.f32.mrf.mxu0  ;;  %13501 = vmatprep.subr.bf16.mxu0 %v14077_v18  ;;  %v6954_v39 = vmul.f32 %v18213_v26, %v20677_v62 }
 0x2cd   : > { %v4760_v33 = vpop.f32.mrf.mxu1  ;;  %13440 = vmatmul.mubr.msk.bf16.gmra.mxu1 %vm506_vm2, %v6960_v29  ;;  %v18231_v29 = vld [vmem:[#allocation3 + $0x107] sm:$0xff] }
 0x2ce   : > { %v18220_v46 = vadd.f32 %v4760_v33, %v4615_v25  ;;  %13443 = vmatprep.mubr.msk.bf16.mxu1 %vm506_vm2, %v6961_v45  ;;  %v4628_v24 = vpop.f32.mrf.mxu0  ;;  %v7170_v25 = vpack.c.bf16 %v7161_v27, %v7160_v11  ;;  %v18238_v33 = vld [vmem:[#allocation3 + $0x10f] sm:$0xff] }
 0x2cf   : > { %v13205_v52 = vpop.f32.mrf.mxu1  ;;  %13502 = vmatpush3.bf16.msra.mxu0 %v14077_v18  ;;  %v6962_v18 = vpack.c.bf16 %v6954_v39, %v6953_v8 }
 0x2d0   : > { %v18229_v1 = vadd.f32 %v13205_v52, %v13181_v49  ;;  %v13182_v10 = vpop.f32.mrf.mxu0  ;;  %13543 = vmatprep.subr.bf16.mxu0 %v18211_v9  ;;  %v7162_v49 = vmul.f32 %v18231_v29, %v18089_v4 }
 0x2d1   : > { %v4773_v45 = vpop.f32.mrf.mxu1  ;;  %13464 = vmatmul.mubr.msk.bf16.gmra.mxu0 %vm506_vm2, %v7169_v44 }
 0x2d2   : > { %v18235_v53 = vadd.f32 %v4773_v45, %v4628_v24  ;;  %13467 = vmatprep.mubr.msk.bf16.mxu0 %vm506_vm2, %v7170_v25  ;;  %v4631_v28 = vpop.f32.mrf.mxu0  ;;  %v7163_v24 = vmul.f32 %v18238_v33, %v18082_v57  ;;  %v20678_v25 = vld [vmem:[#allocation18_spill] sm:$0xff] }
 0x2d3   : > { %v13206_v38 = vpop.f32.mrf.mxu1 }
 0x2d4   : > { %v18242_v27 = vadd.f32 %v13206_v38, %v13182_v10  ;;  %v13217_v11 = vpop.f32.mrf.mxu0  ;;  %v7171_v45 = vpack.c.bf16 %v7163_v24, %v7162_v49  ;;  %v7553_v49 = vmul.f32 %v17619_v35, %v17889_v15  ;;  %v7552_v35 = vmul.f32 %v17626_v16, %v17887_v22  ;;  %v14082_v16 = vld [vmem:[%s20016_s8 + $0xf0] sm:$0xff]  }
 0x2d5   : > { %v4776_v52 = vpop.f32.mrf.mxu1  ;;  %v18245_v14 = vadd.f32 %v13217_v11, %v18103_v51  ;;  %13444 = vmatmul.mubr.msk.bf16.gmra.mxu1 %vm506_vm2, %v6962_v18  ;;  %v20680_v11 = vld [vmem:[#allocation27_spill] sm:$0xff] }
 0x2d6   : > { %v18250_v44 = vadd.f32 %v4776_v52, %v4631_v28  ;;  %13479 = vmatprep.mubr.msk.bf16.mxu1 %vm506_vm2, %v20678_v25  ;;  %v4999_v8 = vpop.f32.mrf.mxu0  ;;  %v20679_v28 = vld [vmem:[#allocation52_spill] sm:$0xff] }
 0x2d7   : > { %v18255_v39 = vadd.f32 %v4999_v8, %v18108_v5  ;;  %v18257_v10 = vpop.f32.mrf.mxu1  ;;  %v20681_v52 = vpack.c.bf16 %v20679_v28, %v20680_v11  ;;  %v20682_v11 = vld [vmem:[#allocation66_spill] sm:$0xff] }
 0x2d8   : > { %v13218_v38 = vpop.f32.mrf.mxu0 }
 0x2d9   : > { %v18260_v51 = vadd.f32 %v13218_v38, %v18121_v60  ;;  %v18262_v18 = vpop.f32.mrf.mxu1  ;;  %13468 = vmatmul.mubr.msk.bf16.gmra.mxu0 %vm506_vm2, %v7171_v45  ;;  %v14078_v60 = vld [vmem:[%s20016_s8 + $0xd0] sm:$0xff]   ;;  %v7554_v45 = vmul.f32 %v17726_v54, %v17898_v3  ;;  %v7555_v38 = vmul.f32 %v17724_v41, %v20672_v31  ;;  %v7567_v3 = vpack.c.bf16 %v7553_v49, %v7552_v35  ;;  %v14079_v31 = vld [vmem:[%s20016_s8 + $0xc8] sm:$0xff]   ;;  %v14084_v35 = vld [vmem:[%s20016_s8 + $0x118] sm:$0xff]  }
 0x2da   : > { %13503 = vmatprep.mubr.msk.bf16.mxu0 %vm506_vm2, %v20681_v52  ;;  %v5002_v25 = vpop.f32.mrf.mxu0 }
 0x2db   : > { %v18270_v5 = vadd.f32 %v5002_v25, %v18128_v42  ;;  %v18272_v8 = vpop.f32.mrf.mxu1  ;;  %v7568_v52 = vpack.c.bf16 %v7555_v38, %v7554_v45  ;;  %v7558_v38 = vmul.f32 %v17883_v63, %v17921_v32  ;;  %v20683_v63 = vld [vmem:[#allocation60_spill] sm:$0xff] }
 0x2dc   : > { %v13221_v24 = vpop.f32.mrf.mxu0 }
 0x2dd   : > { %v18284_v28 = vadd.f32 %v13221_v24, %v18141_v61  ;;  %v18286_v42 = vpop.f32.mrf.mxu1  ;;  %13480 = vmatmul.mubr.msk.bf16.vlgmr.msra.gmra.mxu1 %vm506_vm2, %v20682_v11  ;;  %v7557_v24 = vmul.f32 %v17748_v20, %v17919_v43 }
 0x2de   : > { %13520 = vmatpush3.bf16.msra.mxu1 %v18184_v36  ;;  %13483 = vmatprep.mubr.msk.bf16.mxu1 %vm506_vm2, %v18021_v37  ;;  %v5015_v54 = vpop.f32.mrf.mxu0 }
 0x2df   : > { %v18296_v15 = vadd.f32 %v5015_v54, %v18149_v56  ;;  %v18298_v41 = vpop.f32.mrf.mxu1  ;;  %13521 = vmatprep.subr.bf16.mxu1 %v14078_v60 }
 0x2e0   : > { %v13222_v61 = vpop.f32.mrf.mxu0 }
 0x2e1   : > { %v18307_v22 = vadd.f32 %v13222_v61, %v18160_v6  ;;  %v18309_v36 = vpop.f32.mrf.mxu1  ;;  %13504 = vmatmul.mubr.msk.bf16.vlgmr.msra.gmra.mxu0 %vm506_vm2, %v7567_v3  ;;  %v14081_v6 = vld [vmem:[%s20016_s8 + $0xc0] sm:$0xff]  }
 0x2e2   : > { %13507 = vmatprep.mubr.msk.bf16.mxu0 %vm506_vm2, %v7568_v52  ;;  %v5018_v56 = vpop.f32.mrf.mxu0  ;;  %13522 = vmatpush3.bf16.msra.mxu1 %v14078_v60  ;;  %v14083_v60 = vld [vmem:[%s20016_s8 + $0xe8] sm:$0xff]   ;;  %v7561_v52 = vmul.f32 %v17976_v0, %v20674_v30 }
 0x2e3   : > { %v18314_v25 = vadd.f32 %v5018_v56, %v18170_v50  ;;  %v18316_v49 = vpop.f32.mrf.mxu1  ;;  %13523 = vmatprep.subr.bf16.mxu1 %v14079_v31  ;;  %13544 = vmatpush3.bf16.msra.mxu0 %v18211_v9  ;;  %v7559_v50 = vmul.f32 %v17881_v19, %v20673_v47  ;;  %v7556_v9 = vmul.f32 %v17750_v2, %v17917_v23  ;;  %v14085_v2 = vld [vmem:[%s20016_s8 + $0xe0] sm:$0xff]   ;;  %v20686_v0 = vld [vmem:[#allocation71_spill] sm:$0xff] }
 0x2e4   : > { %v13225_v45 = vpop.f32.mrf.mxu0  ;;  %13545 = vmatprep.subr.bf16.mxu0 %v14082_v16  ;;  %v7563_v56 = vmul.f32 %v18175_v13, %v20677_v62 }
 0x2e5   : > { %v18332_v20 = vadd.f32 %v13225_v45, %v18188_v7  ;;  %v18334_v43 = vpop.f32.mrf.mxu1  ;;  %13484 = vmatmul.mubr.msk.bf16.gmra.mxu1 %vm506_vm2, %v18029_v59  ;;  %v7569_v7 = vpack.c.bf16 %v7557_v24, %v7556_v9  ;;  %v7570_v3 = vpack.c.bf16 %v7559_v50, %v7558_v38  ;;  %v7356_v50 = vld [vmem:[#allocation3 + $0x110] sm:$0xff] }
 0x2e6   : > { %13487 = vmatprep.mubr.msk.bf16.mxu1 %vm506_vm2, %v20683_v63  ;;  %v5031_v19 = vpop.f32.mrf.mxu0  ;;  %13524 = vmatpush3.bf16.msra.mxu1 %v14079_v31  ;;  %v18385_v9 = vld [vmem:[#allocation3 + $0x111] sm:$0xff]  ;;  %v7355_v63 = vld [vmem:[#allocation3 + $0x108] sm:$0xff] }
 0x2e7   : > { %v18343_v32 = vadd.f32 %v5031_v19, %v18196_v34  ;;  %v18345_v47 = vpop.f32.mrf.mxu1  ;;  %13525 = vmatprep.subr.bf16.mxu1 %v14081_v6  ;;  %13546 = vmatpush3.bf16.msra.mxu0 %v14082_v16 }
 0x2e8   : > { %v13226_v54 = vpop.f32.mrf.mxu0  ;;  %13547 = vmatprep.subr.bf16.mxu0 %v14083_v60 }
 0x2e9   : > { %v18354_v23 = vadd.f32 %v13226_v54, %v18204_v12  ;;  %13508 = vmatmul.mubr.msk.bf16.gmra.mxu0 %vm506_vm2, %v7569_v7  ;;  %v18358_v31 = vpop.f32.mrf.mxu1  ;;  %v7562_v12 = vmul.f32 %v18186_v21, %v20676_v58  ;;  %v18400_v54 = vpack.c.bf16 %v7356_v50, %v7355_v63  ;;  %v20699_v63 = vld [vmem:[#allocation59_spill] sm:$0xff] }
 0x2ea   : > { %13511 = vmatprep.mubr.msk.bf16.mxu0 %vm506_vm2, %v7570_v3  ;;  %v5034_v34 = vpop.f32.mrf.mxu0  ;;  %13526 = vmatpush3.bf16.msra.mxu1 %v14081_v6  ;;  %v20685_v6 = vld [vmem:[#allocation57_spill] sm:$0xff]  ;;  %v7565_v3 = vmul.f32 %v18385_v9, %v18213_v26 }
 0x2eb   : > { %v18361_v61 = vadd.f32 %v5034_v34, %v18220_v46  ;;  %13548 = vmatpush3.bf16.msra.mxu0 %v14083_v60  ;;  %13567 = vmatprep.subr.bf16.mxu1 %v14084_v35  ;;  %v7560_v46 = vmul.f32 %v17978_v48, %v20675_v55  ;;  %v18378_v45 = vpop.f32.mrf.mxu1  ;;  %v18383_v60 = vld [vmem:[#allocation3 + $0x109] sm:$0xff]  ;;  %v20690_v34 = vld [vmem:[#allocation56_spill] sm:$0xff] }
 0x2ec   : > { %v13229_v16 = vpop.f32.mrf.mxu0  ;;  %13549 = vmatprep.subr.bf16.mxu0 %v14085_v2 }
 0x2ed   : > { %v18370_v24 = vadd.f32 %v13229_v16, %v18229_v1  ;;  %13488 = vmatmul.mubr.msk.bf16.gmra.mxu1 %vm506_vm2, %v20685_v6  ;;  %v7571_v62 = vpack.c.bf16 %v7561_v52, %v7560_v46  ;;  %v7572_v1 = vpack.c.bf16 %v7563_v56, %v7562_v12  ;;  %v18395_v19 = vpop.f32.mrf.mxu1  ;;  %v20691_v52 = vld [vmem:[#allocation50_spill] sm:$0xff] }
 0x2ee   : > { %13491 = vmatprep.mubr.msk.bf16.mxu1 %vm506_vm2, %v20686_v0  ;;  %v5047_v30 = vpop.f32.mrf.mxu0  ;;  %v20692_v16 = vpack.c.bf16 %v20690_v34, %v20691_v52  ;;  %v14087_v34 = vld [vmem:[%s20016_s8 + $0x108] sm:$0xff]  }
 0x2ef   : > { %20684 = vst [vmem:[#allocation15_spill] sm:$0xff] %v18370_v24  ;;  %v18381_v58 = vadd.f32 %v5047_v30, %v18235_v53  ;;  %13550 = vmatpush3.bf16.msra.mxu0 %v14085_v2  ;;  %v14089_v53 = vld [vmem:[%s20018_s10 + $0x38] sm:$0xff]   ;;  %v18416_v12 = vpop.f32.mrf.mxu1  ;;  %v14086_v30 = vld [vmem:[%s20016_s8 + $0x110] sm:$0xff]   ;;  %v14094_v24 = vld [vmem:[%s20018_s10 + $0x8] sm:$0xff]  }
 0x2f0   : > { %v13230_v38 = vpop.f32.mrf.mxu0  ;;  %13591 = vmatprep.subr.bf16.mxu0 %v14089_v53  ;;  %20693 = vst [vmem:[#allocation72_spill] sm:$0xff] %v18416_v12 }
 0x2f1   : > { %20687 = vst [vmem:[#allocation43_spill] sm:$0xff] %v18381_v58  ;;  %v18388_v48 = vadd.f32 %v13230_v38, %v18242_v27  ;;  %13512 = vmatmul.mubr.msk.bf16.gmra.mxu0 %vm506_vm2, %v7571_v62  ;;  %v7564_v27 = vmul.f32 %v18383_v60, %v18218_v40  ;;  %v18425_v0 = vpop.f32.mrf.mxu1  ;;  %v20695_v38 = vld [vmem:[#allocation39_spill] sm:$0xff]  ;;  %v7960_v58 = vld [vmem:[#allocation3 + $0xe8] sm:$0xff] }
 0x2f2   : > { %13515 = vmatprep.mubr.msk.bf16.mxu0 %vm506_vm2, %v7572_v1  ;;  %v5050_v55 = vpop.f32.mrf.mxu0  ;;  %20694 = vst [vmem:[#allocation22_spill] sm:$0xff] %v18425_v0  ;;  %v20696_v1 = vld [vmem:[#allocation29_spill] sm:$0xff] }
 0x2f3   : > { %20688 = vst [vmem:[#allocation45_spill] sm:$0xff] %v18388_v48  ;;  %v18398_v7 = vadd.f32 %v5050_v55, %v18250_v44  ;;  %v7573_v56 = vpack.c.bf16 %v7565_v3, %v7564_v27  ;;  %v20697_v50 = vpack.c.bf16 %v20695_v38, %v20696_v1  ;;  %v20698_v55 = vld [vmem:[#allocation23_spill] sm:$0xff]  ;;  %v18442_v3 = vpop.f32.mrf.mxu1  ;;  %v14088_v38 = vld [vmem:[%s20016_s8 + $0x100] sm:$0xff]  }
 0x2f4   : > { %v18406_v2 = vpop.f32.mrf.mxu0  ;;  %v20700_v27 = vpack.c.bf16 %v20698_v55, %v20699_v63  ;;  %20701 = vst [vmem:[#allocation55_spill] sm:$0xff] %v18442_v3  ;;  %v20704_v55 = vld [vmem:[#allocation61_spill] sm:$0xff]  ;;  %v7958_v3 = vld [vmem:[#allocation3 + $0xd8] sm:$0xff] }
 0x2f5   : > { %20689 = vst [vmem:[#allocation17_spill] sm:$0xff] %v18398_v7  ;;  %13492 = vmatmul.mubr.msk.bf16.gmra.mxu1 %vm506_vm2, %v18400_v54 }
 0x2f6   : > { %13527 = vmatprep.mubr.msk.bf16.mxu1 %vm506_vm2, %v20692_v16  ;;  %v18414_v44 = vpop.f32.mrf.mxu0 }
 0x2f8   : > { %v18418_v6 = vpop.f32.mrf.mxu0 }
 0x2f9   : > { %13516 = vmatmul.mubr.msk.bf16.gmra.mxu0 %vm506_vm2, %v7573_v56  ;;  %v18458_v56 = vpop.f32.mrf.mxu1 }
 0x2fa   : > { %13551 = vmatprep.mubr.msk.bf16.mxu0 %vm506_vm2, %v20682_v11  ;;  %v18423_v46 = vpop.f32.mrf.mxu0  ;;  %20702 = vst [vmem:[#allocation24_spill] sm:$0xff] %v18458_v56  ;;  %v20707_v56 = vld [vmem:[#allocation41_spill] sm:$0xff] }
 0x2fb   : > { %v18478_v48 = vpop.f32.mrf.mxu1 }
 0x2fc   : > { %v18430_v62 = vpop.f32.mrf.mxu0 }
 0x2fd   : > { %13528 = vmatmul.mubr.msk.bf16.vlgmr.msra.gmra.mxu1 %vm506_vm2, %v20697_v50  ;;  %v7959_v50 = vld [vmem:[#allocation3 + $0xe0] sm:$0xff] }
 0x2fe   : > { %13568 = vmatpush3.bf16.msra.mxu1 %v14084_v35  ;;  %13531 = vmatprep.mubr.msk.bf16.mxu1 %vm506_vm2, %v20700_v27  ;;  %v18440_v11 = vpop.f32.mrf.mxu0  ;;  %v14091_v35 = vld [vmem:[%s20018_s10 + $0x30] sm:$0xff]   ;;  %v20706_v27 = vld [vmem:[#allocation37_spill] sm:$0xff]  ;;  %v7971_v0 = vpack.c.bf16 %v7959_v50, %v7958_v3  ;;  %v18496_v50 = vpop.f32.mrf.mxu1 }
 0x2ff   : > { %13569 = vmatprep.subr.bf16.mxu1 %v14086_v30  ;;  %v20708_v7 = vpack.c.bf16 %v20706_v27, %v20707_v56  ;;  %v20712_v56 = vld [vmem:[#allocation26_spill] sm:$0xff]  ;;  %v20714_v27 = vld [vmem:[#allocation67_spill] sm:$0xff] }
 0x300   : > { %v18447_v52 = vpop.f32.mrf.mxu0 }
 0x301   : > { %13552 = vmatmul.mubr.msk.bf16.vlgmr.msra.gmra.mxu0 %vm506_vm2, %v18021_v37  ;;  %v14093_v37 = vld [vmem:[%s20018_s10 + $0x28] sm:$0xff]  }
 0x302   : > { %13555 = vmatprep.mubr.msk.bf16.mxu0 %vm506_vm2, %v18029_v59  ;;  %v18456_v16 = vpop.f32.mrf.mxu0  ;;  %13570 = vmatpush3.bf16.msra.mxu1 %v14086_v30  ;;  %v20703_v59 = vld [vmem:[#allocation28_spill] sm:$0xff]  ;;  %v7961_v30 = vld [vmem:[#allocation3 + $0xf0] sm:$0xff] }
 0x303   : > { %13571 = vmatprep.subr.bf16.mxu1 %v14087_v34  ;;  %13592 = vmatpush3.bf16.msra.mxu0 %v14089_v53  ;;  %v20705_v63 = vpack.c.bf16 %v20703_v59, %v20704_v55  ;;  %v14090_v59 = vld [vmem:[%s20018_s10 + $0x18] sm:$0xff]  }
 0x304   : > { %v18463_v1 = vpop.f32.mrf.mxu0  ;;  %13593 = vmatprep.subr.bf16.mxu0 %v14091_v35 }
 0x305   : > { %13532 = vmatmul.mubr.msk.bf16.gmra.mxu1 %vm506_vm2, %v20705_v63  ;;  %v7972_v63 = vpack.c.bf16 %v7961_v30, %v7960_v58  ;;  %v7963_v58 = vld [vmem:[#allocation3 + $0x100] sm:$0xff]  ;;  %v7757_v30 = vld [vmem:[#allocation3 + $0x117] sm:$0xff] }
 0x306   : > { %13535 = vmatprep.mubr.msk.bf16.mxu1 %vm506_vm2, %v20708_v7  ;;  %v18476_v53 = vpop.f32.mrf.mxu0  ;;  %13572 = vmatpush3.bf16.msra.mxu1 %v14087_v34  ;;  %v7771_v7 = vmul.f32 %v18231_v29, %v18054_v17  ;;  %v14095_v34 = vld [vmem:[%s20018_s10 + $0x20] sm:$0xff]  }
 0x307   : > { %20709 = vst [vmem:[#allocation44_spill] sm:$0xff] %v18476_v53  ;;  %13573 = vmatprep.subr.bf16.mxu1 %v14088_v38  ;;  %13594 = vmatpush3.bf16.msra.mxu0 %v14091_v35  ;;  %v7772_v35 = vmul.f32 %v18238_v33, %v20712_v56  ;;  %v18507_v56 = vpop.f32.mrf.mxu1 }
 0x308   : > { %v18483_v55 = vpop.f32.mrf.mxu0  ;;  %13595 = vmatprep.subr.bf16.mxu0 %v14093_v37 }
 0x309   : > { %20710 = vst [vmem:[#allocation53_spill] sm:$0xff] %v18483_v55  ;;  %13556 = vmatmul.mubr.msk.bf16.gmra.mxu0 %vm506_vm2, %v7971_v0  ;;  %v7781_v29 = vpack.c.bf16 %v7772_v35, %v7771_v7  ;;  %v20715_v0 = vld [vmem:[#allocation40_spill] sm:$0xff] }
 0x30a   : > { %13559 = vmatprep.mubr.msk.bf16.mxu0 %vm506_vm2, %v7972_v63  ;;  %v18492_v3 = vpop.f32.mrf.mxu0  ;;  %13574 = vmatpush3.bf16.msra.mxu1 %v14088_v38  ;;  %v20716_v12 = vpack.c.bf16 %v20714_v27, %v20715_v0  ;;  %v7758_v63 = vld [vmem:[#allocation3 + $0x11f] sm:$0xff]  ;;  %v18518_v0 = vpop.f32.mrf.mxu1 }
 0x30b   : > { %20711 = vst [vmem:[#allocation62_spill] sm:$0xff] %v18492_v3  ;;  %13607 = vmatprep.subr.bf16.mxu1 %v14090_v59  ;;  %13596 = vmatpush3.bf16.msra.mxu0 %v14093_v37  ;;  %v7962_v38 = vld [vmem:[#allocation3 + $0xf8] sm:$0xff]  ;;  %v7774_v35 = vmul.f32 %v7758_v63, %v18082_v57  ;;  %v7967_v27 = vld [vmem:[#allocation3 + $0x120] sm:$0xff] }
 0x30c   : > { %v18498_v17 = vpop.f32.mrf.mxu0  ;;  %13597 = vmatprep.subr.bf16.mxu0 %v14095_v34  ;;  %v7973_v37 = vpack.c.bf16 %v7963_v58, %v7962_v38 }
 0x30d   : > { %20713 = vst [vmem:[#allocation54_spill] sm:$0xff] %v18498_v17  ;;  %13536 = vmatmul.mubr.msk.bf16.gmra.mxu1 %vm506_vm2, %v20716_v12  ;;  %v7773_v17 = vmul.f32 %v7757_v30, %v18089_v4  ;;  %v20721_v30 = vld [vmem:[#allocation63_spill] sm:$0xff] }
 0x30e   : > { %13539 = vmatprep.mubr.msk.bf16.mxu1 %vm506_vm2, %v7781_v29  ;;  %v18505_v33 = vpop.f32.mrf.mxu0  ;;  %v7966_v29 = vld [vmem:[#allocation3 + $0x118] sm:$0xff] }
 0x30f   : > { %20717 = vst [vmem:[#allocation35_spill] sm:$0xff] %v18505_v33  ;;  %13598 = vmatpush3.bf16.msra.mxu0 %v14095_v34  ;;  %v7782_v33 = vpack.c.bf16 %v7774_v35, %v7773_v17  ;;  %v7975_v4 = vpack.c.bf16 %v7967_v27, %v7966_v29  ;;  %v20720_v34 = vld [vmem:[#allocation38_spill] sm:$0xff]  ;;  %v20723_v29 = vld [vmem:[#allocation33_spill] sm:$0xff] }
 0x310   : > { %v18510_v7 = vpop.f32.mrf.mxu0  ;;  %v20722_v57 = vpack.c.bf16 %v20720_v34, %v20721_v30  ;;  %v20724_v27 = vld [vmem:[#allocation69_spill] sm:$0xff]  ;;  %v20726_v30 = vld [vmem:[#allocation58_spill] sm:$0xff] }
 0x311   : > { %20718 = vst [vmem:[#allocation31_spill] sm:$0xff] %v18510_v7  ;;  %13560 = vmatmul.mubr.msk.bf16.gmra.mxu0 %vm506_vm2, %v7973_v37  ;;  %v20725_v34 = vpack.c.bf16 %v20723_v29, %v20724_v27  ;;  %v20732_v27 = vld [vmem:[#allocation32_spill] sm:$0xff] }
 0x312   : > { %13563 = vmatprep.mubr.msk.bf16.mxu0 %vm506_vm2, %v18400_v54  ;;  %v18516_v12 = vpop.f32.mrf.mxu0  ;;  %v18529_v54 = vpop.f32.mrf.mxu1 }
 0x313   : > { %20719 = vst [vmem:[#allocation16_spill] sm:$0xff] %v18516_v12 }
 0x314   : > { %v18520_v58 = vpop.f32.mrf.mxu0  ;;  %v18536_v17 = vpop.f32.mrf.mxu1 }
 0x315   : > { %13540 = vmatmul.mubr.msk.bf16.gmra.mxu1 %vm506_vm2, %v7782_v33  ;;  %v14092_v33 = vld [vmem:[%s20018_s10 + $0x10] sm:$0xff]  }
 0x316   : > { %13575 = vmatprep.mubr.msk.bf16.mxu1 %vm506_vm2, %v20722_v57  ;;  %v18527_v63 = vpop.f32.mrf.mxu0  ;;  %v20727_v57 = vld [vmem:[#allocation21_spill] sm:$0xff] }
 0x317   : > { %v20728_v12 = vpack.c.bf16 %v20726_v30, %v20727_v57  ;;  %v20734_v30 = vld [vmem:[#allocation34_spill] sm:$0xff]  ;;  %v20735_v57 = vld [vmem:[#allocation73_spill] sm:$0xff] }
 0x318   : > { %v18531_v38 = vpop.f32.mrf.mxu0  ;;  %v20736_v55 = vpack.c.bf16 %v20734_v30, %v20735_v57  ;;  %v8159_v30 = vld [vmem:[#allocation3 + $0x119] sm:$0xff]  ;;  %v20741_v57 = vld [vmem:[#allocation14_spill] sm:$0xff] }
 0x319   : > { %13564 = vmatmul.mubr.msk.bf16.gmra.mxu0 %vm506_vm2, %v7975_v4  ;;  %v18551_v4 = vpop.f32.mrf.mxu1 }
 0x31a   : > { %v18534_v37 = vpop.f32.mrf.mxu0 }
 0x31b   : > { %v18558_v3 = vpop.f32.mrf.mxu1 }
 0x31c   : > { %v18541_v35 = vpop.f32.mrf.mxu0  ;;  %20729 = vst [vmem:[#allocation19_spill] sm:$0xff] %v18558_v3  ;;  %v8174_v3 = vmul.f32 %v18385_v9, %v18175_v13 }
 0x31d   : > { %13576 = vmatmul.mubr.msk.bf16.vlgmr.msra.gmra.mxu1 %vm506_vm2, %v20725_v34 }
 0x31e   : > { %13579 = vmatprep.mubr.msk.bf16.mxu1 %vm506_vm2, %v20728_v12  ;;  %13608 = vmatpush3.bf16.msra.mxu1 %v14090_v59  ;;  %v18553_v7 = vpop.f32.mrf.mxu0  ;;  %v14096_v12 = vld [vmem:[%s20018_s10] sm:$0xff]   ;;  %v20731_v59 = vld [vmem:[#allocation49_spill] sm:$0xff] }
 0x31f   : > { %13609 = vmatprep.subr.bf16.mxu1 %v14092_v33  ;;  %v20733_v34 = vpack.c.bf16 %v20731_v59, %v20732_v27 }
 0x320   : > { %v18560_v29 = vpop.f32.mrf.mxu0 }
 0x321   : > { %20730 = vst [vmem:[#allocation36_spill] sm:$0xff] %v18560_v29  ;;  %v8173_v29 = vmul.f32 %v18383_v60, %v18186_v21  ;;  %v8175_v60 = vmul.f32 %v8159_v30, %v18218_v40  ;;  %v5272_v40 = vadd.f32 %v18262_v18, %v18255_v39 }
 0x322   : > { %13610 = vmatpush3.bf16.msra.mxu1 %v14092_v33  ;;  %v18573_v33 = vpop.f32.mrf.mxu1  ;;  %v18575_v53 = vpop.f32.mrf.mxu0 }
 0x323   : > { %13611 = vmatprep.subr.bf16.mxu1 %v14094_v24  ;;  %20737 = vst [vmem:[#allocation48_spill] sm:$0xff] %v18573_v33 }
 0x324   : > { %v18581_v59 = vpop.f32.mrf.mxu1 }
 0x325   : > { %13580 = vmatmul.mubr.msk.bf16.gmra.mxu1 %vm506_vm2, %v20733_v34  ;;  %20738 = vst [vmem:[#allocation20_spill] sm:$0xff] %v18581_v59  ;;  %v18583_v27 = vpop.f32.mrf.mxu0  ;;  %v8160_v34 = vld [vmem:[#allocation3 + $0x121] sm:$0xff] }
 0x326   : > { %13583 = vmatprep.mubr.msk.bf16.mxu1 %vm506_vm2, %v20736_v55  ;;  %13612 = vmatpush3.bf16.msra.mxu1 %v14094_v24  ;;  %20739 = vst [vmem:[#allocation46_spill] sm:$0xff] %v18583_v27  ;;  %v8183_v55 = vpack.c.bf16 %v8174_v3, %v8173_v29  ;;  %v20740_v24 = vld [vmem:[#allocation25_spill] sm:$0xff]  ;;  %v8176_v21 = vmul.f32 %v8160_v34, %v18213_v26  ;;  %v18592_v13 = vpop.f32.mrf.mxu1 }
 0x327   : > { %13613 = vmatprep.subr.bf16.mxu1 %v14096_v12  ;;  %v20742_v33 = vpack.c.bf16 %v20740_v24, %v20741_v57  ;;  %v18594_v9 = vpop.f32.mrf.mxu0  ;;  %v5274_v29 = vadd.f32 %v18257_v10, %v18245_v14  ;;  %v5275_v24 = vadd.f32 %v18272_v8, %v18260_v51  ;;  %v5466_v57 = vadd.f32 %v18414_v44, %v5272_v40 }
 0x328   : > { %v18596_v59 = vpop.f32.mrf.mxu1  ;;  %v5273_v10 = vadd.f32 %v18286_v42, %v18270_v5 }
 0x329   : > { %v18598_v27 = vpop.f32.mrf.mxu0  ;;  %v5468_v34 = vadd.f32 %v18406_v2, %v5274_v29  ;;  %v5469_v18 = vadd.f32 %v18418_v6, %v5275_v24  ;;  %v5278_v2 = vadd.f32 %v18298_v41, %v18284_v28  ;;  %v5676_v51 = vadd.f32 %v18496_v50, %v5466_v57 }
 0x32a   : > { %13614 = vmatpush3.bf16.msra.mxu1 %v14096_v12  ;;  %v8184_v12 = vpack.c.bf16 %v8176_v21, %v8175_v60  ;;  %v5467_v8 = vadd.f32 %v18423_v46, %v5273_v10  ;;  %v5276_v29 = vadd.f32 %v18309_v36, %v18296_v15  ;;  %v5279_v50 = vadd.f32 %v18316_v49, %v18307_v22  ;;  %v18647_v15 = vld [vmem:[%s20017_s9] ss:$0 sm:$0xff] }
 0x32b   : > { %v5678_v39 = vadd.f32 %v18478_v48, %v5468_v34  ;;  %v5472_v5 = vadd.f32 %v18430_v62, %v5278_v2  ;;  %v5679_v6 = vadd.f32 %v18507_v56, %v5469_v18  ;;  %v5886_v28 = vadd.f32 %v18527_v63, %v5676_v51 }
 0x32c   : > { %v5470_v46 = vadd.f32 %v18440_v11, %v5276_v29  ;;  %v5677_v36 = vadd.f32 %v18518_v0, %v5467_v8  ;;  %v5277_v63 = vadd.f32 %v18334_v43, %v18314_v25  ;;  %v5473_v49 = vadd.f32 %v18447_v52, %v5279_v50 }
 0x32d   : > { %13584 = vmatmul.mubr.msk.bf16.gmra.mxu1 %vm506_vm2, %v20742_v33  ;;  %v18605_v33 = vpop.f32.mrf.mxu0  ;;  %v5888_v44 = vadd.f32 %v18520_v58, %v5678_v39  ;;  %v5889_v62 = vadd.f32 %v18531_v38, %v5679_v6  ;;  %v5682_v22 = vadd.f32 %v18529_v54, %v5472_v5  ;;  %v5282_v0 = vadd.f32 %v18345_v47, %v18332_v20 }
 0x32e   : > { %13587 = vmatprep.mubr.msk.bf16.mxu1 %vm506_vm2, %v8183_v55  ;;  %v5887_v57 = vadd.f32 %v18534_v37, %v5677_v36  ;;  %v5680_v38 = vadd.f32 %v18536_v17, %v5470_v46  ;;  %v5471_v2 = vadd.f32 %v18456_v16, %v5277_v63  ;;  %v5280_v8 = vadd.f32 %v18358_v31, %v18343_v32  ;;  %v20743_v31 = vld [vmem:[#allocation19_spill] sm:$0xff]  ;;  %v20745_v36 = vld [vmem:[#allocation44_spill] sm:$0xff] }
 0x32f   : > { %v5892_v25 = vadd.f32 %v18541_v35, %v5682_v22  ;;  %v5476_v20 = vadd.f32 %v18463_v1, %v5282_v0  ;;  %v5283_v6 = vadd.f32 %v18378_v45, %v18354_v23  ;;  %v5281_v32 = vadd.f32 %v18395_v19, %v18361_v61  ;;  %v20744_v1 = vld [vmem:[#allocation36_spill] sm:$0xff]  ;;  %v20747_v45 = vld [vmem:[#allocation53_spill] sm:$0xff] }
 0x330   : > { %v5890_v47 = vadd.f32 %v18553_v7, %v5680_v38 }
 0x335   : > { %v18600_v3 = vpop.f32.mrf.mxu1  ;;  %13588 = vmatmul.mubr.msk.bf16.gmra.mxu1 %vm506_vm2, %v8184_v12 }
 0x337   : > { %v18607_v26 = vpop.f32.mrf.mxu1 }
 0x339   : > { %v18612_v30 = vpop.f32.mrf.mxu1  ;;  %v18614_v55 = vpop.f32.mrf.mxu0 }
 0x33b   : > { %v18619_v21 = vpop.f32.mrf.mxu1  ;;  %v18621_v14 = vpop.f32.mrf.mxu0 }
 0x33d   : > { %v18629_v60 = vpop.f32.mrf.mxu0  ;;  %v13337_v12 = vpop.f32.mrf.mxu1 }
 0x33e   : > { %v6082_v41 = vadd.f32 %v13337_v12, %v5888_v44  ;;  %v5683_v44 = vadd.f32 %v18551_v4, %v5473_v49  ;;  %v5681_v4 = vadd.f32 %v20743_v31, %v5471_v2 }
 0x33f   : > { %v18637_v42 = vpop.f32.mrf.mxu0  ;;  %v6017_v48 = vpop.f32.mrf.mxu1 }
 0x340   : > { %v6080_v56 = vadd.f32 %v6017_v48, %v5886_v28  ;;  %v5893_v28 = vadd.f32 %v20744_v1, %v5683_v44  ;;  %v5891_v61 = vadd.f32 %v18575_v53, %v5681_v4  ;;  %v20754_v44 = vld [vmem:[#allocation20_spill] sm:$0xff]  ;;  %v20757_v4 = vld [vmem:[#allocation54_spill] sm:$0xff] }
 0x341   : > { %v13338_v40 = vpop.f32.mrf.mxu1  ;;  %v13361_v58 = vpop.f32.mrf.mxu0 }
 0x342   : > { %v6292_v34 = vadd.f32 %v13361_v58, %v6082_v41  ;;  %v6083_v10 = vadd.f32 %v13338_v40, %v5889_v62  ;;  %v5474_v62 = vadd.f32 %v20745_v36, %v5280_v8  ;;  %v20758_v36 = vld [vmem:[#allocation17_spill] sm:$0xff] }
 0x343   : > { %v6020_v11 = vpop.f32.mrf.mxu1  ;;  %v6227_v24 = vpop.f32.mrf.mxu0 }
 0x344   : > { %v6315_v39 = vadd.f32 %v18647_v15, %v6292_v34  ;;  %v6290_v18 = vadd.f32 %v6227_v24, %v6080_v56  ;;  %v6081_v12 = vadd.f32 %v6020_v11, %v5887_v57  ;;  %v20746_v56 = vld [vmem:[#allocation48_spill] sm:$0xff]  ;;  %v5477_v34 = vadd.f32 %v20747_v45, %v5283_v6  ;;  %v20748_v57 = vld [vmem:[#allocation62_spill] sm:$0xff]  ;;  %v20755_v6 = vld [vmem:[#allocation45_spill] sm:$0xff] }
 0x345   : > { %v13341_v43 = vpop.f32.mrf.mxu1  ;;  %v13362_v54 = vpop.f32.mrf.mxu0  ;;  %v5686_v23 = vadd.f32 %v20746_v56, %v5476_v20  ;;  %v5684_v20 = vadd.f32 %v20754_v44, %v5474_v62  ;;  %v20759_v62 = vld [vmem:[#allocation24_spill] sm:$0xff] }
 0x346   : > { %v6331_v52 = vmax.f32 %v6315_v39, 0.0  ;;  %v6313_v51 = vadd.f32 %v18647_v15, %v6290_v18  ;;  %v6293_v37 = vadd.f32 %v13362_v54, %v6083_v10  ;;  %v6086_v29 = vadd.f32 %v13341_v43, %v5892_v25  ;;  %v20749_v39 = vld [vmem:[#allocation46_spill] sm:$0xff]  ;;  %v20750_v54 = vld [vmem:[#allocation15_spill] sm:$0xff] }
 0x347   : > { %v6033_v17 = vpop.f32.mrf.mxu1  ;;  %v6230_v16 = vpop.f32.mrf.mxu0  ;;  %v5475_v10 = vadd.f32 %v20748_v57, %v5281_v32  ;;  %v5896_v18 = vadd.f32 %v20749_v39, %v5686_v23  ;;  %v20756_v32 = vld [vmem:[#allocation55_spill] sm:$0xff]  ;;  %v5285_v56 = vadd.f32 %v20759_v62, %v20758_v36 }
 0x348   : > { %6347 = vst.msk [vmem:[#allocation4 + $0x10] sm:$0xff] %vm506_vm2, %v6331_v52  ;;  %v6329_v35 = vmax.f32 %v6313_v51, 0.0  ;;  %v6316_v5 = vadd.f32 %v18647_v15, %v6293_v37  ;;  %v6291_v48 = vadd.f32 %v6230_v16, %v6081_v12  ;;  %v6084_v46 = vadd.f32 %v6033_v17, %v5890_v47  ;;  %v20751_v52 = vld [vmem:[#allocation72_spill] sm:$0xff]  ;;  %v20752_v51 = vld [vmem:[#allocation43_spill] sm:$0xff]  ;;  %v20753_v37 = vld [vmem:[#allocation22_spill] sm:$0xff] }
 0x349   : > { %v13342_v7 = vpop.f32.mrf.mxu1  ;;  %v13365_v41 = vpop.f32.mrf.mxu0  ;;  %v5286_v12 = vadd.f32 %v20751_v52, %v20750_v54  ;;  %v5284_v8 = vadd.f32 %v20753_v37, %v20752_v51  ;;  %v5687_v47 = vadd.f32 %v18592_v13, %v5477_v34  ;;  %v5287_v31 = vadd.f32 %v20756_v32, %v20755_v6  ;;  %v20760_v23 = vld [vmem:[#allocation35_spill] sm:$0xff]  ;;  %v20762_v54 = vld [vmem:[#allocation16_spill] sm:$0xff] }
 0x34a   : > { %6345 = vst.msk [vmem:[#allocation4] sm:$0xff] %vm506_vm2, %v6329_v35  ;;  %v6332_v50 = vmax.f32 %v6316_v5, 0.0  ;;  %v6314_v40 = vadd.f32 %v18647_v15, %v6291_v48  ;;  %v6296_v58 = vadd.f32 %v13365_v41, %v6086_v29  ;;  %v6087_v49 = vadd.f32 %v13342_v7, %v5893_v28 }
 0x34b   : > { %v6036_v19 = vpop.f32.mrf.mxu1  ;;  %v6243_v63 = vpop.f32.mrf.mxu0  ;;  %v5480_v1 = vadd.f32 %v20757_v4, %v5286_v12  ;;  %v5685_v28 = vadd.f32 %v18596_v59, %v5475_v10  ;;  %v5894_v7 = vadd.f32 %v18594_v9, %v5684_v20  ;;  %v5478_v45 = vadd.f32 %v20760_v23, %v5284_v8 }
 0x34c   : > { %6348 = vst.msk [vmem:[#allocation4 + $0x18] sm:$0xff] %vm506_vm2, %v6332_v50  ;;  %v6330_v22 = vmax.f32 %v6314_v40, 0.0  ;;  %v6319_v11 = vadd.f32 %v18647_v15, %v6296_v58  ;;  %v6294_v24 = vadd.f32 %v6243_v63, %v6084_v46  ;;  %v6085_v25 = vadd.f32 %v6036_v19, %v5891_v61 }
 0x34d   : > { %v13345_v0 = vpop.f32.mrf.mxu1  ;;  %v13366_v38 = vpop.f32.mrf.mxu0  ;;  %v5897_v50 = vadd.f32 %v18598_v27, %v5687_v47  ;;  %v5690_v34 = vadd.f32 %v18600_v3, %v5480_v1  ;;  %v5895_v27 = vadd.f32 %v18605_v33, %v5685_v28  ;;  %v5479_v52 = vadd.f32 %v20762_v54, %v5285_v56 }
 0x34e   : > { %6346 = vst.msk [vmem:[#allocation4 + $0x8] sm:$0xff] %vm506_vm2, %v6330_v22  ;;  %v6335_v2 = vmax.f32 %v6319_v11, 0.0  ;;  %v6317_v53 = vadd.f32 %v18647_v15, %v6294_v24  ;;  %v6297_v43 = vadd.f32 %v13366_v38, %v6087_v49  ;;  %v6090_v29 = vadd.f32 %v13345_v0, %v5896_v18  ;;  %v20761_v24 = vld [vmem:[#allocation31_spill] sm:$0xff] }
 0x34f   : > { %v6049_v17 = vpop.f32.mrf.mxu1  ;;  %v6246_v16 = vpop.f32.mrf.mxu0  ;;  %v5481_v57 = vadd.f32 %v20761_v24, %v5287_v31  ;;  %v5900_v10 = vadd.f32 %v18614_v55, %v5690_v34  ;;  %v5688_v12 = vadd.f32 %v18607_v26, %v5478_v45 }
 0x350   : > { %6351 = vst.msk [vmem:[#allocation4 + $0x30] sm:$0xff] %vm506_vm2, %v6335_v2  ;;  %v6333_v35 = vmax.f32 %v6317_v53, 0.0  ;;  %v6320_v5 = vadd.f32 %v18647_v15, %v6297_v43  ;;  %v6295_v48 = vadd.f32 %v6246_v16, %v6085_v25  ;;  %v6088_v9 = vadd.f32 %v6049_v17, %v5894_v7 }
 0x351   : > { %v13346_v41 = vpop.f32.mrf.mxu1  ;;  %v13369_v13 = vpop.f32.mrf.mxu0  ;;  %v5691_v51 = vadd.f32 %v18612_v30, %v5481_v57  ;;  %v5689_v16 = vadd.f32 %v18619_v21, %v5479_v52 }
 0x352   : > { %6349 = vst.msk [vmem:[#allocation4 + $0x20] sm:$0xff] %vm506_vm2, %v6333_v35  ;;  %v6336_v46 = vmax.f32 %v6320_v5, 0.0  ;;  %v6318_v40 = vadd.f32 %v18647_v15, %v6295_v48  ;;  %v6300_v58 = vadd.f32 %v13369_v13, %v6090_v29  ;;  %v6091_v49 = vadd.f32 %v13346_v41, %v5897_v50 }
 0x353   : > { %v8413_v59 = vld [vmem:[#allocation4 + $0x10] ss:$2 sm:$0xff]  ;;  %v8415_v61 = vld [vmem:[#allocation4 + $0x11] ss:$2 sm:$0xff]  ;;  %v6052_v19 = vpop.f32.mrf.mxu1  ;;  %v6259_v63 = vpop.f32.mrf.mxu0  ;;  %v5898_v35 = vadd.f32 %v18621_v14, %v5688_v12  ;;  %v5901_v30 = vadd.f32 %v18629_v60, %v5691_v51  ;;  %v5899_v14 = vadd.f32 %v18637_v42, %v5689_v16 }
 0x354   : > { %6352 = vst.msk [vmem:[#allocation4 + $0x38] sm:$0xff] %vm506_vm2, %v6336_v46  ;;  %v6334_v22 = vmax.f32 %v6318_v40, 0.0  ;;  %v6323_v11 = vadd.f32 %v18647_v15, %v6300_v58  ;;  %v8417_v39 = vmax.f32 %v8413_v59, %v8415_v61  ;;  %v6298_v0 = vadd.f32 %v6259_v63, %v6088_v9  ;;  %v8588_v61 = vld [vmem:[#allocation5 + $0x8] sm:$0xff]  ;;  %v18731_v9 = vpop.permute.xlu0 %8530 }
 0x355   : > { %v8409_v18 = vld [vmem:[#allocation4] ss:$2 sm:$0xff]  ;;  %v8411_v3 = vld [vmem:[#allocation4 + $0x1] ss:$2 sm:$0xff]  ;;  %v13349_v38 = vpop.f32.mrf.mxu1  ;;  %v13370_v2 = vpop.f32.mrf.mxu0  ;;  %v6089_v53 = vadd.f32 %v6052_v19, %v5895_v27  ;;  %20763 = vst [vmem:[#allocation42_spill] sm:$0xff] %v18731_v9 }
 0x356   : > { %v8416_v25 = vmax.f32 %v8409_v18, %v8411_v3  ;;  %6350 = vst.msk [vmem:[#allocation4 + $0x28] sm:$0xff] %vm506_vm2, %v6334_v22  ;;  %v6339_v33 = vmax.f32 %v6323_v11, 0.0  ;;  %v6301_v43 = vadd.f32 %v13370_v2, %v6091_v49  ;;  %v6321_v55 = vadd.f32 %v18647_v15, %v6298_v0  ;;  %v8520_v19 = vld [vmem:[#allocation5 + $0x7] sm:$0xff] }
 0x357   : > { %v6065_v37 = vpop.f32.mrf.mxu1  ;;  %v6262_v8 = vpop.f32.mrf.mxu0  ;;  %v6094_v20 = vadd.f32 %v13349_v38, %v5900_v10  ;;  %v8568_v2 = vmul.f32 %v18731_v9, %v8520_v19 }
 0x358   : > { %v8418_v44 = vmax.f32 %v8416_v25, %v8417_v39  ;;  %6355 = vst.msk [vmem:[#allocation4 + $0x50] sm:$0xff] %vm506_vm2, %v6339_v33  ;;  %v6324_v47 = vadd.f32 %v18647_v15, %v6301_v43  ;;  %v6299_v17 = vadd.f32 %v6262_v8, %v6089_v53  ;;  %v6337_v29 = vmax.f32 %v6321_v55, 0.0  ;;  %v18735_v39 = vpop.permute.xlu1 %8535 }
 0x359   : > { %v13350_v5 = vpop.f32.mrf.mxu1  ;;  %v13373_v26 = vpop.f32.mrf.mxu0  ;;  %v6092_v1 = vadd.f32 %v6065_v37, %v5898_v35  ;;  %20764 = vst [vmem:[#allocation47_spill] sm:$0xff] %v18735_v39 }
 0x35a   : > { %8419 = vst.msk [vmem:[#allocation5 + $0x10] sm:$0xff] %vm506_vm2, %v8418_v44  ;;  %v6340_v48 = vmax.f32 %v6324_v47, 0.0  ;;  %v6322_v6 = vadd.f32 %v18647_v15, %v6299_v17  ;;  %v6304_v32 = vadd.f32 %v13373_v26, %v6094_v20  ;;  %6353 = vst.msk [vmem:[#allocation4 + $0x40] sm:$0xff] %vm506_vm2, %v6337_v29  ;;  %v6095_v41 = vadd.f32 %v13350_v5, %v5901_v30 }
 0x35b   : > { %v8425_v31 = vld [vmem:[#allocation4 + $0x30] ss:$2 sm:$0xff]  ;;  %v8427_v4 = vld [vmem:[#allocation4 + $0x31] ss:$2 sm:$0xff]  ;;  %v6068_v28 = vpop.f32.mrf.mxu1  ;;  %v6275_v21 = vpop.f32.mrf.mxu0 }
 0x35c   : > { %6356 = vst.msk [vmem:[#allocation4 + $0x58] sm:$0xff] %vm506_vm2, %v6340_v48  ;;  %v6338_v7 = vmax.f32 %v6322_v6, 0.0  ;;  %v6327_v60 = vadd.f32 %v18647_v15, %v6304_v32  ;;  %v8429_v13 = vmax.f32 %v8425_v31, %v8427_v4  ;;  %v6302_v40 = vadd.f32 %v6275_v21, %v6092_v1 }
 0x35d   : > { %v8421_v50 = vld [vmem:[#allocation4 + $0x20] ss:$2 sm:$0xff]  ;;  %v8423_v46 = vld [vmem:[#allocation4 + $0x21] ss:$2 sm:$0xff]  ;;  %v13374_v58 = vpop.f32.mrf.mxu0  ;;  %v13385_v36 = vpop.f32.mrf.mxu1  ;;  %v6093_v23 = vadd.f32 %v6068_v28, %v5899_v14 }
 0x35e   : > { %v8428_v62 = vmax.f32 %v8421_v50, %v8423_v46  ;;  %6354 = vst.msk [vmem:[#allocation4 + $0x48] sm:$0xff] %vm506_vm2, %v6338_v7  ;;  %v6343_v56 = vmax.f32 %v6327_v60, 0.0  ;;  %v6305_v45 = vadd.f32 %v13374_v58, %v6095_v41  ;;  %v6325_v42 = vadd.f32 %v18647_v15, %v6302_v40 }
 0x35f   : > { %v6278_v34 = vpop.f32.mrf.mxu0  ;;  %v6635_v59 = vpop.f32.mrf.mxu1 }
 0x360   : > { %v8430_v63 = vmax.f32 %v8428_v62, %v8429_v13  ;;  %6359 = vst.msk [vmem:[#allocation4 + $0x70] sm:$0xff] %vm506_vm2, %v6343_v56  ;;  %v6328_v27 = vadd.f32 %v18647_v15, %v6305_v45  ;;  %v6303_v22 = vadd.f32 %v6278_v34, %v6093_v23  ;;  %v6341_v49 = vmax.f32 %v6325_v42, 0.0  ;;  %v18769_v62 = vpop.permute.xlu1 %8545  ;;  %v18771_v56 = vpop.permute.xlu0 %8540 }
 0x361   : > { %v13386_v11 = vpop.f32.mrf.mxu1  ;;  %v13409_v24 = vpop.f32.mrf.mxu0  ;;  %v8589_v57 = vld [vmem:[#allocation5 + $0x10] sm:$0xff]  ;;  %20767 = vst [vmem:[#allocation65_spill] sm:$0xff] %v18769_v62  ;;  %20768 = vst [vmem:[#allocation68_spill] sm:$0xff] %v18771_v56 }
 0x362   : > { %v8521_v10 = vld [vmem:[#allocation5 + $0xf] sm:$0xff]  ;;  %8431 = vst.msk [vmem:[#allocation5 + $0x18] sm:$0xff] %vm506_vm2, %v8430_v63  ;;  %v6344_v18 = vmax.f32 %v6328_v27, 0.0  ;;  %v6326_v3 = vadd.f32 %v18647_v15, %v6303_v22  ;;  %v18739_v0 = vadd.f32 %v13409_v24, %v13385_v36  ;;  %v8596_v38 = vpack.c.bf16 %v8589_v57, %v8588_v61  ;;  %6357 = vst.msk [vmem:[#allocation4 + $0x60] sm:$0xff] %vm506_vm2, %v6341_v49 }
 0x363   : > { %v8437_v25 = vld [vmem:[#allocation4 + $0x50] ss:$2 sm:$0xff]  ;;  %v8439_v33 = vld [vmem:[#allocation4 + $0x51] ss:$2 sm:$0xff]  ;;  %v18743_v53 = vpop.f32.mrf.mxu1  ;;  %v6780_v43 = vpop.f32.mrf.mxu0  ;;  %v8569_v54 = vmul.f32 %v18735_v39, %v8521_v10  ;;  %v18758_v6 = vmul.f32 %v18731_v9, %v8521_v10 }
 0x364   : > { %6360 = vst.msk [vmem:[#allocation4 + $0x78] sm:$0xff] %vm506_vm2, %v6344_v18  ;;  %v6342_v52 = vmax.f32 %v6326_v3, 0.0  ;;  %v18747_v12 = vadd.f32 %v6780_v43, %v6635_v59  ;;  %13599 = vmatprep.mubr.msk.bf16.mxu0 %vm506_vm2, %v8596_v38  ;;  %v8441_v20 = vmax.f32 %v8437_v25, %v8439_v33 }
 0x365   : > { %v8433_v51 = vld [vmem:[#allocation4 + $0x40] ss:$2 sm:$0xff]  ;;  %v8435_v55 = vld [vmem:[#allocation4 + $0x41] ss:$2 sm:$0xff]  ;;  %v13389_v37 = vpop.f32.mrf.mxu1  ;;  %v13410_v8 = vpop.f32.mrf.mxu0  ;;  %v8576_v44 = vpack.c.bf16 %v8569_v54, %v8568_v2  ;;  %20765 = vst [vmem:[#allocation30_spill] sm:$0xff] %v18758_v6 }
 0x366   : > { %v8440_v47 = vmax.f32 %v8433_v51, %v8435_v55  ;;  %6358 = vst.msk [vmem:[#allocation4 + $0x68] sm:$0xff] %vm506_vm2, %v6342_v52  ;;  %v18751_v17 = vadd.f32 %v13410_v8, %v13386_v11 }
 0x367   : > { %13615 = vmatprep.mubr.msk.bf16.mxu1 %vm506_vm2, %v8576_v44  ;;  %v6651_v16 = vpop.f32.mrf.mxu1  ;;  %v18754_v35 = vpop.f32.mrf.mxu0 }
 0x368   : > { %v8442_v29 = vmax.f32 %v8440_v47, %v8441_v20 }
 0x369   : > { %v13390_v5 = vpop.f32.mrf.mxu1  ;;  %v13413_v26 = vpop.f32.mrf.mxu0  ;;  %v8522_v30 = vld [vmem:[#allocation5 + $0x17] sm:$0xff] }
 0x36a   : > { %8443 = vst.msk [vmem:[#allocation5 + $0x20] sm:$0xff] %vm506_vm2, %v8442_v29  ;;  %v6805_v48 = vadd.f32 %v13413_v26, %v13389_v37  ;;  %v18761_v32 = vmul.f32 %v18735_v39, %v8522_v30  ;;  %v18773_v34 = vld [vmem:[#allocation5 + $0x18] sm:$0xff]  ;;  %v8570_v27 = vmul.f32 %v18771_v56, %v8522_v30 }
 0x36b   : > { %v8449_v31 = vld [vmem:[#allocation4 + $0x70] ss:$2 sm:$0xff]  ;;  %v8451_v4 = vld [vmem:[#allocation4 + $0x71] ss:$2 sm:$0xff]  ;;  %v18763_v1 = vpop.f32.mrf.mxu1  ;;  %v6796_v28 = vpop.f32.mrf.mxu0  ;;  %20769 = vst [vmem:[#allocation51_spill] sm:$0xff] %v18773_v34 }
 0x36c   : > { %20766 = vst [vmem:[#allocation64_spill] sm:$0xff] %v18761_v32  ;;  %v6797_v21 = vadd.f32 %v6796_v28, %v6651_v16  ;;  %v8453_v50 = vmax.f32 %v8449_v31, %v8451_v4 }
 0x36d   : > { %v8445_v7 = vld [vmem:[#allocation4 + $0x60] ss:$2 sm:$0xff]  ;;  %v8447_v41 = vld [vmem:[#allocation4 + $0x61] ss:$2 sm:$0xff]  ;;  %v13393_v60 = vpop.f32.mrf.mxu1  ;;  %v13414_v13 = vpop.f32.mrf.mxu0 }
 0x36e   : > { %v8452_v46 = vmax.f32 %v8445_v7, %v8447_v41  ;;  %v6808_v40 = vadd.f32 %v13414_v13, %v13390_v5 }
 0x36f   : > { %v6667_v58 = vpop.f32.mrf.mxu1  ;;  %v18767_v36 = vpop.f32.mrf.mxu0 }
 0x370   : > { %v8454_v23 = vmax.f32 %v8452_v46, %v8453_v50 }
 0x371   : > { %v13394_v45 = vpop.f32.mrf.mxu1  ;;  %v13417_v42 = vpop.f32.mrf.mxu0  ;;  %v18775_v59 = vld [vmem:[#allocation5 + $0x20] sm:$0xff] }
 0x372   : > { %20770 = vst [vmem:[#allocation70_spill] sm:$0xff] %v18775_v59  ;;  %v18777_v61 = vld [vmem:[#allocation5 + $0x1f] sm:$0xff]  ;;  %8455 = vst.msk [vmem:[#allocation5 + $0x28] sm:$0xff] %vm506_vm2, %v8454_v23  ;;  %v6821_v19 = vadd.f32 %v13417_v42, %v13393_v60  ;;  %v8597_v63 = vpack.c.bf16 %v18775_v59, %v18773_v34 }
 0x373   : > { %20771 = vst [vmem:[#allocation18_spill] sm:$0xff] %v18777_v61  ;;  %v8571_v22 = vmul.f32 %v18769_v62, %v18777_v61  ;;  %v18785_v49 = vpop.f32.mrf.mxu1  ;;  %v6812_v11 = vpop.f32.mrf.mxu0 }
 0x374   : > { %v6813_v24 = vadd.f32 %v6812_v11, %v6667_v58  ;;  %13600 = vmatmul.mubr.msk.bf16.vlgmr.msra.gmra.mxu0 %vm506_vm2, %v8597_v63 }
 0x375   : > { %v8577_v57 = vpack.c.bf16 %v8571_v22, %v8570_v27  ;;  %v13397_v10 = vpop.f32.mrf.mxu1  ;;  %v13418_v18 = vpop.f32.mrf.mxu0 }
 0x376   : > { %v6824_v3 = vadd.f32 %v13418_v18, %v13394_v45 }
 0x377   : > { %13616 = vmatmul.mubr.msk.bf16.vlgmr.msra.gmra.mxu1 %vm506_vm2, %v8577_v57  ;;  %v6683_v38 = vpop.f32.mrf.mxu1  ;;  %v18789_v2 = vpop.f32.mrf.mxu0 }
 0x379   : > { %v13398_v25 = vpop.f32.mrf.mxu1  ;;  %v13421_v33 = vpop.f32.mrf.mxu0 }
 0x37a   : > { %v6837_v43 = vadd.f32 %v13421_v33, %v13397_v10  ;;  %v14101_v10 = vld [vmem:[%s20018_s10 + $0x48] sm:$0xff]  }
 0x37b   : > { %v18791_v54 = vpop.f32.mrf.mxu1  ;;  %v6828_v52 = vpop.f32.mrf.mxu0 }
 0x37c   : > { %v6829_v51 = vadd.f32 %v6828_v52, %v6683_v38  ;;  %v14103_v52 = vld [vmem:[%s20018_s10 + $0x40] sm:$0xff]  }
 0x37d   : > { %v13422_v55 = vpop.f32.mrf.mxu0  ;;  %v13433_v37 = vpop.f32.mrf.mxu1 }
 0x37e   : > { %v6840_v8 = vadd.f32 %v13422_v55, %v13398_v25  ;;  %v18794_v44 = vadd.f32 %v13433_v37, %v18739_v0  ;;  %v14104_v55 = vld [vmem:[%s20018_s10 + $0x60] sm:$0xff]  }
 0x37f   : > { %v18796_v20 = vpop.f32.mrf.mxu0  ;;  %v7053_v47 = vpop.f32.mrf.mxu1 }
 0x380   : > { %v18799_v16 = vadd.f32 %v7053_v47, %v18747_v12 }
 0x381   : > { %v13434_v29 = vpop.f32.mrf.mxu1  ;;  %v18801_v5 = vpop.f32.mrf.mxu0 }
 0x382   : > { %v18804_v26 = vadd.f32 %v13434_v29, %v18751_v17 }
 0x383   : > { %v18806_v30 = vpop.f32.mrf.mxu1  ;;  %v18808_v31 = vpop.f32.mrf.mxu0 }
 0x385   : > { %v13437_v4 = vpop.f32.mrf.mxu1  ;;  %v18810_v28 = vpop.f32.mrf.mxu0 }
 0x386   : > { %v18812_v0 = vadd.f32 %v13437_v4, %v6805_v48  ;;  %v14097_v48 = vld [vmem:[%s20018_s10 + $0x58] sm:$0xff]  }
 0x387   : > { %v7069_v7 = vpop.f32.mrf.mxu1  ;;  %v18814_v41 = vpop.f32.mrf.mxu0  ;;  %13623 = vmatprep.subr.bf16.mxu0 %v14097_v48 }
 0x388   : > { %v18816_v12 = vadd.f32 %v7069_v7, %v6797_v21  ;;  %v14098_v21 = vld [vmem:[%s20018_s10 + $0x78] sm:$0xff]   ;;  %13624 = vmatpush3.bf16.msra.mxu0 %v14097_v48 }
 0x389   : > { %v13438_v60 = vpop.f32.mrf.mxu1  ;;  %v18818_v13 = vpop.f32.mrf.mxu0  ;;  %13639 = vmatprep.subr.bf16.mxu1 %v14098_v21 }
 0x38a   : > { %v18820_v50 = vadd.f32 %v13438_v60, %v6808_v40  ;;  %v14099_v40 = vld [vmem:[%s20018_s10 + $0x50] sm:$0xff]   ;;  %13640 = vmatpush3.bf16.msra.mxu1 %v14098_v21  ;;  %v18881_v60 = vld [vmem:[%s20018_s10 + $0x98] sm:$0xff]  }
 0x38b   : > { %v18822_v17 = vpop.f32.mrf.mxu1  ;;  %v18824_v46 = vpop.f32.mrf.mxu0  ;;  %13625 = vmatprep.subr.bf16.mxu0 %v14099_v40  ;;  %20777 = vst [vmem:[#allocation71_spill] sm:$0xff] %v18881_v60 }
 0x38c   : > { %13626 = vmatpush3.bf16.msra.mxu0 %v14099_v40 }
 0x38d   : > { %v13441_v58 = vpop.f32.mrf.mxu1  ;;  %v18826_v23 = vpop.f32.mrf.mxu0  ;;  %13627 = vmatprep.subr.bf16.mxu0 %v14101_v10 }
 0x38e   : > { %v18828_v45 = vadd.f32 %v13441_v58, %v6821_v19  ;;  %v14100_v19 = vld [vmem:[%s20018_s10 + $0x70] sm:$0xff]   ;;  %v18886_v58 = vld [vmem:[%s20018_s10 + $0xb8] sm:$0xff]  }
 0x38f   : > { %v7085_v42 = vpop.f32.mrf.mxu1  ;;  %v18839_v63 = vpop.f32.mrf.mxu0  ;;  %13641 = vmatprep.subr.bf16.mxu1 %v14100_v19  ;;  %20778 = vst [vmem:[#allocation56_spill] sm:$0xff] %v18886_v58 }
 0x390   : > { %v18844_v27 = vadd.f32 %v7085_v42, %v6813_v24  ;;  %v14102_v24 = vld [vmem:[%s20018_s10 + $0x68] sm:$0xff]   ;;  %13642 = vmatpush3.bf16.msra.mxu1 %v14100_v19  ;;  %13628 = vmatpush3.bf16.msra.mxu0 %v14101_v10 }
 0x391   : > { %v13442_v22 = vpop.f32.mrf.mxu1  ;;  %v18846_v11 = vpop.f32.mrf.mxu0  ;;  %13643 = vmatprep.subr.bf16.mxu1 %v14102_v24  ;;  %13629 = vmatprep.subr.bf16.mxu0 %v14103_v52 }
 0x392   : > { %v18848_v57 = vadd.f32 %v13442_v22, %v6824_v3 }
 0x393   : > { %v18856_v18 = vpop.f32.mrf.mxu1  ;;  %v18858_v38 = vpop.f32.mrf.mxu0 }
 0x394   : > { %13644 = vmatpush3.bf16.msra.mxu1 %v14102_v24  ;;  %13630 = vmatpush3.bf16.msra.mxu0 %v14103_v52 }
 0x395   : > { %v13445_v25 = vpop.f32.mrf.mxu1  ;;  %v18860_v33 = vpop.f32.mrf.mxu0  ;;  %13645 = vmatprep.subr.bf16.mxu1 %v14104_v55  ;;  %13655 = vmatprep.subr.bf16.mxu0 %v18881_v60 }
 0x396   : > { %v18862_v3 = vadd.f32 %v13445_v25, %v6837_v43 }
 0x397   : > { %v7101_v37 = vpop.f32.mrf.mxu1  ;;  %v18870_v47 = vpop.f32.mrf.mxu0 }
 0x398   : > { %20772 = vst [vmem:[#allocation52_spill] sm:$0xff] %v18862_v3  ;;  %20773 = vst [vmem:[#allocation27_spill] sm:$0xff] %v18870_v47  ;;  %v18872_v29 = vadd.f32 %v7101_v37, %v6829_v51  ;;  %13646 = vmatpush3.bf16.msra.mxu1 %v14104_v55 }
 0x399   : > { %v13446_v4 = vpop.f32.mrf.mxu1  ;;  %v18874_v7 = vpop.f32.mrf.mxu0  ;;  %13671 = vmatprep.subr.bf16.mxu1 %v18886_v58 }
 0x39a   : > { %20774 = vst [vmem:[#allocation66_spill] sm:$0xff] %v18872_v29  ;;  %20775 = vst [vmem:[#allocation60_spill] sm:$0xff] %v18874_v7  ;;  %v18876_v43 = vadd.f32 %v13446_v4, %v6840_v8 }
 0x39b   : > { %v18888_v51 = vpop.f32.mrf.mxu1  ;;  %v18890_v48 = vpop.f32.mrf.mxu0 }
 0x39c   : > { %20776 = vst [vmem:[#allocation57_spill] sm:$0xff] %v18876_v43  ;;  %20779 = vst [vmem:[#allocation50_spill] sm:$0xff] %v18888_v51 }
 0x39d   : > { %20780 = vst [vmem:[#allocation39_spill] sm:$0xff] %v18890_v48  ;;  %v18892_v21 = vpop.f32.mrf.mxu0  ;;  %v13481_v8 = vpop.f32.mrf.mxu1 }
 0x39e   : > { %20781 = vst [vmem:[#allocation29_spill] sm:$0xff] %v18892_v21 }
 0x39f   : > { %v18896_v40 = vpop.f32.mrf.mxu0  ;;  %v7455_v42 = vpop.f32.mrf.mxu1 }
 0x3a0   : > { %20782 = vst [vmem:[#allocation23_spill] sm:$0xff] %v18896_v40 }
 0x3a1   : > { %v18898_v19 = vpop.f32.mrf.mxu1  ;;  %v13505_v22 = vpop.f32.mrf.mxu0 }
 0x3a3   : > { %v18900_v10 = vpop.f32.mrf.mxu1  ;;  %v7664_v24 = vpop.f32.mrf.mxu0 }
 0x3a5   : > { %v18902_v25 = vpop.f32.mrf.mxu1  ;;  %v18904_v37 = vpop.f32.mrf.mxu0 }
 0x3a7   : > { %v18906_v4 = vpop.f32.mrf.mxu1  ;;  %v18908_v52 = vpop.f32.mrf.mxu0 }
 0x3a9   : > { %v18910_v55 = vpop.f32.mrf.mxu1  ;;  %v18912_v14 = vpop.f32.mrf.mxu0 }
 0x3ab   : > { %v18914_v9 = vpop.f32.mrf.mxu1  ;;  %v18916_v39 = vpop.f32.mrf.mxu0 }
 0x3ac   : > { %20783 = vst [vmem:[#allocation59_spill] sm:$0xff] %v18914_v9 }
 0x3ad   : > { %v18918_v59 = vpop.f32.mrf.mxu1  ;;  %v18920_v34 = vpop.f32.mrf.mxu0 }
 0x3ae   : > { %20784 = vst [vmem:[#allocation28_spill] sm:$0xff] %v18918_v59  ;;  %20785 = vst [vmem:[#allocation61_spill] sm:$0xff] %v18920_v34 }
 0x3af   : > { %v18922_v58 = vpop.f32.mrf.mxu1  ;;  %v18924_v60 = vpop.f32.mrf.mxu0 }
 0x3b0   : > { %20786 = vst [vmem:[#allocation37_spill] sm:$0xff] %v18922_v58  ;;  %20787 = vst [vmem:[#allocation41_spill] sm:$0xff] %v18924_v60 }
 0x3b1   : > { %v18926_v56 = vpop.f32.mrf.mxu1  ;;  %v18928_v61 = vpop.f32.mrf.mxu0 }
 0x3b2   : > { %20788 = vst [vmem:[#allocation26_spill] sm:$0xff] %v18926_v56  ;;  %20789 = vst [vmem:[#allocation67_spill] sm:$0xff] %v18928_v61 }
 0x3b3   : > { %v18930_v62 = vpop.f32.mrf.mxu1  ;;  %v18932_v6 = vpop.f32.mrf.mxu0 }
 0x3b4   : > { %20790 = vst [vmem:[#allocation40_spill] sm:$0xff] %v18930_v62  ;;  %20791 = vst [vmem:[#allocation38_spill] sm:$0xff] %v18932_v6 }
 0x3b5   : > { %v18934_v32 = vpop.f32.mrf.mxu1  ;;  %v18936_v40 = vpop.f32.mrf.mxu0 }
 0x3b6   : > { %20792 = vst [vmem:[#allocation63_spill] sm:$0xff] %v18934_v32  ;;  %20793 = vst [vmem:[#allocation33_spill] sm:$0xff] %v18936_v40 }
 0x3b7   : > { %v18938_v21 = vpop.f32.mrf.mxu1  ;;  %v18940_v43 = vpop.f32.mrf.mxu0 }
 0x3b8   : > { %20794 = vst [vmem:[#allocation69_spill] sm:$0xff] %v18938_v21  ;;  %20795 = vst [vmem:[#allocation58_spill] sm:$0xff] %v18940_v43 }
 0x3b9   : > { %v18942_v48 = vpop.f32.mrf.mxu1  ;;  %v18944_v29 = vpop.f32.mrf.mxu0 }
 0x3ba   : > { %20796 = vst [vmem:[#allocation21_spill] sm:$0xff] %v18942_v48  ;;  %20797 = vst [vmem:[#allocation49_spill] sm:$0xff] %v18944_v29 }
 0x3bb   : > { %v18946_v58 = vpop.f32.mrf.mxu1  ;;  %v18948_v56 = vpop.f32.mrf.mxu0 }
 0x3bc   : > { %20798 = vst [vmem:[#allocation32_spill] sm:$0xff] %v18946_v58  ;;  %20799 = vst [vmem:[#allocation34_spill] sm:$0xff] %v18948_v56 }
 0x3bd   : > { %v18950_v61 = vpop.f32.mrf.mxu0  ;;  %v13529_v62 = vpop.f32.mrf.mxu1 }
 0x3be   : > { %20800 = vst [vmem:[#allocation73_spill] sm:$0xff] %v18950_v61 }
 0x3bf   : > { %v18952_v6 = vpop.f32.mrf.mxu0  ;;  %v7873_v32 = vpop.f32.mrf.mxu1 }
 0x3c0   : > { %20801 = vst [vmem:[#allocation25_spill] sm:$0xff] %v18952_v6 }
 0x3c1   : > { %v13530_v51 = vpop.f32.mrf.mxu1  ;;  %v13553_v40 = vpop.f32.mrf.mxu0 }
 0x3c3   : > { %v7876_v60 = vpop.f32.mrf.mxu1  ;;  %v8066_v21 = vpop.f32.mrf.mxu0 }
 0x3c5   : > { %v18954_v59 = vpop.f32.mrf.mxu1  ;;  %v13554_v43 = vpop.f32.mrf.mxu0 }
 0x3c7   : > { %v18956_v48 = vpop.f32.mrf.mxu1  ;;  %v8069_v29 = vpop.f32.mrf.mxu0 }
 0x3c8   : > { %20802 = vst [vmem:[#allocation14_spill] sm:$0xff] %v18956_v48  ;;  %v7327_v48 = vadd.f32 %v18801_v5, %v18794_v44  ;;  %v6800_v5 = vadd.f32 %v18767_v36, %v18763_v1  ;;  %v7329_v36 = vadd.f32 %v18824_v46, %v18816_v12 }
 0x3c9   : > { %v18958_v7 = vpop.f32.mrf.mxu1  ;;  %v18960_v58 = vpop.f32.mrf.mxu0 }
 0x3ca   : > { %20803 = vst [vmem:[#allocation19_spill] sm:$0xff] %v18958_v7  ;;  %20804 = vst [vmem:[#allocation36_spill] sm:$0xff] %v18960_v58  ;;  %v7121_v1 = vadd.f32 %v18822_v17, %v6800_v5  ;;  %v7522_v46 = vadd.f32 %v18906_v4, %v7329_v36  ;;  %v20817_v5 = vld [vmem:[#allocation52_spill] sm:$0xff] }
 0x3cb   : > { %v18962_v56 = vpop.f32.mrf.mxu1  ;;  %v18966_v6 = vpop.f32.mrf.mxu0 }
 0x3cc   : > { %20805 = vst [vmem:[#allocation44_spill] sm:$0xff] %v18962_v56  ;;  %20807 = vst [vmem:[#allocation53_spill] sm:$0xff] %v18966_v6  ;;  %v6784_v56 = vadd.f32 %v18754_v35, %v18743_v53  ;;  %v7520_v6 = vadd.f32 %v13481_v8, %v7327_v48  ;;  %v6816_v53 = vadd.f32 %v18789_v2, %v18785_v49 }
 0x3cd   : > { %v18964_v61 = vpop.f32.mrf.mxu1  ;;  %v18972_v9 = vpop.f32.mrf.mxu0 }
 0x3ce   : > { %20806 = vst [vmem:[#allocation48_spill] sm:$0xff] %v18964_v61  ;;  %20810 = vst [vmem:[#allocation15_spill] sm:$0xff] %v18972_v9  ;;  %v7325_v61 = vadd.f32 %v18808_v31, %v18799_v16  ;;  %v7729_v44 = vadd.f32 %v13505_v22, %v7520_v6  ;;  %v7331_v6 = vadd.f32 %v18818_v13, %v18812_v0  ;;  %v20812_v22 = vld [vmem:[#allocation27_spill] sm:$0xff] }
 0x3cf   : > { %v18968_v3 = vpop.f32.mrf.mxu1  ;;  %v18984_v58 = vpop.f32.mrf.mxu0 }
 0x3d0   : > { %20808 = vst [vmem:[#allocation62_spill] sm:$0xff] %v18968_v3  ;;  %v7518_v9 = vadd.f32 %v7455_v42, %v7325_v61  ;;  %v7938_v8 = vadd.f32 %v13529_v62, %v7729_v44  ;;  %v6832_v61 = vadd.f32 %v18796_v20, %v18791_v54  ;;  %v7330_v54 = vadd.f32 %v18839_v63, %v7121_v1 }
 0x3d1   : > { %v18970_v34 = vpop.f32.mrf.mxu1  ;;  %v7335_v20 = vadd.f32 %v18846_v11, %v18828_v45  ;;  %v20821_v1 = vld [vmem:[#allocation19_spill] sm:$0xff] }
 0x3d2   : > { %20809 = vst [vmem:[#allocation46_spill] sm:$0xff] %v18970_v34  ;;  %v7117_v34 = vadd.f32 %v18806_v30, %v6784_v56  ;;  %v7727_v48 = vadd.f32 %v7664_v24, %v7518_v9  ;;  %v18999_v56 = vpop.f32.mrf.mxu0  ;;  %v8131_v2 = vadd.f32 %v13553_v40, %v7938_v8  ;;  %v7524_v30 = vadd.f32 %v18902_v25, %v7331_v6  ;;  %v20813_v24 = vld [vmem:[#allocation59_spill] sm:$0xff]  ;;  %v20820_v8 = vld [vmem:[#allocation41_spill] sm:$0xff] }
 0x3d3   : > { %v18974_v47 = vpop.f32.mrf.mxu1  ;;  %v7523_v25 = vadd.f32 %v20813_v24, %v7330_v54 }
 0x3d4   : > { %20811 = vst [vmem:[#allocation72_spill] sm:$0xff] %v18974_v47  ;;  %v7328_v47 = vadd.f32 %v18810_v28, %v18804_v26  ;;  %v7326_v16 = vadd.f32 %v18814_v41, %v7117_v34  ;;  %v7936_v62 = vadd.f32 %v7873_v32, %v7727_v48  ;;  %v7332_v26 = vadd.f32 %v18826_v23, %v18820_v50  ;;  %v19019_v13 = vpop.f32.mrf.mxu0 }
 0x3d5   : > { %v18978_v7 = vpop.f32.mrf.mxu1  ;;  %v7125_v32 = vadd.f32 %v18856_v18, %v6816_v53  ;;  %v7333_v50 = vadd.f32 %v18858_v38, %v18844_v27  ;;  %v7733_v23 = vadd.f32 %v18912_v14, %v7524_v30  ;;  %v7731_v18 = vadd.f32 %v18916_v39, %v7522_v46  ;;  %v20816_v39 = vld [vmem:[#allocation36_spill] sm:$0xff] }
 0x3d6   : > { %v7521_v31 = vadd.f32 %v18898_v19, %v7328_v47  ;;  %v7519_v34 = vadd.f32 %v18900_v10, %v7326_v16  ;;  %v8129_v12 = vadd.f32 %v8066_v21, %v7936_v62  ;;  %v7525_v21 = vadd.f32 %v18910_v55, %v7332_v26  ;;  %v19032_v19 = vpop.f32.mrf.mxu0  ;;  %v20818_v53 = vld [vmem:[#allocation60_spill] sm:$0xff] }
 0x3d7   : > { %v18986_v3 = vpop.f32.mrf.mxu1  ;;  %v7942_v42 = vadd.f32 %v18954_v59, %v7733_v23  ;;  %v7334_v10 = vadd.f32 %v20812_v22, %v7125_v32  ;;  %v7339_v16 = vadd.f32 %v20818_v53, %v20817_v5  ;;  %v7732_v6 = vadd.f32 %v20820_v8, %v7523_v25  ;;  %v20826_v32 = vld [vmem:[#allocation44_spill] sm:$0xff]  ;;  %v20838_v8 = vld [vmem:[#allocation23_spill] sm:$0xff] }
 0x3d8   : > { %v7730_v9 = vadd.f32 %v18904_v37, %v7521_v31  ;;  %v7728_v0 = vadd.f32 %v18908_v52, %v7519_v34  ;;  %v20814_v37 = vld [vmem:[#allocation61_spill] sm:$0xff]  ;;  %v20819_v31 = vld [vmem:[#allocation28_spill] sm:$0xff] }
 0x3d9   : > { %v18995_v35 = vpop.f32.mrf.mxu1  ;;  %v8135_v55 = vadd.f32 %v20816_v39, %v7942_v42  ;;  %v7528_v48 = vadd.f32 %v20819_v31, %v7335_v20  ;;  %v20825_v20 = vld [vmem:[#allocation67_spill] sm:$0xff]  ;;  %v7941_v46 = vadd.f32 %v20826_v32, %v7732_v6  ;;  %v20835_v39 = vld [vmem:[#allocation40_spill] sm:$0xff]  ;;  %v20844_v32 = vld [vmem:[#allocation49_spill] sm:$0xff] }
 0x3da   : > { %v7939_v41 = vadd.f32 %v13530_v51, %v7730_v9  ;;  %v7937_v63 = vadd.f32 %v7876_v60, %v7728_v0  ;;  %v7336_v51 = vadd.f32 %v18860_v33, %v18848_v57  ;;  %v7734_v57 = vadd.f32 %v20814_v37, %v7525_v21  ;;  %v20815_v33 = vld [vmem:[#allocation14_spill] sm:$0xff]  ;;  %v20822_v9 = vld [vmem:[#allocation53_spill] sm:$0xff] }
 0x3db   : > { %v19008_v49 = vpop.f32.mrf.mxu1  ;;  %v7940_v4 = vadd.f32 %v20815_v33, %v7731_v18  ;;  %v20828_v21 = vld [vmem:[#allocation66_spill] sm:$0xff]  ;;  %v20829_v18 = vld [vmem:[#allocation39_spill] sm:$0xff]  ;;  %v8134_v22 = vadd.f32 %v18984_v58, %v7941_v46  ;;  %v20833_v33 = vld [vmem:[#allocation57_spill] sm:$0xff] }
 0x3dc   : > { %v8132_v11 = vadd.f32 %v13554_v43, %v7939_v41  ;;  %v8130_v38 = vadd.f32 %v8069_v29, %v7937_v63  ;;  %v7943_v36 = vadd.f32 %v20821_v1, %v7734_v57  ;;  %v20824_v41 = vld [vmem:[#allocation37_spill] sm:$0xff]  ;;  %v7337_v42 = vadd.f32 %v20829_v18, %v20828_v21  ;;  %v20839_v1 = vld [vmem:[#allocation63_spill] sm:$0xff]  ;;  %v20845_v46 = vld [vmem:[#allocation72_spill] sm:$0xff] }
 0x3dd   : > { %v13577_v28 = vpop.f32.mrf.mxu1  ;;  %v8133_v62 = vadd.f32 %v20822_v9, %v7940_v4  ;;  %v20834_v4 = vld [vmem:[#allocation29_spill] sm:$0xff] }
 0x3de   : > { %v8340_v17 = vadd.f32 %v13577_v28, %v8131_v2  ;;  %v19048_v2 = vpop.f32.mrf.mxu0  ;;  %v20823_v28 = vld [vmem:[#allocation50_spill] sm:$0xff] }
 0x3df   : > { %v8275_v45 = vpop.f32.mrf.mxu1  ;;  %v7129_v0 = vadd.f32 %v20823_v28, %v6832_v61 }
 0x3e0   : > { %v8363_v47 = vadd.f32 %v18647_v15, %v8340_v17  ;;  %v8338_v40 = vadd.f32 %v8275_v45, %v8129_v12  ;;  %v7526_v12 = vadd.f32 %v20824_v41, %v7333_v50  ;;  %v7737_v17 = vadd.f32 %v20825_v20, %v7528_v48  ;;  %v20827_v45 = vld [vmem:[#allocation15_spill] sm:$0xff]  ;;  %v13565_v24 = vpop.f32.mrf.mxu0 }
 0x3e1   : > { %v13578_v27 = vpop.f32.mrf.mxu1  ;;  %v8136_v63 = vadd.f32 %v20827_v45, %v7943_v36  ;;  %v7338_v6 = vadd.f32 %v20838_v8, %v7129_v0  ;;  %v7532_v36 = vadd.f32 %v20839_v1, %v7339_v16 }
 0x3e2   : > { %v8379_v14 = vmax.f32 %v8363_v47, 0.0  ;;  %v8361_v60 = vadd.f32 %v18647_v15, %v8338_v40  ;;  %v8341_v43 = vadd.f32 %v13578_v27, %v8132_v11  ;;  %v20830_v27 = vld [vmem:[#allocation26_spill] sm:$0xff] }
 0x3e3   : > { %v8278_v52 = vpop.f32.mrf.mxu1  ;;  %v7529_v61 = vadd.f32 %v20830_v27, %v7336_v51  ;;  %v20836_v51 = vld [vmem:[#allocation33_spill] sm:$0xff]  ;;  %v7741_v16 = vadd.f32 %v20844_v32, %v7532_v36  ;;  %v20846_v27 = vld [vmem:[#allocation34_spill] sm:$0xff] }
 0x3e4   : > { %8395 = vst.msk [vmem:[#allocation4 + $0x90] sm:$0xff] %vm506_vm2, %v8379_v14  ;;  %v8377_v59 = vmax.f32 %v8361_v60, 0.0  ;;  %v8364_v29 = vadd.f32 %v18647_v15, %v8341_v43  ;;  %v8339_v44 = vadd.f32 %v8278_v52, %v8130_v38  ;;  %v20831_v38 = vld [vmem:[#allocation38_spill] sm:$0xff]  ;;  %v20832_v14 = vld [vmem:[#allocation48_spill] sm:$0xff]  ;;  %v7340_v52 = vadd.f32 %v20834_v4, %v20833_v33 }
 0x3e5   : > { %v13581_v34 = vpop.f32.mrf.mxu1  ;;  %v7735_v50 = vadd.f32 %v20831_v38, %v7526_v12  ;;  %v7946_v60 = vadd.f32 %v20832_v14, %v7737_v17  ;;  %v20842_v12 = vld [vmem:[#allocation69_spill] sm:$0xff]  ;;  %v7950_v38 = vadd.f32 %v18978_v7, %v7741_v16  ;;  %v20847_v4 = vld [vmem:[#allocation32_spill] sm:$0xff] }
 0x3e6   : > { %8393 = vst.msk [vmem:[#allocation4 + $0x80] sm:$0xff] %vm506_vm2, %v8377_v59  ;;  %v8380_v26 = vmax.f32 %v8364_v29, 0.0  ;;  %v8362_v54 = vadd.f32 %v18647_v15, %v8339_v44  ;;  %v8344_v30 = vadd.f32 %v13581_v34, %v8135_v55  ;;  %v7527_v55 = vadd.f32 %v20835_v39, %v7334_v10  ;;  %v20837_v29 = vld [vmem:[#allocation62_spill] sm:$0xff]  ;;  %v20843_v17 = vld [vmem:[#allocation21_spill] sm:$0xff] }
 0x3e7   : > { %v8291_v23 = vpop.f32.mrf.mxu1  ;;  %v7738_v59 = vadd.f32 %v20836_v51, %v7529_v61  ;;  %v7944_v44 = vadd.f32 %v20837_v29, %v7735_v50  ;;  %v8139_v53 = vadd.f32 %v18999_v56, %v7946_v60  ;;  %v20840_v34 = vld [vmem:[#allocation58_spill] sm:$0xff]  ;;  %v7530_v20 = vadd.f32 %v20842_v12, %v7337_v42  ;;  %v19091_v42 = vpop.permute.xlu1 %8826  ;;  %v20848_v7 = vld [vmem:[#allocation73_spill] sm:$0xff] }
 0x3e8   : > { %8396 = vst.msk [vmem:[#allocation4 + $0x98] sm:$0xff] %vm506_vm2, %v8380_v26  ;;  %v8378_v11 = vmax.f32 %v8362_v54, 0.0  ;;  %v8367_v47 = vadd.f32 %v18647_v15, %v8344_v30  ;;  %v8342_v40 = vadd.f32 %v8291_v23, %v8133_v62  ;;  %v7736_v9 = vadd.f32 %v20840_v34, %v7527_v55  ;;  %v20841_v10 = vld [vmem:[#allocation46_spill] sm:$0xff]  ;;  %v8114_v30 = vpop.f32.mrf.mxu0 }
 0x3e9   : > { %v13582_v43 = vpop.f32.mrf.mxu1  ;;  %v7947_v62 = vadd.f32 %v20841_v10, %v7738_v59  ;;  %v8137_v54 = vadd.f32 %v19019_v13, %v7944_v44  ;;  %v7533_v0 = vadd.f32 %v20843_v17, %v7340_v52  ;;  %v7739_v61 = vadd.f32 %v20846_v27, %v7530_v20 }
 0x3ea   : > { %8394 = vst.msk [vmem:[#allocation4 + $0x88] sm:$0xff] %vm506_vm2, %v8378_v11  ;;  %v8383_v25 = vmax.f32 %v8367_v47, 0.0  ;;  %v8365_v37 = vadd.f32 %v18647_v15, %v8342_v40  ;;  %v8345_v57 = vadd.f32 %v13582_v43, %v8136_v63  ;;  %v7945_v23 = vadd.f32 %v20845_v46, %v7736_v9  ;;  %v19086_v47 = vpop.permute.xlu0 %8821  ;;  %v19115_v46 = vld [vmem:[#allocation5 + $0x27] sm:$0xff] }
 0x3eb   : > { %v8294_v5 = vpop.f32.mrf.mxu1  ;;  %v8140_v13 = vadd.f32 %v19032_v19, %v7947_v62  ;;  %v7531_v52 = vadd.f32 %v20847_v4, %v7338_v6  ;;  %v7742_v39 = vadd.f32 %v20848_v7, %v7533_v0  ;;  %v8143_v55 = vadd.f32 %v13565_v24, %v7950_v38  ;;  %v19110_v34 = vpop.permute.xlu1 %8836 }
 0x3ec   : > { %8399 = vst.msk [vmem:[#allocation4 + $0xb0] sm:$0xff] %vm506_vm2, %v8383_v25  ;;  %v8381_v58 = vmax.f32 %v8365_v37, 0.0  ;;  %v8368_v31 = vadd.f32 %v18647_v15, %v8345_v57  ;;  %v8343_v48 = vadd.f32 %v8294_v5, %v8134_v22  ;;  %v8138_v50 = vadd.f32 %v19048_v2, %v7945_v23  ;;  %v13566_v25 = vpop.f32.mrf.mxu0 }
 0x3ed   : > { %v13585_v26 = vpop.f32.mrf.mxu1  ;;  %v7948_v2 = vadd.f32 %v18986_v3, %v7739_v61 }
 0x3ee   : > { %8397 = vst.msk [vmem:[#allocation4 + $0xa0] sm:$0xff] %vm506_vm2, %v8381_v58  ;;  %v8384_v56 = vmax.f32 %v8368_v31, 0.0  ;;  %v8366_v28 = vadd.f32 %v18647_v15, %v8343_v48  ;;  %v8348_v41 = vadd.f32 %v13585_v26, %v8139_v53  ;;  %v20849_v53 = vld [vmem:[#allocation25_spill] sm:$0xff]  ;;  %v7951_v31 = vadd.f32 %v18995_v35, %v7742_v39  ;;  %v19106_v8 = vpop.permute.xlu0 %8831  ;;  %v8117_v1 = vpop.f32.mrf.mxu0 }
 0x3ef   : > { %v8461_v45 = vld [vmem:[#allocation4 + $0x90] ss:$2 sm:$0xff]  ;;  %v8463_v63 = vld [vmem:[#allocation4 + $0x91] ss:$2 sm:$0xff]  ;;  %v8307_v11 = vpop.f32.mrf.mxu1  ;;  %v7740_v58 = vadd.f32 %v20849_v53, %v7531_v52  ;;  %v8141_v6 = vadd.f32 %v8114_v30, %v7948_v2 }
 0x3f0   : > { %8400 = vst.msk [vmem:[#allocation4 + $0xb8] sm:$0xff] %vm506_vm2, %v8384_v56  ;;  %v8382_v40 = vmax.f32 %v8366_v28, 0.0  ;;  %v8371_v21 = vadd.f32 %v18647_v15, %v8348_v41  ;;  %v8346_v18 = vadd.f32 %v8307_v11, %v8137_v54  ;;  %v8465_v14 = vmax.f32 %v8461_v45, %v8463_v63  ;;  %v14217_v15 = vld [vmem:[%s20017_s9] ss:$0 sm:$0xff]  ;;  %v19144_v2 = vld [vmem:[#allocation5 + $0x11] sm:$0xff] }
 0x3f1   : > { %v8457_v60 = vld [vmem:[#allocation4 + $0x80] ss:$2 sm:$0xff]  ;;  %v8459_v43 = vld [vmem:[#allocation4 + $0x81] ss:$2 sm:$0xff]  ;;  %v13586_v22 = vpop.f32.mrf.mxu1  ;;  %v7949_v9 = vadd.f32 %v19008_v49, %v7740_v58  ;;  %v8144_v35 = vadd.f32 %v13566_v25, %v7951_v31 }
 0x3f2   : > { %v8464_v19 = vmax.f32 %v8457_v60, %v8459_v43  ;;  %8398 = vst.msk [vmem:[#allocation4 + $0xa8] sm:$0xff] %vm506_vm2, %v8382_v40  ;;  %v8387_v37 = vmax.f32 %v8371_v21, 0.0  ;;  %v8369_v57 = vadd.f32 %v14217_v15, %v8346_v18  ;;  %v8349_v33 = vadd.f32 %v13586_v22, %v8140_v13  ;;  %v19117_v45 = vpop.permute.xlu0 %8550  ;;  %v19120_v21 = vpop.permute.xlu1 %8555  ;;  %v19122_v18 = vld [vmem:[#allocation5 + $0x28] sm:$0xff] }
 0x3f3   : > { %v8310_v51 = vpop.f32.mrf.mxu1  ;;  %v8142_v28 = vadd.f32 %v8117_v1, %v7949_v9  ;;  %v8572_v38 = vmul.f32 %v19117_v45, %v19115_v46 }
 0x3f4   : > { %v8466_v59 = vmax.f32 %v8464_v19, %v8465_v14  ;;  %8403 = vst.msk [vmem:[#allocation4 + $0xd0] sm:$0xff] %vm506_vm2, %v8387_v37  ;;  %v8385_v29 = vmax.f32 %v8369_v57, 0.0  ;;  %v8372_v44 = vadd.f32 %v14217_v15, %v8349_v33  ;;  %v8347_v5 = vadd.f32 %v8310_v51, %v8138_v50 }
 0x3f5   : > { %v13589_v48 = vpop.f32.mrf.mxu1 }
 0x3f6   : > { %8467 = vst.msk [vmem:[#allocation5 + $0x30] sm:$0xff] %vm506_vm2, %v8466_v59  ;;  %8401 = vst.msk [vmem:[#allocation4 + $0xc0] sm:$0xff] %vm506_vm2, %v8385_v29  ;;  %v8388_v3 = vmax.f32 %v8372_v44, 0.0  ;;  %v8370_v24 = vadd.f32 %v14217_v15, %v8347_v5  ;;  %v8352_v36 = vadd.f32 %v13589_v48, %v8143_v55  ;;  %v8811_v44 = vld [vmem:[#allocation5 + $0x9] sm:$0xff]  ;;  %v8860_v5 = vmul.f32 %v19091_v42, %v19144_v2  ;;  %v19150_v58 = vpop.permute.xlu1 %8565  ;;  %v19152_v48 = vpop.permute.xlu0 %8560 }
 0x3f7   : > { %v8473_v10 = vld [vmem:[#allocation4 + $0xb0] ss:$2 sm:$0xff]  ;;  %v8475_v62 = vld [vmem:[#allocation4 + $0xb1] ss:$2 sm:$0xff]  ;;  %v8323_v26 = vpop.f32.mrf.mxu1 }
 0x3f8   : > { %8404 = vst.msk [vmem:[#allocation4 + $0xd8] sm:$0xff] %vm506_vm2, %v8388_v3  ;;  %v8386_v54 = vmax.f32 %v8370_v24, 0.0  ;;  %v8375_v30 = vadd.f32 %v14217_v15, %v8352_v36  ;;  %v8350_v56 = vadd.f32 %v8323_v26, %v8141_v6  ;;  %v8477_v41 = vmax.f32 %v8473_v10, %v8475_v62  ;;  %v19170_v26 = vld [vmem:[#allocation5 + $0x21] sm:$0xff] }
 0x3f9   : > { %v8469_v12 = vld [vmem:[#allocation4 + $0xa0] ss:$2 sm:$0xff]  ;;  %v8471_v20 = vld [vmem:[#allocation4 + $0xa1] ss:$2 sm:$0xff]  ;;  %v13590_v17 = vpop.f32.mrf.mxu1  ;;  %v8859_v3 = vmul.f32 %v19086_v47, %v8811_v44 }
 0x3fa   : > { %v8476_v0 = vmax.f32 %v8469_v12, %v8471_v20  ;;  %8402 = vst.msk [vmem:[#allocation4 + $0xc8] sm:$0xff] %vm506_vm2, %v8386_v54  ;;  %v8391_v32 = vmax.f32 %v8375_v30, 0.0  ;;  %v8373_v16 = vadd.f32 %v14217_v15, %v8350_v56  ;;  %v8353_v49 = vadd.f32 %v13590_v17, %v8144_v35  ;;  %v19177_v30 = vld [vmem:[#allocation5 + $0x19] sm:$0xff]  ;;  %v19179_v56 = vpop.permute.xlu1 %8846  ;;  %v20850_v12 = vld [vmem:[#allocation64_spill] sm:$0xff]  ;;  %v14110_v44 = vld [vmem:[%s20018_s10 + $0xa8] sm:$0xff]  }
 0x3fb   : > { %v8326_v23 = vpop.f32.mrf.mxu1  ;;  %v8867_v62 = vpack.c.bf16 %v8860_v5, %v8859_v3  ;;  %v20851_v20 = vld [vmem:[#allocation30_spill] sm:$0xff]  ;;  %v9266_v5 = vmul.f32 %v19091_v42, %v19177_v30  ;;  %v9127_v3 = vld [vmem:[#allocation5 + $0x10] sm:$0xff] }
 0x3fc   : > { %v8478_v63 = vmax.f32 %v8476_v0, %v8477_v41  ;;  %8407 = vst.msk [vmem:[#allocation4 + $0xf0] sm:$0xff] %vm506_vm2, %v8391_v32  ;;  %v8389_v11 = vmax.f32 %v8373_v16, 0.0  ;;  %v8376_v13 = vadd.f32 %v14217_v15, %v8353_v49  ;;  %v8351_v40 = vadd.f32 %v8326_v23, %v8142_v28  ;;  %v19192_v32 = vpop.permute.xlu0 %8841  ;;  %v20853_v49 = vld [vmem:[#allocation65_spill] sm:$0xff] }
 0x3fd   : > { %v19124_v27 = vld [vmem:[#allocation5 + $0x30] sm:$0xff]  ;;  %v8862_v28 = vmul.f32 %v19110_v34, %v19170_v26  ;;  %v20852_v17 = vpack.c.bf16 %v20850_v12, %v20851_v20  ;;  %v8861_v16 = vmul.f32 %v19106_v8, %v19177_v30  ;;  %v9000_v23 = vmul.f32 %v20853_v49, %v19115_v46  ;;  %v14112_v20 = vld [vmem:[%s20018_s10 + $0xa0] sm:$0xff]  }
 0x3fe   : > { %v19126_v61 = vld [vmem:[#allocation5 + $0x2f] sm:$0xff]  ;;  %8479 = vst.msk [vmem:[#allocation5 + $0x38] sm:$0xff] %vm506_vm2, %v8478_v63  ;;  %8405 = vst.msk [vmem:[#allocation4 + $0xe0] sm:$0xff] %vm506_vm2, %v8389_v11  ;;  %v8392_v50 = vmax.f32 %v8376_v13, 0.0  ;;  %v8374_v14 = vadd.f32 %v14217_v15, %v8351_v40  ;;  %v19134_v60 = vpack.c.bf16 %v19124_v27, %v19122_v18  ;;  %v20854_v40 = vld [vmem:[#allocation18_spill] sm:$0xff] }
 0x3ff   : > { %v8573_v43 = vmul.f32 %v19120_v21, %v19126_v61  ;;  %v8485_v22 = vld [vmem:[#allocation4 + $0xd0] ss:$2 sm:$0xff]  ;;  %v8487_v25 = vld [vmem:[#allocation4 + $0xd1] ss:$2 sm:$0xff]  ;;  %v8868_v13 = vpack.c.bf16 %v8862_v28, %v8861_v16  ;;  %v9265_v28 = vmul.f32 %v19086_v47, %v19144_v2 }
 0x400   : > { %8408 = vst.msk [vmem:[#allocation4 + $0xf8] sm:$0xff] %vm506_vm2, %v8392_v50  ;;  %v8390_v19 = vmax.f32 %v8374_v14, 0.0  ;;  %13603 = vmatprep.mubr.msk.bf16.mxu0 %vm506_vm2, %v19134_v60  ;;  %v8489_v4 = vmax.f32 %v8485_v22, %v8487_v25  ;;  %v19184_v41 = vld [vmem:[#allocation5 + $0x29] sm:$0xff]  ;;  %v9001_v22 = vmul.f32 %v19117_v45, %v19126_v61  ;;  %v14114_v16 = vld [vmem:[%s20018_s10 + $0xf8] sm:$0xff]  }
 0x401   : > { %v8578_v37 = vpack.c.bf16 %v8573_v43, %v8572_v38  ;;  %v8481_v57 = vld [vmem:[#allocation4 + $0xc0] ss:$2 sm:$0xff]  ;;  %v8483_v33 = vld [vmem:[#allocation4 + $0xc1] ss:$2 sm:$0xff]  ;;  %v8863_v63 = vmul.f32 %v19192_v32, %v19184_v41  ;;  %v20855_v38 = vld [vmem:[#allocation68_spill] sm:$0xff]  ;;  %v9268_v2 = vmul.f32 %v19110_v34, %v19184_v41 }
 0x402   : > { %v8488_v15 = vmax.f32 %v8481_v57, %v8483_v33  ;;  %8406 = vst.msk [vmem:[#allocation4 + $0xe8] sm:$0xff] %vm506_vm2, %v8390_v19  ;;  %v8999_v50 = vmul.f32 %v20855_v38, %v20854_v40  ;;  %v14107_v14 = vld [vmem:[%s20018_s10 + $0x90] sm:$0xff]   ;;  %v19215_v57 = vpop.permute.xlu1 %8856  ;;  %v20856_v33 = vld [vmem:[#allocation71_spill] sm:$0xff] }
 0x403   : > { %13619 = vmatprep.mubr.msk.bf16.mxu1 %vm506_vm2, %v8578_v37  ;;  %v14108_v37 = vld [vmem:[%s20018_s10 + $0xb0] sm:$0xff]  }
 0x404   : > { %v8490_v52 = vmax.f32 %v8488_v15, %v8489_v4  ;;  %v9006_v19 = vpack.c.bf16 %v9000_v23, %v8999_v50  ;;  %v14115_v40 = vld [vmem:[%s20018_s10 + $0xd0] sm:$0xff]  }
 0x405   : > { %v19148_v53 = vld [vmem:[#allocation5 + $0x37] sm:$0xff] }
 0x406   : > { %8491 = vst.msk [vmem:[#allocation5 + $0x40] sm:$0xff] %vm506_vm2, %v8490_v52  ;;  %v19154_v6 = vld [vmem:[#allocation5 + $0x38] sm:$0xff]  ;;  %v8574_v9 = vmul.f32 %v19152_v48, %v19148_v53  ;;  %v9002_v11 = vmul.f32 %v19120_v21, %v19148_v53 }
 0x407   : > { %v8497_v7 = vld [vmem:[#allocation4 + $0xf0] ss:$2 sm:$0xff]  ;;  %v8499_v39 = vld [vmem:[#allocation4 + $0xf1] ss:$2 sm:$0xff]  ;;  %v9137_v50 = vpack.c.bf16 %v19154_v6, %v19124_v27  ;;  %v14117_v27 = vld [vmem:[%s20018_s10 + $0xc8] sm:$0xff]  }
 0x408   : > { %v8501_v59 = vmax.f32 %v8497_v7, %v8499_v39  ;;  %v19174_v54 = vld [vmem:[#allocation5 + $0x31] sm:$0xff]  ;;  %v9007_v4 = vpack.c.bf16 %v9002_v11, %v9001_v22  ;;  %v14109_v7 = vld [vmem:[%s20018_s10 + $0x88] sm:$0xff]   ;;  %v9396_v22 = vld [vmem:[#allocation5 + $0x1f] sm:$0xff] }
 0x409   : > { %v8493_v55 = vld [vmem:[#allocation4 + $0xe0] ss:$2 sm:$0xff]  ;;  %v8495_v51 = vld [vmem:[#allocation4 + $0xe1] ss:$2 sm:$0xff]  ;;  %v8864_v0 = vmul.f32 %v19179_v56, %v19174_v54 }
 0x40a   : > { %v8500_v29 = vmax.f32 %v8493_v55, %v8495_v51  ;;  %v19229_v55 = vpop.permute.xlu0 %8851  ;;  %v20857_v51 = vld [vmem:[#allocation56_spill] sm:$0xff] }
 0x40b   : > { %v8869_v43 = vpack.c.bf16 %v8864_v0, %v8863_v63  ;;  %v14113_v0 = vld [vmem:[%s20018_s10 + $0xd8] sm:$0xff]   ;;  %v20859_v63 = vld [vmem:[#allocation70_spill] sm:$0xff] }
 0x40c   : > { %v8502_v31 = vmax.f32 %v8500_v29, %v8501_v59  ;;  %v9136_v11 = vpack.c.bf16 %v19122_v18, %v20859_v63  ;;  %v14116_v18 = vld [vmem:[%s20018_s10 + $0xf0] sm:$0xff]  }
 0x40d   : > { %v19156_v1 = vld [vmem:[#allocation5 + $0x40] sm:$0xff]  ;;  %v9670_v63 = vld [vmem:[#allocation5 + $0x51] sm:$0xff] }
 0x40e   : > { %v19159_v24 = vld [vmem:[#allocation5 + $0x3f] sm:$0xff]  ;;  %8503 = vst.msk [vmem:[#allocation5 + $0x48] sm:$0xff] %vm506_vm2, %v8502_v31  ;;  %v19164_v36 = vpack.c.bf16 %v19156_v1, %v19154_v6  ;;  %v9395_v6 = vld [vmem:[#allocation5 + $0x17] sm:$0xff] }
 0x40f   : > { %v8575_v10 = vmul.f32 %v19150_v58, %v19159_v24  ;;  %v19219_v15 = vld [vmem:[#allocation5 + $0x39] sm:$0xff] }
 0x410   : > { %13604 = vmatmul.mubr.msk.bf16.gmra.mxu0 %vm506_vm2, %v19164_v36  ;;  %v8865_v59 = vmul.f32 %v19229_v55, %v19219_v15  ;;  %v9270_v23 = vmul.f32 %v19179_v56, %v19219_v15 }
 0x411   : > { %v8579_v35 = vpack.c.bf16 %v8575_v10, %v8574_v9  ;;  %13631 = vmatprep.mubr.msk.bf16.mxu0 %vm506_vm2, %v8867_v62  ;;  %v9003_v9 = vmul.f32 %v19152_v48, %v19159_v24  ;;  %v14111_v10 = vld [vmem:[%s20018_s10 + $0x80] sm:$0xff]   ;;  %v20858_v62 = vld [vmem:[#allocation51_spill] sm:$0xff] }
 0x413   : > { %13620 = vmatmul.mubr.msk.bf16.gmra.mxu1 %vm506_vm2, %v8579_v35  ;;  %v9135_v35 = vpack.c.bf16 %v20858_v62, %v9127_v3  ;;  %v9534_v3 = vld [vmem:[#allocation5 + $0x20] sm:$0xff]  ;;  %v9533_v62 = vld [vmem:[#allocation5 + $0x18] sm:$0xff] }
 0x414   : > { %13647 = vmatprep.mubr.msk.bf16.mxu1 %vm506_vm2, %v20852_v17  ;;  %v9273_v17 = vpack.c.bf16 %v9266_v5, %v9265_v28  ;;  %v14121_v28 = vld [vmem:[%s20018_s10 + $0x118] sm:$0xff]  }
 0x415   : > { %v19209_v25 = vld [vmem:[#allocation5 + $0x41] sm:$0xff] }
 0x416   : > { %v19221_v52 = vld [vmem:[#allocation5 + $0x47] sm:$0xff]  ;;  %v8866_v39 = vmul.f32 %v19215_v57, %v19209_v25 }
 0x417   : > { %v9004_v29 = vmul.f32 %v19221_v52, %v19150_v58 }
 0x418   : > { %13632 = vmatmul.mubr.msk.bf16.vlgmr.msra.gmra.mxu0 %vm506_vm2, %v8868_v13  ;;  %v8870_v31 = vpack.c.bf16 %v8866_v39, %v8865_v59  ;;  %v9267_v13 = vmul.f32 %v19106_v8, %v19170_v26  ;;  %v9271_v39 = vmul.f32 %v19229_v55, %v19209_v25  ;;  %v14118_v59 = vld [vmem:[%s20018_s10 + $0xe8] sm:$0xff]  }
 0x419   : > { %13656 = vmatpush3.bf16.msra.mxu0 %v20856_v33  ;;  %13635 = vmatprep.mubr.msk.bf16.mxu0 %vm506_vm2, %v8869_v43  ;;  %v9008_v12 = vpack.c.bf16 %v9004_v29, %v9003_v9  ;;  %v9134_v33 = vld [vmem:[#allocation5 + $0x48] sm:$0xff]  ;;  %v20861_v29 = vld [vmem:[#allocation42_spill] sm:$0xff] }
 0x41a   : > { %13657 = vmatprep.subr.bf16.mxu0 %v14107_v14  ;;  %v9274_v43 = vpack.c.bf16 %v9268_v2, %v9267_v13  ;;  %v9138_v5 = vpack.c.bf16 %v9134_v33, %v19156_v1  ;;  %v9541_v1 = vpack.c.bf16 %v9534_v3, %v9533_v62  ;;  %v14133_v13 = vld [vmem:[%s20020_s12 + $0x58] sm:$0xff]  }
 0x41b   : > { %13648 = vmatmul.mubr.msk.bf16.vlgmr.msra.gmra.mxu1 %vm506_vm2, %v9006_v19 }
 0x41c   : > { %13651 = vmatprep.mubr.msk.bf16.mxu1 %vm506_vm2, %v9007_v4  ;;  %13672 = vmatpush3.bf16.msra.mxu1 %v20857_v51  ;;  %v20860_v4 = vld [vmem:[#allocation47_spill] sm:$0xff] }
 0x41d   : > { %13673 = vmatprep.subr.bf16.mxu1 %v14108_v37  ;;  %13658 = vmatpush3.bf16.msra.mxu0 %v14107_v14  ;;  %v9269_v14 = vmul.f32 %v19192_v32, %v19174_v54 }
 0x41e   : > { %13659 = vmatprep.subr.bf16.mxu0 %v14109_v7 }
 0x41f   : > { %v9275_v19 = vpack.c.bf16 %v9270_v23, %v9269_v14  ;;  %v14124_v23 = vld [vmem:[%s20018_s10 + $0x100] sm:$0xff]   ;;  %v14136_v14 = vld [vmem:[%s20020_s12 + $0x10] sm:$0xff]  }
 0x420   : > { %13674 = vmatpush3.bf16.msra.mxu1 %v14108_v37  ;;  %13636 = vmatmul.mubr.msk.bf16.gmra.mxu0 %vm506_vm2, %v8870_v31  ;;  %v19283_v37 = vld [vmem:[#allocation5 + $0x49] sm:$0xff]  ;;  %v14119_v31 = vld [vmem:[%s20018_s10 + $0xc0] sm:$0xff]  }
 0x421   : > { %13675 = vmatprep.subr.bf16.mxu1 %v14110_v44  ;;  %13660 = vmatpush3.bf16.msra.mxu0 %v14109_v7  ;;  %v9404_v7 = vmul.f32 %v9396_v22, %v20860_v4  ;;  %v9272_v51 = vmul.f32 %v19283_v37, %v19215_v57  ;;  %v14139_v22 = vld [vmem:[%s20020_s12 + $0x40] sm:$0xff]  }
 0x422   : > { %13663 = vmatprep.mubr.msk.bf16.mxu0 %vm506_vm2, %v9135_v35  ;;  %13661 = vmatprep.subr.bf16.mxu0 %v14111_v10  ;;  %v14120_v35 = vld [vmem:[%s20018_s10 + $0xe0] sm:$0xff]  }
 0x423   : > { %13652 = vmatmul.mubr.msk.bf16.gmra.mxu1 %vm506_vm2, %v9008_v12  ;;  %v9406_v12 = vmul.f32 %v20853_v49, %v19126_v61  ;;  %v14122_v61 = vld [vmem:[%s20018_s10 + $0x110] sm:$0xff]  }
 0x424   : > { %13676 = vmatpush3.bf16.msra.mxu1 %v14110_v44  ;;  %13679 = vmatprep.mubr.msk.bf16.mxu1 %vm506_vm2, %v9273_v17  ;;  %v9403_v44 = vmul.f32 %v9395_v6, %v20861_v29  ;;  %v9405_v17 = vmul.f32 %v20855_v38, %v19115_v46  ;;  %v14123_v46 = vld [vmem:[%s20018_s10 + $0x108] sm:$0xff]  }
 0x425   : > { %13677 = vmatprep.subr.bf16.mxu1 %v14112_v20  ;;  %13662 = vmatpush3.bf16.msra.mxu0 %v14111_v10  ;;  %v9276_v10 = vpack.c.bf16 %v9272_v51, %v9271_v39 }
 0x426   : > { %13687 = vmatprep.subr.bf16.mxu0 %v14113_v0  ;;  %v9411_v9 = vpack.c.bf16 %v9404_v7, %v9403_v44  ;;  %v9412_v2 = vpack.c.bf16 %v9406_v12, %v9405_v17 }
 0x428   : > { %13678 = vmatpush3.bf16.msra.mxu1 %v14112_v20  ;;  %13664 = vmatmul.mubr.msk.bf16.vlgmr.msra.gmra.mxu0 %vm506_vm2, %v9136_v11  ;;  %v9408_v20 = vmul.f32 %v19120_v21, %v19159_v24  ;;  %v9540_v24 = vld [vmem:[#allocation5 + $0x50] sm:$0xff]  ;;  %v14132_v11 = vld [vmem:[%s20020_s12 + $0x20] sm:$0xff]  }
 0x429   : > { %13703 = vmatprep.subr.bf16.mxu1 %v14114_v16  ;;  %13688 = vmatpush3.bf16.msra.mxu0 %v14113_v0  ;;  %v9407_v0 = vmul.f32 %v19117_v45, %v19148_v53  ;;  %v9409_v45 = vmul.f32 %v19221_v52, %v19152_v48  ;;  %v9672_v53 = vmul.f32 %v19091_v42, %v19170_v26 }
 0x42a   : > { %13667 = vmatprep.mubr.msk.bf16.mxu0 %vm506_vm2, %v9137_v50  ;;  %13689 = vmatprep.subr.bf16.mxu0 %v14115_v40  ;;  %v9676_v42 = vmul.f32 %v19179_v56, %v19209_v25  ;;  %v9675_v26 = vmul.f32 %v19192_v32, %v19219_v15  ;;  %v14127_v32 = vld [vmem:[%s20020_s12 + $0x70] sm:$0xff]   ;;  %v14130_v15 = vld [vmem:[%s20020_s12 + $0x28] sm:$0xff]  }
 0x42b   : > { %13680 = vmatmul.mubr.msk.bf16.vlgmr.msra.gmra.mxu1 %vm506_vm2, %v9274_v43  ;;  %v9413_v49 = vpack.c.bf16 %v9408_v20, %v9407_v0  ;;  %v14128_v25 = vld [vmem:[%s20020_s12 + $0x30] sm:$0xff]   ;;  %v14137_v43 = vld [vmem:[%s20020_s12 + $0x48] sm:$0xff]  }
 0x42c   : > { %13683 = vmatprep.mubr.msk.bf16.mxu1 %vm506_vm2, %v9275_v19  ;;  %13704 = vmatpush3.bf16.msra.mxu1 %v14114_v16  ;;  %v9402_v16 = vld [vmem:[#allocation5 + $0x4f] sm:$0xff]  ;;  %v9681_v52 = vpack.c.bf16 %v9676_v42, %v9675_v26  ;;  %v14140_v19 = vld [vmem:[%s20020_s12] sm:$0xff]  }
 0x42d   : > { %13705 = vmatprep.subr.bf16.mxu1 %v14116_v18  ;;  %13690 = vmatpush3.bf16.msra.mxu0 %v14115_v40  ;;  %v9410_v21 = vmul.f32 %v9402_v16, %v19150_v58  ;;  %v9544_v58 = vpack.c.bf16 %v9540_v24, %v9134_v33  ;;  %v14134_v40 = vld [vmem:[%s20020_s12 + $0x18] sm:$0xff]   ;;  %v14135_v50 = vld [vmem:[%s20020_s12 + $0x50] sm:$0xff]  }
 0x42e   : > { %13691 = vmatprep.subr.bf16.mxu0 %v14117_v27 }
 0x42f   : > { %v9414_v38 = vpack.c.bf16 %v9410_v21, %v9409_v45 }
 0x430   : > { %13706 = vmatpush3.bf16.msra.mxu1 %v14116_v18  ;;  %13668 = vmatmul.mubr.msk.bf16.gmra.mxu0 %vm506_vm2, %v9138_v5  ;;  %v14138_v18 = vld [vmem:[%s20020_s12 + $0x8] sm:$0xff]  }
 0x431   : > { %13707 = vmatprep.subr.bf16.mxu1 %v14118_v59  ;;  %13692 = vmatpush3.bf16.msra.mxu0 %v14117_v27  ;;  %v19416_v27 = vld [vmem:[%s20020_s12 + $0xf8] sm:$0xff]  }
 0x432   : > { %13695 = vmatprep.mubr.msk.bf16.mxu0 %vm506_vm2, %v9411_v9  ;;  %13693 = vmatprep.subr.bf16.mxu0 %v14119_v31  ;;  %20863 = vst [vmem:[#allocation22_spill] sm:$0xff] %v19416_v27 }
 0x433   : > { %13684 = vmatmul.mubr.msk.bf16.gmra.mxu1 %vm506_vm2, %v9276_v10 }
 0x434   : > { %13708 = vmatpush3.bf16.msra.mxu1 %v14118_v59  ;;  %13711 = vmatprep.mubr.msk.bf16.mxu1 %vm506_vm2, %v9541_v1  ;;  %v13601_v6 = vpop.f32.mrf.mxu0 }
 0x435   : > { %13709 = vmatprep.subr.bf16.mxu1 %v14120_v35  ;;  %13694 = vmatpush3.bf16.msra.mxu0 %v14119_v31 }
 0x436   : > { %13719 = vmatprep.subr.bf16.mxu0 %v14121_v28  ;;  %v8679_v4 = vpop.f32.mrf.mxu0 }
 0x437   : > { %v13617_v33 = vpop.f32.mrf.mxu1 }
 0x438   : > { %13710 = vmatpush3.bf16.msra.mxu1 %v14120_v35  ;;  %13696 = vmatmul.mubr.msk.bf16.vlgmr.msra.gmra.mxu0 %vm506_vm2, %v9412_v2  ;;  %v13602_v39 = vpop.f32.mrf.mxu0 }
 0x439   : > { %13720 = vmatpush3.bf16.msra.mxu0 %v14121_v28  ;;  %13699 = vmatprep.mubr.msk.bf16.mxu0 %vm506_vm2, %v9413_v49  ;;  %v8780_v7 = vpop.f32.mrf.mxu1 }
 0x43a   : > { %13721 = vmatprep.subr.bf16.mxu0 %v14122_v61  ;;  %v8682_v59 = vpop.f32.mrf.mxu0 }
 0x43b   : > { %13712 = vmatmul.mubr.msk.bf16.vlgmr.msra.gmra.mxu1 %vm506_vm2, %v19134_v60  ;;  %v9671_v60 = vmul.f32 %v19086_v47, %v19177_v30  ;;  %v9674_v47 = vmul.f32 %v19110_v34, %v19174_v54  ;;  %v9677_v34 = vmul.f32 %v19283_v37, %v19229_v55  ;;  %v9678_v54 = vmul.f32 %v9670_v63, %v19215_v57  ;;  %v14129_v57 = vld [vmem:[%s20020_s12 + $0x68] sm:$0xff]   ;;  %v14131_v55 = vld [vmem:[%s20020_s12 + $0x60] sm:$0xff]   ;;  %v19411_v37 = vld [vmem:[%s20020_s12 + $0xb8] sm:$0xff]   ;;  %v13618_v51 = vpop.f32.mrf.mxu1 }
 0x43c   : > { %13715 = vmatprep.mubr.msk.bf16.mxu1 %vm506_vm2, %v19164_v36  ;;  %v9673_v36 = vmul.f32 %v19106_v8, %v19184_v41  ;;  %v14125_v8 = vld [vmem:[%s20020_s12 + $0x78] sm:$0xff]   ;;  %20862 = vst [vmem:[#allocation43_spill] sm:$0xff] %v19411_v37 }
 0x43d   : > { %13722 = vmatpush3.bf16.msra.mxu0 %v14122_v61  ;;  %v9679_v48 = vpack.c.bf16 %v9672_v53, %v9671_v60  ;;  %v9682_v56 = vpack.c.bf16 %v9678_v54, %v9677_v34  ;;  %13735 = vmatprep.subr.bf16.mxu1 %v14125_v8  ;;  %v14126_v41 = vld [vmem:[%s20020_s12 + $0x38] sm:$0xff]   ;;  %v8783_v29 = vpop.f32.mrf.mxu1 }
 0x43e   : > { %13723 = vmatprep.subr.bf16.mxu0 %v14123_v46  ;;  %v9680_v30 = vpack.c.bf16 %v9674_v47, %v9673_v36  ;;  %13736 = vmatpush3.bf16.msra.mxu1 %v14125_v8 }
 0x43f   : > { %13737 = vmatprep.subr.bf16.mxu1 %v14127_v32 }
 0x440   : > { %13700 = vmatmul.mubr.msk.bf16.gmra.mxu0 %vm506_vm2, %v9414_v38 }
 0x441   : > { %13724 = vmatpush3.bf16.msra.mxu0 %v14123_v46  ;;  %13727 = vmatprep.mubr.msk.bf16.mxu0 %vm506_vm2, %v9679_v48 }
 0x442   : > { %13725 = vmatprep.subr.bf16.mxu0 %v14124_v23  ;;  %13738 = vmatpush3.bf16.msra.mxu1 %v14127_v32  ;;  %v8781_v32 = vadd.f32 %v8780_v7, %v8679_v4 }
 0x443   : > { %13716 = vmatmul.mubr.msk.bf16.gmra.mxu1 %vm506_vm2, %v9544_v58  ;;  %13739 = vmatprep.subr.bf16.mxu1 %v14129_v57 }
 0x445   : > { %13726 = vmatpush3.bf16.msra.mxu0 %v14124_v23 }
 0x446   : > { %13759 = vmatprep.subr.bf16.mxu0 %v14126_v41  ;;  %13740 = vmatpush3.bf16.msra.mxu1 %v14129_v57 }
 0x447   : > { %13741 = vmatprep.subr.bf16.mxu1 %v14131_v55 }
 0x448   : > { %13728 = vmatmul.mubr.msk.bf16.vlgmr.msra.gmra.mxu0 %vm506_vm2, %v9680_v30 }
 0x449   : > { %13731 = vmatprep.mubr.msk.bf16.mxu0 %vm506_vm2, %v9681_v52  ;;  %13760 = vmatpush3.bf16.msra.mxu0 %v14126_v41 }
 0x44a   : > { %13761 = vmatprep.subr.bf16.mxu0 %v14128_v25  ;;  %13742 = vmatpush3.bf16.msra.mxu1 %v14131_v55  ;;  %v8792_v55 = vadd.f32 %v13618_v51, %v13602_v39 }
 0x44b   : > { %13743 = vmatprep.subr.bf16.mxu1 %v14133_v13 }
 0x44d   : > { %13762 = vmatpush3.bf16.msra.mxu0 %v14128_v25 }
 0x44e   : > { %13763 = vmatprep.subr.bf16.mxu0 %v14130_v15  ;;  %13744 = vmatpush3.bf16.msra.mxu1 %v14133_v13 }
 0x44f   : > { %13745 = vmatprep.subr.bf16.mxu1 %v14135_v50 }
 0x450   : > { %13732 = vmatmul.mubr.msk.bf16.gmra.mxu0 %vm506_vm2, %v9682_v56  ;;  %v8789_v56 = vadd.f32 %v13617_v33, %v13601_v6 }
 0x451   : > { %13764 = vmatpush3.bf16.msra.mxu0 %v14130_v15 }
 0x452   : > { %13765 = vmatprep.subr.bf16.mxu0 %v14132_v11  ;;  %13746 = vmatpush3.bf16.msra.mxu1 %v14135_v50  ;;  %v8784_v50 = vadd.f32 %v8783_v29, %v8682_v59 }
 0x453   : > { %13747 = vmatprep.subr.bf16.mxu1 %v14137_v43 }
 0x455   : > { %13766 = vmatpush3.bf16.msra.mxu0 %v14132_v11 }
 0x456   : > { %13767 = vmatprep.subr.bf16.mxu0 %v14134_v40  ;;  %13748 = vmatpush3.bf16.msra.mxu1 %v14137_v43 }
 0x457   : > { %13749 = vmatprep.subr.bf16.mxu1 %v14139_v22 }
 0x459   : > { %13768 = vmatpush3.bf16.msra.mxu0 %v14134_v40 }
 0x45a   : > { %13769 = vmatprep.subr.bf16.mxu0 %v14136_v14  ;;  %13750 = vmatpush3.bf16.msra.mxu1 %v14139_v22 }
 0x45b   : > { %13783 = vmatprep.subr.bf16.mxu1 %v19411_v37 }
 0x45d   : > { %13770 = vmatpush3.bf16.msra.mxu0 %v14136_v14 }
 0x45e   : > { %13771 = vmatprep.subr.bf16.mxu0 %v14138_v18 }
 0x461   : > { %13772 = vmatpush3.bf16.msra.mxu0 %v14138_v18 }
 0x462   : > { %13773 = vmatprep.subr.bf16.mxu0 %v14140_v19 }
 0x465   : > { %13774 = vmatpush3.bf16.msra.mxu0 %v14140_v19 }
 0x466   : > { %13807 = vmatprep.subr.bf16.mxu0 %v19416_v27 }
 0x4d0   : > { %v13605_v44 = vpop.f32.mrf.mxu0 }
 0x4d2   : > { %v8695_v5 = vpop.f32.mrf.mxu0 }
 0x4d3   : > { %v13621_v31 = vpop.f32.mrf.mxu1 }
 0x4d4   : > { %v13606_v3 = vpop.f32.mrf.mxu0  ;;  %v8805_v19 = vadd.f32 %v13621_v31, %v13605_v44 }
 0x4d5   : > { %v8796_v9 = vpop.f32.mrf.mxu1 }
 0x4d6   : > { %v19420_v10 = vpop.f32.mrf.mxu0  ;;  %v8797_v37 = vadd.f32 %v8796_v9, %v8695_v5 }
 0x4d7   : > { %v13622_v62 = vpop.f32.mrf.mxu1 }
 0x4d8   : > { %v13633_v1 = vpop.f32.mrf.mxu0 }
 0x4d9   : > { %v19422_v35 = vpop.f32.mrf.mxu1  ;;  %v8983_v25 = vadd.f32 %v13633_v1, %v8789_v56 }
 0x4da   : > { %v8950_v28 = vpop.f32.mrf.mxu0 }
 0x4db   : > { %v13649_v12 = vpop.f32.mrf.mxu1  ;;  %v8981_v11 = vadd.f32 %v8950_v28, %v8781_v32 }
 0x4dc   : > { %v13634_v20 = vpop.f32.mrf.mxu0  ;;  %v9121_v14 = vadd.f32 %v13649_v12, %v8983_v25  ;;  %v8800_v12 = vadd.f32 %v19422_v35, %v19420_v10 }
 0x4dd   : > { %v9088_v17 = vpop.f32.mrf.mxu1  ;;  %v8984_v43 = vadd.f32 %v13634_v20, %v8792_v55 }
 0x4de   : > { %v8953_v0 = vpop.f32.mrf.mxu0  ;;  %v9119_v6 = vadd.f32 %v9088_v17, %v8981_v11 }
 0x4df   : > { %v13650_v2 = vpop.f32.mrf.mxu1  ;;  %v8982_v33 = vadd.f32 %v8953_v0, %v8784_v50 }
 0x4e0   : > { %v13637_v61 = vpop.f32.mrf.mxu0  ;;  %v9122_v7 = vadd.f32 %v13650_v2, %v8984_v43 }
 0x4e1   : > { %v9091_v49 = vpop.f32.mrf.mxu1  ;;  %v8987_v1 = vadd.f32 %v13637_v61, %v8805_v19 }
 0x4e2   : > { %v8966_v16 = vpop.f32.mrf.mxu0  ;;  %v9120_v28 = vadd.f32 %v9091_v49, %v8982_v33  ;;  %v19440_v49 = vpop.permute.xlu0 %9858 }
 0x4e3   : > { %v13653_v46 = vpop.f32.mrf.mxu1  ;;  %v8985_v39 = vadd.f32 %v8966_v16, %v8797_v37 }
 0x4e4   : > { %v13638_v45 = vpop.f32.mrf.mxu0  ;;  %v9125_v20 = vadd.f32 %v13653_v46, %v8987_v1 }
 0x4e5   : > { %v9104_v21 = vpop.f32.mrf.mxu1 }
 0x4e6   : > { %v8969_v53 = vpop.f32.mrf.mxu0  ;;  %v9123_v0 = vadd.f32 %v9104_v21, %v8985_v39  ;;  %v19454_v11 = vpop.permute.xlu0 %9868 }
 0x4e7   : > { %v19424_v60 = vpop.f32.mrf.mxu1  ;;  %v8986_v2 = vadd.f32 %v8969_v53, %v8800_v12 }
 0x4e8   : > { %v13665_v38 = vpop.f32.mrf.mxu0 }
 0x4e9   : > { %v19426_v24 = vpop.f32.mrf.mxu1  ;;  %v9251_v27 = vadd.f32 %v13665_v38, %v9121_v14  ;;  %v19438_v38 = vpop.permute.xlu1 %9863 }
 0x4ea   : > { %v9218_v23 = vpop.f32.mrf.mxu0 }
 0x4eb   : > { %v13681_v48 = vpop.f32.mrf.mxu1  ;;  %v9249_v56 = vadd.f32 %v9218_v23, %v9119_v6 }
 0x4ec   : > { %v13666_v58 = vpop.f32.mrf.mxu0  ;;  %v9389_v32 = vadd.f32 %v13681_v48, %v9251_v27  ;;  %v9124_v48 = vadd.f32 %v19426_v24, %v8986_v2 }
 0x4ed   : > { %v9356_v47 = vpop.f32.mrf.mxu1  ;;  %v9252_v59 = vadd.f32 %v13666_v58, %v9122_v7  ;;  %v19447_v58 = vld [vmem:[%s20019_s11] ss:$0 sm:$0xff] }
 0x4ee   : > { %v9221_v42 = vpop.f32.mrf.mxu0  ;;  %v9387_v17 = vadd.f32 %v9356_v47, %v9249_v56 }
 0x4ef   : > { %v13682_v36 = vpop.f32.mrf.mxu1  ;;  %v9250_v5 = vadd.f32 %v9221_v42, %v9120_v28 }
 0x4f0   : > { %v13669_v26 = vpop.f32.mrf.mxu0  ;;  %v9390_v37 = vadd.f32 %v13682_v36, %v9252_v59 }
 0x4f1   : > { %v9359_v30 = vpop.f32.mrf.mxu1 }
 0x4f2   : > { %v9234_v52 = vpop.f32.mrf.mxu0 }
 0x4f3   : > { %v13685_v63 = vpop.f32.mrf.mxu1  ;;  %v9253_v10 = vadd.f32 %v9234_v52, %v9123_v0 }
 0x4f4   : > { %v13670_v34 = vpop.f32.mrf.mxu0 }
 0x4f5   : > { %v19428_v54 = vpop.f32.mrf.mxu1 }
 0x4f6   : > { %v19430_v8 = vpop.f32.mrf.mxu0 }
 0x4f7   : > { %v19432_v41 = vpop.f32.mrf.mxu1 }
 0x4f8   : > { %20864 = vst [vmem:[#allocation20_spill] sm:$0xff] %v19432_v41  ;;  %v13697_v15 = vpop.f32.mrf.mxu0 }
 0x4f9   : > { %v19434_v57 = vpop.f32.mrf.mxu1  ;;  %v9527_v9 = vadd.f32 %v13697_v15, %v9389_v32 }
 0x4fa   : > { %20865 = vst [vmem:[#allocation45_spill] sm:$0xff] %v19434_v57  ;;  %v9494_v13 = vpop.f32.mrf.mxu0  ;;  %v8808_v57 = vadd.f32 %v13622_v62, %v13606_v3  ;;  %v9255_v3 = vadd.f32 %v13669_v26, %v9125_v20  ;;  %v19475_v20 = vpop.permute.xlu0 %10189 }
 0x4fb   : > { %v13713_v40 = vpop.f32.mrf.mxu1  ;;  %v9525_v62 = vadd.f32 %v9494_v13, %v9387_v17 }
 0x4fc   : > { %v13698_v18 = vpop.f32.mrf.mxu0  ;;  %v8988_v44 = vadd.f32 %v13638_v45, %v8808_v57  ;;  %v9388_v45 = vadd.f32 %v9359_v30, %v9250_v5  ;;  %v9657_v46 = vadd.f32 %v13713_v40, %v9527_v9  ;;  %v9393_v47 = vadd.f32 %v13685_v63, %v9255_v3  ;;  %v19451_v57 = vpop.permute.xlu1 %9873 }
 0x4fd   : > { %v9624_v22 = vpop.f32.mrf.mxu1  ;;  %v9528_v23 = vadd.f32 %v13698_v18, %v9390_v37  ;;  %v9254_v30 = vadd.f32 %v19430_v8, %v9124_v48 }
 0x4fe   : > { %v9497_v41 = vpop.f32.mrf.mxu0  ;;  %v9126_v16 = vadd.f32 %v19424_v60, %v8988_v44  ;;  %v9655_v42 = vadd.f32 %v9624_v22, %v9525_v62  ;;  %v9391_v60 = vadd.f32 %v19428_v54, %v9253_v10  ;;  %v19471_v44 = vld [vmem:[#allocation6] sm:$0xff] }
 0x4ff   : > { %v13714_v4 = vpop.f32.mrf.mxu1  ;;  %v9526_v36 = vadd.f32 %v9497_v41, %v9388_v45  ;;  %v20866_v13 = vld [vmem:[#allocation20_spill] sm:$0xff]  ;;  %v9848_v62 = vld [vmem:[#allocation6 + $0x7] sm:$0xff] }
 0x500   : > { %v13701_v51 = vpop.f32.mrf.mxu0  ;;  %v9256_v21 = vadd.f32 %v13670_v34, %v9126_v16  ;;  %v9658_v24 = vadd.f32 %v13714_v4, %v9528_v23  ;;  %v19465_v28 = vpop.permute.xlu1 %10194  ;;  %v14143_v45 = vld [vmem:[%s20020_s12 + $0xb0] sm:$0xff]  }
 0x501   : > { %v9627_v29 = vpop.f32.mrf.mxu1  ;;  %v9531_v34 = vadd.f32 %v13701_v51, %v9393_v47  ;;  %v20867_v18 = vld [vmem:[#allocation45_spill] sm:$0xff] }
 0x502   : > { %v9510_v31 = vpop.f32.mrf.mxu0  ;;  %v9394_v63 = vadd.f32 %v20866_v13, %v9256_v21  ;;  %v9656_v50 = vadd.f32 %v9627_v29, %v9526_v36  ;;  %v9392_v22 = vadd.f32 %v20867_v18, %v9254_v30 }
 0x503   : > { %v13717_v27 = vpop.f32.mrf.mxu1  ;;  %v9529_v40 = vadd.f32 %v9510_v31, %v9391_v60 }
 0x504   : > { %v13702_v61 = vpop.f32.mrf.mxu0  ;;  %v9661_v33 = vadd.f32 %v13717_v27, %v9531_v34  ;;  %v19500_v47 = vpop.permute.xlu1 %10204 }
 0x505   : > { %v9640_v26 = vpop.f32.mrf.mxu1  ;;  %v9532_v19 = vadd.f32 %v13702_v61, %v9394_v63 }
 0x506   : > { %v9513_v35 = vpop.f32.mrf.mxu0  ;;  %v9659_v56 = vadd.f32 %v9640_v26, %v9529_v40  ;;  %v20868_v26 = vld [vmem:[#allocation43_spill] sm:$0xff] }
 0x507   : > { %v13718_v14 = vpop.f32.mrf.mxu1  ;;  %v9530_v39 = vadd.f32 %v9513_v35, %v9392_v22 }
 0x508   : > { %v13729_v53 = vpop.f32.mrf.mxu0  ;;  %v9662_v17 = vadd.f32 %v13718_v14, %v9532_v19 }
 0x509   : > { %v9795_v25 = vadd.f32 %v13729_v53, %v9657_v46  ;;  %v9643_v32 = vpop.f32.mrf.mxu1  ;;  %v9896_v53 = vmul.f32 %v19440_v49, %v9848_v62 }
 0x50a   : > { %v9762_v52 = vpop.f32.mrf.mxu0  ;;  %v9660_v37 = vadd.f32 %v9643_v32, %v9530_v39  ;;  %v14149_v32 = vld [vmem:[%s20020_s12 + $0x98] sm:$0xff]  }
 0x50b   : > { %v9810_v15 = vadd.f32 %v19447_v58, %v9795_v25  ;;  %v9793_v55 = vadd.f32 %v9762_v52, %v9655_v42  ;;  %v19502_v42 = vpop.permute.xlu0 %10199 }
 0x50c   : > { %v13730_v41 = vpop.f32.mrf.mxu0 }
 0x50d   : > { %v19457_v43 = vmax.f32 %v9810_v15, 0.0  ;;  %v9808_v54 = vadd.f32 %v19447_v58, %v9793_v55  ;;  %v9796_v8 = vadd.f32 %v13730_v41, %v9658_v24  ;;  %v14145_v24 = vld [vmem:[%s20020_s12 + $0xa8] sm:$0xff]  }
 0x50e   : > { %v9765_v6 = vpop.f32.mrf.mxu0 }
 0x50f   : > { %9826 = vst [vmem:[#allocation6 + $0x20] sm:$0xff] %v19457_v43  ;;  %v19462_v4 = vmax.f32 %v9808_v54, 0.0  ;;  %v9811_v7 = vadd.f32 %v19447_v58, %v9796_v8  ;;  %v9794_v1 = vadd.f32 %v9765_v6, %v9656_v50  ;;  %v14147_v54 = vld [vmem:[%s20020_s12 + $0xa0] sm:$0xff]   ;;  %v19541_v8 = vpop.permute.xlu1 %9883  ;;  %v19543_v18 = vpop.permute.xlu0 %9878 }
 0x510   : > { %v13733_v51 = vpop.f32.mrf.mxu0 }
 0x511   : > { %9824 = vst [vmem:[#allocation6 + $0x10] sm:$0xff] %v19462_v4  ;;  %v19468_v59 = vmax.f32 %v9811_v7, 0.0  ;;  %v9809_v29 = vadd.f32 %v19447_v58, %v9794_v1  ;;  %v9799_v12 = vadd.f32 %v13733_v51, %v9661_v33  ;;  %v9932_v31 = vpack.c.bf16 %v19462_v4, %v19471_v44  ;;  %v14144_v7 = vld [vmem:[%s20020_s12 + $0xf0] sm:$0xff]  }
 0x512   : > { %v9778_v5 = vpop.f32.mrf.mxu0 }
 0x513   : > { %9827 = vst [vmem:[#allocation6 + $0x28] sm:$0xff] %v19468_v59  ;;  %v19478_v9 = vmax.f32 %v9809_v29, 0.0  ;;  %v9814_v0 = vadd.f32 %v19447_v58, %v9799_v12  ;;  %v9797_v2 = vadd.f32 %v9778_v5, %v9659_v56  ;;  %13751 = vmatprep.mubr.bf16.mxu1 %v9932_v31  ;;  %v20869_v29 = vld [vmem:[#allocation22_spill] sm:$0xff]  ;;  %v14146_v31 = vld [vmem:[%s20020_s12 + $0xe8] sm:$0xff]   ;;  %v19569_v5 = vpop.permute.xlu0 %9888 }
 0x514   : > { %v13734_v3 = vpop.f32.mrf.mxu0 }
 0x515   : > { %9825 = vst [vmem:[#allocation6 + $0x18] sm:$0xff] %v19478_v9  ;;  %v19484_v27 = vmax.f32 %v9814_v0, 0.0  ;;  %v9812_v16 = vadd.f32 %v19447_v58, %v9797_v2  ;;  %v9800_v10 = vadd.f32 %v13734_v3, %v9662_v17  ;;  %v19489_v35 = vpack.c.bf16 %v19457_v43, %v19478_v9  ;;  %v19567_v17 = vpop.permute.xlu1 %9893 }
 0x516   : > { %v9781_v46 = vpop.f32.mrf.mxu0  ;;  %v10543_v40 = vpack.c.bf16 %v19478_v9, %v19462_v4  ;;  %v14162_v9 = vld [vmem:[%s20020_s12 + $0x168] sm:$0xff]  }
 0x517   : > { %9830 = vst [vmem:[#allocation6 + $0x40] sm:$0xff] %v19484_v27  ;;  %v19495_v23 = vmax.f32 %v9812_v16, 0.0  ;;  %v9815_v48 = vadd.f32 %v19447_v58, %v9800_v10  ;;  %v9798_v21 = vadd.f32 %v9781_v46, %v9660_v37  ;;  %13752 = vmatmul.mubr.bf16.vlgmr.msra.gmra.mxu1 %v19489_v35  ;;  %v14151_v16 = vld [vmem:[%s20020_s12 + $0x90] sm:$0xff]  }
 0x518   : > { %v9849_v36 = vld [vmem:[#allocation6 + $0xf] sm:$0xff]  ;;  %13784 = vmatpush3.bf16.msra.mxu1 %v20868_v26 }
 0x519   : > { %9828 = vst [vmem:[#allocation6 + $0x30] sm:$0xff] %v19495_v23  ;;  %v19506_v25 = vmax.f32 %v9815_v48, 0.0  ;;  %v9813_v60 = vadd.f32 %v19447_v58, %v9798_v21  ;;  %v9897_v30 = vmul.f32 %v19438_v38, %v9849_v36  ;;  %13785 = vmatprep.subr.bf16.mxu1 %v14143_v45  ;;  %v19512_v52 = vpack.c.bf16 %v19495_v23, %v19468_v59  ;;  %v10179_v55 = vld [vmem:[#allocation6 + $0x9] sm:$0xff]  ;;  %v14148_v48 = vld [vmem:[%s20020_s12 + $0xe0] sm:$0xff]  }
 0x51a   : > { %v19545_v22 = vld [vmem:[#allocation6 + $0x27] sm:$0xff]  ;;  %v10227_v19 = vmul.f32 %v19475_v20, %v10179_v55 }
 0x51b   : > { %9831 = vst [vmem:[#allocation6 + $0x48] sm:$0xff] %v19506_v25  ;;  %v19518_v34 = vmax.f32 %v9813_v60, 0.0  ;;  %v9904_v15 = vpack.c.bf16 %v9897_v30, %v9896_v53  ;;  %13755 = vmatprep.mubr.bf16.mxu1 %v19512_v52  ;;  %v9900_v39 = vmul.f32 %v19543_v18, %v19545_v22  ;;  %v19594_v21 = vmul.f32 %v19454_v11, %v19545_v22  ;;  %v14153_v26 = vld [vmem:[%s20020_s12 + $0x88] sm:$0xff]  }
 0x51c   : > { %v19521_v58 = vld [vmem:[#allocation6 + $0x17] sm:$0xff]  ;;  %v19523_v13 = vld [vmem:[#allocation6 + $0x1f] sm:$0xff]  ;;  %13786 = vmatpush3.bf16.msra.mxu1 %v14143_v45  ;;  %v10385_v45 = vmul.f32 %v19440_v49, %v9849_v36 }
 0x51d   : > { %v19525_v63 = vld [vmem:[#allocation6 + $0x11] sm:$0xff]  ;;  %9829 = vst [vmem:[#allocation6 + $0x38] sm:$0xff] %v19518_v34  ;;  %13775 = vmatprep.mubr.bf16.mxu0 %v9904_v15  ;;  %v9898_v41 = vmul.f32 %v19454_v11, %v19521_v58  ;;  %v9899_v50 = vmul.f32 %v19451_v57, %v19523_v13  ;;  %13787 = vmatprep.subr.bf16.mxu1 %v14145_v24  ;;  %v19599_v60 = vld [vmem:[#allocation6 + $0x19] sm:$0xff]  ;;  %v19601_v30 = vld [vmem:[#allocation6 + $0x21] sm:$0xff] }
 0x51e   : > { %v19536_v14 = vpack.c.bf16 %v19484_v27, %v19518_v34  ;;  %v10228_v6 = vmul.f32 %v19465_v28, %v19525_v63  ;;  %v10386_v37 = vmul.f32 %v19438_v38, %v19521_v58 }
 0x51f   : > { %v9905_v33 = vpack.c.bf16 %v9899_v50, %v9898_v41 }
 0x520   : > { %13756 = vmatmul.mubr.bf16.gmra.mxu1 %v19536_v14  ;;  %v19554_v1 = vld [vmem:[#allocation6 + $0x2f] sm:$0xff]  ;;  %v10235_v56 = vpack.c.bf16 %v10228_v6, %v10227_v19  ;;  %v10393_v53 = vpack.c.bf16 %v10386_v37, %v10385_v45  ;;  %v19621_v19 = vpop.permute.xlu0 %10209  ;;  %v14150_v6 = vld [vmem:[%s20020_s12 + $0xd8] sm:$0xff]   ;;  %v10229_v45 = vmul.f32 %v19502_v42, %v19599_v60 }
 0x521   : > { %13788 = vmatpush3.bf16.msra.mxu1 %v14145_v24  ;;  %13776 = vmatmul.mubr.bf16.vlgmr.msra.gmra.mxu0 %v9905_v33  ;;  %v9901_v51 = vmul.f32 %v19541_v8, %v19554_v1  ;;  %v19586_v10 = vmul.f32 %v19451_v57, %v19554_v1  ;;  %v19603_v36 = vld [vmem:[#allocation6 + $0x29] sm:$0xff]  ;;  %v19628_v33 = vmul.f32 %v19475_v20, %v19599_v60 }
 0x522   : > { %13789 = vmatprep.subr.bf16.mxu1 %v14147_v54  ;;  %13808 = vmatpush3.bf16.msra.mxu0 %v20869_v29  ;;  %v19615_v50 = vld [vmem:[#allocation6 + $0x41] sm:$0xff] }
 0x523   : > { %13799 = vmatprep.mubr.bf16.mxu1 %v10235_v56  ;;  %13809 = vmatprep.subr.bf16.mxu0 %v14144_v7  ;;  %v9906_v12 = vpack.c.bf16 %v9901_v51, %v9900_v39  ;;  %v19634_v56 = vpop.permute.xlu1 %10214  ;;  %v19640_v51 = vmul.f32 %v19502_v42, %v19603_v36  ;;  %v14156_v39 = vld [vmem:[%s20020_s12 + $0xc0] sm:$0xff]  }
 0x524   : > { %v19571_v0 = vld [vmem:[#allocation6 + $0x37] sm:$0xff]  ;;  %v19573_v2 = vld [vmem:[#allocation6 + $0x3f] sm:$0xff]  ;;  %v19657_v37 = vmul.f32 %v19634_v56, %v19615_v50  ;;  %v19686_v55 = vpop.permute.xlu0 %10219 }
 0x525   : > { %13790 = vmatpush3.bf16.msra.mxu1 %v14147_v54  ;;  %13779 = vmatprep.mubr.bf16.mxu0 %v9906_v12  ;;  %v9902_v3 = vmul.f32 %v19569_v5, %v19571_v0  ;;  %v9903_v62 = vmul.f32 %v19567_v17, %v19573_v2  ;;  %v19605_v24 = vld [vmem:[#allocation6 + $0x31] sm:$0xff]  ;;  %v19607_v15 = vld [vmem:[#allocation6 + $0x39] sm:$0xff]  ;;  %v19613_v41 = vmul.f32 %v19543_v18, %v19571_v0 }
 0x526   : > { %13791 = vmatprep.subr.bf16.mxu1 %v14149_v32  ;;  %13810 = vmatpush3.bf16.msra.mxu0 %v14144_v7  ;;  %v19619_v54 = vmul.f32 %v19541_v8, %v19573_v2  ;;  %v19632_v7 = vmul.f32 %v19465_v28, %v19601_v30  ;;  %v19648_v29 = vmul.f32 %v19621_v19, %v19607_v15  ;;  %v14155_v12 = vld [vmem:[%s20020_s12 + $0x80] sm:$0xff]  }
 0x527   : > { %13811 = vmatprep.subr.bf16.mxu0 %v14146_v31  ;;  %v9907_v46 = vpack.c.bf16 %v9903_v62, %v9902_v3  ;;  %v14152_v62 = vld [vmem:[%s20020_s12 + $0xd0] sm:$0xff]   ;;  %v10391_v4 = vmul.f32 %v19569_v5, %v19573_v2 }
 0x529   : > { %13792 = vmatpush3.bf16.msra.mxu1 %v14149_v32  ;;  %13780 = vmatmul.mubr.bf16.gmra.mxu0 %v9907_v46  ;;  %v19644_v32 = vmul.f32 %v19500_v47, %v19605_v24  ;;  %v14157_v46 = vld [vmem:[%s20020_s12 + $0x138] sm:$0xff]  }
 0x52a   : > { %13793 = vmatprep.subr.bf16.mxu1 %v14151_v16  ;;  %13812 = vmatpush3.bf16.msra.mxu0 %v14146_v31 }
 0x52b   : > { %13823 = vmatprep.mubr.bf16.mxu0 %v10393_v53  ;;  %13813 = vmatprep.subr.bf16.mxu0 %v14148_v48  ;;  %v14154_v53 = vld [vmem:[%s20020_s12 + $0xc8] sm:$0xff]  }
 0x52d   : > { %13794 = vmatpush3.bf16.msra.mxu1 %v14151_v16  ;;  %v10231_v16 = vmul.f32 %v19621_v19, %v19603_v36 }
 0x52e   : > { %13795 = vmatprep.subr.bf16.mxu1 %v14153_v26  ;;  %13814 = vmatpush3.bf16.msra.mxu0 %v14148_v48  ;;  %v10232_v48 = vmul.f32 %v19634_v56, %v19605_v24 }
 0x52f   : > { %13815 = vmatprep.subr.bf16.mxu0 %v14150_v6 }
 0x530   : > { %v10237_v31 = vpack.c.bf16 %v10232_v48, %v10231_v16  ;;  %v10387_v16 = vmul.f32 %v19454_v11, %v19523_v13  ;;  %v10388_v48 = vmul.f32 %v19451_v57, %v19545_v22  ;;  %v14163_v11 = vld [vmem:[%s20020_s12 + $0x120] sm:$0xff]   ;;  %v14165_v22 = vld [vmem:[%s20020_s12 + $0x118] sm:$0xff]  }
 0x531   : > { %13796 = vmatpush3.bf16.msra.mxu1 %v14153_v26  ;;  %v10230_v26 = vmul.f32 %v19500_v47, %v19601_v30 }
 0x532   : > { %13797 = vmatprep.subr.bf16.mxu1 %v14155_v12  ;;  %13816 = vmatpush3.bf16.msra.mxu0 %v14150_v6  ;;  %v14159_v6 = vld [vmem:[%s20020_s12 + $0x130] sm:$0xff]   ;;  %v10394_v61 = vpack.c.bf16 %v10388_v48, %v10387_v16  ;;  %v14177_v48 = vld [vmem:[%s20020_s12 + $0x1a8] sm:$0xff]  }
 0x533   : > { %13817 = vmatprep.subr.bf16.mxu0 %v14152_v62  ;;  %v10236_v3 = vpack.c.bf16 %v10230_v26, %v10229_v45  ;;  %v14161_v45 = vld [vmem:[%s20020_s12 + $0x128] sm:$0xff]   ;;  %v14175_v16 = vld [vmem:[%s20020_s12 + $0x1b0] sm:$0xff]  }
 0x535   : > { %13798 = vmatpush3.bf16.msra.mxu1 %v14155_v12  ;;  %v10233_v12 = vmul.f32 %v19686_v55, %v19607_v15 }
 0x536   : > { %13831 = vmatprep.subr.bf16.mxu1 %v14157_v46  ;;  %13818 = vmatpush3.bf16.msra.mxu0 %v14152_v62  ;;  %v19693_v62 = vpop.permute.xlu1 %10224 }
 0x537   : > { %13819 = vmatprep.subr.bf16.mxu0 %v14154_v53 }
 0x538   : > { %13800 = vmatmul.mubr.bf16.vlgmr.msra.gmra.mxu1 %v10236_v3  ;;  %v10234_v3 = vmul.f32 %v19693_v62, %v19615_v50 }
 0x539   : > { %13803 = vmatprep.mubr.bf16.mxu1 %v10237_v31  ;;  %13832 = vmatpush3.bf16.msra.mxu1 %v14157_v46  ;;  %v14158_v31 = vld [vmem:[%s20020_s12 + $0x178] sm:$0xff]   ;;  %v10390_v46 = vmul.f32 %v19541_v8, %v19571_v0  ;;  %v14160_v8 = vld [vmem:[%s20020_s12 + $0x170] sm:$0xff]  }
 0x53a   : > { %13833 = vmatprep.subr.bf16.mxu1 %v14159_v6  ;;  %13820 = vmatpush3.bf16.msra.mxu0 %v14154_v53  ;;  %v10238_v26 = vpack.c.bf16 %v10234_v3, %v10233_v12  ;;  %v10389_v53 = vmul.f32 %v19543_v18, %v19554_v1  ;;  %v19719_v18 = vld [vmem:[#allocation6 + $0x47] sm:$0xff]  ;;  %v14167_v0 = vld [vmem:[%s20020_s12 + $0x110] sm:$0xff]   ;;  %v14173_v12 = vld [vmem:[%s20020_s12 + $0x1b8] sm:$0xff]  }
 0x53b   : > { %13821 = vmatprep.subr.bf16.mxu0 %v14156_v39  ;;  %v10392_v1 = vmul.f32 %v19719_v18, %v19567_v17  ;;  %v14172_v3 = vld [vmem:[%s20020_s12 + $0x140] sm:$0xff]  }
 0x53c   : > { %v10395_v57 = vpack.c.bf16 %v10390_v46, %v10389_v53  ;;  %v20870_v46 = vpack.c.bf16 %v19468_v59, %v19457_v43  ;;  %v14174_v43 = vld [vmem:[%s20020_s12 + $0x1f8] sm:$0xff]   ;;  %v10697_v59 = vmul.f32 %v19621_v19, %v19605_v24  ;;  %v14178_v19 = vld [vmem:[%s20020_s12 + $0x1e8] sm:$0xff]  }
 0x53d   : > { %13834 = vmatpush3.bf16.msra.mxu1 %v14159_v6  ;;  %v10396_v2 = vpack.c.bf16 %v10392_v1, %v10391_v4  ;;  %v14168_v6 = vld [vmem:[%s20020_s12 + $0x150] sm:$0xff]   ;;  %v14188_v1 = vld [vmem:[%s20020_s12 + $0x1c0] sm:$0xff]  }
 0x53e   : > { %13835 = vmatprep.subr.bf16.mxu1 %v14161_v45  ;;  %13822 = vmatpush3.bf16.msra.mxu0 %v14156_v39  ;;  %v14164_v39 = vld [vmem:[%s20020_s12 + $0x160] sm:$0xff]   ;;  %v14184_v4 = vld [vmem:[%s20020_s12 + $0x1d0] sm:$0xff]  }
 0x53f   : > { %13855 = vmatprep.subr.bf16.mxu0 %v14158_v31 }
 0x540   : > { %13804 = vmatmul.mubr.bf16.gmra.mxu1 %v10238_v26  ;;  %v10696_v26 = vmul.f32 %v19500_v47, %v19603_v36  ;;  %v20871_v36 = vpack.c.bf16 %v19506_v25, %v19484_v27 }
 0x541   : > { %13836 = vmatpush3.bf16.msra.mxu1 %v14161_v45  ;;  %13847 = vmatprep.mubr.bf16.mxu1 %v10543_v40  ;;  %v10694_v40 = vmul.f32 %v19465_v28, %v19599_v60  ;;  %v14169_v28 = vld [vmem:[%s20020_s12 + $0x108] sm:$0xff]   ;;  %v14171_v60 = vld [vmem:[%s20020_s12 + $0x100] sm:$0xff]  }
 0x542   : > { %13824 = vmatmul.mubr.bf16.vlgmr.msra.gmra.mxu0 %v10394_v61  ;;  %13837 = vmatprep.subr.bf16.mxu1 %v14163_v11  ;;  %v10693_v61 = vmul.f32 %v19475_v20, %v19525_v63  ;;  %v14166_v63 = vld [vmem:[%s20020_s12 + $0x158] sm:$0xff]   ;;  %v14170_v45 = vld [vmem:[%s20020_s12 + $0x148] sm:$0xff]  }
 0x543   : > { %13827 = vmatprep.mubr.bf16.mxu0 %v10395_v57  ;;  %13856 = vmatpush3.bf16.msra.mxu0 %v14158_v31  ;;  %v10545_v31 = vpack.c.bf16 %v19518_v34, %v19495_v23  ;;  %v10851_v23 = vmul.f32 %v19440_v49, %v19521_v58  ;;  %v10852_v34 = vmul.f32 %v19438_v38, %v19523_v13  ;;  %v14179_v38 = vld [vmem:[%s20020_s12 + $0x1a0] sm:$0xff]   ;;  %v14176_v13 = vld [vmem:[%s20020_s12 + $0x1f0] sm:$0xff]   ;;  %v14182_v57 = vld [vmem:[%s20020_s12 + $0x1d8] sm:$0xff]  }
 0x544   : > { %13857 = vmatprep.subr.bf16.mxu0 %v14160_v8  ;;  %v10701_v20 = vpack.c.bf16 %v10694_v40, %v10693_v61  ;;  %v10695_v49 = vmul.f32 %v19502_v42, %v19601_v30  ;;  %v19794_v42 = vld [vmem:[#allocation6 + $0x49] sm:$0xff]  ;;  %v14181_v30 = vld [vmem:[%s20020_s12 + $0x198] sm:$0xff]  }
 0x545   : > { %13838 = vmatpush3.bf16.msra.mxu1 %v14163_v11  ;;  %v10698_v11 = vmul.f32 %v19634_v56, %v19607_v15  ;;  %v10859_v47 = vpack.c.bf16 %v10852_v34, %v10851_v23  ;;  %v10699_v15 = vmul.f32 %v19686_v55, %v19615_v50  ;;  %v10700_v27 = vmul.f32 %v19794_v42, %v19693_v62  ;;  %v14183_v56 = vld [vmem:[%s20020_s12 + $0x190] sm:$0xff]   ;;  %v14180_v50 = vld [vmem:[%s20020_s12 + $0x1e0] sm:$0xff]  }
 0x546   : > { %13839 = vmatprep.subr.bf16.mxu1 %v14165_v22  ;;  %v10702_v58 = vpack.c.bf16 %v10696_v26, %v10695_v49  ;;  %v14190_v61 = vld [vmem:[%s20020_s12 + $0x230] sm:$0xff]  }
 0x547   : > { %13858 = vmatpush3.bf16.msra.mxu0 %v14160_v8  ;;  %v10703_v24 = vpack.c.bf16 %v10698_v11, %v10697_v59  ;;  %v10704_v53 = vpack.c.bf16 %v10700_v27, %v10699_v15  ;;  %v14185_v8 = vld [vmem:[%s20020_s12 + $0x188] sm:$0xff]  }
 0x548   : > { %13859 = vmatprep.subr.bf16.mxu0 %v14162_v9  ;;  %v10850_v40 = vld [vmem:[#allocation6 + $0x4f] sm:$0xff] }
 0x549   : > { %13840 = vmatpush3.bf16.msra.mxu1 %v14165_v22  ;;  %v14187_v22 = vld [vmem:[%s20020_s12 + $0x180] sm:$0xff]  }
 0x54a   : > { %13828 = vmatmul.mubr.bf16.gmra.mxu0 %v10396_v2  ;;  %13841 = vmatprep.subr.bf16.mxu1 %v14167_v0  ;;  %v20873_v2 = vpack.c.bf16 %v19619_v54, %v19613_v41  ;;  %v14194_v41 = vld [vmem:[%s20020_s12 + $0x210] sm:$0xff]   ;;  %v11012_v54 = vpack.c.bf16 %v19471_v44, %v19506_v25  ;;  %v20876_v25 = vpack.c.bf16 %v19657_v37, %v19648_v29 }
 0x54b   : > { %13860 = vmatpush3.bf16.msra.mxu0 %v14162_v9  ;;  %13871 = vmatprep.mubr.bf16.mxu0 %v10701_v20  ;;  %v14186_v9 = vld [vmem:[%s20020_s12 + $0x1c8] sm:$0xff]   ;;  %v10858_v20 = vmul.f32 %v10850_v40, %v19567_v17  ;;  %v14193_v17 = vld [vmem:[%s20020_s12 + $0x218] sm:$0xff]  }
 0x54c   : > { %13861 = vmatprep.subr.bf16.mxu0 %v14164_v39  ;;  %v11158_v44 = vld [vmem:[#allocation6 + $0x51] sm:$0xff] }
 0x54d   : > { %13842 = vmatpush3.bf16.msra.mxu1 %v14167_v0  ;;  %v20872_v0 = vpack.c.bf16 %v19586_v10, %v19594_v21  ;;  %v14192_v21 = vld [vmem:[%s20020_s12 + $0x220] sm:$0xff]  }
 0x54e   : > { %13843 = vmatprep.subr.bf16.mxu1 %v14169_v28 }
 0x54f   : > { %13862 = vmatpush3.bf16.msra.mxu0 %v14164_v39  ;;  %v10857_v39 = vmul.f32 %v19719_v18, %v19569_v5  ;;  %v20874_v5 = vpack.c.bf16 %v19632_v7, %v19628_v33  ;;  %v20875_v33 = vpack.c.bf16 %v19644_v32, %v19640_v51  ;;  %v11165_v7 = vmul.f32 %v19794_v42, %v19686_v55 }
 0x550   : > { %13863 = vmatprep.subr.bf16.mxu0 %v14166_v63  ;;  %v11166_v18 = vmul.f32 %v11158_v44, %v19693_v62 }
 0x551   : > { %13844 = vmatpush3.bf16.msra.mxu1 %v14169_v28  ;;  %v14191_v28 = vld [vmem:[%s20020_s12 + $0x228] sm:$0xff]   ;;  %v10862_v10 = vpack.c.bf16 %v10858_v20, %v10857_v39 }
 0x552   : > { %13845 = vmatprep.subr.bf16.mxu1 %v14171_v60 }
 0x553   : > { %13864 = vmatpush3.bf16.msra.mxu0 %v14166_v63  ;;  %v11170_v63 = vpack.c.bf16 %v11166_v18, %v11165_v7 }
 0x554   : > { %13865 = vmatprep.subr.bf16.mxu0 %v14168_v6 }
 0x555   : > { %13846 = vmatpush3.bf16.msra.mxu1 %v14171_v60 }
 0x556   : > { %13879 = vmatprep.subr.bf16.mxu1 %v14173_v12 }
 0x557   : > { %13866 = vmatpush3.bf16.msra.mxu0 %v14168_v6 }
 0x558   : > { %13867 = vmatprep.subr.bf16.mxu0 %v14170_v45  ;;  %13848 = vmatmul.mubr.bf16.vlgmr.msra.gmra.mxu1 %v20870_v46 }
 0x559   : > { %13851 = vmatprep.mubr.bf16.mxu1 %v10545_v31  ;;  %13880 = vmatpush3.bf16.msra.mxu1 %v14173_v12 }
 0x55a   : > { %13881 = vmatprep.subr.bf16.mxu1 %v14175_v16 }
 0x55b   : > { %13868 = vmatpush3.bf16.msra.mxu0 %v14170_v45 }
 0x55c   : > { %13869 = vmatprep.subr.bf16.mxu0 %v14172_v3 }
 0x55d   : > { %13882 = vmatpush3.bf16.msra.mxu1 %v14175_v16 }
 0x55e   : > { %13883 = vmatprep.subr.bf16.mxu1 %v14177_v48 }
 0x55f   : > { %13870 = vmatpush3.bf16.msra.mxu0 %v14172_v3 }
 0x560   : > { %13903 = vmatprep.subr.bf16.mxu0 %v14174_v43  ;;  %13852 = vmatmul.mubr.bf16.gmra.mxu1 %v20871_v36 }
 0x561   : > { %13884 = vmatpush3.bf16.msra.mxu1 %v14177_v48  ;;  %13895 = vmatprep.mubr.bf16.mxu1 %v10859_v47 }
 0x562   : > { %13872 = vmatmul.mubr.bf16.vlgmr.msra.gmra.mxu0 %v10702_v58  ;;  %13885 = vmatprep.subr.bf16.mxu1 %v14179_v38 }
 0x563   : > { %13875 = vmatprep.mubr.bf16.mxu0 %v10703_v24  ;;  %13904 = vmatpush3.bf16.msra.mxu0 %v14174_v43 }
 0x564   : > { %13905 = vmatprep.subr.bf16.mxu0 %v14176_v13 }
 0x565   : > { %13886 = vmatpush3.bf16.msra.mxu1 %v14179_v38 }
 0x566   : > { %13887 = vmatprep.subr.bf16.mxu1 %v14181_v30 }
 0x567   : > { %13906 = vmatpush3.bf16.msra.mxu0 %v14176_v13 }
 0x568   : > { %13907 = vmatprep.subr.bf16.mxu0 %v14178_v19 }
 0x569   : > { %13888 = vmatpush3.bf16.msra.mxu1 %v14181_v30 }
 0x56a   : > { %13876 = vmatmul.mubr.bf16.gmra.mxu0 %v10704_v53  ;;  %13889 = vmatprep.subr.bf16.mxu1 %v14183_v56 }
 0x56b   : > { %13908 = vmatpush3.bf16.msra.mxu0 %v14178_v19  ;;  %13919 = vmatprep.mubr.bf16.mxu0 %v19489_v35  ;;  %v14189_v35 = vld [vmem:[%s20020_s12 + $0x238] sm:$0xff]  }
 0x56c   : > { %13909 = vmatprep.subr.bf16.mxu0 %v14180_v50 }
 0x56d   : > { %13890 = vmatpush3.bf16.msra.mxu1 %v14183_v56 }
 0x56e   : > { %13891 = vmatprep.subr.bf16.mxu1 %v14185_v8 }
 0x56f   : > { %13910 = vmatpush3.bf16.msra.mxu0 %v14180_v50 }
 0x570   : > { %13911 = vmatprep.subr.bf16.mxu0 %v14182_v57 }
 0x571   : > { %13892 = vmatpush3.bf16.msra.mxu1 %v14185_v8 }
 0x572   : > { %13893 = vmatprep.subr.bf16.mxu1 %v14187_v22 }
 0x573   : > { %13912 = vmatpush3.bf16.msra.mxu0 %v14182_v57 }
 0x574   : > { %13913 = vmatprep.subr.bf16.mxu0 %v14184_v4 }
 0x575   : > { %13894 = vmatpush3.bf16.msra.mxu1 %v14187_v22 }
 0x576   : > { %13927 = vmatprep.subr.bf16.mxu1 %v14189_v35 }
 0x577   : > { %13914 = vmatpush3.bf16.msra.mxu0 %v14184_v4 }
 0x578   : > { %13915 = vmatprep.subr.bf16.mxu0 %v14186_v9  ;;  %13896 = vmatmul.mubr.bf16.vlgmr.msra.gmra.mxu1 %v20872_v0 }
 0x579   : > { %13899 = vmatprep.mubr.bf16.mxu1 %v20873_v2  ;;  %13928 = vmatpush3.bf16.msra.mxu1 %v14189_v35 }
 0x57a   : > { %13929 = vmatprep.subr.bf16.mxu1 %v14190_v61 }
 0x57b   : > { %13916 = vmatpush3.bf16.msra.mxu0 %v14186_v9 }
 0x57c   : > { %13917 = vmatprep.subr.bf16.mxu0 %v14188_v1 }
 0x57d   : > { %13930 = vmatpush3.bf16.msra.mxu1 %v14190_v61 }
 0x57e   : > { %13931 = vmatprep.subr.bf16.mxu1 %v14191_v28 }
 0x57f   : > { %13918 = vmatpush3.bf16.msra.mxu0 %v14188_v1 }
 0x580   : > { %13900 = vmatmul.mubr.bf16.gmra.mxu1 %v10862_v10 }
 0x581   : > { %13932 = vmatpush3.bf16.msra.mxu1 %v14191_v28  ;;  %13943 = vmatprep.mubr.bf16.mxu1 %v20874_v5 }
 0x582   : > { %13920 = vmatmul.mubr.bf16.vlgmr.msra.gmra.mxu0 %v19512_v52  ;;  %13933 = vmatprep.subr.bf16.mxu1 %v14192_v21  ;;  %v14195_v52 = vld [vmem:[%s20020_s12 + $0x208] sm:$0xff]  }
 0x583   : > { %13923 = vmatprep.mubr.bf16.mxu0 %v19536_v14  ;;  %v14196_v14 = vld [vmem:[%s20020_s12 + $0x200] sm:$0xff]  }
 0x585   : > { %13934 = vmatpush3.bf16.msra.mxu1 %v14192_v21 }
 0x586   : > { %13935 = vmatprep.subr.bf16.mxu1 %v14193_v17 }
 0x589   : > { %13936 = vmatpush3.bf16.msra.mxu1 %v14193_v17 }
 0x58a   : > { %13924 = vmatmul.mubr.bf16.gmra.mxu0 %v11012_v54  ;;  %13937 = vmatprep.subr.bf16.mxu1 %v14194_v41 }
 0x58d   : > { %13938 = vmatpush3.bf16.msra.mxu1 %v14194_v41 }
 0x58e   : > { %13939 = vmatprep.subr.bf16.mxu1 %v14195_v52 }
 0x591   : > { %13940 = vmatpush3.bf16.msra.mxu1 %v14195_v52 }
 0x592   : > { %13941 = vmatprep.subr.bf16.mxu1 %v14196_v14 }
 0x595   : > { %13942 = vmatpush3.bf16.msra.mxu1 %v14196_v14 }
 0x598   : > { %13944 = vmatmul.mubr.bf16.vlgmr.msra.gmra.mxu1 %v20875_v33 }
 0x599   : > { %13947 = vmatprep.mubr.bf16.mxu1 %v20876_v25 }
 0x5a0   : > { %13948 = vmatmul.mubr.bf16.gmra.mxu1 %v11170_v63 }
 0x5d7   : > { %v13753_v60 = vpop.f32.mrf.mxu1 }
 0x5d9   : > { %v10035_v6 = vpop.f32.mrf.mxu1 }
 0x5db   : > { %v13754_v12 = vpop.f32.mrf.mxu1 }
 0x5dd   : > { %v10038_v16 = vpop.f32.mrf.mxu1 }
 0x5e0   : > { %v13757_v51 = vpop.f32.mrf.mxu1 }
 0x5e1   : > { %v13777_v45 = vpop.f32.mrf.mxu0 }
 0x5e2   : > { %v19880_v3 = vpop.f32.mrf.mxu1  ;;  %v10157_v54 = vadd.f32 %v13777_v45, %v13753_v60 }
 0x5e3   : > { %v10148_v31 = vpop.f32.mrf.mxu0 }
 0x5e4   : > { %v19882_v29 = vpop.f32.mrf.mxu1  ;;  %v10149_v52 = vadd.f32 %v10148_v31, %v10035_v6 }
 0x5e5   : > { %v13778_v32 = vpop.f32.mrf.mxu0 }
 0x5e6   : > { %v19884_v48 = vpop.f32.mrf.mxu1  ;;  %v10160_v25 = vadd.f32 %v13778_v32, %v13754_v12 }
 0x5e7   : > { %v10151_v46 = vpop.f32.mrf.mxu0 }
 0x5e8   : > { %v10152_v63 = vadd.f32 %v10151_v46, %v10038_v16 }
 0x5e9   : > { %v13781_v37 = vpop.f32.mrf.mxu0 }
 0x5eb   : > { %v10164_v62 = vpop.f32.mrf.mxu0 }
 0x5ec   : > { %v10165_v45 = vadd.f32 %v10164_v62, %v19880_v3 }
 0x5ed   : > { %v19886_v34 = vpop.f32.mrf.mxu0 }
 0x5ee   : > { %v10176_v16 = vadd.f32 %v19886_v34, %v19882_v29  ;;  %v19924_v29 = vld [vmem:[%s20021_s13] ss:$0 sm:$0xff] }
 0x5ef   : > { %v19888_v43 = vpop.f32.mrf.mxu0 }
 0x5f0   : > { %v10168_v3 = vadd.f32 %v19888_v43, %v19884_v48 }
 0x5f8   : > { %v13801_v55 = vpop.f32.mrf.mxu1 }
 0x5f9   : > { %v10371_v14 = vadd.f32 %v13801_v55, %v10157_v54 }
 0x5fa   : > { %v10338_v23 = vpop.f32.mrf.mxu1 }
 0x5fb   : > { %v10369_v7 = vadd.f32 %v10338_v23, %v10149_v52 }
 0x5fc   : > { %v13802_v26 = vpop.f32.mrf.mxu1 }
 0x5fe   : > { %v10341_v11 = vpop.f32.mrf.mxu1 }
 0x600   : > { %v13805_v38 = vpop.f32.mrf.mxu1 }
 0x602   : > { %v13825_v59 = vpop.f32.mrf.mxu0  ;;  %v10354_v58 = vpop.f32.mrf.mxu1 }
 0x603   : > { %v10529_v18 = vadd.f32 %v13825_v59, %v10371_v14  ;;  %v10373_v46 = vadd.f32 %v10354_v58, %v10165_v45 }
 0x604   : > { %v10496_v49 = vpop.f32.mrf.mxu0  ;;  %v19890_v36 = vpop.f32.mrf.mxu1 }
 0x605   : > { %v10376_v62 = vadd.f32 %v19890_v36, %v10176_v16 }
 0x606   : > { %v13826_v47 = vpop.f32.mrf.mxu0  ;;  %v19892_v42 = vpop.f32.mrf.mxu1 }
 0x608   : > { %v10499_v13 = vpop.f32.mrf.mxu0 }
 0x60a   : > { %v13829_v24 = vpop.f32.mrf.mxu0 }
 0x60c   : > { %v10512_v15 = vpop.f32.mrf.mxu0 }
 0x60e   : > { %v19894_v19 = vpop.f32.mrf.mxu0 }
 0x60f   : > { %20877 = vst [vmem:[#allocation55_spill] sm:$0xff] %v19894_v19 }
 0x610   : > { %v19896_v53 = vpop.f32.mrf.mxu0 }
 0x611   : > { %20878 = vst [vmem:[#allocation54_spill] sm:$0xff] %v19896_v53 }
 0x618   : > { %v13849_v30 = vpop.f32.mrf.mxu1 }
 0x61a   : > { %v10646_v27 = vpop.f32.mrf.mxu1 }
 0x61c   : > { %v13850_v56 = vpop.f32.mrf.mxu1 }
 0x61e   : > { %v10649_v8 = vpop.f32.mrf.mxu1 }
 0x620   : > { %v13853_v22 = vpop.f32.mrf.mxu1 }
 0x622   : > { %v13873_v50 = vpop.f32.mrf.mxu0  ;;  %v19898_v35 = vpop.f32.mrf.mxu1 }
 0x623   : > { %20879 = vst [vmem:[#allocation17_spill] sm:$0xff] %v19898_v35  ;;  %v10370_v35 = vadd.f32 %v10341_v11, %v10152_v63 }
 0x624   : > { %v10804_v57 = vpop.f32.mrf.mxu0  ;;  %v19900_v61 = vpop.f32.mrf.mxu1 }
 0x625   : > { %20880 = vst [vmem:[#allocation24_spill] sm:$0xff] %v19900_v61  ;;  %v10173_v61 = vadd.f32 %v13781_v37, %v13757_v51  ;;  %v10528_v55 = vadd.f32 %v10499_v13, %v10370_v35 }
 0x626   : > { %v13874_v4 = vpop.f32.mrf.mxu0  ;;  %v19902_v1 = vpop.f32.mrf.mxu1 }
 0x627   : > { %20881 = vst [vmem:[#allocation35_spill] sm:$0xff] %v19902_v1  ;;  %v10372_v1 = vadd.f32 %v13802_v26, %v10160_v25  ;;  %v10375_v31 = vadd.f32 %v13805_v38, %v10173_v61  ;;  %v10678_v59 = vadd.f32 %v10649_v8, %v10528_v55  ;;  %v10531_v38 = vadd.f32 %v10512_v15, %v10373_v46 }
 0x628   : > { %v10807_v9 = vpop.f32.mrf.mxu0 }
 0x629   : > { %v10530_v19 = vadd.f32 %v13826_v47, %v10372_v1  ;;  %v10533_v51 = vadd.f32 %v13829_v24, %v10375_v31  ;;  %v10836_v34 = vadd.f32 %v10807_v9, %v10678_v59  ;;  %v20887_v9 = vld [vmem:[#allocation54_spill] sm:$0xff] }
 0x62a   : > { %v13877_v40 = vpop.f32.mrf.mxu0  ;;  %v20886_v43 = vld [vmem:[#allocation17_spill] sm:$0xff] }
 0x62b   : > { %v10680_v12 = vadd.f32 %v13850_v56, %v10530_v19  ;;  %v10683_v13 = vadd.f32 %v13853_v22, %v10533_v51  ;;  %v10374_v19 = vadd.f32 %v19892_v42, %v10168_v3  ;;  %v20885_v56 = vld [vmem:[#allocation55_spill] sm:$0xff]  ;;  %v10681_v36 = vadd.f32 %v20886_v43, %v10531_v38 }
 0x62c   : > { %v19904_v2 = vpop.f32.mrf.mxu0  ;;  %v10534_v48 = vadd.f32 %v20885_v56, %v10376_v62  ;;  %v20888_v1 = vld [vmem:[#allocation24_spill] sm:$0xff] }
 0x62d   : > { %20882 = vst [vmem:[#allocation31_spill] sm:$0xff] %v19904_v2  ;;  %v10527_v2 = vadd.f32 %v10496_v49, %v10369_v7  ;;  %v10838_v11 = vadd.f32 %v13874_v4, %v10680_v12  ;;  %v10841_v15 = vadd.f32 %v13877_v40, %v10683_v13  ;;  %v10532_v61 = vadd.f32 %v20887_v9, %v10374_v19 }
 0x62e   : > { %v19906_v20 = vpop.f32.mrf.mxu0  ;;  %v20890_v54 = vld [vmem:[#allocation35_spill] sm:$0xff] }
 0x62f   : > { %20883 = vst [vmem:[#allocation16_spill] sm:$0xff] %v19906_v20  ;;  %v10679_v20 = vadd.f32 %v13849_v30, %v10529_v18  ;;  %v10677_v60 = vadd.f32 %v10646_v27, %v10527_v2  ;;  %v10682_v52 = vadd.f32 %v20890_v54, %v10532_v61 }
 0x630   : > { %v19908_v10 = vpop.f32.mrf.mxu0 }
 0x631   : > { %20884 = vst [vmem:[#allocation27_spill] sm:$0xff] %v19908_v10  ;;  %v10837_v6 = vadd.f32 %v13873_v50, %v10679_v20  ;;  %v10835_v32 = vadd.f32 %v10804_v57, %v10677_v60 }
 0x634   : > { %v20889_v2 = vld [vmem:[#allocation31_spill] sm:$0xff] }
 0x638   : > { %v13897_v0 = vpop.f32.mrf.mxu1  ;;  %v20892_v60 = vld [vmem:[#allocation27_spill] sm:$0xff] }
 0x639   : > { %v10995_v23 = vadd.f32 %v13897_v0, %v10837_v6  ;;  %v10684_v0 = vadd.f32 %v20888_v1, %v10534_v48  ;;  %v10840_v6 = vadd.f32 %v20892_v60, %v10682_v52 }
 0x63a   : > { %v10962_v39 = vpop.f32.mrf.mxu1 }
 0x63b   : > { %v10993_v49 = vadd.f32 %v10962_v39, %v10835_v32  ;;  %v10839_v39 = vadd.f32 %v20889_v2, %v10681_v36 }
 0x63c   : > { %v13898_v28 = vpop.f32.mrf.mxu1 }
 0x63d   : > { %v10996_v58 = vadd.f32 %v13898_v28, %v10838_v11 }
 0x63e   : > { %v10965_v5 = vpop.f32.mrf.mxu1 }
 0x63f   : > { %v10994_v57 = vadd.f32 %v10965_v5, %v10836_v34  ;;  %v20891_v5 = vld [vmem:[#allocation16_spill] sm:$0xff] }
 0x640   : > { %v13901_v41 = vpop.f32.mrf.mxu1  ;;  %v10842_v14 = vadd.f32 %v20891_v5, %v10684_v0 }
 0x641   : > { %v10999_v20 = vadd.f32 %v13901_v41, %v10841_v15 }
 0x642   : > { %v13921_v21 = vpop.f32.mrf.mxu0  ;;  %v19910_v44 = vpop.f32.mrf.mxu1 }
 0x643   : > { %v11145_v47 = vadd.f32 %v13921_v21, %v10995_v23 }
 0x644   : > { %v11112_v17 = vpop.f32.mrf.mxu0  ;;  %v19912_v10 = vpop.f32.mrf.mxu1 }
 0x645   : > { %v11143_v24 = vadd.f32 %v11112_v17, %v10993_v49  ;;  %v11000_v45 = vadd.f32 %v19912_v10, %v10842_v14 }
 0x646   : > { %v13922_v33 = vpop.f32.mrf.mxu0  ;;  %v10981_v26 = vpop.f32.mrf.mxu1 }
 0x647   : > { %v11146_v22 = vadd.f32 %v13922_v33, %v10996_v58  ;;  %v10997_v33 = vadd.f32 %v19910_v44, %v10839_v39  ;;  %v10998_v23 = vadd.f32 %v10981_v26, %v10840_v6 }
 0x648   : > { %v11115_v53 = vpop.f32.mrf.mxu0 }
 0x649   : > { %v11144_v28 = vadd.f32 %v11115_v53, %v10994_v57 }
 0x64a   : > { %v13925_v37 = vpop.f32.mrf.mxu0 }
 0x64b   : > { %v11149_v18 = vadd.f32 %v13925_v37, %v10999_v20 }
 0x64c   : > { %v11128_v50 = vpop.f32.mrf.mxu0 }
 0x64d   : > { %v11147_v44 = vadd.f32 %v11128_v50, %v10997_v33 }
 0x64e   : > { %v13926_v25 = vpop.f32.mrf.mxu0 }
 0x64f   : > { %v11150_v51 = vadd.f32 %v13926_v25, %v11000_v45 }
 0x650   : > { %v11131_v16 = vpop.f32.mrf.mxu0 }
 0x651   : > { %v11148_v49 = vadd.f32 %v11131_v16, %v10998_v23 }
 0x658   : > { %v13945_v30 = vpop.f32.mrf.mxu1 }
 0x659   : > { %v11303_v27 = vadd.f32 %v13945_v30, %v11145_v47 }
 0x65a   : > { %v11270_v8 = vpop.f32.mrf.mxu1 }
 0x65b   : > { %v11318_v4 = vadd.f32 %v19924_v29, %v11303_v27  ;;  %v11301_v35 = vadd.f32 %v11270_v8, %v11143_v24 }
 0x65c   : > { %v13946_v42 = vpop.f32.mrf.mxu1 }
 0x65d   : > { %v11326_v21 = vmax.f32 %v11318_v4, 0.0  ;;  %v11316_v17 = vadd.f32 %v19924_v29, %v11301_v35  ;;  %v11304_v40 = vadd.f32 %v13946_v42, %v11146_v22 }
 0x65e   : > { %v11273_v7 = vpop.f32.mrf.mxu1 }
 0x65f   : > { %11334 = vst [vmem:[%s19939_s15 + $0x10] sm:$0xff] %v11326_v21  ;;  %v11324_v53 = vmax.f32 %v11316_v17, 0.0  ;;  %v11319_v41 = vadd.f32 %v19924_v29, %v11304_v40  ;;  %v11302_v63 = vadd.f32 %v11273_v7, %v11144_v28 }
 0x660   : > { %v13949_v31 = vpop.f32.mrf.mxu1 }
 0x661   : > { %11332 = vst [vmem:[%s19939_s15] sm:$0xff] %v11324_v53  ;;  %v11327_v55 = vmax.f32 %v11319_v41, 0.0  ;;  %v11317_v12 = vadd.f32 %v19924_v29, %v11302_v63  ;;  %v11307_v32 = vadd.f32 %v13949_v31, %v11149_v18 }
 0x662   : > { %v11286_v46 = vpop.f32.mrf.mxu1 }
 0x663   : > { %11335 = vst [vmem:[%s19939_s15 + $0x18] sm:$0xff] %v11327_v55  ;;  %v11325_v37 = vmax.f32 %v11317_v12, 0.0  ;;  %v11322_v10 = vadd.f32 %v19924_v29, %v11307_v32  ;;  %v11305_v59 = vadd.f32 %v11286_v46, %v11147_v44 }
 0x664   : > { %v13950_v11 = vpop.f32.mrf.mxu1 }
 0x665   : > { %11333 = vst [vmem:[%s19939_s15 + $0x8] sm:$0xff] %v11325_v37  ;;  %v11330_v47 = vmax.f32 %v11322_v10, 0.0  ;;  %v11320_v3 = vadd.f32 %v19924_v29, %v11305_v59  ;;  %v11308_v26 = vadd.f32 %v13950_v11, %v11150_v51 }
 0x666   : > { %v11289_v62 = vpop.f32.mrf.mxu1 }
 0x667   : > { %11338 = vst [vmem:[%s19939_s15 + $0x30] sm:$0xff] %v11330_v47  ;;  %v11328_v38 = vmax.f32 %v11320_v3, 0.0  ;;  %v11323_v13 = vadd.f32 %v19924_v29, %v11308_v26  ;;  %v11306_v30 = vadd.f32 %v11289_v62, %v11148_v49 }
 0x669   : > { %11336 = vst [vmem:[%s19939_s15 + $0x20] sm:$0xff] %v11328_v38  ;;  %v11331_v34 = vmax.f32 %v11323_v13, 0.0  ;;  %v11321_v58 = vadd.f32 %v19924_v29, %v11306_v30 }
 0x66b   : > { %11339 = vst [vmem:[%s19939_s15 + $0x38] sm:$0xff] %v11331_v34  ;;  %v11329_v24 = vmax.f32 %v11321_v58, 0.0 }
 0x66d   : > { %11337 = vst [vmem:[%s19939_s15 + $0x28] sm:$0xff] %v11329_v24 }
 0x66e   : > { %14232 = shalt.err (!%p14229_p3)
}
 0x66f   : > { %s14233_s19 = scalar_lea.hbm %s19960_s25, 1024  ;;  %s14237_s21 = scalar_lea.hbm %s20022_s14, 2048 }
 0x670   : > { %p14234_p4 = scmp.ne.s32.totalorder %s19960_s25, %s14233_s19  ;;  %p14238_p9 = scmp.lt.s32.totalorder %s19960_s25, %s20022_s14 }
 0x671   : > { %p14239_p10 = scmp.lt.s32.totalorder %s14237_s21, %s14233_s19 }
 0x672   : > { %p14235_p7 = pnand %p14234_p4, %p14399_p5 }
 0x673   : > { %p14240_p11 = por %p14239_p10, %p14238_p9 }
 0x674   : > { %p14236_p8 = pneg %p14235_p7 }
 0x676   : > { %p14241_p12 = pnand %p14240_p11, %p14236_p8 }
 0x678   : > { %14244 = shalt.err (!%p14241_p12)
}
 0x679   : > { %s14284_s22 = smov 128   ;;  %s14285_s26 = smov 8  }
 0x67a   : > { %13972 = dma.vmem_to_hbm [thread:$0]  (%p14399_p5), %s19962_s20, 1024, %s19960_s25, %s19968_s17, %s14284_s22, %s14284_s22, %s14285_s26  }
 0x67b PF: > { %p13978_p13 = scmp.ge.s32.totalorder %s14279_s16, 2  ;;  %s11369_s15 = sand.u32 1, %s14267_s29  }
 0x67c   : > { %s11370_s19 = scalar_lea.sflag [#allocation8], %s11369_s15 }
 0x67d   : > { %p13975_p0 = pnand %p13978_p13, %p14403_p6 }
 0x67f   : > { %p13976_p1 = pneg %p13975_p0 }
 0x681   : > { %14262 = dma.done.wait (%p13976_p1), %s11370_s19, 1024  }
 0x682   : > { %14264 = vsyncadd (%p13976_p1), %s11370_s19, 4294966272  ;;  %s20894_s16 = sld [smem:[#allocation11_spill]]  ;;  %s20897_s29 = smov %s14271_s30 }
 0x683   : > { %s20895_s18 = sld [smem:[#allocation10_spill]] }
 0x684   : > { %s20896_s15 = sld [smem:[#allocation12_spill]] }
 0x688   : > { %p24_p2 = scmp.ge.s32.totalorder %s20894_s16, 4  }
 0x689   : > { %s20898_s30 = smov %s20895_s18 }
 0x68a   :  { %26 = sbr.rel (!%p24_p2) target bundleno = 3 (0x3), region = 174 }
 0x68f   :  { %11375 = vsyncpa [#allocation8], 1 }
 0x690   :  { %11377 = vsyncpa [#allocation8 + $0x1], 1 }

</bundles_post_ra>
